<compile_context>
chip_gen: v6e
topology: v6e:2x2x1
jax: 0.10.0
libtpu: 0.0.40
codegen_flags: <defaults>
</compile_context>

<pallas_src>
import functools

import jax
import jax.numpy as jnp
from jax.experimental import pallas as pl
from jax.experimental.pallas import tpu as pltpu


# ----------------------------------------------------------------------------
# Kernel 1: fused conv trunk (conv1 s4 + conv2 s2 + conv3 s1, each with ReLU)
# ----------------------------------------------------------------------------
def _conv_trunk_kernel(p1_ref, w1_ref, b1_ref, w2_ref, b2_ref, w3_ref, b3_ref,
                       out_ref):
    batch = out_ref.shape[0]

    # conv1 (8x8 stride 4) as ONE super-patch matmul.  Output rows are the
    # (b, hh, ww) 10x10 coarse grid, 128 lanes = (oh%2, ow%2, c) space-to-depth.
    s2d1 = jnp.dot(p1_ref[...], w1_ref[...], preferred_element_type=jnp.float32)
    s2d1 = jnp.maximum(s2d1 + b1_ref[...], 0.0).astype(jnp.bfloat16)

    for b in range(batch):
        # conv2: 4x4 stride 2 == 2x2 stride 1 on the space-to-depth grid.
        # Kept on a 10-pitch strip: local row = oh2*10 + ow2 (89 rows).
        acc2 = None
        for g in range(4):
            a, c = g // 2, g % 2
            start = b * 100 + a * 10 + c
            part = jnp.dot(s2d1[start:start + 89, :], w2_ref[g],
                           preferred_element_type=jnp.float32)
            acc2 = part if acc2 is None else acc2 + part
        act2 = jnp.maximum(acc2 + b2_ref[...], 0.0).astype(jnp.bfloat16)

        # conv3: 3x3 stride 1 on the 9x9 valid region of the strip.
        # Output strip: local row = oh3*10 + ow3 (67 rows).
        acc3 = None
        for g in range(9):
            kh, kw = g // 3, g % 3
            start = kh * 10 + kw
            part = jnp.dot(act2[start:start + 67, :], w3_ref[g],
                           preferred_element_type=jnp.float32)
            acc3 = part if acc3 is None else acc3 + part
        act3 = jnp.maximum(acc3 + b3_ref[...], 0.0).astype(out_ref.dtype)

        # Scatter the 7x7 valid rows into the (B, 7, 7, 64) output.
        for oh in range(7):
            out_ref[b, oh] = act3[oh * 10:oh * 10 + 7, :]


def conv_trunk(p1, w1s, b1r, w2g, b2r, w3g, b3r, batch):
    k = p1.shape[1]
    return pl.pallas_call(
        _conv_trunk_kernel,
        out_shape=jax.ShapeDtypeStruct((batch, 7, 7, 64), jnp.bfloat16),
        grid=(1,),
        in_specs=[
            pl.BlockSpec((batch * 100, k), lambda i: (0, 0)),
            pl.BlockSpec((k, 128), lambda i: (0, 0)),
            pl.BlockSpec((1, 128), lambda i: (0, 0)),
            pl.BlockSpec((4, 128, 64), lambda i: (0, 0, 0)),
            pl.BlockSpec((1, 64), lambda i: (0, 0)),
            pl.BlockSpec((9, 64, 64), lambda i: (0, 0, 0)),
            pl.BlockSpec((1, 64), lambda i: (0, 0)),
        ],
        out_specs=pl.BlockSpec((batch, 7, 7, 64), lambda i: (0, 0, 0, 0)),
        compiler_params=pltpu.CompilerParams(
            dimension_semantics=("arbitrary",)),
    )(p1, w1s, b1r, w2g, b2r, w3g, b3r)


# ----------------------------------------------------------------------------
# Kernel 2: fused Linear(3136, 512) + ReLU + Linear(512, out) (lane-dense out)
# ----------------------------------------------------------------------------
def _mlp_kernel(x_ref, w4_ref, b4_ref, w5_ref, b5_ref, o_ref):
    h = jnp.dot(x_ref[...], w4_ref[...], preferred_element_type=jnp.float32)
    h = jnp.maximum(h + b4_ref[...], 0.0).astype(jnp.bfloat16)
    q = jnp.dot(h, w5_ref[...], preferred_element_type=jnp.float32)
    o_ref[...] = q + b5_ref[...]


def mlp_head(flat, w4, b4, w5pad, b5pad):
    batch, k = flat.shape
    n1 = w4.shape[1]
    n2 = w5pad.shape[1]
    return pl.pallas_call(
        _mlp_kernel,
        out_shape=jax.ShapeDtypeStruct((batch, n2), jnp.float32),
        grid=(1,),
        in_specs=[
            pl.BlockSpec((batch, k), lambda i: (0, 0)),
            pl.BlockSpec((k, n1), lambda i: (0, 0)),
            pl.BlockSpec((1, n1), lambda i: (0, 0)),
            pl.BlockSpec((n1, n2), lambda i: (0, 0)),
            pl.BlockSpec((1, n2), lambda i: (0, 0)),
        ],
        out_specs=pl.BlockSpec((batch, n2), lambda i: (0, 0)),
        compiler_params=pltpu.CompilerParams(
            dimension_semantics=("arbitrary",)),
    )(flat, w4, b4, w5pad, b5pad)


# ----------------------------------------------------------------------------
# Parameters: PyTorch-layout init, then a ONE-TIME re-layout to kernel form
# ----------------------------------------------------------------------------
def init_params(key, in_channels, output_dim):
    ks = jax.random.split(key, 10)

    def uinit(k, shape, fan_in):
        bound = 1.0 / float(fan_in) ** 0.5
        return jax.random.uniform(k, shape, jnp.float32, -bound, bound)

    p = {}
    p["w1"] = uinit(ks[0], (32, in_channels, 8, 8), in_channels * 8 * 8)
    p["b1"] = uinit(ks[1], (32,), in_channels * 8 * 8)
    p["w2"] = uinit(ks[2], (64, 32, 4, 4), 32 * 4 * 4)
    p["b2"] = uinit(ks[3], (64,), 32 * 4 * 4)
    p["w3"] = uinit(ks[4], (64, 64, 3, 3), 64 * 3 * 3)
    p["b3"] = uinit(ks[5], (64,), 64 * 3 * 3)
    p["w4"] = uinit(ks[6], (512, 3136), 3136)       # Linear(3136, 512), (out, in)
    p["b4"] = uinit(ks[7], (512,), 3136)
    p["w5"] = uinit(ks[8], (output_dim, 512), 512)  # Linear(512, output_dim)
    p["b5"] = uinit(ks[9], (output_dim,), 512)
    return p


def prepare_params(p, in_channels, output_dim):
    """One-time re-layout: bf16 weights, pre-transposed / space-to-depth form."""
    c = in_channels
    wdt = jnp.bfloat16

    # conv1 -> "super-patch" weight: a 12x12xC block (stride-8 grid) maps to
    # 4 space-to-depth phases x 32 channels = 128 lane-dense outputs.
    w1p = jnp.transpose(p["w1"], (2, 3, 1, 0))               # (8, 8, C, 32)
    sup = jnp.zeros((12, 12, c, 2, 2, 32), jnp.float32)
    for rh in range(2):
        for rw in range(2):
            sup = sup.at[4 * rh:4 * rh + 8,
                         4 * rw:4 * rw + 8, :, rh, rw, :].set(w1p)
    w1s = sup.reshape(144 * c, 128).astype(wdt)
    b1r = jnp.tile(p["b1"], 4).reshape(1, 128).astype(jnp.float32)

    # conv2 (4x4 s2) -> four 2x2-stride-1 taps over the space-to-depth lanes.
    w2p = jnp.transpose(p["w2"], (2, 3, 1, 0))               # (4, 4, 32, 64)
    w2p = w2p.reshape(2, 2, 2, 2, 32, 64)                    # (a, rh, c2, rw, ci, co)
    w2g = jnp.transpose(w2p, (0, 2, 1, 3, 4, 5)).reshape(4, 128, 64).astype(wdt)
    b2r = p["b2"].reshape(1, 64).astype(jnp.float32)

    # conv3 (3x3 s1): one (64, 64) matrix per tap.
    w3g = jnp.transpose(p["w3"], (2, 3, 1, 0)).reshape(9, 64, 64).astype(wdt)
    b3r = p["b3"].reshape(1, 64).astype(jnp.float32)

    # fc1: permute rows once so our channels-last (oh, ow, c) flatten matches
    # PyTorch's NCHW flatten; store as (in, out).
    w4p = p["w4"].reshape(512, 64, 7, 7).transpose(2, 3, 1, 0).reshape(3136, 512)
    b4r = p["b4"].reshape(1, 512).astype(jnp.float32)

    # fc2: (in, out), zero-padded to a lane-dense (multiple of 128) output.
    n2 = ((output_dim + 127) // 128) * 128
    w5p = jnp.zeros((512, n2), jnp.float32).at[:, :output_dim].set(p["w5"].T)
    b5p = jnp.zeros((1, n2), jnp.float32).at[0, :output_dim].set(p["b5"])

    return {"w1s": w1s, "b1r": b1r, "w2g": w2g, "b2r": b2r,
            "w3g": w3g, "b3r": b3r, "w4p": w4p.astype(wdt), "b4r": b4r,
            "w5p": w5p.astype(wdt), "b5p": b5p}


# ----------------------------------------------------------------------------
# Forward pass (== DQN.forward / self.online); requires 84x84 spatial input
# (hard-coded by Linear(3136, 512): 84 ->(8,s4) 20 ->(4,s2) 9 ->(3,s1) 7).
# ----------------------------------------------------------------------------
def dqn_forward(kp, x, *, output_dim):
    b, c = x.shape[0], x.shape[1]
    xn = jnp.transpose(x, (0, 2, 3, 1))                      # NHWC, ~113 KB

    # conv1 super-patches: 12x12 blocks on a stride-8 grid (10x10 blocks per
    # image), columns ordered (u, v, ci) to match w1s.
    pats = []
    for u in range(12):
        for v in range(12):
            pats.append(xn[:, u:u + 73:8, v:v + 73:8, :])    # (B, 10, 10, C)
    p1 = jnp.stack(pats, axis=3).reshape(b * 100, 144 * c).astype(jnp.bfloat16)

    trunk = conv_trunk(p1, kp["w1s"], kp["b1r"], kp["w2g"], kp["b2r"],
                       kp["w3g"], kp["b3r"], b)              # (B, 7, 7, 64)
    flat = trunk.reshape(b, 3136)
    q_full = mlp_head(flat, kp["w4p"], kp["b4r"], kp["w5p"], kp["b5p"])
    return q_full[:, :output_dim]


# ----------------------------------------------------------------------------
# Plain-JAX reference (f32, PyTorch layout) for a numerical sanity check
# ----------------------------------------------------------------------------
def dqn_reference(p, x):
    def conv(h, w, bias, s):
        y = jax.lax.conv_general_dilated(
            h, w, window_strides=(s, s), padding="VALID",
            dimension_numbers=("NCHW", "OIHW", "NCHW"))
        return jax.nn.relu(y + bias[None, :, None, None])

    h = conv(x, p["w1"], p["b1"], 4)
    h = conv(h, p["w2"], p["b2"], 2)
    h = conv(h, p["w3"], p["b3"], 1)
    h = h.reshape(h.shape[0], -1)
    h = jax.nn.relu(h @ p["w4"].T + p["b4"])
    return h @ p["w5"].T + p["b5"]


if __name__ == "__main__":
    batch, in_channels, spatial, output_dim = 2, 4, 84, 5

    key = jax.random.PRNGKey(0)
    k_param, k_input = jax.random.split(key)
    params = init_params(k_param, in_channels, output_dim)
    kparams = prepare_params(params, in_channels, output_dim)
    x = jax.random.normal(k_input, (batch, in_channels, spatial, spatial),
                          dtype=jnp.float32)

    fwd = jax.jit(functools.partial(dqn_forward, output_dim=output_dim))
    q = fwd(kparams, x)
    jax.block_until_ready(q)

    assert q.shape == (batch, output_dim), q.shape
    assert q.dtype == jnp.float32

    # bf16 weights => loose (but bug-catching) tolerance vs the f32 reference.
    q_ref = jax.jit(dqn_reference)(params, x)
    err = float(jnp.max(jnp.abs(q - q_ref)))
    scale = float(jnp.max(jnp.abs(q_ref))) + 1e-3
    assert err < 0.05 * scale + 0.01, (err, scale)

    print("KERNEL_OK")
</pallas_src>

<mosaic_0001>
module attributes {stable_mosaic.version = 11 : i64} {
  func.func @_conv_trunk_kernel(%arg0: i32, %arg1: memref<200x576xbf16, #tpu.memory_space<vmem>>, %arg2: memref<576x128xbf16, #tpu.memory_space<vmem>>, %arg3: memref<1x128xf32, #tpu.memory_space<vmem>>, %arg4: memref<4x128x64xbf16, #tpu.memory_space<vmem>>, %arg5: memref<1x64xf32, #tpu.memory_space<vmem>>, %arg6: memref<9x64x64xbf16, #tpu.memory_space<vmem>>, %arg7: memref<1x64xf32, #tpu.memory_space<vmem>>, %arg8: memref<2x7x7x64xbf16, #tpu.memory_space<vmem>>) attributes {dimension_semantics = [#tpu.dimension_semantics<arbitrary>], iteration_bounds = array<i64: 1>, scalar_prefetch = 0 : i64, scratch_operands = 0 : i64, tpu.core_type = #tpu.core_type<tc>, window_params = [{pipeline_mode = #tpu.pipeline_mode<synchronous>, transform_indices = @transform_0, window_bounds = array<i64: 200, 576>}, {pipeline_mode = #tpu.pipeline_mode<synchronous>, transform_indices = @transform_1, window_bounds = array<i64: 576, 128>}, {pipeline_mode = #tpu.pipeline_mode<synchronous>, transform_indices = @transform_2, window_bounds = array<i64: 1, 128>}, {pipeline_mode = #tpu.pipeline_mode<synchronous>, transform_indices = @transform_3, window_bounds = array<i64: 4, 128, 64>}, {pipeline_mode = #tpu.pipeline_mode<synchronous>, transform_indices = @transform_4, window_bounds = array<i64: 1, 64>}, {pipeline_mode = #tpu.pipeline_mode<synchronous>, transform_indices = @transform_5, window_bounds = array<i64: 9, 64, 64>}, {pipeline_mode = #tpu.pipeline_mode<synchronous>, transform_indices = @transform_6, window_bounds = array<i64: 1, 64>}, {pipeline_mode = #tpu.pipeline_mode<synchronous>, transform_indices = @transform_7, window_bounds = array<i64: 2, 7, 7, 64>}]} {
    %c0 = arith.constant 0 : index
    %c0_0 = arith.constant 0 : index
    %0 = vector.load %arg1[%c0, %c0_0] : memref<200x576xbf16, #tpu.memory_space<vmem>>, vector<200x576xbf16>
    %c0_1 = arith.constant 0 : index
    %c0_2 = arith.constant 0 : index
    %1 = vector.load %arg2[%c0_1, %c0_2] : memref<576x128xbf16, #tpu.memory_space<vmem>>, vector<576x128xbf16>
    %cst = arith.constant dense<0.000000e+00> : vector<200x128xf32>
    %2 = tpu.matmul %0, %1, %cst {dimension_numbers = #tpu.dot_dimension_numbers<[1], [0], [0], [1], [0, 0, 1, 1], [], []>} : vector<200x576xbf16>, vector<576x128xbf16>, vector<200x128xf32> -> vector<200x128xf32>
    %c0_3 = arith.constant 0 : index
    %c0_4 = arith.constant 0 : index
    %3 = vector.load %arg3[%c0_3, %c0_4] : memref<1x128xf32, #tpu.memory_space<vmem>>, vector<1x128xf32>
    %4 = vector.broadcast %3 : vector<1x128xf32> to vector<200x128xf32>
    %5 = arith.addf %2, %4 : vector<200x128xf32>
    %cst_5 = arith.constant 0.000000e+00 : f32
    %6 = vector.broadcast %cst_5 : f32 to vector<200x128xf32>
    %7 = arith.maximumf %5, %6 : vector<200x128xf32>
    %8 = arith.truncf %7 : vector<200x128xf32> to vector<200x128xbf16>
    %9 = vector.extract_strided_slice %8 {offsets = [0, 0], sizes = [89, 128], strides = [1, 1]} : vector<200x128xbf16> to vector<89x128xbf16>
    %c0_6 = arith.constant 0 : index
    %c0_7 = arith.constant 0 : index
    %c0_8 = arith.constant 0 : index
    %10 = vector.load %arg4[%c0_6, %c0_7, %c0_8] : memref<4x128x64xbf16, #tpu.memory_space<vmem>>, vector<1x128x64xbf16>
    %11 = vector.shape_cast %10 : vector<1x128x64xbf16> to vector<128x64xbf16>
    %cst_9 = arith.constant dense<0.000000e+00> : vector<89x64xf32>
    %12 = tpu.matmul %9, %11, %cst_9 {dimension_numbers = #tpu.dot_dimension_numbers<[1], [0], [0], [1], [0, 0, 1, 1], [], []>} : vector<89x128xbf16>, vector<128x64xbf16>, vector<89x64xf32> -> vector<89x64xf32>
    %13 = vector.extract_strided_slice %8 {offsets = [1, 0], sizes = [89, 128], strides = [1, 1]} : vector<200x128xbf16> to vector<89x128xbf16>
    %c1 = arith.constant 1 : index
    %c0_10 = arith.constant 0 : index
    %c0_11 = arith.constant 0 : index
    %14 = vector.load %arg4[%c1, %c0_10, %c0_11] : memref<4x128x64xbf16, #tpu.memory_space<vmem>>, vector<1x128x64xbf16>
    %15 = vector.shape_cast %14 : vector<1x128x64xbf16> to vector<128x64xbf16>
    %cst_12 = arith.constant dense<0.000000e+00> : vector<89x64xf32>
    %16 = tpu.matmul %13, %15, %cst_12 {dimension_numbers = #tpu.dot_dimension_numbers<[1], [0], [0], [1], [0, 0, 1, 1], [], []>} : vector<89x128xbf16>, vector<128x64xbf16>, vector<89x64xf32> -> vector<89x64xf32>
    %17 = arith.addf %12, %16 : vector<89x64xf32>
    %18 = vector.extract_strided_slice %8 {offsets = [10, 0], sizes = [89, 128], strides = [1, 1]} : vector<200x128xbf16> to vector<89x128xbf16>
    %c2 = arith.constant 2 : index
    %c0_13 = arith.constant 0 : index
    %c0_14 = arith.constant 0 : index
    %19 = vector.load %arg4[%c2, %c0_13, %c0_14] : memref<4x128x64xbf16, #tpu.memory_space<vmem>>, vector<1x128x64xbf16>
    %20 = vector.shape_cast %19 : vector<1x128x64xbf16> to vector<128x64xbf16>
    %cst_15 = arith.constant dense<0.000000e+00> : vector<89x64xf32>
    %21 = tpu.matmul %18, %20, %cst_15 {dimension_numbers = #tpu.dot_dimension_numbers<[1], [0], [0], [1], [0, 0, 1, 1], [], []>} : vector<89x128xbf16>, vector<128x64xbf16>, vector<89x64xf32> -> vector<89x64xf32>
    %22 = arith.addf %17, %21 : vector<89x64xf32>
    %23 = vector.extract_strided_slice %8 {offsets = [11, 0], sizes = [89, 128], strides = [1, 1]} : vector<200x128xbf16> to vector<89x128xbf16>
    %c3 = arith.constant 3 : index
    %c0_16 = arith.constant 0 : index
    %c0_17 = arith.constant 0 : index
    %24 = vector.load %arg4[%c3, %c0_16, %c0_17] : memref<4x128x64xbf16, #tpu.memory_space<vmem>>, vector<1x128x64xbf16>
    %25 = vector.shape_cast %24 : vector<1x128x64xbf16> to vector<128x64xbf16>
    %cst_18 = arith.constant dense<0.000000e+00> : vector<89x64xf32>
    %26 = tpu.matmul %23, %25, %cst_18 {dimension_numbers = #tpu.dot_dimension_numbers<[1], [0], [0], [1], [0, 0, 1, 1], [], []>} : vector<89x128xbf16>, vector<128x64xbf16>, vector<89x64xf32> -> vector<89x64xf32>
    %27 = arith.addf %22, %26 : vector<89x64xf32>
    %c0_19 = arith.constant 0 : index
    %c0_20 = arith.constant 0 : index
    %28 = vector.load %arg5[%c0_19, %c0_20] : memref<1x64xf32, #tpu.memory_space<vmem>>, vector<1x64xf32>
    %29 = vector.broadcast %28 : vector<1x64xf32> to vector<89x64xf32>
    %30 = arith.addf %27, %29 : vector<89x64xf32>
    %cst_21 = arith.constant 0.000000e+00 : f32
    %31 = vector.broadcast %cst_21 : f32 to vector<89x64xf32>
    %32 = arith.maximumf %30, %31 : vector<89x64xf32>
    %33 = arith.truncf %32 : vector<89x64xf32> to vector<89x64xbf16>
    %34 = vector.extract_strided_slice %33 {offsets = [0, 0], sizes = [67, 64], strides = [1, 1]} : vector<89x64xbf16> to vector<67x64xbf16>
    %c0_22 = arith.constant 0 : index
    %c0_23 = arith.constant 0 : index
    %c0_24 = arith.constant 0 : index
    %35 = vector.load %arg6[%c0_22, %c0_23, %c0_24] : memref<9x64x64xbf16, #tpu.memory_space<vmem>>, vector<1x64x64xbf16>
    %36 = vector.shape_cast %35 : vector<1x64x64xbf16> to vector<64x64xbf16>
    %cst_25 = arith.constant dense<0.000000e+00> : vector<67x64xf32>
    %37 = tpu.matmul %34, %36, %cst_25 {dimension_numbers = #tpu.dot_dimension_numbers<[1], [0], [0], [1], [0, 0, 1, 1], [], []>} : vector<67x64xbf16>, vector<64x64xbf16>, vector<67x64xf32> -> vector<67x64xf32>
    %38 = vector.extract_strided_slice %33 {offsets = [1, 0], sizes = [67, 64], strides = [1, 1]} : vector<89x64xbf16> to vector<67x64xbf16>
    %c1_26 = arith.constant 1 : index
    %c0_27 = arith.constant 0 : index
    %c0_28 = arith.constant 0 : index
    %39 = vector.load %arg6[%c1_26, %c0_27, %c0_28] : memref<9x64x64xbf16, #tpu.memory_space<vmem>>, vector<1x64x64xbf16>
    %40 = vector.shape_cast %39 : vector<1x64x64xbf16> to vector<64x64xbf16>
    %cst_29 = arith.constant dense<0.000000e+00> : vector<67x64xf32>
    %41 = tpu.matmul %38, %40, %cst_29 {dimension_numbers = #tpu.dot_dimension_numbers<[1], [0], [0], [1], [0, 0, 1, 1], [], []>} : vector<67x64xbf16>, vector<64x64xbf16>, vector<67x64xf32> -> vector<67x64xf32>
    %42 = arith.addf %37, %41 : vector<67x64xf32>
    %43 = vector.extract_strided_slice %33 {offsets = [2, 0], sizes = [67, 64], strides = [1, 1]} : vector<89x64xbf16> to vector<67x64xbf16>
    %c2_30 = arith.constant 2 : index
    %c0_31 = arith.constant 0 : index
    %c0_32 = arith.constant 0 : index
    %44 = vector.load %arg6[%c2_30, %c0_31, %c0_32] : memref<9x64x64xbf16, #tpu.memory_space<vmem>>, vector<1x64x64xbf16>
    %45 = vector.shape_cast %44 : vector<1x64x64xbf16> to vector<64x64xbf16>
    %cst_33 = arith.constant dense<0.000000e+00> : vector<67x64xf32>
    %46 = tpu.matmul %43, %45, %cst_33 {dimension_numbers = #tpu.dot_dimension_numbers<[1], [0], [0], [1], [0, 0, 1, 1], [], []>} : vector<67x64xbf16>, vector<64x64xbf16>, vector<67x64xf32> -> vector<67x64xf32>
    %47 = arith.addf %42, %46 : vector<67x64xf32>
    %48 = vector.extract_strided_slice %33 {offsets = [10, 0], sizes = [67, 64], strides = [1, 1]} : vector<89x64xbf16> to vector<67x64xbf16>
    %c3_34 = arith.constant 3 : index
    %c0_35 = arith.constant 0 : index
    %c0_36 = arith.constant 0 : index
    %49 = vector.load %arg6[%c3_34, %c0_35, %c0_36] : memref<9x64x64xbf16, #tpu.memory_space<vmem>>, vector<1x64x64xbf16>
    %50 = vector.shape_cast %49 : vector<1x64x64xbf16> to vector<64x64xbf16>
    %cst_37 = arith.constant dense<0.000000e+00> : vector<67x64xf32>
    %51 = tpu.matmul %48, %50, %cst_37 {dimension_numbers = #tpu.dot_dimension_numbers<[1], [0], [0], [1], [0, 0, 1, 1], [], []>} : vector<67x64xbf16>, vector<64x64xbf16>, vector<67x64xf32> -> vector<67x64xf32>
    %52 = arith.addf %47, %51 : vector<67x64xf32>
    %53 = vector.extract_strided_slice %33 {offsets = [11, 0], sizes = [67, 64], strides = [1, 1]} : vector<89x64xbf16> to vector<67x64xbf16>
    %c4 = arith.constant 4 : index
    %c0_38 = arith.constant 0 : index
    %c0_39 = arith.constant 0 : index
    %54 = vector.load %arg6[%c4, %c0_38, %c0_39] : memref<9x64x64xbf16, #tpu.memory_space<vmem>>, vector<1x64x64xbf16>
    %55 = vector.shape_cast %54 : vector<1x64x64xbf16> to vector<64x64xbf16>
    %cst_40 = arith.constant dense<0.000000e+00> : vector<67x64xf32>
    %56 = tpu.matmul %53, %55, %cst_40 {dimension_numbers = #tpu.dot_dimension_numbers<[1], [0], [0], [1], [0, 0, 1, 1], [], []>} : vector<67x64xbf16>, vector<64x64xbf16>, vector<67x64xf32> -> vector<67x64xf32>
    %57 = arith.addf %52, %56 : vector<67x64xf32>
    %58 = vector.extract_strided_slice %33 {offsets = [12, 0], sizes = [67, 64], strides = [1, 1]} : vector<89x64xbf16> to vector<67x64xbf16>
    %c5 = arith.constant 5 : index
    %c0_41 = arith.constant 0 : index
    %c0_42 = arith.constant 0 : index
    %59 = vector.load %arg6[%c5, %c0_41, %c0_42] : memref<9x64x64xbf16, #tpu.memory_space<vmem>>, vector<1x64x64xbf16>
    %60 = vector.shape_cast %59 : vector<1x64x64xbf16> to vector<64x64xbf16>
    %cst_43 = arith.constant dense<0.000000e+00> : vector<67x64xf32>
    %61 = tpu.matmul %58, %60, %cst_43 {dimension_numbers = #tpu.dot_dimension_numbers<[1], [0], [0], [1], [0, 0, 1, 1], [], []>} : vector<67x64xbf16>, vector<64x64xbf16>, vector<67x64xf32> -> vector<67x64xf32>
    %62 = arith.addf %57, %61 : vector<67x64xf32>
    %63 = vector.extract_strided_slice %33 {offsets = [20, 0], sizes = [67, 64], strides = [1, 1]} : vector<89x64xbf16> to vector<67x64xbf16>
    %c6 = arith.constant 6 : index
    %c0_44 = arith.constant 0 : index
    %c0_45 = arith.constant 0 : index
    %64 = vector.load %arg6[%c6, %c0_44, %c0_45] : memref<9x64x64xbf16, #tpu.memory_space<vmem>>, vector<1x64x64xbf16>
    %65 = vector.shape_cast %64 : vector<1x64x64xbf16> to vector<64x64xbf16>
    %cst_46 = arith.constant dense<0.000000e+00> : vector<67x64xf32>
    %66 = tpu.matmul %63, %65, %cst_46 {dimension_numbers = #tpu.dot_dimension_numbers<[1], [0], [0], [1], [0, 0, 1, 1], [], []>} : vector<67x64xbf16>, vector<64x64xbf16>, vector<67x64xf32> -> vector<67x64xf32>
    %67 = arith.addf %62, %66 : vector<67x64xf32>
    %68 = vector.extract_strided_slice %33 {offsets = [21, 0], sizes = [67, 64], strides = [1, 1]} : vector<89x64xbf16> to vector<67x64xbf16>
    %c7 = arith.constant 7 : index
    %c0_47 = arith.constant 0 : index
    %c0_48 = arith.constant 0 : index
    %69 = vector.load %arg6[%c7, %c0_47, %c0_48] : memref<9x64x64xbf16, #tpu.memory_space<vmem>>, vector<1x64x64xbf16>
    %70 = vector.shape_cast %69 : vector<1x64x64xbf16> to vector<64x64xbf16>
    %cst_49 = arith.constant dense<0.000000e+00> : vector<67x64xf32>
    %71 = tpu.matmul %68, %70, %cst_49 {dimension_numbers = #tpu.dot_dimension_numbers<[1], [0], [0], [1], [0, 0, 1, 1], [], []>} : vector<67x64xbf16>, vector<64x64xbf16>, vector<67x64xf32> -> vector<67x64xf32>
    %72 = arith.addf %67, %71 : vector<67x64xf32>
    %73 = vector.extract_strided_slice %33 {offsets = [22, 0], sizes = [67, 64], strides = [1, 1]} : vector<89x64xbf16> to vector<67x64xbf16>
    %c8 = arith.constant 8 : index
    %c0_50 = arith.constant 0 : index
    %c0_51 = arith.constant 0 : index
    %74 = vector.load %arg6[%c8, %c0_50, %c0_51] : memref<9x64x64xbf16, #tpu.memory_space<vmem>>, vector<1x64x64xbf16>
    %75 = vector.shape_cast %74 : vector<1x64x64xbf16> to vector<64x64xbf16>
    %cst_52 = arith.constant dense<0.000000e+00> : vector<67x64xf32>
    %76 = tpu.matmul %73, %75, %cst_52 {dimension_numbers = #tpu.dot_dimension_numbers<[1], [0], [0], [1], [0, 0, 1, 1], [], []>} : vector<67x64xbf16>, vector<64x64xbf16>, vector<67x64xf32> -> vector<67x64xf32>
    %77 = arith.addf %72, %76 : vector<67x64xf32>
    %c0_53 = arith.constant 0 : index
    %c0_54 = arith.constant 0 : index
    %78 = vector.load %arg7[%c0_53, %c0_54] : memref<1x64xf32, #tpu.memory_space<vmem>>, vector<1x64xf32>
    %79 = vector.broadcast %78 : vector<1x64xf32> to vector<67x64xf32>
    %80 = arith.addf %77, %79 : vector<67x64xf32>
    %cst_55 = arith.constant 0.000000e+00 : f32
    %81 = vector.broadcast %cst_55 : f32 to vector<67x64xf32>
    %82 = arith.maximumf %80, %81 : vector<67x64xf32>
    %83 = arith.truncf %82 : vector<67x64xf32> to vector<67x64xbf16>
    %84 = vector.extract_strided_slice %83 {offsets = [0, 0], sizes = [7, 64], strides = [1, 1]} : vector<67x64xbf16> to vector<7x64xbf16>
    %c0_56 = arith.constant 0 : index
    %c0_57 = arith.constant 0 : index
    %c0_58 = arith.constant 0 : index
    %c0_59 = arith.constant 0 : index
    %85 = vector.load %arg8[%c0_56, %c0_57, %c0_58, %c0_59] : memref<2x7x7x64xbf16, #tpu.memory_space<vmem>>, vector<1x1x7x64xbf16>
    %86 = vector.shape_cast %85 : vector<1x1x7x64xbf16> to vector<7x64xbf16>
    %87 = vector.shape_cast %84 : vector<7x64xbf16> to vector<1x1x7x64xbf16>
    tpu.vector_store %arg8[%c0_56, %c0_57, %c0_58, %c0_59], %87 {strides = array<i32>} : memref<2x7x7x64xbf16, #tpu.memory_space<vmem>>, vector<1x1x7x64xbf16>,
    %88 = vector.extract_strided_slice %83 {offsets = [10, 0], sizes = [7, 64], strides = [1, 1]} : vector<67x64xbf16> to vector<7x64xbf16>
    %c0_60 = arith.constant 0 : index
    %c1_61 = arith.constant 1 : index
    %c0_62 = arith.constant 0 : index
    %c0_63 = arith.constant 0 : index
    %89 = vector.load %arg8[%c0_60, %c1_61, %c0_62, %c0_63] : memref<2x7x7x64xbf16, #tpu.memory_space<vmem>>, vector<1x1x7x64xbf16>
    %90 = vector.shape_cast %89 : vector<1x1x7x64xbf16> to vector<7x64xbf16>
    %91 = vector.shape_cast %88 : vector<7x64xbf16> to vector<1x1x7x64xbf16>
    tpu.vector_store %arg8[%c0_60, %c1_61, %c0_62, %c0_63], %91 {strides = array<i32>} : memref<2x7x7x64xbf16, #tpu.memory_space<vmem>>, vector<1x1x7x64xbf16>,
    %92 = vector.extract_strided_slice %83 {offsets = [20, 0], sizes = [7, 64], strides = [1, 1]} : vector<67x64xbf16> to vector<7x64xbf16>
    %c0_64 = arith.constant 0 : index
    %c2_65 = arith.constant 2 : index
    %c0_66 = arith.constant 0 : index
    %c0_67 = arith.constant 0 : index
    %93 = vector.load %arg8[%c0_64, %c2_65, %c0_66, %c0_67] : memref<2x7x7x64xbf16, #tpu.memory_space<vmem>>, vector<1x1x7x64xbf16>
    %94 = vector.shape_cast %93 : vector<1x1x7x64xbf16> to vector<7x64xbf16>
    %95 = vector.shape_cast %92 : vector<7x64xbf16> to vector<1x1x7x64xbf16>
    tpu.vector_store %arg8[%c0_64, %c2_65, %c0_66, %c0_67], %95 {strides = array<i32>} : memref<2x7x7x64xbf16, #tpu.memory_space<vmem>>, vector<1x1x7x64xbf16>,
    %96 = vector.extract_strided_slice %83 {offsets = [30, 0], sizes = [7, 64], strides = [1, 1]} : vector<67x64xbf16> to vector<7x64xbf16>
    %c0_68 = arith.constant 0 : index
    %c3_69 = arith.constant 3 : index
    %c0_70 = arith.constant 0 : index
    %c0_71 = arith.constant 0 : index
    %97 = vector.load %arg8[%c0_68, %c3_69, %c0_70, %c0_71] : memref<2x7x7x64xbf16, #tpu.memory_space<vmem>>, vector<1x1x7x64xbf16>
    %98 = vector.shape_cast %97 : vector<1x1x7x64xbf16> to vector<7x64xbf16>
    %99 = vector.shape_cast %96 : vector<7x64xbf16> to vector<1x1x7x64xbf16>
    tpu.vector_store %arg8[%c0_68, %c3_69, %c0_70, %c0_71], %99 {strides = array<i32>} : memref<2x7x7x64xbf16, #tpu.memory_space<vmem>>, vector<1x1x7x64xbf16>,
    %100 = vector.extract_strided_slice %83 {offsets = [40, 0], sizes = [7, 64], strides = [1, 1]} : vector<67x64xbf16> to vector<7x64xbf16>
    %c0_72 = arith.constant 0 : index
    %c4_73 = arith.constant 4 : index
    %c0_74 = arith.constant 0 : index
    %c0_75 = arith.constant 0 : index
    %101 = vector.load %arg8[%c0_72, %c4_73, %c0_74, %c0_75] : memref<2x7x7x64xbf16, #tpu.memory_space<vmem>>, vector<1x1x7x64xbf16>
    %102 = vector.shape_cast %101 : vector<1x1x7x64xbf16> to vector<7x64xbf16>
    %103 = vector.shape_cast %100 : vector<7x64xbf16> to vector<1x1x7x64xbf16>
    tpu.vector_store %arg8[%c0_72, %c4_73, %c0_74, %c0_75], %103 {strides = array<i32>} : memref<2x7x7x64xbf16, #tpu.memory_space<vmem>>, vector<1x1x7x64xbf16>,
    %104 = vector.extract_strided_slice %83 {offsets = [50, 0], sizes = [7, 64], strides = [1, 1]} : vector<67x64xbf16> to vector<7x64xbf16>
    %c0_76 = arith.constant 0 : index
    %c5_77 = arith.constant 5 : index
    %c0_78 = arith.constant 0 : index
    %c0_79 = arith.constant 0 : index
    %105 = vector.load %arg8[%c0_76, %c5_77, %c0_78, %c0_79] : memref<2x7x7x64xbf16, #tpu.memory_space<vmem>>, vector<1x1x7x64xbf16>
    %106 = vector.shape_cast %105 : vector<1x1x7x64xbf16> to vector<7x64xbf16>
    %107 = vector.shape_cast %104 : vector<7x64xbf16> to vector<1x1x7x64xbf16>
    tpu.vector_store %arg8[%c0_76, %c5_77, %c0_78, %c0_79], %107 {strides = array<i32>} : memref<2x7x7x64xbf16, #tpu.memory_space<vmem>>, vector<1x1x7x64xbf16>,
    %108 = vector.extract_strided_slice %83 {offsets = [60, 0], sizes = [7, 64], strides = [1, 1]} : vector<67x64xbf16> to vector<7x64xbf16>
    %c0_80 = arith.constant 0 : index
    %c6_81 = arith.constant 6 : index
    %c0_82 = arith.constant 0 : index
    %c0_83 = arith.constant 0 : index
    %109 = vector.load %arg8[%c0_80, %c6_81, %c0_82, %c0_83] : memref<2x7x7x64xbf16, #tpu.memory_space<vmem>>, vector<1x1x7x64xbf16>
    %110 = vector.shape_cast %109 : vector<1x1x7x64xbf16> to vector<7x64xbf16>
    %111 = vector.shape_cast %108 : vector<7x64xbf16> to vector<1x1x7x64xbf16>
    tpu.vector_store %arg8[%c0_80, %c6_81, %c0_82, %c0_83], %111 {strides = array<i32>} : memref<2x7x7x64xbf16, #tpu.memory_space<vmem>>, vector<1x1x7x64xbf16>,
    %112 = vector.extract_strided_slice %8 {offsets = [100, 0], sizes = [89, 128], strides = [1, 1]} : vector<200x128xbf16> to vector<89x128xbf16>
    %c0_84 = arith.constant 0 : index
    %c0_85 = arith.constant 0 : index
    %c0_86 = arith.constant 0 : index
    %113 = vector.load %arg4[%c0_84, %c0_85, %c0_86] : memref<4x128x64xbf16, #tpu.memory_space<vmem>>, vector<1x128x64xbf16>
    %114 = vector.shape_cast %113 : vector<1x128x64xbf16> to vector<128x64xbf16>
    %cst_87 = arith.constant dense<0.000000e+00> : vector<89x64xf32>
    %115 = tpu.matmul %112, %114, %cst_87 {dimension_numbers = #tpu.dot_dimension_numbers<[1], [0], [0], [1], [0, 0, 1, 1], [], []>} : vector<89x128xbf16>, vector<128x64xbf16>, vector<89x64xf32> -> vector<89x64xf32>
    %116 = vector.extract_strided_slice %8 {offsets = [101, 0], sizes = [89, 128], strides = [1, 1]} : vector<200x128xbf16> to vector<89x128xbf16>
    %c1_88 = arith.constant 1 : index
    %c0_89 = arith.constant 0 : index
    %c0_90 = arith.constant 0 : index
    %117 = vector.load %arg4[%c1_88, %c0_89, %c0_90] : memref<4x128x64xbf16, #tpu.memory_space<vmem>>, vector<1x128x64xbf16>
    %118 = vector.shape_cast %117 : vector<1x128x64xbf16> to vector<128x64xbf16>
    %cst_91 = arith.constant dense<0.000000e+00> : vector<89x64xf32>
    %119 = tpu.matmul %116, %118, %cst_91 {dimension_numbers = #tpu.dot_dimension_numbers<[1], [0], [0], [1], [0, 0, 1, 1], [], []>} : vector<89x128xbf16>, vector<128x64xbf16>, vector<89x64xf32> -> vector<89x64xf32>
    %120 = arith.addf %115, %119 : vector<89x64xf32>
    %121 = vector.extract_strided_slice %8 {offsets = [110, 0], sizes = [89, 128], strides = [1, 1]} : vector<200x128xbf16> to vector<89x128xbf16>
    %c2_92 = arith.constant 2 : index
    %c0_93 = arith.constant 0 : index
    %c0_94 = arith.constant 0 : index
    %122 = vector.load %arg4[%c2_92, %c0_93, %c0_94] : memref<4x128x64xbf16, #tpu.memory_space<vmem>>, vector<1x128x64xbf16>
    %123 = vector.shape_cast %122 : vector<1x128x64xbf16> to vector<128x64xbf16>
    %cst_95 = arith.constant dense<0.000000e+00> : vector<89x64xf32>
    %124 = tpu.matmul %121, %123, %cst_95 {dimension_numbers = #tpu.dot_dimension_numbers<[1], [0], [0], [1], [0, 0, 1, 1], [], []>} : vector<89x128xbf16>, vector<128x64xbf16>, vector<89x64xf32> -> vector<89x64xf32>
    %125 = arith.addf %120, %124 : vector<89x64xf32>
    %126 = vector.extract_strided_slice %8 {offsets = [111, 0], sizes = [89, 128], strides = [1, 1]} : vector<200x128xbf16> to vector<89x128xbf16>
    %c3_96 = arith.constant 3 : index
    %c0_97 = arith.constant 0 : index
    %c0_98 = arith.constant 0 : index
    %127 = vector.load %arg4[%c3_96, %c0_97, %c0_98] : memref<4x128x64xbf16, #tpu.memory_space<vmem>>, vector<1x128x64xbf16>
    %128 = vector.shape_cast %127 : vector<1x128x64xbf16> to vector<128x64xbf16>
    %cst_99 = arith.constant dense<0.000000e+00> : vector<89x64xf32>
    %129 = tpu.matmul %126, %128, %cst_99 {dimension_numbers = #tpu.dot_dimension_numbers<[1], [0], [0], [1], [0, 0, 1, 1], [], []>} : vector<89x128xbf16>, vector<128x64xbf16>, vector<89x64xf32> -> vector<89x64xf32>
    %130 = arith.addf %125, %129 : vector<89x64xf32>
    %c0_100 = arith.constant 0 : index
    %c0_101 = arith.constant 0 : index
    %131 = vector.load %arg5[%c0_100, %c0_101] : memref<1x64xf32, #tpu.memory_space<vmem>>, vector<1x64xf32>
    %132 = vector.broadcast %131 : vector<1x64xf32> to vector<89x64xf32>
    %133 = arith.addf %130, %132 : vector<89x64xf32>
    %cst_102 = arith.constant 0.000000e+00 : f32
    %134 = vector.broadcast %cst_102 : f32 to vector<89x64xf32>
    %135 = arith.maximumf %133, %134 : vector<89x64xf32>
    %136 = arith.truncf %135 : vector<89x64xf32> to vector<89x64xbf16>
    %137 = vector.extract_strided_slice %136 {offsets = [0, 0], sizes = [67, 64], strides = [1, 1]} : vector<89x64xbf16> to vector<67x64xbf16>
    %c0_103 = arith.constant 0 : index
    %c0_104 = arith.constant 0 : index
    %c0_105 = arith.constant 0 : index
    %138 = vector.load %arg6[%c0_103, %c0_104, %c0_105] : memref<9x64x64xbf16, #tpu.memory_space<vmem>>, vector<1x64x64xbf16>
    %139 = vector.shape_cast %138 : vector<1x64x64xbf16> to vector<64x64xbf16>
    %cst_106 = arith.constant dense<0.000000e+00> : vector<67x64xf32>
    %140 = tpu.matmul %137, %139, %cst_106 {dimension_numbers = #tpu.dot_dimension_numbers<[1], [0], [0], [1], [0, 0, 1, 1], [], []>} : vector<67x64xbf16>, vector<64x64xbf16>, vector<67x64xf32> -> vector<67x64xf32>
    %141 = vector.extract_strided_slice %136 {offsets = [1, 0], sizes = [67, 64], strides = [1, 1]} : vector<89x64xbf16> to vector<67x64xbf16>
    %c1_107 = arith.constant 1 : index
    %c0_108 = arith.constant 0 : index
    %c0_109 = arith.constant 0 : index
    %142 = vector.load %arg6[%c1_107, %c0_108, %c0_109] : memref<9x64x64xbf16, #tpu.memory_space<vmem>>, vector<1x64x64xbf16>
    %143 = vector.shape_cast %142 : vector<1x64x64xbf16> to vector<64x64xbf16>
    %cst_110 = arith.constant dense<0.000000e+00> : vector<67x64xf32>
    %144 = tpu.matmul %141, %143, %cst_110 {dimension_numbers = #tpu.dot_dimension_numbers<[1], [0], [0], [1], [0, 0, 1, 1], [], []>} : vector<67x64xbf16>, vector<64x64xbf16>, vector<67x64xf32> -> vector<67x64xf32>
    %145 = arith.addf %140, %144 : vector<67x64xf32>
    %146 = vector.extract_strided_slice %136 {offsets = [2, 0], sizes = [67, 64], strides = [1, 1]} : vector<89x64xbf16> to vector<67x64xbf16>
    %c2_111 = arith.constant 2 : index
    %c0_112 = arith.constant 0 : index
    %c0_113 = arith.constant 0 : index
    %147 = vector.load %arg6[%c2_111, %c0_112, %c0_113] : memref<9x64x64xbf16, #tpu.memory_space<vmem>>, vector<1x64x64xbf16>
    %148 = vector.shape_cast %147 : vector<1x64x64xbf16> to vector<64x64xbf16>
    %cst_114 = arith.constant dense<0.000000e+00> : vector<67x64xf32>
    %149 = tpu.matmul %146, %148, %cst_114 {dimension_numbers = #tpu.dot_dimension_numbers<[1], [0], [0], [1], [0, 0, 1, 1], [], []>} : vector<67x64xbf16>, vector<64x64xbf16>, vector<67x64xf32> -> vector<67x64xf32>
    %150 = arith.addf %145, %149 : vector<67x64xf32>
    %151 = vector.extract_strided_slice %136 {offsets = [10, 0], sizes = [67, 64], strides = [1, 1]} : vector<89x64xbf16> to vector<67x64xbf16>
    %c3_115 = arith.constant 3 : index
    %c0_116 = arith.constant 0 : index
    %c0_117 = arith.constant 0 : index
    %152 = vector.load %arg6[%c3_115, %c0_116, %c0_117] : memref<9x64x64xbf16, #tpu.memory_space<vmem>>, vector<1x64x64xbf16>
    %153 = vector.shape_cast %152 : vector<1x64x64xbf16> to vector<64x64xbf16>
    %cst_118 = arith.constant dense<0.000000e+00> : vector<67x64xf32>
    %154 = tpu.matmul %151, %153, %cst_118 {dimension_numbers = #tpu.dot_dimension_numbers<[1], [0], [0], [1], [0, 0, 1, 1], [], []>} : vector<67x64xbf16>, vector<64x64xbf16>, vector<67x64xf32> -> vector<67x64xf32>
    %155 = arith.addf %150, %154 : vector<67x64xf32>
    %156 = vector.extract_strided_slice %136 {offsets = [11, 0], sizes = [67, 64], strides = [1, 1]} : vector<89x64xbf16> to vector<67x64xbf16>
    %c4_119 = arith.constant 4 : index
    %c0_120 = arith.constant 0 : index
    %c0_121 = arith.constant 0 : index
    %157 = vector.load %arg6[%c4_119, %c0_120, %c0_121] : memref<9x64x64xbf16, #tpu.memory_space<vmem>>, vector<1x64x64xbf16>
    %158 = vector.shape_cast %157 : vector<1x64x64xbf16> to vector<64x64xbf16>
    %cst_122 = arith.constant dense<0.000000e+00> : vector<67x64xf32>
    %159 = tpu.matmul %156, %158, %cst_122 {dimension_numbers = #tpu.dot_dimension_numbers<[1], [0], [0], [1], [0, 0, 1, 1], [], []>} : vector<67x64xbf16>, vector<64x64xbf16>, vector<67x64xf32> -> vector<67x64xf32>
    %160 = arith.addf %155, %159 : vector<67x64xf32>
    %161 = vector.extract_strided_slice %136 {offsets = [12, 0], sizes = [67, 64], strides = [1, 1]} : vector<89x64xbf16> to vector<67x64xbf16>
    %c5_123 = arith.constant 5 : index
    %c0_124 = arith.constant 0 : index
    %c0_125 = arith.constant 0 : index
    %162 = vector.load %arg6[%c5_123, %c0_124, %c0_125] : memref<9x64x64xbf16, #tpu.memory_space<vmem>>, vector<1x64x64xbf16>
    %163 = vector.shape_cast %162 : vector<1x64x64xbf16> to vector<64x64xbf16>
    %cst_126 = arith.constant dense<0.000000e+00> : vector<67x64xf32>
    %164 = tpu.matmul %161, %163, %cst_126 {dimension_numbers = #tpu.dot_dimension_numbers<[1], [0], [0], [1], [0, 0, 1, 1], [], []>} : vector<67x64xbf16>, vector<64x64xbf16>, vector<67x64xf32> -> vector<67x64xf32>
    %165 = arith.addf %160, %164 : vector<67x64xf32>
    %166 = vector.extract_strided_slice %136 {offsets = [20, 0], sizes = [67, 64], strides = [1, 1]} : vector<89x64xbf16> to vector<67x64xbf16>
    %c6_127 = arith.constant 6 : index
    %c0_128 = arith.constant 0 : index
    %c0_129 = arith.constant 0 : index
    %167 = vector.load %arg6[%c6_127, %c0_128, %c0_129] : memref<9x64x64xbf16, #tpu.memory_space<vmem>>, vector<1x64x64xbf16>
    %168 = vector.shape_cast %167 : vector<1x64x64xbf16> to vector<64x64xbf16>
    %cst_130 = arith.constant dense<0.000000e+00> : vector<67x64xf32>
    %169 = tpu.matmul %166, %168, %cst_130 {dimension_numbers = #tpu.dot_dimension_numbers<[1], [0], [0], [1], [0, 0, 1, 1], [], []>} : vector<67x64xbf16>, vector<64x64xbf16>, vector<67x64xf32> -> vector<67x64xf32>
    %170 = arith.addf %165, %169 : vector<67x64xf32>
    %171 = vector.extract_strided_slice %136 {offsets = [21, 0], sizes = [67, 64], strides = [1, 1]} : vector<89x64xbf16> to vector<67x64xbf16>
    %c7_131 = arith.constant 7 : index
    %c0_132 = arith.constant 0 : index
    %c0_133 = arith.constant 0 : index
    %172 = vector.load %arg6[%c7_131, %c0_132, %c0_133] : memref<9x64x64xbf16, #tpu.memory_space<vmem>>, vector<1x64x64xbf16>
    %173 = vector.shape_cast %172 : vector<1x64x64xbf16> to vector<64x64xbf16>
    %cst_134 = arith.constant dense<0.000000e+00> : vector<67x64xf32>
    %174 = tpu.matmul %171, %173, %cst_134 {dimension_numbers = #tpu.dot_dimension_numbers<[1], [0], [0], [1], [0, 0, 1, 1], [], []>} : vector<67x64xbf16>, vector<64x64xbf16>, vector<67x64xf32> -> vector<67x64xf32>
    %175 = arith.addf %170, %174 : vector<67x64xf32>
    %176 = vector.extract_strided_slice %136 {offsets = [22, 0], sizes = [67, 64], strides = [1, 1]} : vector<89x64xbf16> to vector<67x64xbf16>
    %c8_135 = arith.constant 8 : index
    %c0_136 = arith.constant 0 : index
    %c0_137 = arith.constant 0 : index
    %177 = vector.load %arg6[%c8_135, %c0_136, %c0_137] : memref<9x64x64xbf16, #tpu.memory_space<vmem>>, vector<1x64x64xbf16>
    %178 = vector.shape_cast %177 : vector<1x64x64xbf16> to vector<64x64xbf16>
    %cst_138 = arith.constant dense<0.000000e+00> : vector<67x64xf32>
    %179 = tpu.matmul %176, %178, %cst_138 {dimension_numbers = #tpu.dot_dimension_numbers<[1], [0], [0], [1], [0, 0, 1, 1], [], []>} : vector<67x64xbf16>, vector<64x64xbf16>, vector<67x64xf32> -> vector<67x64xf32>
    %180 = arith.addf %175, %179 : vector<67x64xf32>
    %c0_139 = arith.constant 0 : index
    %c0_140 = arith.constant 0 : index
    %181 = vector.load %arg7[%c0_139, %c0_140] : memref<1x64xf32, #tpu.memory_space<vmem>>, vector<1x64xf32>
    %182 = vector.broadcast %181 : vector<1x64xf32> to vector<67x64xf32>
    %183 = arith.addf %180, %182 : vector<67x64xf32>
    %cst_141 = arith.constant 0.000000e+00 : f32
    %184 = vector.broadcast %cst_141 : f32 to vector<67x64xf32>
    %185 = arith.maximumf %183, %184 : vector<67x64xf32>
    %186 = arith.truncf %185 : vector<67x64xf32> to vector<67x64xbf16>
    %187 = vector.extract_strided_slice %186 {offsets = [0, 0], sizes = [7, 64], strides = [1, 1]} : vector<67x64xbf16> to vector<7x64xbf16>
    %c1_142 = arith.constant 1 : index
    %c0_143 = arith.constant 0 : index
    %c0_144 = arith.constant 0 : index
    %c0_145 = arith.constant 0 : index
    %188 = vector.load %arg8[%c1_142, %c0_143, %c0_144, %c0_145] : memref<2x7x7x64xbf16, #tpu.memory_space<vmem>>, vector<1x1x7x64xbf16>
    %189 = vector.shape_cast %188 : vector<1x1x7x64xbf16> to vector<7x64xbf16>
    %190 = vector.shape_cast %187 : vector<7x64xbf16> to vector<1x1x7x64xbf16>
    tpu.vector_store %arg8[%c1_142, %c0_143, %c0_144, %c0_145], %190 {strides = array<i32>} : memref<2x7x7x64xbf16, #tpu.memory_space<vmem>>, vector<1x1x7x64xbf16>,
    %191 = vector.extract_strided_slice %186 {offsets = [10, 0], sizes = [7, 64], strides = [1, 1]} : vector<67x64xbf16> to vector<7x64xbf16>
    %c1_146 = arith.constant 1 : index
    %c1_147 = arith.constant 1 : index
    %c0_148 = arith.constant 0 : index
    %c0_149 = arith.constant 0 : index
    %192 = vector.load %arg8[%c1_146, %c1_147, %c0_148, %c0_149] : memref<2x7x7x64xbf16, #tpu.memory_space<vmem>>, vector<1x1x7x64xbf16>
    %193 = vector.shape_cast %192 : vector<1x1x7x64xbf16> to vector<7x64xbf16>
    %194 = vector.shape_cast %191 : vector<7x64xbf16> to vector<1x1x7x64xbf16>
    tpu.vector_store %arg8[%c1_146, %c1_147, %c0_148, %c0_149], %194 {strides = array<i32>} : memref<2x7x7x64xbf16, #tpu.memory_space<vmem>>, vector<1x1x7x64xbf16>,
    %195 = vector.extract_strided_slice %186 {offsets = [20, 0], sizes = [7, 64], strides = [1, 1]} : vector<67x64xbf16> to vector<7x64xbf16>
    %c1_150 = arith.constant 1 : index
    %c2_151 = arith.constant 2 : index
    %c0_152 = arith.constant 0 : index
    %c0_153 = arith.constant 0 : index
    %196 = vector.load %arg8[%c1_150, %c2_151, %c0_152, %c0_153] : memref<2x7x7x64xbf16, #tpu.memory_space<vmem>>, vector<1x1x7x64xbf16>
    %197 = vector.shape_cast %196 : vector<1x1x7x64xbf16> to vector<7x64xbf16>
    %198 = vector.shape_cast %195 : vector<7x64xbf16> to vector<1x1x7x64xbf16>
    tpu.vector_store %arg8[%c1_150, %c2_151, %c0_152, %c0_153], %198 {strides = array<i32>} : memref<2x7x7x64xbf16, #tpu.memory_space<vmem>>, vector<1x1x7x64xbf16>,
    %199 = vector.extract_strided_slice %186 {offsets = [30, 0], sizes = [7, 64], strides = [1, 1]} : vector<67x64xbf16> to vector<7x64xbf16>
    %c1_154 = arith.constant 1 : index
    %c3_155 = arith.constant 3 : index
    %c0_156 = arith.constant 0 : index
    %c0_157 = arith.constant 0 : index
    %200 = vector.load %arg8[%c1_154, %c3_155, %c0_156, %c0_157] : memref<2x7x7x64xbf16, #tpu.memory_space<vmem>>, vector<1x1x7x64xbf16>
    %201 = vector.shape_cast %200 : vector<1x1x7x64xbf16> to vector<7x64xbf16>
    %202 = vector.shape_cast %199 : vector<7x64xbf16> to vector<1x1x7x64xbf16>
    tpu.vector_store %arg8[%c1_154, %c3_155, %c0_156, %c0_157], %202 {strides = array<i32>} : memref<2x7x7x64xbf16, #tpu.memory_space<vmem>>, vector<1x1x7x64xbf16>,
    %203 = vector.extract_strided_slice %186 {offsets = [40, 0], sizes = [7, 64], strides = [1, 1]} : vector<67x64xbf16> to vector<7x64xbf16>
    %c1_158 = arith.constant 1 : index
    %c4_159 = arith.constant 4 : index
    %c0_160 = arith.constant 0 : index
    %c0_161 = arith.constant 0 : index
    %204 = vector.load %arg8[%c1_158, %c4_159, %c0_160, %c0_161] : memref<2x7x7x64xbf16, #tpu.memory_space<vmem>>, vector<1x1x7x64xbf16>
    %205 = vector.shape_cast %204 : vector<1x1x7x64xbf16> to vector<7x64xbf16>
    %206 = vector.shape_cast %203 : vector<7x64xbf16> to vector<1x1x7x64xbf16>
    tpu.vector_store %arg8[%c1_158, %c4_159, %c0_160, %c0_161], %206 {strides = array<i32>} : memref<2x7x7x64xbf16, #tpu.memory_space<vmem>>, vector<1x1x7x64xbf16>,
    %207 = vector.extract_strided_slice %186 {offsets = [50, 0], sizes = [7, 64], strides = [1, 1]} : vector<67x64xbf16> to vector<7x64xbf16>
    %c1_162 = arith.constant 1 : index
    %c5_163 = arith.constant 5 : index
    %c0_164 = arith.constant 0 : index
    %c0_165 = arith.constant 0 : index
    %208 = vector.load %arg8[%c1_162, %c5_163, %c0_164, %c0_165] : memref<2x7x7x64xbf16, #tpu.memory_space<vmem>>, vector<1x1x7x64xbf16>
    %209 = vector.shape_cast %208 : vector<1x1x7x64xbf16> to vector<7x64xbf16>
    %210 = vector.shape_cast %207 : vector<7x64xbf16> to vector<1x1x7x64xbf16>
    tpu.vector_store %arg8[%c1_162, %c5_163, %c0_164, %c0_165], %210 {strides = array<i32>} : memref<2x7x7x64xbf16, #tpu.memory_space<vmem>>, vector<1x1x7x64xbf16>,
    %211 = vector.extract_strided_slice %186 {offsets = [60, 0], sizes = [7, 64], strides = [1, 1]} : vector<67x64xbf16> to vector<7x64xbf16>
    %c1_166 = arith.constant 1 : index
    %c6_167 = arith.constant 6 : index
    %c0_168 = arith.constant 0 : index
    %c0_169 = arith.constant 0 : index
    %212 = vector.load %arg8[%c1_166, %c6_167, %c0_168, %c0_169] : memref<2x7x7x64xbf16, #tpu.memory_space<vmem>>, vector<1x1x7x64xbf16>
    %213 = vector.shape_cast %212 : vector<1x1x7x64xbf16> to vector<7x64xbf16>
    %214 = vector.shape_cast %211 : vector<7x64xbf16> to vector<1x1x7x64xbf16>
    tpu.vector_store %arg8[%c1_166, %c6_167, %c0_168, %c0_169], %214 {strides = array<i32>} : memref<2x7x7x64xbf16, #tpu.memory_space<vmem>>, vector<1x1x7x64xbf16>,
    return
  }
  func.func @transform_0(%arg0: i32) -> (i32, i32) {
    %c0_i32 = arith.constant 0 : i32
    %c0_i32_0 = arith.constant 0 : i32
    %c0_i32_1 = arith.constant 0 : i32
    return %c0_i32, %c0_i32_0 : i32, i32
  }
  func.func @transform_1(%arg0: i32) -> (i32, i32) {
    %c0_i32 = arith.constant 0 : i32
    %c0_i32_0 = arith.constant 0 : i32
    %c0_i32_1 = arith.constant 0 : i32
    return %c0_i32, %c0_i32_0 : i32, i32
  }
  func.func @transform_2(%arg0: i32) -> (i32, i32) {
    %c0_i32 = arith.constant 0 : i32
    %c0_i32_0 = arith.constant 0 : i32
    %c0_i32_1 = arith.constant 0 : i32
    return %c0_i32, %c0_i32_0 : i32, i32
  }
  func.func @transform_3(%arg0: i32) -> (i32, i32, i32) {
    %c0_i32 = arith.constant 0 : i32
    %c0_i32_0 = arith.constant 0 : i32
    %c0_i32_1 = arith.constant 0 : i32
    %c0_i32_2 = arith.constant 0 : i32
    return %c0_i32, %c0_i32_0, %c0_i32_1 : i32, i32, i32
  }
  func.func @transform_4(%arg0: i32) -> (i32, i32) {
    %c0_i32 = arith.constant 0 : i32
    %c0_i32_0 = arith.constant 0 : i32
    %c0_i32_1 = arith.constant 0 : i32
    return %c0_i32, %c0_i32_0 : i32, i32
  }
  func.func @transform_5(%arg0: i32) -> (i32, i32, i32) {
    %c0_i32 = arith.constant 0 : i32
    %c0_i32_0 = arith.constant 0 : i32
    %c0_i32_1 = arith.constant 0 : i32
    %c0_i32_2 = arith.constant 0 : i32
    return %c0_i32, %c0_i32_0, %c0_i32_1 : i32, i32, i32
  }
  func.func @transform_6(%arg0: i32) -> (i32, i32) {
    %c0_i32 = arith.constant 0 : i32
    %c0_i32_0 = arith.constant 0 : i32
    %c0_i32_1 = arith.constant 0 : i32
    return %c0_i32, %c0_i32_0 : i32, i32
  }
  func.func @transform_7(%arg0: i32) -> (i32, i32, i32, i32) {
    %c0_i32 = arith.constant 0 : i32
    %c0_i32_0 = arith.constant 0 : i32
    %c0_i32_1 = arith.constant 0 : i32
    %c0_i32_2 = arith.constant 0 : i32
    %c0_i32_3 = arith.constant 0 : i32
    return %c0_i32, %c0_i32_0, %c0_i32_1, %c0_i32_2 : i32, i32, i32, i32
  }
}

module attributes {stable_mosaic.version = 11 : i64} {
  func.func @_mlp_kernel(%arg0: i32, %arg1: memref<2x3136xbf16, #tpu.memory_space<vmem>>, %arg2: memref<3136x512xbf16, #tpu.memory_space<vmem>>, %arg3: memref<1x512xf32, #tpu.memory_space<vmem>>, %arg4: memref<512x128xbf16, #tpu.memory_space<vmem>>, %arg5: memref<1x128xf32, #tpu.memory_space<vmem>>, %arg6: memref<2x128xf32, #tpu.memory_space<vmem>>) attributes {dimension_semantics = [#tpu.dimension_semantics<arbitrary>], iteration_bounds = array<i64: 1>, scalar_prefetch = 0 : i64, scratch_operands = 0 : i64, tpu.core_type = #tpu.core_type<tc>, window_params = [{pipeline_mode = #tpu.pipeline_mode<synchronous>, transform_indices = @transform_0, window_bounds = array<i64: 2, 3136>}, {pipeline_mode = #tpu.pipeline_mode<synchronous>, transform_indices = @transform_1, window_bounds = array<i64: 3136, 512>}, {pipeline_mode = #tpu.pipeline_mode<synchronous>, transform_indices = @transform_2, window_bounds = array<i64: 1, 512>}, {pipeline_mode = #tpu.pipeline_mode<synchronous>, transform_indices = @transform_3, window_bounds = array<i64: 512, 128>}, {pipeline_mode = #tpu.pipeline_mode<synchronous>, transform_indices = @transform_4, window_bounds = array<i64: 1, 128>}, {pipeline_mode = #tpu.pipeline_mode<synchronous>, transform_indices = @transform_5, window_bounds = array<i64: 2, 128>}]} {
    %c0 = arith.constant 0 : index
    %c0_0 = arith.constant 0 : index
    %0 = vector.load %arg1[%c0, %c0_0] : memref<2x3136xbf16, #tpu.memory_space<vmem>>, vector<2x3136xbf16>
    %c0_1 = arith.constant 0 : index
    %c0_2 = arith.constant 0 : index
    %1 = vector.load %arg2[%c0_1, %c0_2] : memref<3136x512xbf16, #tpu.memory_space<vmem>>, vector<3136x512xbf16>
    %cst = arith.constant dense<0.000000e+00> : vector<2x512xf32>
    %2 = tpu.matmul %0, %1, %cst {dimension_numbers = #tpu.dot_dimension_numbers<[1], [0], [0], [1], [0, 0, 1, 1], [], []>} : vector<2x3136xbf16>, vector<3136x512xbf16>, vector<2x512xf32> -> vector<2x512xf32>
    %c0_3 = arith.constant 0 : index
    %c0_4 = arith.constant 0 : index
    %3 = vector.load %arg3[%c0_3, %c0_4] : memref<1x512xf32, #tpu.memory_space<vmem>>, vector<1x512xf32>
    %4 = vector.broadcast %3 : vector<1x512xf32> to vector<2x512xf32>
    %5 = arith.addf %2, %4 : vector<2x512xf32>
    %cst_5 = arith.constant 0.000000e+00 : f32
    %6 = vector.broadcast %cst_5 : f32 to vector<2x512xf32>
    %7 = arith.maximumf %5, %6 : vector<2x512xf32>
    %8 = arith.truncf %7 : vector<2x512xf32> to vector<2x512xbf16>
    %c0_6 = arith.constant 0 : index
    %c0_7 = arith.constant 0 : index
    %9 = vector.load %arg4[%c0_6, %c0_7] : memref<512x128xbf16, #tpu.memory_space<vmem>>, vector<512x128xbf16>
    %cst_8 = arith.constant dense<0.000000e+00> : vector<2x128xf32>
    %10 = tpu.matmul %8, %9, %cst_8 {dimension_numbers = #tpu.dot_dimension_numbers<[1], [0], [0], [1], [0, 0, 1, 1], [], []>} : vector<2x512xbf16>, vector<512x128xbf16>, vector<2x128xf32> -> vector<2x128xf32>
    %c0_9 = arith.constant 0 : index
    %c0_10 = arith.constant 0 : index
    %11 = vector.load %arg5[%c0_9, %c0_10] : memref<1x128xf32, #tpu.memory_space<vmem>>, vector<1x128xf32>
    %12 = vector.broadcast %11 : vector<1x128xf32> to vector<2x128xf32>
    %13 = arith.addf %10, %12 : vector<2x128xf32>
    %c0_11 = arith.constant 0 : index
    %c0_12 = arith.constant 0 : index
    %14 = vector.load %arg6[%c0_11, %c0_12] : memref<2x128xf32, #tpu.memory_space<vmem>>, vector<2x128xf32>
    tpu.vector_store %arg6[%c0_11, %c0_12], %13 {strides = array<i32>} : memref<2x128xf32, #tpu.memory_space<vmem>>, vector<2x128xf32>,
    return
  }
  func.func @transform_0(%arg0: i32) -> (i32, i32) {
    %c0_i32 = arith.constant 0 : i32
    %c0_i32_0 = arith.constant 0 : i32
    %c0_i32_1 = arith.constant 0 : i32
    return %c0_i32, %c0_i32_0 : i32, i32
  }
  func.func @transform_1(%arg0: i32) -> (i32, i32) {
    %c0_i32 = arith.constant 0 : i32
    %c0_i32_0 = arith.constant 0 : i32
    %c0_i32_1 = arith.constant 0 : i32
    return %c0_i32, %c0_i32_0 : i32, i32
  }
  func.func @transform_2(%arg0: i32) -> (i32, i32) {
    %c0_i32 = arith.constant 0 : i32
    %c0_i32_0 = arith.constant 0 : i32
    %c0_i32_1 = arith.constant 0 : i32
    return %c0_i32, %c0_i32_0 : i32, i32
  }
  func.func @transform_3(%arg0: i32) -> (i32, i32) {
    %c0_i32 = arith.constant 0 : i32
    %c0_i32_0 = arith.constant 0 : i32
    %c0_i32_1 = arith.constant 0 : i32
    return %c0_i32, %c0_i32_0 : i32, i32
  }
  func.func @transform_4(%arg0: i32) -> (i32, i32) {
    %c0_i32 = arith.constant 0 : i32
    %c0_i32_0 = arith.constant 0 : i32
    %c0_i32_1 = arith.constant 0 : i32
    return %c0_i32, %c0_i32_0 : i32, i32
  }
  func.func @transform_5(%arg0: i32) -> (i32, i32) {
    %c0_i32 = arith.constant 0 : i32
    %c0_i32_0 = arith.constant 0 : i32
    %c0_i32_1 = arith.constant 0 : i32
    return %c0_i32, %c0_i32_0 : i32, i32
  }
}

</mosaic_0001>

<bundles_post_ra>
// kernel: dqn_forward.2
= control target key start
LH: loop header
LB: loop body
LE: loop exit
PB: predicated region body
PF: predicated region fallthrough
CT: control target
= control target key end

     0   :  { %v9994_v33 = vmov 0.0   ;;  %vm7668_vm0 = vmmov 0   ;;  %vm714_vm1 = vcmask 523264   ;;  %vm1569_vm2 = vcmask 1042432   ;;  %s9985_s1 = inlined_call_operand.vmem [shape: bf16[576,128], index: 1, kind: input, shape index: {}]   ;;  %s9986_s0 = inlined_call_operand.vmem [shape: bf16[200,576], index: 0, kind: input, shape index: {}]   ;;  %s9987_s3 = inlined_call_operand.vmem [shape: bf16[4,128,64], index: 3, kind: input, shape index: {}]   ;;  %s9988_s2 = inlined_call_operand.vmem [shape: f32[1,128], index: 2, kind: input, shape index: {}]   ;;  %s9989_s5 = inlined_call_operand.vmem [shape: bf16[9,64,64], index: 5, kind: input, shape index: {}]   ;;  %s9990_s4 = inlined_call_operand.vmem [shape: f32[1,64], index: 4, kind: input, shape index: {}]   ;;  %s9991_s6 = inlined_call_operand.vmem [shape: f32[1,64], index: 6, kind: input, shape index: {}]   ;;  %s9992_s7 = inlined_call_operand.vmem [shape: bf16[2,7,7,64], index: 7, kind: output, shape index: {}]  }
   0x1   :  { %v7406_v0 = vld [vmem:[%s9985_s1 + $0x78] sm:$0xff]   ;;  %v7410_v4 = vld [vmem:[%s9985_s1 + $0x70] sm:$0xff]   ;;  %v7414_v8 = vld [vmem:[%s9985_s1 + $0x68] sm:$0xff]   ;;  %vm1233_vm3 = vsmask.f32 7424  ;;  %vm2816_vm5 = vcmask 1045504  }
   0x2   :  { %v7407_v1 = vld [vmem:[%s9985_s1 + $0x38] sm:$0xff]   ;;  %6129 = vmatprep.subr.bf16.mxu0 %v7406_v0  ;;  %v7411_v5 = vld [vmem:[%s9985_s1 + $0x30] sm:$0xff]   ;;  %v7415_v9 = vld [vmem:[%s9985_s1 + $0x28] sm:$0xff]   ;;  %vm1747_vm4 = vsmask.f32 2304  ;;  %vm3308_vm6 = vcmask 1040384  }
   0x3   :  { %v7408_v2 = vld [vmem:[%s9985_s1 + $0xf8] sm:$0xff]   ;;  %6130 = vmatpush3.bf16.msra.mxu0 %v7407_v1  ;;  %v7412_v6 = vld [vmem:[%s9985_s1 + $0xf0] sm:$0xff]   ;;  %v7416_v10 = vld [vmem:[%s9985_s1 + $0xe8] sm:$0xff]   ;;  %vm2955_vm7 = vsmask.f32 5376  ;;  %vm2251_vm9 = vcmask 1046528  }
   0x4   :  { %v7409_v3 = vld [vmem:[%s9985_s1 + $0xb8] sm:$0xff]   ;;  %6223 = vmatprep.subr.bf16.mxu1 %v7408_v2  ;;  %6131 = vmatprep.subr.bf16.mxu0 %v7410_v4  ;;  %v7413_v7 = vld [vmem:[%s9985_s1 + $0xb0] sm:$0xff]   ;;  %v7417_v11 = vld [vmem:[%s9985_s1 + $0xa8] sm:$0xff]   ;;  %vm3912_vm8 = vsmask.f32 256  ;;  %vm2676_vm10 = vcmask 1041408  }
   0x5   :  { %6224 = vmatpush3.bf16.msra.mxu1 %v7409_v3  ;;  %v7418_v12 = vld [vmem:[%s9985_s1 + $0x60] sm:$0xff]   ;;  %v7422_v16 = vld [vmem:[%s9985_s1 + $0x58] sm:$0xff]   ;;  %v7426_v20 = vld [vmem:[%s9985_s1 + $0x50] sm:$0xff]   ;;  %vm3109_vm11 = vcmask 1044480   ;;  %vm3269_vm12 = vcmask 519168   ;;  %vm3281_vm15 = vcmask 1046532  }
   0x6   :  { %6225 = vmatprep.subr.bf16.mxu1 %v7412_v6  ;;  %v7419_v13 = vld [vmem:[%s9985_s1 + $0x20] sm:$0xff]   ;;  %v7423_v17 = vld [vmem:[%s9985_s1 + $0x18] sm:$0xff]   ;;  %v7427_v21 = vld [vmem:[%s9985_s1 + $0x10] sm:$0xff]   ;;  %vm3270_vm13 = vsmask.f32 3328 }
   0x7   :  { %6132 = vmatpush3.bf16.msra.mxu0 %v7411_v5  ;;  %v7420_v14 = vld [vmem:[%s9985_s1 + $0xe0] sm:$0xff]   ;;  %v7424_v18 = vld [vmem:[%s9985_s1 + $0xd8] sm:$0xff]   ;;  %v7428_v22 = vld [vmem:[%s9985_s1 + $0xd0] sm:$0xff]  }
   0x8   :  { %6133 = vmatprep.subr.bf16.mxu0 %v7414_v8  ;;  %v7421_v15 = vld [vmem:[%s9985_s1 + $0xa0] sm:$0xff]   ;;  %v7425_v19 = vld [vmem:[%s9985_s1 + $0x98] sm:$0xff]   ;;  %v7429_v23 = vld [vmem:[%s9985_s1 + $0x90] sm:$0xff]  }
   0x9   :  { %6226 = vmatpush3.bf16.msra.mxu1 %v7413_v7  ;;  %v7430_v24 = vld [vmem:[%s9985_s1 + $0x48] sm:$0xff]   ;;  %v7434_v28 = vld [vmem:[%s9985_s1 + $0x40] sm:$0xff]   ;;  %v7444_v37 = vld [vmem:[%s9985_s1 + $0x118] sm:$0xff]  }
   0xa   :  { %6227 = vmatprep.subr.bf16.mxu1 %v7416_v10  ;;  %v7431_v25 = vld [vmem:[%s9985_s1 + $0x8] sm:$0xff]   ;;  %v7435_v29 = vld [vmem:[%s9985_s1] sm:$0xff]   ;;  %v7454_v43 = vld [vmem:[%s9986_s0 + $0x5c] ss:$20 sps:$4 sm:$0xff]  }
   0xb   :  { %6134 = vmatpush3.bf16.msra.mxu0 %v7415_v9  ;;  %v7432_v26 = vld [vmem:[%s9985_s1 + $0xc8] sm:$0xff]   ;;  %v7436_v30 = vld [vmem:[%s9985_s1 + $0xc0] sm:$0xff]   ;;  %v7463_v44 = vld [vmem:[%s9985_s1 + $0x110] sm:$0xff]  }
   0xc   :  { %6135 = vmatprep.subr.bf16.mxu0 %v7418_v12  ;;  %v7433_v27 = vld [vmem:[%s9985_s1 + $0x88] sm:$0xff]   ;;  %v7437_v31 = vld [vmem:[%s9986_s0] ss:$20 sps:$4 sm:$0xff]   ;;  %v7439_v32 = vld [vmem:[%s9986_s0 + $0x4] ss:$20 sps:$4 sm:$0xff]  }
   0xd   :  { %6228 = vmatpush3.bf16.msra.mxu1 %v7417_v11  ;;  %v7440_v34 = vld [vmem:[%s9985_s1 + $0x80] sm:$0xff]   ;;  %786 = vmatprep.mubr.bf16.mxu0 %v7439_v32  ;;  %v7441_v35 = vld [vmem:[%s9986_s0 + $0x8] ss:$20 sps:$4 sm:$0xff]   ;;  %v7456_v47 = vld [vmem:[%s9986_s0 + $0x58] ss:$20 sps:$4 sm:$0xff]  }
   0xe   :  { %6229 = vmatprep.subr.bf16.mxu1 %v7420_v14  ;;  %v7443_v36 = vld [vmem:[%s9986_s0 + $0xc] ss:$20 sps:$4 sm:$0xff]   ;;  %v7448_v39 = vld [vmem:[%s9986_s0 + $0x34] ss:$20 sps:$4 sm:$0xff]   ;;  %v7450_v42 = vld [vmem:[%s9986_s0 + $0x30] ss:$20 sps:$4 sm:$0xff]  }
   0xf   :  { %6136 = vmatpush3.bf16.msra.mxu0 %v7419_v13  ;;  %922 = vmatprep.mubr.bf16.mxu1 %v7443_v36  ;;  %v7445_v38 = vld [vmem:[%s9986_s0 + $0x2c] ss:$20 sps:$4 sm:$0xff]   ;;  %v7447_v40 = vld [vmem:[%s9986_s0 + $0x28] ss:$20 sps:$4 sm:$0xff]   ;;  %v7453_v45 = vld [vmem:[%s9986_s0 + $0x50] ss:$20 sps:$4 sm:$0xff]  }
  0x10   :  { %6137 = vmatprep.subr.bf16.mxu0 %v7422_v16  ;;  %v7451_v41 = vld [vmem:[%s9986_s0 + $0x54] ss:$20 sps:$4 sm:$0xff]   ;;  %v7457_v46 = vld [vmem:[%s9986_s0 + $0x7c] ss:$20 sps:$4 sm:$0xff]   ;;  %v7460_v48 = vld [vmem:[%s9986_s0 + $0x84] ss:$20 sps:$4 sm:$0xff]  }
  0x11   :  { %6230 = vmatpush3.bf16.msra.mxu1 %v7421_v15  ;;  %v7482_v49 = vld [vmem:[%s9985_s1 + $0x108] sm:$0xff]   ;;  %v7464_v51 = vld [vmem:[%s9986_s0 + $0xa4] ss:$20 sps:$4 sm:$0xff]   ;;  %v7462_v52 = vld [vmem:[%s9986_s0 + $0x80] ss:$20 sps:$4 sm:$0xff]  }
  0x12   :  { %6231 = vmatprep.subr.bf16.mxu1 %v7424_v18  ;;  %v7459_v50 = vld [vmem:[%s9986_s0 + $0x78] ss:$20 sps:$4 sm:$0xff]   ;;  %v7466_v54 = vld [vmem:[%s9986_s0 + $0xa0] ss:$20 sps:$4 sm:$0xff]   ;;  %v7469_v57 = vld [vmem:[%s9986_s0 + $0xa8] ss:$20 sps:$4 sm:$0xff]  }
  0x13   :  { %6138 = vmatpush3.bf16.msra.mxu0 %v7423_v17  ;;  %v7467_v53 = vld [vmem:[%s9986_s0 + $0xac] ss:$20 sps:$4 sm:$0xff]   ;;  %v7473_v58 = vld [vmem:[%s9986_s0 + $0xd4] ss:$20 sps:$4 sm:$0xff]   ;;  %v7475_v61 = vld [vmem:[%s9986_s0 + $0xd0] ss:$20 sps:$4 sm:$0xff]  }
  0x14   :  { %6139 = vmatprep.subr.bf16.mxu0 %v7426_v20  ;;  %v7503_v55 = vld [vmem:[%s9985_s1 + $0x100] sm:$0xff]   ;;  %v7472_v59 = vld [vmem:[%s9986_s0 + $0xc8] ss:$20 sps:$4 sm:$0xff]   ;;  %v7481_v1 = vld [vmem:[%s9986_s0 + $0xf8] ss:$20 sps:$4 sm:$0xff]  }
  0x15   :  { %6232 = vmatpush3.bf16.msra.mxu1 %v7425_v19  ;;  %v7470_v56 = vld [vmem:[%s9986_s0 + $0xcc] ss:$20 sps:$4 sm:$0xff]   ;;  %v7476_v60 = vld [vmem:[%s9986_s0 + $0xf4] ss:$20 sps:$4 sm:$0xff]   ;;  %v7479_v62 = vld [vmem:[%s9986_s0 + $0xfc] ss:$20 sps:$4 sm:$0xff]  }
  0x16   :  { %6233 = vmatprep.subr.bf16.mxu1 %v7428_v22  ;;  %v7478_v63 = vld [vmem:[%s9986_s0 + $0xf0] ss:$20 sps:$4 sm:$0xff]   ;;  %v7485_v3 = vld [vmem:[%s9986_s0 + $0x118] ss:$20 sps:$4 sm:$0xff]   ;;  %v7488_v5 = vld [vmem:[%s9986_s0 + $0x120] ss:$20 sps:$4 sm:$0xff]  }
  0x17   :  { %6140 = vmatpush3.bf16.msra.mxu0 %v7427_v21  ;;  %v7483_v0 = vld [vmem:[%s9986_s0 + $0x11c] ss:$20 sps:$4 sm:$0xff]   ;;  %v7486_v2 = vld [vmem:[%s9986_s0 + $0x124] ss:$20 sps:$4 sm:$0xff]   ;;  %v7492_v6 = vld [vmem:[%s9986_s0 + $0x14c] ss:$20 sps:$4 sm:$0xff]  }
  0x18   :  { %6141 = vmatprep.subr.bf16.mxu0 %v7430_v24  ;;  %v7489_v4 = vld [vmem:[%s9986_s0 + $0x144] ss:$20 sps:$4 sm:$0xff]   ;;  %v7491_v7 = vld [vmem:[%s9986_s0 + $0x140] ss:$20 sps:$4 sm:$0xff]   ;;  %v7494_v9 = vld [vmem:[%s9986_s0 + $0x148] ss:$20 sps:$4 sm:$0xff]  }
  0x19   :  { %6234 = vmatpush3.bf16.msra.mxu1 %v7429_v23  ;;  %v7495_v8 = vld [vmem:[%s9986_s0 + $0x16c] ss:$20 sps:$4 sm:$0xff]   ;;  %v7498_v10 = vld [vmem:[%s9986_s0 + $0x174] ss:$20 sps:$4 sm:$0xff]   ;;  %v7500_v13 = vld [vmem:[%s9986_s0 + $0x170] ss:$20 sps:$4 sm:$0xff]  }
  0x1a   :  { %6235 = vmatprep.subr.bf16.mxu1 %v7432_v26  ;;  %v7497_v11 = vld [vmem:[%s9986_s0 + $0x168] ss:$20 sps:$4 sm:$0xff]   ;;  %v7504_v15 = vld [vmem:[%s9986_s0 + $0x190] ss:$20 sps:$4 sm:$0xff]   ;;  %v7507_v17 = vld [vmem:[%s9986_s0 + $0x198] ss:$20 sps:$4 sm:$0xff]  }
  0x1b   :  { %6142 = vmatpush3.bf16.msra.mxu0 %v7431_v25  ;;  %v7501_v12 = vld [vmem:[%s9986_s0 + $0x194] ss:$20 sps:$4 sm:$0xff]   ;;  %v7505_v14 = vld [vmem:[%s9986_s0 + $0x19c] ss:$20 sps:$4 sm:$0xff]   ;;  %v7511_v18 = vld [vmem:[%s9986_s0 + $0x1c4] ss:$20 sps:$4 sm:$0xff]  }
  0x1c   :  { %6143 = vmatprep.subr.bf16.mxu0 %v7434_v28  ;;  %v7508_v16 = vld [vmem:[%s9986_s0 + $0x1bc] ss:$20 sps:$4 sm:$0xff]   ;;  %v99_v19 = vld [vmem:[%s9986_s0 + $0x1e0] sm:$0xff]  ;;  %v7510_v20 = vld [vmem:[%s9986_s0 + $0x1b8] ss:$20 sps:$4 sm:$0xff]  }
  0x1d   :  { %6236 = vmatpush3.bf16.msra.mxu1 %v7433_v27  ;;  %v5554_v21 = vcombine.high %v99_v19, %v99_v19  ;;  %v100_v22 = vld [vmem:[%s9986_s0 + $0x1e8] sm:$0xff]  ;;  %v7513_v23 = vld [vmem:[%s9986_s0 + $0x1c0] ss:$20 sps:$4 sm:$0xff]   ;;  %v5553_v25 = vcombine.low %v99_v19, %v99_v19  ;;  %v7518_v27 = vld [vmem:[%s9986_s0 + $0x10] ss:$20 sps:$4 sm:$0xff]  }
  0x1e   :  { %6237 = vmatprep.subr.bf16.mxu1 %v7436_v30  ;;  %v5556_v24 = vcombine.high %v100_v22, %v100_v22  ;;  %v5555_v26 = vcombine.low %v100_v22, %v100_v22  ;;  %v7531_v28 = vld [vmem:[%s9987_s3 + $0x78] sm:$0xff]   ;;  %v7532_v30 = vld [vmem:[%s9987_s3 + $0x70] sm:$0xff]   ;;  %vm9249_vm14 = vmand %vm3269_vm12, %vm3270_vm13  ;;  %vm3294_vm12 = vcmask 1045508  }
  0x1f   :  { %6144 = vmatpush3.bf16.msra.mxu0 %v7435_v29  ;;  %v7519_v29 = vld [vmem:[%s9986_s0 + $0x38] ss:$20 sps:$4 sm:$0xff]   ;;  %v7521_v32 = vld [vmem:[%s9986_s0 + $0x88] ss:$20 sps:$4 sm:$0xff]   ;;  %vm9291_vm13 = vmor %vm2676_vm10, %vm3294_vm12 }
  0x20   :  { %6608 = vmatprep.subr.bf16.mxu0 %v9994_v33  ;;  %v7523_v36 = vld [vmem:[%s9986_s0 + $0xd8] ss:$20 sps:$4 sm:$0xff]  }
  0x21   :  { %6238 = vmatpush3.bf16.msra.mxu1 %v7440_v34  ;;  %v7533_v34 = vld [vmem:[%s9987_s3 + $0x68] sm:$0xff]  }
  0x22   :  { %787 = vmatmul.mubr.bf16.vlgmr.msra.gmra.mxu0 %v7437_v31  ;;  %6668 = vmatprep.subr.bf16.mxu1 %v7531_v28  ;;  %v7520_v31 = vld [vmem:[%s9986_s0 + $0x60] ss:$20 sps:$4 sm:$0xff]  }
  0x23   :  { %6609 = vmatpush3.bf16.msra.mxu0 %v7444_v37  ;;  %794 = vmatprep.mubr.bf16.mxu0 %v7445_v38  ;;  %v7534_v37 = vld [vmem:[%s9987_s3 + $0x60] sm:$0xff]  }
  0x24   :  { %923 = vmatmul.mubr.bf16.vlgmr.msra.gmra.mxu1 %v7441_v35  ;;  %6610 = vmatprep.subr.bf16.mxu0 %v9994_v33  ;;  %v7522_v35 = vld [vmem:[%s9986_s0 + $0xb0] ss:$20 sps:$4 sm:$0xff]   ;;  %v7524_v38 = vld [vmem:[%s9986_s0 + $0x100] ss:$20 sps:$4 sm:$0xff]  }
  0x25   :  { %930 = vmatprep.mubr.bf16.mxu1 %v7448_v39  ;;  %6669 = vmatpush3.bf16.msra.mxu1 %v7531_v28  ;;  %v7535_v39 = vld [vmem:[%s9987_s3 + $0x58] sm:$0xff]  }
  0x26   :  { %6670 = vmatprep.subr.bf16.mxu1 %v7532_v30 }
  0x27   :  { %6611 = vmatpush3.bf16.msra.mxu0 %v7463_v44  ;;  %v7537_v44 = vld [vmem:[%s9987_s3 + $0x48] sm:$0xff]  }
  0x28   :  { %6612 = vmatprep.subr.bf16.mxu0 %v9994_v33 }
  0x29   :  { %6671 = vmatpush3.bf16.msra.mxu1 %v7532_v30 }
  0x2a   :  { %795 = vmatmul.mubr.bf16.gmra.mxu0 %v7447_v40  ;;  %6672 = vmatprep.subr.bf16.mxu1 %v7533_v34  ;;  %v7525_v40 = vld [vmem:[%s9986_s0 + $0x128] ss:$20 sps:$4 sm:$0xff]  }
  0x2b   :  { %802 = vmatprep.mubr.bf16.mxu0 %v7451_v41  ;;  %6613 = vmatpush3.bf16.msra.mxu0 %v7482_v49  ;;  %v7526_v41 = vld [vmem:[%s9986_s0 + $0x150] ss:$20 sps:$4 sm:$0xff]  }
  0x2c   :  { %931 = vmatmul.mubr.bf16.gmra.mxu1 %v7450_v42  ;;  %6614 = vmatprep.subr.bf16.mxu0 %v9994_v33  ;;  %v7536_v42 = vld [vmem:[%s9987_s3 + $0x50] sm:$0xff]  }
  0x2d   :  { %938 = vmatprep.mubr.bf16.mxu1 %v7454_v43  ;;  %6673 = vmatpush3.bf16.msra.mxu1 %v7533_v34  ;;  %v7527_v43 = vld [vmem:[%s9986_s0 + $0x178] ss:$20 sps:$4 sm:$0xff]  }
  0x2e   :  { %6674 = vmatprep.subr.bf16.mxu1 %v7534_v37 }
  0x2f   :  { %6615 = vmatpush3.bf16.msra.mxu0 %v7503_v55 }
  0x30   :  { %6780 = vmatprep.subr.bf16.mxu0 %v9994_v33 }
  0x31   :  { %6675 = vmatpush3.bf16.msra.mxu1 %v7534_v37 }
  0x32   :  { %803 = vmatmul.mubr.bf16.gmra.mxu0 %v7453_v45  ;;  %6676 = vmatprep.subr.bf16.mxu1 %v7535_v39  ;;  %v7528_v45 = vld [vmem:[%s9986_s0 + $0x1a0] ss:$20 sps:$4 sm:$0xff]  }
  0x33   :  { %810 = vmatprep.mubr.bf16.mxu0 %v7457_v46  ;;  %v7529_v46 = vld [vmem:[%s9986_s0 + $0x1c8] ss:$20 sps:$4 sm:$0xff]  }
  0x34   :  { %939 = vmatmul.mubr.bf16.gmra.mxu1 %v7456_v47 }
  0x35   :  { %946 = vmatprep.mubr.bf16.mxu1 %v7460_v48  ;;  %6677 = vmatpush3.bf16.msra.mxu1 %v7535_v39  ;;  %v8070_v48 = vld [vmem:[%s9988_s2] ss:$0 sm:$0xff] }
  0x36   :  { %6678 = vmatprep.subr.bf16.mxu1 %v7536_v42 }
  0x39   :  { %6679 = vmatpush3.bf16.msra.mxu1 %v7536_v42 }
  0x3a   :  { %811 = vmatmul.mubr.bf16.gmra.mxu0 %v7459_v50  ;;  %6680 = vmatprep.subr.bf16.mxu1 %v7537_v44 }
  0x3b   :  { %818 = vmatprep.mubr.bf16.mxu0 %v7464_v51 }
  0x3c   :  { %947 = vmatmul.mubr.bf16.gmra.mxu1 %v7462_v52  ;;  %v7538_v52 = vld [vmem:[%s9987_s3 + $0x40] sm:$0xff]  }
  0x3d   :  { %954 = vmatprep.mubr.bf16.mxu1 %v7467_v53  ;;  %6681 = vmatpush3.bf16.msra.mxu1 %v7537_v44 }
  0x3e   :  { %6682 = vmatprep.subr.bf16.mxu1 %v7538_v52 }
  0x41   :  { %6683 = vmatpush3.bf16.msra.mxu1 %v7538_v52 }
  0x42   :  { %819 = vmatmul.mubr.bf16.gmra.mxu0 %v7466_v54  ;;  %v7530_v54 = vld [vmem:[%s9986_s0 + $0x1f0] ss:$0 sps:$4 sm:$0xff]  }
  0x43   :  { %826 = vmatprep.mubr.bf16.mxu0 %v7470_v56 }
  0x44   :  { %955 = vmatmul.mubr.bf16.gmra.mxu1 %v7469_v57 }
  0x45   :  { %962 = vmatprep.mubr.bf16.mxu1 %v7473_v58 }
  0x4a   :  { %827 = vmatmul.mubr.bf16.gmra.mxu0 %v7472_v59 }
  0x4b   :  { %834 = vmatprep.mubr.bf16.mxu0 %v7476_v60 }
  0x4c   :  { %963 = vmatmul.mubr.bf16.gmra.mxu1 %v7475_v61  ;;  %v8082_v61 = vld [vmem:[%s9987_s3 + $0x38] sm:$0xff]  }
  0x4d   :  { %970 = vmatprep.mubr.bf16.mxu1 %v7479_v62  ;;  %6696 = vmatprep.subr.bf16.mxu1 %v8082_v61 }
  0x52   :  { %835 = vmatmul.mubr.bf16.gmra.mxu0 %v7478_v63 }
  0x53   :  { %842 = vmatprep.mubr.bf16.mxu0 %v7483_v0 }
  0x54   :  { %971 = vmatmul.mubr.bf16.gmra.mxu1 %v7481_v1 }
  0x55   :  { %978 = vmatprep.mubr.bf16.mxu1 %v7486_v2 }
  0x5a   :  { %843 = vmatmul.mubr.bf16.gmra.mxu0 %v7485_v3 }
  0x5b   :  { %850 = vmatprep.mubr.bf16.mxu0 %v7489_v4 }
  0x5c   :  { %979 = vmatmul.mubr.bf16.gmra.mxu1 %v7488_v5 }
  0x5d   :  { %986 = vmatprep.mubr.bf16.mxu1 %v7492_v6 }
  0x62   :  { %851 = vmatmul.mubr.bf16.gmra.mxu0 %v7491_v7 }
  0x63   :  { %858 = vmatprep.mubr.bf16.mxu0 %v7495_v8 }
  0x64   :  { %987 = vmatmul.mubr.bf16.gmra.mxu1 %v7494_v9 }
  0x65   :  { %994 = vmatprep.mubr.bf16.mxu1 %v7498_v10 }
  0x6a   :  { %859 = vmatmul.mubr.bf16.gmra.mxu0 %v7497_v11 }
  0x6b   :  { %866 = vmatprep.mubr.bf16.mxu0 %v7501_v12 }
  0x6c   :  { %995 = vmatmul.mubr.bf16.gmra.mxu1 %v7500_v13 }
  0x6d   :  { %1002 = vmatprep.mubr.bf16.mxu1 %v7505_v14 }
  0x72   :  { %867 = vmatmul.mubr.bf16.gmra.mxu0 %v7504_v15 }
  0x73   :  { %874 = vmatprep.mubr.bf16.mxu0 %v7508_v16 }
  0x74   :  { %1003 = vmatmul.mubr.bf16.gmra.mxu1 %v7507_v17 }
  0x75   :  { %1010 = vmatprep.mubr.bf16.mxu1 %v7511_v18 }
  0x7a   :  { %875 = vmatmul.mubr.bf16.gmra.mxu0 %v7510_v20 }
  0x7b   :  { %882 = vmatprep.mubr.bf16.mxu0 %v5554_v21 }
  0x7c   :  { %1011 = vmatmul.mubr.bf16.gmra.mxu1 %v7513_v23 }
  0x7d   :  { %1018 = vmatprep.mubr.bf16.mxu1 %v5556_v24 }
  0x82   :  { %883 = vmatmul.mubr.bf16.gmra.mxu0 %v5553_v25 }
  0x83   :  { %6616 = vmatprep.mubr.msk.bf16.mxu0 %vm7668_vm0, %v9994_v33 }
  0x84   :  { %1019 = vmatmul.mubr.bf16.gmra.mxu1 %v5555_v26 }
  0x8a   :  { %6617 = vmatmul.mubr.msk.bf16.vlgmr.msra.gmra.mxu0 %vm714_vm1, %v7518_v27 }
  0x8b   :  { %6620 = vmatprep.mubr.msk.bf16.mxu0 %vm7668_vm0, %v9994_v33 }
  0x92   :  { %6621 = vmatmul.mubr.msk.bf16.gmra.mxu0 %vm714_vm1, %v7519_v29 }
  0x93   :  { %6624 = vmatprep.mubr.msk.bf16.mxu0 %vm7668_vm0, %v9994_v33 }
  0x9a   :  { %6625 = vmatmul.mubr.msk.bf16.gmra.mxu0 %vm714_vm1, %v7520_v31 }
  0x9b   :  { %6628 = vmatprep.mubr.msk.bf16.mxu0 %vm7668_vm0, %v9994_v33 }
  0xa2   :  { %6629 = vmatmul.mubr.msk.bf16.gmra.mxu0 %vm714_vm1, %v7521_v32 }
  0xa3   :  { %6632 = vmatprep.mubr.msk.bf16.mxu0 %vm7668_vm0, %v9994_v33 }
  0xaa   :  { %6633 = vmatmul.mubr.msk.bf16.gmra.mxu0 %vm714_vm1, %v7522_v35 }
  0xab   :  { %6636 = vmatprep.mubr.msk.bf16.mxu0 %vm7668_vm0, %v9994_v33 }
  0xb2   :  { %6637 = vmatmul.mubr.msk.bf16.gmra.mxu0 %vm714_vm1, %v7523_v36 }
  0xb3   :  { %6640 = vmatprep.mubr.msk.bf16.mxu0 %vm7668_vm0, %v9994_v33 }
  0xba   :  { %6641 = vmatmul.mubr.msk.bf16.gmra.mxu0 %vm714_vm1, %v7524_v38 }
  0xbb   :  { %6644 = vmatprep.mubr.msk.bf16.mxu0 %vm7668_vm0, %v9994_v33 }
  0xc2   :  { %6645 = vmatmul.mubr.msk.bf16.gmra.mxu0 %vm714_vm1, %v7525_v40 }
  0xc3   :  { %6648 = vmatprep.mubr.msk.bf16.mxu0 %vm7668_vm0, %v9994_v33 }
  0xca   :  { %6649 = vmatmul.mubr.msk.bf16.gmra.mxu0 %vm714_vm1, %v7526_v41 }
  0xcb   :  { %6652 = vmatprep.mubr.msk.bf16.mxu0 %vm7668_vm0, %v9994_v33 }
  0xd2   :  { %6653 = vmatmul.mubr.msk.bf16.gmra.mxu0 %vm714_vm1, %v7527_v43 }
  0xd3   :  { %6656 = vmatprep.mubr.msk.bf16.mxu0 %vm7668_vm0, %v9994_v33 }
  0xda   :  { %6657 = vmatmul.mubr.msk.bf16.gmra.mxu0 %vm714_vm1, %v7528_v45 }
  0xdb   :  { %6660 = vmatprep.mubr.msk.bf16.mxu0 %vm7668_vm0, %v9994_v33 }
  0xe2   :  { %v6145_v47 = vpop.f32.mrf.mxu0  ;;  %6661 = vmatmul.mubr.msk.bf16.gmra.mxu0 %vm714_vm1, %v7529_v46 }
  0xe3   :  { %6664 = vmatprep.mubr.msk.bf16.mxu0 %vm7668_vm0, %v9994_v33 }
  0xe4   :  { %v6146_v49 = vpop.f32.mrf.mxu0  ;;  %v6239_v51 = vpop.f32.mrf.mxu1 }
  0xe5   :  { %v6147_v50 = vadd.f32 %v6146_v49, %v6145_v47 }
  0xe6   :  { %v6148_v53 = vpop.f32.mrf.mxu0  ;;  %v6240_v56 = vpop.f32.mrf.mxu1 }
  0xe7   :  { %v789_v55 = vadd.f32 %v6147_v50, %v8070_v48  ;;  %v6241_v57 = vadd.f32 %v6240_v56, %v6239_v51 }
  0xe8   :  { %v6149_v58 = vpop.f32.mrf.mxu0  ;;  %v6242_v60 = vpop.f32.mrf.mxu1 }
  0xe9   :  { %v6150_v59 = vadd.f32 %v6149_v58, %v6148_v53  ;;  %v8085_v63 = vadd.f32 %v6241_v57, %v789_v55 }
  0xea   :  { %v6151_v62 = vpop.f32.mrf.mxu0  ;;  %6665 = vmatmul.mubr.msk.bf16.gmra.mxu0 %vm714_vm1, %v7530_v54  ;;  %v6243_v1 = vpop.f32.mrf.mxu1 }
  0xeb   :  { %v792_v0 = vadd.f32 %v6150_v59, %v8070_v48  ;;  %6788 = vmatprep.mubr.msk.bf16.mxu0 %vm7668_vm0, %v9994_v33  ;;  %v6244_v2 = vadd.f32 %v6243_v1, %v6242_v60 }
  0xec   :  { %v6152_v3 = vpop.f32.mrf.mxu0  ;;  %v6245_v5 = vpop.f32.mrf.mxu1 }
  0xed   :  { %v6153_v4 = vadd.f32 %v6152_v3, %v6151_v62  ;;  %v8091_v7 = vadd.f32 %v6244_v2, %v792_v0 }
  0xee   :  { %v6154_v6 = vpop.f32.mrf.mxu0  ;;  %v6246_v9 = vpop.f32.mrf.mxu1 }
  0xef   :  { %v797_v8 = vadd.f32 %v6153_v4, %v8070_v48  ;;  %v6247_v10 = vadd.f32 %v6246_v9, %v6245_v5 }
  0xf0   :  { %v6155_v11 = vpop.f32.mrf.mxu0  ;;  %v6248_v13 = vpop.f32.mrf.mxu1 }
  0xf1   :  { %v6156_v12 = vadd.f32 %v6155_v11, %v6154_v6  ;;  %v8094_v15 = vadd.f32 %v6247_v10, %v797_v8 }
  0xf2   :  { %v6157_v14 = vpop.f32.mrf.mxu0  ;;  %v6249_v17 = vpop.f32.mrf.mxu1 }
  0xf3   :  { %v800_v16 = vadd.f32 %v6156_v12, %v8070_v48  ;;  %v6250_v18 = vadd.f32 %v6249_v17, %v6248_v13 }
  0xf4   :  { %v6158_v19 = vpop.f32.mrf.mxu0  ;;  %v6251_v21 = vpop.f32.mrf.mxu1 }
  0xf5   :  { %v6159_v20 = vadd.f32 %v6158_v19, %v6157_v14  ;;  %v8097_v23 = vadd.f32 %v6250_v18, %v800_v16 }
  0xf6   :  { %v6160_v22 = vpop.f32.mrf.mxu0  ;;  %v6252_v25 = vpop.f32.mrf.mxu1 }
  0xf7   :  { %v805_v24 = vadd.f32 %v6159_v20, %v8070_v48  ;;  %v6253_v26 = vadd.f32 %v6252_v25, %v6251_v21 }
  0xf8   :  { %v6161_v27 = vpop.f32.mrf.mxu0  ;;  %v6254_v29 = vpop.f32.mrf.mxu1 }
  0xf9   :  { %v6162_v28 = vadd.f32 %v6161_v27, %v6160_v22  ;;  %v8100_v31 = vadd.f32 %v6253_v26, %v805_v24 }
  0xfa   :  { %v6163_v30 = vpop.f32.mrf.mxu0  ;;  %v6255_v34 = vpop.f32.mrf.mxu1 }
  0xfb   :  { %v808_v32 = vadd.f32 %v6162_v28, %v8070_v48  ;;  %v6256_v35 = vadd.f32 %v6255_v34, %v6254_v29 }
  0xfc   :  { %v6164_v36 = vpop.f32.mrf.mxu0  ;;  %v6257_v38 = vpop.f32.mrf.mxu1 }
  0xfd   :  { %v6165_v37 = vadd.f32 %v6164_v36, %v6163_v30  ;;  %v8103_v40 = vadd.f32 %v6256_v35, %v808_v32 }
  0xfe   :  { %v6166_v39 = vpop.f32.mrf.mxu0  ;;  %v6258_v42 = vpop.f32.mrf.mxu1 }
  0xff   :  { %v813_v41 = vadd.f32 %v6165_v37, %v8070_v48  ;;  %v6259_v43 = vadd.f32 %v6258_v42, %v6257_v38 }
 0x100   :  { %v6167_v44 = vpop.f32.mrf.mxu0  ;;  %v6260_v46 = vpop.f32.mrf.mxu1 }
 0x101   :  { %v6168_v45 = vadd.f32 %v6167_v44, %v6166_v39  ;;  %v8106_v49 = vadd.f32 %v6259_v43, %v813_v41 }
 0x102   :  { %v6169_v47 = vpop.f32.mrf.mxu0  ;;  %v6261_v51 = vpop.f32.mrf.mxu1 }
 0x103   :  { %v816_v50 = vadd.f32 %v6168_v45, %v8070_v48  ;;  %v6262_v52 = vadd.f32 %v6261_v51, %v6260_v46 }
 0x104   :  { %v6170_v53 = vpop.f32.mrf.mxu0  ;;  %v6263_v55 = vpop.f32.mrf.mxu1 }
 0x105   :  { %v6171_v54 = vadd.f32 %v6170_v53, %v6169_v47  ;;  %v8109_v57 = vadd.f32 %v6262_v52, %v816_v50 }
 0x106   :  { %v6172_v56 = vpop.f32.mrf.mxu0  ;;  %v6264_v59 = vpop.f32.mrf.mxu1 }
 0x107   :  { %v821_v58 = vadd.f32 %v6171_v54, %v8070_v48  ;;  %v6265_v60 = vadd.f32 %v6264_v59, %v6263_v55 }
 0x108   :  { %v6173_v62 = vpop.f32.mrf.mxu0  ;;  %v6266_v1 = vpop.f32.mrf.mxu1 }
 0x109   :  { %v6174_v0 = vadd.f32 %v6173_v62, %v6172_v56  ;;  %v8112_v3 = vadd.f32 %v6265_v60, %v821_v58 }
 0x10a   :  { %v6175_v2 = vpop.f32.mrf.mxu0  ;;  %v6267_v5 = vpop.f32.mrf.mxu1 }
 0x10b   :  { %v824_v4 = vadd.f32 %v6174_v0, %v8070_v48  ;;  %v6268_v6 = vadd.f32 %v6267_v5, %v6266_v1 }
 0x10c   :  { %v6176_v8 = vpop.f32.mrf.mxu0  ;;  %v6269_v10 = vpop.f32.mrf.mxu1 }
 0x10d   :  { %v6177_v9 = vadd.f32 %v6176_v8, %v6175_v2  ;;  %v8115_v12 = vadd.f32 %v6268_v6, %v824_v4 }
 0x10e   :  { %v6178_v11 = vpop.f32.mrf.mxu0  ;;  %v6270_v14 = vpop.f32.mrf.mxu1 }
 0x10f   :  { %v829_v13 = vadd.f32 %v6177_v9, %v8070_v48  ;;  %v6271_v16 = vadd.f32 %v6270_v14, %v6269_v10 }
 0x110   :  { %v6179_v17 = vpop.f32.mrf.mxu0  ;;  %v6272_v19 = vpop.f32.mrf.mxu1 }
 0x111   :  { %v6180_v18 = vadd.f32 %v6179_v17, %v6178_v11  ;;  %v8118_v21 = vadd.f32 %v6271_v16, %v829_v13 }
 0x112   :  { %v6181_v20 = vpop.f32.mrf.mxu0  ;;  %v6273_v24 = vpop.f32.mrf.mxu1 }
 0x113   :  { %v832_v22 = vadd.f32 %v6180_v18, %v8070_v48  ;;  %v6274_v25 = vadd.f32 %v6273_v24, %v6272_v19 }
 0x114   :  { %v6182_v26 = vpop.f32.mrf.mxu0  ;;  %v6275_v28 = vpop.f32.mrf.mxu1 }
 0x115   :  { %v6183_v27 = vadd.f32 %v6182_v26, %v6181_v20  ;;  %v8121_v30 = vadd.f32 %v6274_v25, %v832_v22 }
 0x116   :  { %v6184_v29 = vpop.f32.mrf.mxu0  ;;  %v6276_v34 = vpop.f32.mrf.mxu1 }
 0x117   :  { %v837_v32 = vadd.f32 %v6183_v27, %v8070_v48  ;;  %v6277_v35 = vadd.f32 %v6276_v34, %v6275_v28 }
 0x118   :  { %v6185_v36 = vpop.f32.mrf.mxu0  ;;  %v6278_v38 = vpop.f32.mrf.mxu1 }
 0x119   :  { %v6186_v37 = vadd.f32 %v6185_v36, %v6184_v29  ;;  %v8124_v41 = vadd.f32 %v6277_v35, %v837_v32 }
 0x11a   :  { %v6187_v39 = vpop.f32.mrf.mxu0  ;;  %v6279_v43 = vpop.f32.mrf.mxu1 }
 0x11b   :  { %v840_v42 = vadd.f32 %v6186_v37, %v8070_v48  ;;  %v6280_v44 = vadd.f32 %v6279_v43, %v6278_v38 }
 0x11c   :  { %v6188_v45 = vpop.f32.mrf.mxu0  ;;  %v6281_v47 = vpop.f32.mrf.mxu1 }
 0x11d   :  { %v6189_v46 = vadd.f32 %v6188_v45, %v6187_v39  ;;  %v8127_v51 = vadd.f32 %v6280_v44, %v840_v42 }
 0x11e   :  { %v6190_v50 = vpop.f32.mrf.mxu0  ;;  %v6282_v53 = vpop.f32.mrf.mxu1 }
 0x11f   :  { %v845_v52 = vadd.f32 %v6189_v46, %v8070_v48  ;;  %v6283_v54 = vadd.f32 %v6282_v53, %v6281_v47 }
 0x120   :  { %v6191_v55 = vpop.f32.mrf.mxu0  ;;  %v6284_v58 = vpop.f32.mrf.mxu1 }
 0x121   :  { %v6192_v56 = vadd.f32 %v6191_v55, %v6190_v50  ;;  %v8130_v60 = vadd.f32 %v6283_v54, %v845_v52 }
 0x122   :  { %v6193_v59 = vpop.f32.mrf.mxu0  ;;  %v6285_v0 = vpop.f32.mrf.mxu1 }
 0x123   :  { %v848_v62 = vadd.f32 %v6192_v56, %v8070_v48  ;;  %v6286_v1 = vadd.f32 %v6285_v0, %v6284_v58 }
 0x124   :  { %v6194_v2 = vpop.f32.mrf.mxu0  ;;  %v6287_v5 = vpop.f32.mrf.mxu1 }
 0x125   :  { %v6195_v4 = vadd.f32 %v6194_v2, %v6193_v59  ;;  %v8133_v8 = vadd.f32 %v6286_v1, %v848_v62 }
 0x126   :  { %v6196_v6 = vpop.f32.mrf.mxu0  ;;  %v6288_v10 = vpop.f32.mrf.mxu1 }
 0x127   :  { %v853_v9 = vadd.f32 %v6195_v4, %v8070_v48  ;;  %v6289_v11 = vadd.f32 %v6288_v10, %v6287_v5 }
 0x128   :  { %v6197_v13 = vpop.f32.mrf.mxu0  ;;  %v6290_v16 = vpop.f32.mrf.mxu1 }
 0x129   :  { %v6198_v14 = vadd.f32 %v6197_v13, %v6196_v6  ;;  %v8136_v18 = vadd.f32 %v6289_v11, %v853_v9 }
 0x12a   :  { %v6199_v17 = vpop.f32.mrf.mxu0  ;;  %v6291_v20 = vpop.f32.mrf.mxu1 }
 0x12b   :  { %v856_v19 = vadd.f32 %v6198_v14, %v8070_v48  ;;  %v6292_v22 = vadd.f32 %v6291_v20, %v6290_v16 }
 0x12c   :  { %v6200_v24 = vpop.f32.mrf.mxu0  ;;  %v6293_v26 = vpop.f32.mrf.mxu1 }
 0x12d   :  { %v6201_v25 = vadd.f32 %v6200_v24, %v6199_v17  ;;  %v8139_v28 = vadd.f32 %v6292_v22, %v856_v19 }
 0x12e   :  { %v6202_v27 = vpop.f32.mrf.mxu0  ;;  %v6294_v32 = vpop.f32.mrf.mxu1 }
 0x12f   :  { %v861_v29 = vadd.f32 %v6201_v25, %v8070_v48  ;;  %v6295_v34 = vadd.f32 %v6294_v32, %v6293_v26 }
 0x130   :  { %v6203_v35 = vpop.f32.mrf.mxu0  ;;  %v6296_v37 = vpop.f32.mrf.mxu1 }
 0x131   :  { %v6204_v36 = vadd.f32 %v6203_v35, %v6202_v27  ;;  %v8142_v39 = vadd.f32 %v6295_v34, %v861_v29 }
 0x132   :  { %v6205_v38 = vpop.f32.mrf.mxu0  ;;  %v6297_v43 = vpop.f32.mrf.mxu1 }
 0x133   :  { %v864_v42 = vadd.f32 %v6204_v36, %v8070_v48  ;;  %v6298_v44 = vadd.f32 %v6297_v43, %v6296_v37 }
 0x134   :  { %v6206_v45 = vpop.f32.mrf.mxu0  ;;  %v6299_v47 = vpop.f32.mrf.mxu1 }
 0x135   :  { %v6207_v46 = vadd.f32 %v6206_v45, %v6205_v38  ;;  %v8145_v52 = vadd.f32 %v6298_v44, %v864_v42 }
 0x136   :  { %v6208_v50 = vpop.f32.mrf.mxu0  ;;  %v6300_v54 = vpop.f32.mrf.mxu1 }
 0x137   :  { %v869_v53 = vadd.f32 %v6207_v46, %v8070_v48  ;;  %v6301_v55 = vadd.f32 %v6300_v54, %v6299_v47 }
 0x138   :  { %v6209_v56 = vpop.f32.mrf.mxu0  ;;  %v6302_v59 = vpop.f32.mrf.mxu1 }
 0x139   :  { %v6210_v58 = vadd.f32 %v6209_v56, %v6208_v50  ;;  %v8148_v0 = vadd.f32 %v6301_v55, %v869_v53 }
 0x13a   :  { %v6211_v62 = vpop.f32.mrf.mxu0  ;;  %v6303_v2 = vpop.f32.mrf.mxu1 }
 0x13b   :  { %v872_v1 = vadd.f32 %v6210_v58, %v8070_v48  ;;  %v6304_v4 = vadd.f32 %v6303_v2, %v6302_v59 }
 0x13c   :  { %v6212_v5 = vpop.f32.mrf.mxu0  ;;  %v6305_v9 = vpop.f32.mrf.mxu1 }
 0x13d   :  { %v6213_v6 = vadd.f32 %v6212_v5, %v6211_v62  ;;  %v8151_v11 = vadd.f32 %v6304_v4, %v872_v1 }
 0x13e   :  { %v6214_v10 = vpop.f32.mrf.mxu0  ;;  %v6306_v14 = vpop.f32.mrf.mxu1 }
 0x13f   :  { %v877_v13 = vadd.f32 %v6213_v6, %v8070_v48  ;;  %v6307_v16 = vadd.f32 %v6306_v14, %v6305_v9 }
 0x140   :  { %v6215_v17 = vpop.f32.mrf.mxu0  ;;  %v6308_v20 = vpop.f32.mrf.mxu1 }
 0x141   :  { %v6216_v19 = vadd.f32 %v6215_v17, %v6214_v10  ;;  %v8154_v24 = vadd.f32 %v6307_v16, %v877_v13 }
 0x142   :  { %v6217_v22 = vpop.f32.mrf.mxu0  ;;  %v6309_v26 = vpop.f32.mrf.mxu1 }
 0x143   :  { %v880_v25 = vadd.f32 %v6216_v19, %v8070_v48  ;;  %v6310_v27 = vadd.f32 %v6309_v26, %v6308_v20 }
 0x144   :  { %v6218_v29 = vpop.f32.mrf.mxu0  ;;  %v6311_v34 = vpop.f32.mrf.mxu1 }
 0x145   :  { %v6219_v32 = vadd.f32 %v6218_v29, %v6217_v22  ;;  %v8157_v36 = vadd.f32 %v6310_v27, %v880_v25 }
 0x146   :  { %v6220_v35 = vpop.f32.mrf.mxu0  ;;  %v6312_v38 = vpop.f32.mrf.mxu1 }
 0x147   :  { %v885_v37 = vadd.f32 %v6219_v32, %v8070_v48  ;;  %v6313_v42 = vadd.f32 %v6312_v38, %v6311_v34 }
 0x148   :  { %v6221_v43 = vpop.f32.mrf.mxu0  ;;  %v6314_v44 = vpop.f32.mrf.mxu1 }
 0x149   :  { %v8160_v46 = vadd.f32 %v6313_v42, %v885_v37 }
 0x14a   :  { %v1060_v45 = vpop.f32.mrf.mxu0  ;;  %v6315_v47 = vpop.f32.mrf.mxu1 }
 0x14b   :  { %v1061_v53 = vadd.f32 %v1060_v45, %v8085_v63 }
 0x14c   :  { %v6618_v50 = vpop.f32.mrf.mxu0 }
 0x14d   :  { %v1162_v58 = vmax.f32 %v1061_v53, 0.0 }
 0x14e   :  { %v1063_v54 = vpop.f32.mrf.mxu0 }
 0x14f   :  { %v1064_v55 = vadd.f32 %v1063_v54, %v8091_v7 }
 0x150   :  { %v6619_v56 = vpop.f32.mrf.mxu0 }
 0x151   :  { %v1163_v59 = vmax.f32 %v1064_v55, 0.0 }
 0x152   :  { %v1068_v62 = vpop.f32.mrf.mxu0 }
 0x153   :  { %v8164_v1 = vpack.c.bf16 %v1163_v59, %v1162_v58  ;;  %v1069_v2 = vadd.f32 %v1068_v62, %v8094_v15 }
 0x154   :  { %v6622_v48 = vpop.f32.mrf.mxu0 }
 0x155   :  { %v1235_v4 = vshrl.u32 %v8164_v1, 16  ;;  %v1237_v5 = vshll.u32 %v8164_v1, 16  ;;  %v1164_v7 = vmax.f32 %v1069_v2, 0.0  ;;  %v1570_v15 = vrot.slane %v8164_v1, 5 }
 0x156   :  { %v1071_v6 = vpop.f32.mrf.mxu0 }
 0x157   :  { %v1072_v9 = vadd.f32 %v1071_v6, %v8097_v23  ;;  %v1748_v63 = vrot.slane %v1235_v4, 5  ;;  %v1749_v10 = vrot.slane %v1237_v5, 6  ;;  %v1239_v19 = vrot.slane %v1237_v5, 1 }
 0x158   :  { %v6623_v13 = vpop.f32.mrf.mxu0 }
 0x159   :  { %v1165_v14 = vmax.f32 %v1072_v9, 0.0  ;;  %v1750_v16 = vor.u32 %v1749_v10, %v1748_v63  ;;  %v1240_v32 = vor.u32 %v1239_v19, %v1235_v4  ;;  %v7540_v63 = vld [vmem:[%s9987_s3 + $0x30] sm:$0xff]   ;;  %v7541_v19 = vld [vmem:[%s9987_s3 + $0x28] sm:$0xff]  }
 0x15a   :  { %v1076_v17 = vpop.f32.mrf.mxu0 }
 0x15b   :  { %v8170_v20 = vpack.c.bf16 %v1165_v14, %v1164_v7  ;;  %v1077_v25 = vadd.f32 %v1076_v17, %v8100_v31 }
 0x15c   :  { %v6626_v22 = vpop.f32.mrf.mxu0 }
 0x15d   :  { %v1242_v26 = vshll.u32 %v8170_v20, 16  ;;  %v1246_v23 = vshrl.u32 %v8170_v20, 16  ;;  %v1571_v27 = vrot.slane %v8170_v20, 5  ;;  %v1166_v44 = vmax.f32 %v1077_v25, 0.0 }
 0x15e   :  { %v1079_v29 = vpop.f32.mrf.mxu0 }
 0x15f   :  { %v1080_v34 = vadd.f32 %v1079_v29, %v8103_v40  ;;  %v1244_v35 = vrot.slane %v1242_v26, 1  ;;  %v8179_v37 = vsel %vm1569_vm2, %v1570_v15, %v1571_v27  ;;  %v1751_v38 = vrot.slane %v1246_v23, 5 }
 0x160   :  { %v6627_v42 = vpop.f32.mrf.mxu0  ;;  %v1752_v43 = vrot.slane %v1242_v26, 6 }
 0x161   :  { %v1167_v31 = vmax.f32 %v1080_v34, 0.0  ;;  %v1245_v45 = vsel %vm1233_vm3, %v1240_v32, %v1244_v35  ;;  %v1248_v62 = vor.u32 %v1246_v23, %v1244_v35 }
 0x162   :  { %v1084_v47 = vpop.f32.mrf.mxu0  ;;  %6684 = vmatprep.mubr.bf16.mxu1 %v1245_v45  ;;  %v1753_v50 = vor.u32 %v1752_v43, %v1751_v38 }
 0x163   :  { %v8182_v53 = vpack.c.bf16 %v1167_v31, %v1166_v44  ;;  %v1085_v56 = vadd.f32 %v1084_v47, %v8106_v49 }
 0x164   :  { %v6630_v54 = vpop.f32.mrf.mxu0  ;;  %v8185_v40 = vsel %vm1747_vm4, %v1750_v16, %v1753_v50 }
 0x165   :  { %v1250_v55 = vshll.u32 %v8182_v53, 16  ;;  %v1254_v58 = vshrl.u32 %v8182_v53, 16  ;;  %v1573_v59 = vrot.slane %v8182_v53, 5  ;;  %v1168_v49 = vmax.f32 %v1085_v56, 0.0  ;;  %v7543_v54 = vld [vmem:[%s9987_s3 + $0x18] sm:$0xff]  }
 0x166   :  { %v1087_v48 = vpop.f32.mrf.mxu0 }
 0x167   :  { %v1088_v2 = vadd.f32 %v1087_v48, %v8109_v57  ;;  %v1252_v4 = vrot.slane %v1250_v55, 1  ;;  %v1755_v5 = vrot.slane %v1254_v58, 5  ;;  %v8193_v6 = vsel %vm1569_vm2, %v1571_v27, %v1573_v59 }
 0x168   :  { %v6631_v9 = vpop.f32.mrf.mxu0  ;;  %v1756_v10 = vrot.slane %v1250_v55, 6 }
 0x169   :  { %v1169_v13 = vmax.f32 %v1088_v2, 0.0  ;;  %v1253_v7 = vsel %vm1233_vm3, %v1248_v62, %v1252_v4  ;;  %v1256_v29 = vor.u32 %v1254_v58, %v1252_v4 }
 0x16a   :  { %v1092_v14 = vpop.f32.mrf.mxu0  ;;  %6685 = vmatmul.mubr.bf16.vlgmr.msra.gmra.mxu1 %v1253_v7  ;;  %v1757_v16 = vor.u32 %v1756_v10, %v1755_v5 }
 0x16b   :  { %v8199_v17 = vpack.c.bf16 %v1169_v13, %v1168_v49  ;;  %6697 = vmatpush3.bf16.msra.mxu1 %v8082_v61  ;;  %v1093_v15 = vadd.f32 %v1092_v14, %v8112_v3  ;;  %v7542_v3 = vld [vmem:[%s9987_s3 + $0x20] sm:$0xff]  }
 0x16c   :  { %v6634_v57 = vpop.f32.mrf.mxu0  ;;  %6698 = vmatprep.subr.bf16.mxu1 %v7540_v63  ;;  %v8206_v22 = vsel %vm1747_vm4, %v1753_v50, %v1757_v16 }
 0x16d   :  { %v1258_v25 = vshll.u32 %v8199_v17, 16  ;;  %v1262_v26 = vshrl.u32 %v8199_v17, 16  ;;  %v1575_v23 = vrot.slane %v8199_v17, 5  ;;  %v1170_v43 = vmax.f32 %v1093_v15, 0.0  ;;  %v7545_v15 = vld [vmem:[%s9987_s3 + $0x8] sm:$0xff]  }
 0x16e   :  { %v1095_v27 = vpop.f32.mrf.mxu0 }
 0x16f   :  { %v1096_v61 = vadd.f32 %v1095_v27, %v8115_v12  ;;  %6699 = vmatpush3.bf16.msra.mxu1 %v7540_v63  ;;  %v1260_v32 = vrot.slane %v1258_v25, 1  ;;  %v8214_v34 = vsel %vm1569_vm2, %v1573_v59, %v1575_v23  ;;  %v1759_v35 = vrot.slane %v1262_v26, 5 }
 0x170   :  { %v6635_v38 = vpop.f32.mrf.mxu0  ;;  %6700 = vmatprep.subr.bf16.mxu1 %v7541_v19  ;;  %v1760_v42 = vrot.slane %v1258_v25, 6 }
 0x171   :  { %v1171_v44 = vmax.f32 %v1096_v61, 0.0  ;;  %v1261_v31 = vsel %vm1233_vm3, %v1256_v29, %v1260_v32  ;;  %v1264_v2 = vor.u32 %v1262_v26, %v1260_v32 }
 0x172   :  { %v1100_v45 = vpop.f32.mrf.mxu0  ;;  %6688 = vmatprep.mubr.bf16.mxu1 %v1261_v31  ;;  %v1761_v12 = vor.u32 %v1760_v42, %v1759_v35 }
 0x173   :  { %v8220_v47 = vpack.c.bf16 %v1171_v44, %v1170_v43  ;;  %6701 = vmatpush3.bf16.msra.mxu1 %v7541_v19  ;;  %v1101_v56 = vadd.f32 %v1100_v45, %v8118_v21  ;;  %v7544_v21 = vld [vmem:[%s9987_s3 + $0x10] sm:$0xff]  }
 0x174   :  { %v6638_v50 = vpop.f32.mrf.mxu0  ;;  %6702 = vmatprep.subr.bf16.mxu1 %v7542_v3  ;;  %v8226_v55 = vsel %vm1747_vm4, %v1757_v16, %v1761_v12 }
 0x175   :  { %v1266_v58 = vshll.u32 %v8220_v47, 16  ;;  %v1270_v59 = vshrl.u32 %v8220_v47, 16  ;;  %v1577_v62 = vrot.slane %v8220_v47, 5  ;;  %v1172_v13 = vmax.f32 %v1101_v56, 0.0  ;;  %v7546_v50 = vld [vmem:[%s9987_s3] sm:$0xff]  }
 0x176   :  { %v1103_v48 = vpop.f32.mrf.mxu0 }
 0x177   :  { %v1104_v4 = vadd.f32 %v1103_v48, %v8121_v30  ;;  %6703 = vmatpush3.bf16.msra.mxu1 %v7542_v3  ;;  %v1268_v5 = vrot.slane %v1266_v58, 1  ;;  %v8234_v9 = vsel %vm1569_vm2, %v1575_v23, %v1577_v62  ;;  %v1763_v63 = vrot.slane %v1270_v59, 5  ;;  %v7547_v48 = vld [vmem:[%s9987_s3 + $0xb8] sm:$0xff]  }
 0x178   :  { %v6639_v10 = vpop.f32.mrf.mxu0  ;;  %6704 = vmatprep.subr.bf16.mxu1 %v7543_v54  ;;  %v1764_v49 = vrot.slane %v1266_v58, 6 }
 0x179   :  { %v1173_v7 = vmax.f32 %v1104_v4, 0.0  ;;  %v1269_v14 = vsel %vm1233_vm3, %v1264_v2, %v1268_v5  ;;  %v1272_v32 = vor.u32 %v1270_v59, %v1268_v5 }
 0x17a   :  { %v1108_v16 = vpop.f32.mrf.mxu0  ;;  %6689 = vmatmul.mubr.bf16.gmra.mxu1 %v1269_v14  ;;  %v1765_v30 = vor.u32 %v1764_v49, %v1763_v63 }
 0x17b   :  { %v8240_v57 = vpack.c.bf16 %v1173_v7, %v1172_v13  ;;  %6705 = vmatpush3.bf16.msra.mxu1 %v7543_v54  ;;  %v1109_v26 = vadd.f32 %v1108_v16, %v8124_v41 }
 0x17c   :  { %v6642_v19 = vpop.f32.mrf.mxu0  ;;  %6706 = vmatprep.subr.bf16.mxu1 %v7544_v21  ;;  %v8246_v25 = vsel %vm1747_vm4, %v1761_v12, %v1765_v30 }
 0x17d   :  { %v1274_v23 = vshll.u32 %v8240_v57, 16  ;;  %v1278_v27 = vshrl.u32 %v8240_v57, 16  ;;  %v1579_v29 = vrot.slane %v8240_v57, 5  ;;  %v1174_v41 = vmax.f32 %v1109_v26, 0.0 }
 0x17e   :  { %v1111_v61 = vpop.f32.mrf.mxu0 }
 0x17f   :  { %v1112_v35 = vadd.f32 %v1111_v61, %v8127_v51  ;;  %6707 = vmatpush3.bf16.msra.mxu1 %v7544_v21  ;;  %v1276_v38 = vrot.slane %v1274_v23, 1  ;;  %v1767_v3 = vrot.slane %v1278_v27, 5  ;;  %v8254_v42 = vsel %vm1569_vm2, %v1577_v62, %v1579_v29  ;;  %v7549_v61 = vld [vmem:[%s9987_s3 + $0xa8] sm:$0xff]  }
 0x180   :  { %v6643_v43 = vpop.f32.mrf.mxu0  ;;  %6708 = vmatprep.subr.bf16.mxu1 %v7545_v15  ;;  %v1768_v44 = vrot.slane %v1274_v23, 6 }
 0x181   :  { %v1175_v31 = vmax.f32 %v1112_v35, 0.0  ;;  %v1277_v45 = vsel %vm1233_vm3, %v1272_v32, %v1276_v38  ;;  %v1280_v12 = vor.u32 %v1278_v27, %v1276_v38 }
 0x182   :  { %v1116_v54 = vpop.f32.mrf.mxu0  ;;  %6692 = vmatprep.mubr.bf16.mxu1 %v1277_v45  ;;  %v1769_v51 = vor.u32 %v1768_v44, %v1767_v3 }
 0x183   :  { %v1193_v56 = vpack.c.bf16 %v1175_v31, %v1174_v41  ;;  %v1117_v58 = vadd.f32 %v1116_v54, %v8130_v60  ;;  %6693 = vmatmul.mubr.bf16.gmra.mxu1 %v1280_v12 }
 0x184   :  { %6709 = vmatpush3.bf16.msra.mxu1 %v7545_v15  ;;  %v6646_v59 = vpop.f32.mrf.mxu0  ;;  %6712 = vmatprep.mubr.bf16.mxu1 %v8164_v1  ;;  %v8263_v62 = vsel %vm1747_vm4, %v1765_v30, %v1769_v51  ;;  %v7548_v30 = vld [vmem:[%s9987_s3 + $0xb0] sm:$0xff]  }
 0x185   :  { %6710 = vmatprep.subr.bf16.mxu1 %v7546_v50  ;;  %v1581_v2 = vrot.slane %v1193_v56, 5  ;;  %v8268_v4 = vshrl.u32 %v1193_v56, 16  ;;  %v1775_v5 = vshll.u32 %v1193_v56, 16  ;;  %v1176_v14 = vmax.f32 %v1117_v58, 0.0 }
 0x186   :  { %v1119_v63 = vpop.f32.mrf.mxu0  ;;  %v3736_v38 = vrot.slane %v1193_v56, 7 }
 0x187   :  { %v1120_v60 = vadd.f32 %v1119_v63, %v8133_v8  ;;  %v8272_v10 = vsel %vm1569_vm2, %v1579_v29, %v1581_v2  ;;  %v1774_v1 = vrot.slane %v8268_v4, 5  ;;  %v1777_v21 = vrot.slane %v1775_v5, 6 }
 0x188   :  { %6711 = vmatpush3.bf16.msra.mxu1 %v7546_v50  ;;  %v6647_v49 = vpop.f32.mrf.mxu0  ;;  %v3385_v13 = vrot.slane %v8268_v4, 2  ;;  %v3386_v7 = vrot.slane %v1775_v5, 3  ;;  %v3913_v59 = vrot.slane %v8268_v4, 7 }
 0x189   :  { %v1177_v16 = vmax.f32 %v1120_v60, 0.0  ;;  %6724 = vmatprep.subr.bf16.mxu1 %v7547_v48  ;;  %v1778_v19 = vor.u32 %v1777_v21, %v1774_v1 }
 0x18a   :  { %v1124_v8 = vpop.f32.mrf.mxu0  ;;  %v3387_v15 = vor.u32 %v3386_v7, %v3385_v13 }
 0x18b   :  { %v1194_v26 = vpack.c.bf16 %v1177_v16, %v1176_v14  ;;  %v1125_v23 = vadd.f32 %v1124_v8, %v8136_v18  ;;  %6713 = vmatmul.mubr.bf16.vlgmr.msra.gmra.mxu1 %v8170_v20  ;;  %v8282_v27 = vsel %vm1747_vm4, %v1769_v51, %v1778_v19  ;;  %v3573_v20 = vrot.slane %v1193_v56, 2  ;;  %v7550_v56 = vld [vmem:[%s9987_s3 + $0xa0] sm:$0xff]  }
 0x18c   :  { %6725 = vmatpush3.bf16.msra.mxu1 %v7547_v48  ;;  %v6650_v29 = vpop.f32.mrf.mxu0  ;;  %6716 = vmatprep.mubr.bf16.mxu1 %v8182_v53 }
 0x18d   :  { %6726 = vmatprep.subr.bf16.mxu1 %v7548_v30  ;;  %v3389_v32 = vshrl.u32 %v1194_v26, 16  ;;  %v3392_v35 = vshll.u32 %v1194_v26, 16  ;;  %v3737_v18 = vrot.slane %v1194_v26, 7  ;;  %v3574_v43 = vrot.slane %v1194_v26, 2 }
 0x18e   :  { %v1127_v3 = vpop.f32.mrf.mxu0  ;;  %v1178_v54 = vmax.f32 %v1125_v23, 0.0  ;;  %v7552_v23 = vld [vmem:[%s9987_s3 + $0x90] sm:$0xff]  }
 0x18f   :  { %v1128_v44 = vadd.f32 %v1127_v3, %v8139_v28  ;;  %v3391_v41 = vrot.slane %v3389_v32, 2  ;;  %v3394_v31 = vrot.slane %v3392_v35, 3  ;;  %v8290_v53 = vsel %vm3308_vm6, %v3736_v38, %v3737_v18 }
 0x190   :  { %6727 = vmatpush3.bf16.msra.mxu1 %v7548_v30  ;;  %v6651_v45 = vpop.f32.mrf.mxu0  ;;  %v8293_v12 = vsel %vm2816_vm5, %v3573_v20, %v3574_v43  ;;  %v3914_v50 = vrot.slane %v3389_v32, 7  ;;  %v7553_v20 = vld [vmem:[%s9987_s3 + $0x88] sm:$0xff]  }
 0x191   :  { %v1179_v51 = vmax.f32 %v1128_v44, 0.0  ;;  %6728 = vmatprep.subr.bf16.mxu1 %v7549_v61  ;;  %v3395_v28 = vor.u32 %v3394_v31, %v3391_v41 }
 0x192   :  { %v1132_v58 = vpop.f32.mrf.mxu0  ;;  %v3915_v48 = vor.u32 %v3914_v50, %v3392_v35 }
 0x193   :  { %v1195_v2 = vpack.c.bf16 %v1179_v51, %v1178_v54  ;;  %v1133_v5 = vadd.f32 %v1132_v58, %v8142_v39  ;;  %6717 = vmatmul.mubr.bf16.gmra.mxu1 %v8199_v17  ;;  %v8302_v63 = vsel %vm2955_vm7, %v3387_v15, %v3395_v28  ;;  %v7551_v39 = vld [vmem:[%s9987_s3 + $0x98] sm:$0xff]  }
 0x194   :  { %6729 = vmatpush3.bf16.msra.mxu1 %v7549_v61  ;;  %v6654_v60 = vpop.f32.mrf.mxu0  ;;  %6720 = vmatprep.mubr.bf16.mxu1 %v8220_v47  ;;  %v8306_v1 = vsel %vm3912_vm8, %v3913_v59, %v3915_v48  ;;  %v7554_v59 = vld [vmem:[%s9987_s3 + $0x80] sm:$0xff]  }
 0x195   :  { %10000 = vst [vmem:[#allocation2_spill] sm:$0xff] %v8306_v1  ;;  %v3398_v21 = vshrl.u32 %v1195_v2, 16  ;;  %v3401_v49 = vshll.u32 %v1195_v2, 16  ;;  %v3576_v13 = vrot.slane %v1195_v2, 2  ;;  %v3739_v4 = vrot.slane %v1195_v2, 7  ;;  %6730 = vmatprep.subr.bf16.mxu1 %v7550_v56 }
 0x196   :  { %v1135_v17 = vpop.f32.mrf.mxu0  ;;  %v1180_v15 = vmax.f32 %v1133_v5, 0.0 }
 0x197   :  { %v3400_v7 = vrot.slane %v3398_v21, 2  ;;  %v3403_v14 = vrot.slane %v3401_v49, 3  ;;  %v3917_v16 = vrot.slane %v3398_v21, 7  ;;  %v1136_v30 = vadd.f32 %v1135_v17, %v8145_v52  ;;  %v7555_v17 = vld [vmem:[%s9987_s3 + $0xf8] sm:$0xff]  }
 0x198   :  { %6731 = vmatpush3.bf16.msra.mxu1 %v7550_v56  ;;  %v6655_v47 = vpop.f32.mrf.mxu0  ;;  %v8313_v19 = vsel %vm3308_vm6, %v3737_v18, %v3739_v4  ;;  %v8316_v8 = vsel %vm2816_vm5, %v3574_v43, %v3576_v13 }
 0x199   :  { %v1181_v26 = vmax.f32 %v1136_v30, 0.0  ;;  %6732 = vmatprep.subr.bf16.mxu1 %v7551_v39  ;;  %v3404_v29 = vor.u32 %v3403_v14, %v3400_v7  ;;  %v3918_v61 = vor.u32 %v3917_v16, %v3401_v49 }
 0x19a   :  { %v1140_v32 = vpop.f32.mrf.mxu0 }
 0x19b   :  { %v1196_v35 = vpack.c.bf16 %v1181_v26, %v1180_v15  ;;  %v1141_v52 = vadd.f32 %v1140_v32, %v8148_v0  ;;  %6721 = vmatmul.mubr.bf16.gmra.mxu1 %v8240_v57  ;;  %v8324_v38 = vsel %vm2955_vm7, %v3395_v28, %v3404_v29  ;;  %v8327_v18 = vsel %vm3912_vm8, %v3914_v50, %v3918_v61 }
 0x19c   :  { %10001 = vst [vmem:[#allocation3_spill] sm:$0xff] %v8327_v18  ;;  %6733 = vmatpush3.bf16.msra.mxu1 %v7551_v39  ;;  %v6658_v3 = vpop.f32.mrf.mxu0  ;;  %6740 = vmatprep.mubr.bf16.mxu1 %v8179_v37 }
 0x19d   :  { %6734 = vmatprep.subr.bf16.mxu1 %v7552_v23  ;;  %v3407_v43 = vshrl.u32 %v1196_v35, 16  ;;  %v3410_v44 = vshll.u32 %v1196_v35, 16  ;;  %v3741_v0 = vrot.slane %v1196_v35, 7  ;;  %v3578_v57 = vrot.slane %v1196_v35, 2  ;;  %v7556_v35 = vld [vmem:[%s9987_s3 + $0xf0] sm:$0xff]  }
 0x19e   :  { %v1143_v41 = vpop.f32.mrf.mxu0  ;;  %v1182_v28 = vmax.f32 %v1141_v52, 0.0 }
 0x19f   :  { %v1144_v31 = vadd.f32 %v1143_v41, %v8151_v11  ;;  %v3409_v45 = vrot.slane %v3407_v43, 2  ;;  %v3412_v54 = vrot.slane %v3410_v44, 3  ;;  %v8335_v50 = vsel %vm3308_vm6, %v3739_v4, %v3741_v0 }
 0x1a0   :  { %6735 = vmatpush3.bf16.msra.mxu1 %v7552_v23  ;;  %v6659_v51 = vpop.f32.mrf.mxu0  ;;  %v8338_v37 = vsel %vm2816_vm5, %v3576_v13, %v3578_v57  ;;  %v3920_v56 = vrot.slane %v3407_v43, 7 }
 0x1a1   :  { %v1183_v58 = vmax.f32 %v1144_v31, 0.0  ;;  %6736 = vmatprep.subr.bf16.mxu1 %v7553_v20  ;;  %v3413_v48 = vor.u32 %v3412_v54, %v3409_v45  ;;  %v7557_v31 = vld [vmem:[%s9987_s3 + $0xe8] sm:$0xff]  }
 0x1a2   :  { %v1148_v11 = vpop.f32.mrf.mxu0  ;;  %v3921_v2 = vor.u32 %v3920_v56, %v3410_v44 }
 0x1a3   :  { %v1197_v5 = vpack.c.bf16 %v1183_v58, %v1182_v28  ;;  %v1149_v60 = vadd.f32 %v1148_v11, %v8154_v24  ;;  %v8345_v21 = vsel %vm2955_vm7, %v3404_v29, %v3413_v48 }
 0x1a4   :  { %6737 = vmatpush3.bf16.msra.mxu1 %v7553_v20  ;;  %v6662_v49 = vpop.f32.mrf.mxu0  ;;  %v8348_v13 = vsel %vm3912_vm8, %v3917_v16, %v3921_v2 }
 0x1a5   :  { %10002 = vst [vmem:[#allocation4_spill] sm:$0xff] %v8348_v13  ;;  %v3416_v4 = vshrl.u32 %v1197_v5, 16  ;;  %v3419_v39 = vshll.u32 %v1197_v5, 16  ;;  %6738 = vmatprep.subr.bf16.mxu1 %v7554_v59  ;;  %v3743_v7 = vrot.slane %v1197_v5, 7  ;;  %v3580_v30 = vrot.slane %v1197_v5, 2  ;;  %v7563_v49 = vld [vmem:[%s9989_s5 + $0x38] sm:$0xff]  }
 0x1a6   :  { %v1151_v14 = vpop.f32.mrf.mxu0  ;;  %v1184_v61 = vmax.f32 %v1149_v60, 0.0  ;;  %v7558_v60 = vld [vmem:[%s9987_s3 + $0xe0] sm:$0xff]   ;;  %6781 = vmatpush3.bf16.msra.mxu0 %v7563_v49 }
 0x1a7   :  { %v1152_v24 = vadd.f32 %v1151_v14, %v8157_v36  ;;  %v3418_v47 = vrot.slane %v3416_v4, 2  ;;  %v3421_v15 = vrot.slane %v3419_v39, 3  ;;  %v8355_v26 = vsel %vm3308_vm6, %v3741_v0, %v3743_v7  ;;  %v7559_v14 = vld [vmem:[%s9987_s3 + $0xd8] sm:$0xff]   ;;  %6782 = vmatprep.subr.bf16.mxu0 %v9994_v33  ;;  %v8472_v13 = vld [vmem:[%s9990_s4] ss:$0 sm:$0xff] }
 0x1a8   :  { %6739 = vmatpush3.bf16.msra.mxu1 %v7554_v59  ;;  %v6663_v16 = vpop.f32.mrf.mxu0  ;;  %v8358_v23 = vsel %vm2816_vm5, %v3578_v57, %v3580_v30  ;;  %v3923_v29 = vrot.slane %v3416_v4, 7 }
 0x1a9   :  { %v1185_v32 = vmax.f32 %v1152_v24, 0.0  ;;  %6752 = vmatprep.subr.bf16.mxu1 %v7555_v17  ;;  %v3422_v52 = vor.u32 %v3421_v15, %v3418_v47  ;;  %v7560_v15 = vld [vmem:[%s9987_s3 + $0xd0] sm:$0xff]  }
 0x1aa   :  { %v1156_v36 = vpop.f32.mrf.mxu0  ;;  %v3924_v3 = vor.u32 %v3923_v29, %v3419_v39 }
 0x1ab   :  { %v8363_v20 = vpack.c.bf16 %v1185_v32, %v1184_v61  ;;  %v1157_v43 = vadd.f32 %v1156_v36, %v8160_v46  ;;  %6741 = vmatmul.mubr.bf16.vlgmr.msra.gmra.mxu1 %v8193_v6  ;;  %v8368_v44 = vsel %vm2955_vm7, %v3413_v48, %v3422_v52 }
 0x1ac   :  { %6744 = vmatprep.mubr.bf16.mxu1 %v8214_v34  ;;  %6753 = vmatpush3.bf16.msra.mxu1 %v7555_v17  ;;  %v6666_v0 = vpop.f32.mrf.mxu0  ;;  %v8372_v41 = vsel %vm3912_vm8, %v3920_v56, %v3924_v3 }
 0x1ad   :  { %10003 = vst [vmem:[#allocation5_spill] sm:$0xff] %v8363_v20  ;;  %10004 = vst [vmem:[#allocation6_spill] sm:$0xff] %v8372_v41  ;;  %v1186_v57 = vmax.f32 %v1157_v43, 0.0  ;;  %6754 = vmatprep.subr.bf16.mxu1 %v7556_v35  ;;  %v3425_v46 = vshrl.u32 %v8363_v20, 16  ;;  %v3428_v6 = vshll.u32 %v8363_v20, 16  ;;  %v3745_v45 = vrot.slane %v8363_v20, 7 }
 0x1ae   :  { %v1159_v54 = vpop.f32.mrf.mxu0  ;;  %v9993_v34 = vrot.slane %v8363_v20, 2 }
 0x1af   :  { %v1199_v51 = vpack.c.bf16 %v1186_v57, %v1186_v57  ;;  %v3427_v28 = vrot.slane %v3425_v46, 2  ;;  %v3430_v58 = vrot.slane %v3428_v6, 3  ;;  %v8382_v56 = vsel %vm3308_vm6, %v3743_v7, %v3745_v45 }
 0x1b0   :  { %6755 = vmatpush3.bf16.msra.mxu1 %v7556_v35  ;;  %v6667_v59 = vpop.f32.mrf.mxu0  ;;  %v8387_v48 = vsel %vm2816_vm5, %v3580_v30, %v9993_v34  ;;  %v3926_v11 = vrot.slane %v3425_v46, 7 }
 0x1b1   :  { %v3747_v2 = vrot.slane %v1199_v51, 7  ;;  %v3930_v5 = vshrl.u32 %v1199_v51, 16  ;;  %6756 = vmatprep.subr.bf16.mxu1 %v7557_v31  ;;  %v8395_v4 = vor.u32 %v3430_v58, %v3427_v28  ;;  %v3933_v7 = vshll.u32 %v1199_v51, 16 }
 0x1b2   :  { %v3927_v39 = vor.u32 %v3926_v11, %v3428_v6 }
 0x1b3   :  { %v3932_v17 = vrot.slane %v3930_v5, 7  ;;  %6745 = vmatmul.mubr.bf16.gmra.mxu1 %v8234_v9  ;;  %v8403_v30 = vsel %vm2955_vm7, %v3422_v52, %v8395_v4  ;;  %v8406_v24 = vsel %vm3308_vm6, %v3745_v45, %v3747_v2 }
 0x1b4   :  { %6748 = vmatprep.mubr.bf16.mxu1 %v8254_v42  ;;  %6757 = vmatpush3.bf16.msra.mxu1 %v7557_v31  ;;  %v8410_v47 = vsel %vm3912_vm8, %v3923_v29, %v3927_v39  ;;  %v7561_v42 = vld [vmem:[%s9987_s3 + $0xc8] sm:$0xff]   ;;  %v7562_v29 = vld [vmem:[%s9987_s3 + $0xc0] sm:$0xff]  }
 0x1b5   :  { %10005 = vst [vmem:[#allocation7_spill] sm:$0xff] %v8410_v47  ;;  %6758 = vmatprep.subr.bf16.mxu1 %v7558_v60  ;;  %v3935_v9 = vor.u32 %v3933_v7, %v3932_v17 }
 0x1b7   :  { %v8417_v16 = vsel %vm3912_vm8, %v3926_v11, %v3935_v9  ;;  %vm9272_vm8 = vmor %vm1569_vm2, %vm3281_vm15  ;;  %vm3309_vm15 = vcmask 1044484  }
 0x1b8   :  { %10006 = vst [vmem:[#allocation8_spill] sm:$0xff] %v8417_v16  ;;  %6759 = vmatpush3.bf16.msra.mxu1 %v7558_v60  ;;  %vm9313_vm12 = vmor %vm3308_vm6, %vm3309_vm15 }
 0x1b9   :  { %6760 = vmatprep.subr.bf16.mxu1 %v7559_v14 }
 0x1bb   :  { %6749 = vmatmul.mubr.bf16.gmra.mxu1 %v8272_v10  ;;  %v7569_v10 = vld [vmem:[%s9989_s5 + $0x8] sm:$0xff]  }
 0x1bc   :  { %6761 = vmatpush3.bf16.msra.mxu1 %v7559_v14  ;;  %6768 = vmatprep.mubr.bf16.mxu1 %v8185_v40  ;;  %v7564_v40 = vld [vmem:[%s9989_s5 + $0x30] sm:$0xff]  }
 0x1bd   :  { %6762 = vmatprep.subr.bf16.mxu1 %v7560_v15  ;;  %6783 = vmatpush3.bf16.msra.mxu0 %v7564_v40 }
 0x1be   :  { %6784 = vmatprep.subr.bf16.mxu0 %v9994_v33 }
 0x1c0   :  { %6763 = vmatpush3.bf16.msra.mxu1 %v7560_v15 }
 0x1c1   :  { %6764 = vmatprep.subr.bf16.mxu1 %v7561_v42 }
 0x1c4   :  { %6765 = vmatpush3.bf16.msra.mxu1 %v7561_v42 }
 0x1c5   :  { %6766 = vmatprep.subr.bf16.mxu1 %v7562_v29 }
 0x1c8   :  { %6767 = vmatpush3.bf16.msra.mxu1 %v7562_v29 }
 0x1c9   :  { %6808 = vmatprep.subr.bf16.mxu1 %v9994_v33 }
 0x1cb   :  { %6769 = vmatmul.mubr.bf16.vlgmr.msra.gmra.mxu1 %v8206_v22  ;;  %v7565_v22 = vld [vmem:[%s9989_s5 + $0x28] sm:$0xff]  }
 0x1cc   :  { %6772 = vmatprep.mubr.bf16.mxu1 %v8226_v55  ;;  %6785 = vmatpush3.bf16.msra.mxu0 %v7565_v22  ;;  %v7566_v55 = vld [vmem:[%s9989_s5 + $0x20] sm:$0xff]  }
 0x1cd   :  { %6786 = vmatprep.subr.bf16.mxu0 %v9994_v33 }
 0x1d0   :  { %6787 = vmatpush3.bf16.msra.mxu0 %v7566_v55 }
 0x1d1   :  { %6836 = vmatprep.subr.bf16.mxu0 %v9994_v33 }
 0x1d3   :  { %6773 = vmatmul.mubr.bf16.gmra.mxu1 %v8246_v25  ;;  %v7567_v25 = vld [vmem:[%s9989_s5 + $0x18] sm:$0xff]  }
 0x1d4   :  { %6776 = vmatprep.mubr.bf16.mxu1 %v8263_v62  ;;  %6809 = vmatpush3.bf16.msra.mxu1 %v7567_v25  ;;  %v7568_v62 = vld [vmem:[%s9989_s5 + $0x10] sm:$0xff]  }
 0x1d5   :  { %6810 = vmatprep.subr.bf16.mxu1 %v9994_v33 }
 0x1d8   :  { %6811 = vmatpush3.bf16.msra.mxu1 %v7568_v62 }
 0x1d9   :  { %6812 = vmatprep.subr.bf16.mxu1 %v9994_v33 }
 0x1db   :  { %6777 = vmatmul.mubr.bf16.gmra.mxu1 %v8282_v27  ;;  %v7570_v27 = vld [vmem:[%s9989_s5] sm:$0xff]  }
 0x1dc   :  { %6816 = vmatprep.mubr.msk.bf16.mxu1 %vm7668_vm0, %v9994_v33  ;;  %6813 = vmatpush3.bf16.msra.mxu1 %v7569_v10 }
 0x1dd   :  { %6814 = vmatprep.subr.bf16.mxu1 %v9994_v33 }
 0x1e0   :  { %6815 = vmatpush3.bf16.msra.mxu1 %v7570_v27 }
 0x1e1   :  { %6864 = vmatprep.subr.bf16.mxu1 %v9994_v33 }
 0x22a   :  { %v6686_v61 = vpop.f32.mrf.mxu1 }
 0x22c   :  { %v1369_v32 = vpop.f32.mrf.mxu1 }
 0x22e   :  { %v6687_v35 = vpop.f32.mrf.mxu1 }
 0x230   :  { %v1372_v52 = vpop.f32.mrf.mxu1 }
 0x23a   :  { %v6690_v36 = vpop.f32.mrf.mxu1 }
 0x23c   :  { %v1385_v3 = vpop.f32.mrf.mxu1 }
 0x23e   :  { %v6691_v43 = vpop.f32.mrf.mxu1 }
 0x240   :  { %v1388_v0 = vpop.f32.mrf.mxu1 }
 0x243   :  { %v6694_v57 = vpop.f32.mrf.mxu1 }
 0x245   :  { %v8463_v31 = vpop.f32.mrf.mxu1 }
 0x247   :  { %v6695_v46 = vpop.f32.mrf.mxu1 }
 0x249   :  { %v1404_v6 = vpop.f32.mrf.mxu1 }
 0x24b   :  { %v6714_v45 = vpop.f32.mrf.mxu1 }
 0x24d   :  { %v1498_v54 = vpop.f32.mrf.mxu1 }
 0x24e   :  { %v1499_v33 = vadd.f32 %v1498_v54, %v1369_v32 }
 0x24f   :  { %v6715_v51 = vpop.f32.mrf.mxu1 }
 0x250   :  { %v1510_v16 = vadd.f32 %v6715_v51, %v6687_v35 }
 0x251   :  { %v1501_v28 = vpop.f32.mrf.mxu1 }
 0x253   :  { %v6718_v58 = vpop.f32.mrf.mxu1 }
 0x255   :  { %v1514_v59 = vpop.f32.mrf.mxu1 }
 0x257   :  { %v6719_v11 = vpop.f32.mrf.mxu1 }
 0x259   :  { %v1517_v2 = vpop.f32.mrf.mxu1 }
 0x25b   :  { %v6722_v5 = vpop.f32.mrf.mxu1 }
 0x25c   :  { %v1539_v60 = vadd.f32 %v6722_v5, %v6694_v57  ;;  %v1507_v57 = vadd.f32 %v6714_v45, %v6686_v61  ;;  %v1515_v45 = vadd.f32 %v1514_v59, %v1385_v3 }
 0x25d   :  { %v1530_v49 = vpop.f32.mrf.mxu1 }
 0x25f   :  { %v6723_v39 = vpop.f32.mrf.mxu1 }
 0x260   :  { %v1542_v17 = vadd.f32 %v6723_v39, %v6695_v46 }
 0x261   :  { %v1533_v7 = vpop.f32.mrf.mxu1 }
 0x26b   :  { %v6742_v14 = vpop.f32.mrf.mxu1 }
 0x26c   :  { %v1720_v46 = vadd.f32 %v6742_v14, %v1507_v57  ;;  %v1518_v57 = vadd.f32 %v1517_v2, %v1388_v0 }
 0x26d   :  { %v1671_v9 = vpop.f32.mrf.mxu1 }
 0x26e   :  { %v1718_v47 = vadd.f32 %v1671_v9, %v1499_v33  ;;  %v1526_v9 = vadd.f32 %v6719_v11, %v6691_v43 }
 0x26f   :  { %v6743_v15 = vpop.f32.mrf.mxu1 }
 0x271   :  { %v1674_v42 = vpop.f32.mrf.mxu1 }
 0x273   :  { %v6746_v29 = vpop.f32.mrf.mxu1 }
 0x275   :  { %v1687_v40 = vpop.f32.mrf.mxu1 }
 0x277   :  { %v6747_v22 = vpop.f32.mrf.mxu1 }
 0x278   :  { %v1725_v3 = vadd.f32 %v6747_v22, %v1526_v9 }
 0x279   :  { %v1690_v55 = vpop.f32.mrf.mxu1 }
 0x27a   :  { %v1723_v0 = vadd.f32 %v1690_v55, %v1518_v57 }
 0x27b   :  { %v6750_v25 = vpop.f32.mrf.mxu1 }
 0x27c   :  { %v8465_v62 = vadd.f32 %v6750_v25, %v1539_v60  ;;  %v1502_v60 = vadd.f32 %v1501_v28, %v1372_v52  ;;  %v1721_v25 = vadd.f32 %v6743_v15, %v1510_v16 }
 0x27d   :  { %v1703_v10 = vpop.f32.mrf.mxu1 }
 0x27f   :  { %v6751_v27 = vpop.f32.mrf.mxu1 }
 0x280   :  { %v8467_v34 = vadd.f32 %v6751_v27, %v1542_v17  ;;  %v1523_v17 = vadd.f32 %v6718_v58, %v6690_v36  ;;  %v1719_v27 = vadd.f32 %v1674_v42, %v1502_v60  ;;  %v7573_v42 = vld [vmem:[%s9989_s5 + $0x78] sm:$0xff]  }
 0x281   :  { %v1706_v5 = vpop.f32.mrf.mxu1 }
 0x282   :  { %v1724_v54 = vadd.f32 %v6746_v29, %v1523_v17 }
 0x28b   :  { %v6770_v39 = vpop.f32.mrf.mxu1 }
 0x28c   :  { %v1917_v41 = vadd.f32 %v6770_v39, %v1720_v46  ;;  %v1722_v46 = vadd.f32 %v1687_v40, %v1515_v45  ;;  %v10007_v45 = vmov 0.0  }
 0x28d   :  { %v1868_v18 = vpop.f32.mrf.mxu1 }
 0x28e   :  { %v1915_v1 = vadd.f32 %v1868_v18, %v1718_v47  ;;  %v1936_v61 = vadd.f32 %v8472_v13, %v1917_v41  ;;  %v1531_v41 = vadd.f32 %v1530_v49, %v8463_v31 }
 0x28f   :  { %v6771_v20 = vpop.f32.mrf.mxu1 }
 0x290   :  { %v1918_v32 = vadd.f32 %v6771_v20, %v1721_v25  ;;  %v1934_v35 = vadd.f32 %v8472_v13, %v1915_v1  ;;  %v1948_v16 = vmax.f32 %v1936_v61, 0.0  ;;  %v1534_v20 = vadd.f32 %v1533_v7, %v1404_v6 }
 0x291   :  { %v1871_v33 = vpop.f32.mrf.mxu1  ;;  %v1726_v11 = vadd.f32 %v1703_v10, %v1531_v41 }
 0x292   :  { %v1937_v51 = vadd.f32 %v8472_v13, %v1918_v32  ;;  %v1916_v14 = vadd.f32 %v1871_v33, %v1719_v27  ;;  %v1946_v28 = vmax.f32 %v1934_v35, 0.0  ;;  %v1727_v29 = vadd.f32 %v1706_v5, %v1534_v20  ;;  %v7575_v33 = vld [vmem:[%s9989_s5 + $0x70] sm:$0xff]  }
 0x293   :  { %v6774_v52 = vpop.f32.mrf.mxu1 }
 0x294   :  { %v1949_v18 = vmax.f32 %v1937_v51, 0.0  ;;  %v1935_v47 = vadd.f32 %v8472_v13, %v1916_v14  ;;  %v1921_v36 = vadd.f32 %v6774_v52, %v1724_v54 }
 0x295   :  { %v1884_v1 = vpop.f32.mrf.mxu1 }
 0x296   :  { %v8479_v58 = vpack.c.bf16 %v1949_v18, %v1948_v16  ;;  %v1947_v59 = vmax.f32 %v1935_v47, 0.0  ;;  %v1940_v15 = vadd.f32 %v8472_v13, %v1921_v36  ;;  %v1919_v43 = vadd.f32 %v1884_v1, %v1722_v46 }
 0x297   :  { %v6775_v2 = vpop.f32.mrf.mxu1 }
 0x298   :  { %v8485_v31 = vpack.c.bf16 %v1947_v59, %v1946_v28  ;;  %v1938_v6 = vadd.f32 %v8472_v13, %v1919_v43  ;;  %v1922_v49 = vadd.f32 %v6775_v2, %v1725_v3  ;;  %v1952_v7 = vmax.f32 %v1940_v15, 0.0  ;;  %v7571_v28 = vld [vmem:[%s9989_s5 + $0x58] sm:$0xff]  }
 0x299   :  { %v1887_v40 = vpop.f32.mrf.mxu1  ;;  %v8489_v22 = vshll.u32 %v8479_v58, 16  ;;  %v8492_v55 = vshrl.u32 %v8479_v58, 16  ;;  %v2391_v10 = vrot.slane %v8479_v58, 5  ;;  %v2253_v25 = vrot.slane %v8479_v58, 1 }
 0x29a   :  { %v1941_v39 = vadd.f32 %v8472_v13, %v1922_v49  ;;  %v1920_v60 = vadd.f32 %v1887_v40, %v1723_v0  ;;  %6817 = vmatmul.mubr.msk.bf16.vlgmr.msra.gmra.mxu1 %vm714_vm1, %v8485_v31  ;;  %v1982_v5 = vshrl.u32 %v8485_v31, 16  ;;  %v1950_v17 = vmax.f32 %v1938_v6, 0.0 }
 0x29b   :  { %v6778_v27 = vpop.f32.mrf.mxu1  ;;  %v1984_v61 = vshll.u32 %v8485_v31, 16  ;;  %v1991_v32 = vrot.slane %v8489_v22, 1  ;;  %6820 = vmatprep.mubr.msk.bf16.mxu1 %vm7668_vm0, %v10007_v45  ;;  %v2531_v35 = vrot.slane %v8492_v55, 5  ;;  %6865 = vmatpush3.bf16.msra.mxu1 %v7573_v42  ;;  %v2956_v9 = vrot.slane %v8492_v55, 2 }
 0x29c   :  { %v1953_v54 = vmax.f32 %v1941_v39, 0.0  ;;  %v1939_v51 = vadd.f32 %v8472_v13, %v1920_v60  ;;  %v1925_v14 = vadd.f32 %v6778_v27, %v8465_v62  ;;  %6866 = vmatprep.subr.bf16.mxu1 %v10007_v45  ;;  %v8514_v52 = vrot.slane %v1982_v5, 5  ;;  %v7576_v39 = vld [vmem:[%s9989_s5 + $0x68] sm:$0xff]  }
 0x29d   :  { %v1900_v57 = vpop.f32.mrf.mxu1  ;;  %v1986_v46 = vrot.slane %v1984_v61, 1  ;;  %v2390_v16 = vrot.slane %v8485_v31, 5  ;;  %v2252_v18 = vrot.slane %v8485_v31, 1  ;;  %v1995_v1 = vor.u32 %v8492_v55, %v1991_v32 }
 0x29e   :  { %v8518_v47 = vpack.c.bf16 %v1953_v54, %v1952_v7  ;;  %v1951_v36 = vmax.f32 %v1939_v51, 0.0  ;;  %v1944_v41 = vadd.f32 %v8472_v13, %v1925_v14  ;;  %v1923_v62 = vadd.f32 %v1900_v57, %v1726_v11 }
 0x29f   :  { %v6779_v20 = vpop.f32.mrf.mxu1  ;;  %v1987_v3 = vor.u32 %v1986_v46, %v1982_v5  ;;  %6867 = vmatpush3.bf16.msra.mxu1 %v7575_v33  ;;  %v8528_v59 = vsel %vm1569_vm2, %v2390_v16, %v2391_v10  ;;  %v8533_v15 = vsel %vm2251_vm9, %v2252_v18, %v2253_v25  ;;  %v2677_v2 = vrot.slane %v8485_v31, 6  ;;  %v7577_v18 = vld [vmem:[%s9989_s5 + $0x60] sm:$0xff]  }
 0x2a0   :  { %v8535_v43 = vpack.c.bf16 %v1951_v36, %v1950_v17  ;;  %v1942_v0 = vadd.f32 %v8472_v13, %v1923_v62  ;;  %v1926_v11 = vadd.f32 %v6779_v20, %v8467_v34  ;;  %6868 = vmatprep.subr.bf16.mxu1 %v10007_v45  ;;  %v1956_v42 = vmax.f32 %v1944_v41, 0.0 }
 0x2a1   :  { %v1903_v6 = vpop.f32.mrf.mxu1  ;;  %v1992_v49 = vsel %vm1233_vm3, %v1987_v3, %v1991_v32  ;;  %v8543_v7 = vshll.u32 %v8518_v47, 16  ;;  %v8546_v40 = vshrl.u32 %v8518_v47, 16  ;;  %v2395_v17 = vrot.slane %v8518_v47, 5  ;;  %v7572_v32 = vld [vmem:[%s9989_s5 + $0x50] sm:$0xff]  }
 0x2a2   :  { %v1945_v34 = vadd.f32 %v8472_v13, %v1926_v11  ;;  %v1924_v60 = vadd.f32 %v1903_v6, %v1727_v29  ;;  %6789 = vmatmul.mubr.msk.bf16.vlgmr.msra.gmra.mxu0 %vm714_vm1, %v1992_v49  ;;  %6821 = vmatmul.mubr.msk.bf16.gmra.mxu1 %vm714_vm1, %v8479_v58  ;;  %v8556_v5 = vshll.u32 %v8535_v43, 16  ;;  %v1954_v27 = vmax.f32 %v1942_v0, 0.0 }
 0x2a3   :  { %6837 = vmatpush3.bf16.msra.mxu0 %v7571_v28  ;;  %6792 = vmatprep.mubr.msk.bf16.mxu0 %vm7668_vm0, %v10007_v45  ;;  %v2007_v29 = vrot.slane %v8543_v7, 1  ;;  %v2393_v33 = vrot.slane %v8535_v43, 5  ;;  %v2255_v54 = vrot.slane %v8535_v43, 1  ;;  %v8570_v46 = vshrl.u32 %v8535_v43, 16 }
 0x2a4   :  { %v1957_v51 = vmax.f32 %v1945_v34, 0.0  ;;  %v1943_v14 = vadd.f32 %v8472_v13, %v1924_v60  ;;  %v1999_v57 = vrot.slane %v8556_v5, 1  ;;  %6824 = vmatprep.mubr.msk.bf16.mxu1 %vm7668_vm0, %v10007_v45  ;;  %6838 = vmatprep.subr.bf16.mxu0 %v10007_v45  ;;  %v2678_v0 = vrot.slane %v8479_v58, 6 }
 0x2a5   :  { %v2011_v16 = vor.u32 %v8546_v40, %v2007_v29  ;;  %6869 = vmatpush3.bf16.msra.mxu1 %v7576_v39  ;;  %v8582_v13 = vsel %vm1569_vm2, %v2391_v10, %v2393_v33  ;;  %v8587_v36 = vsel %vm2251_vm9, %v2253_v25, %v2255_v54  ;;  %v8590_v41 = vsel %vm1569_vm2, %v2393_v33, %v2395_v17 }
 0x2a6   :  { %v8592_v62 = vpack.c.bf16 %v1957_v51, %v1956_v42  ;;  %v1955_v20 = vmax.f32 %v1943_v14, 0.0  ;;  %v2000_v3 = vsel %vm1233_vm3, %v1995_v1, %v1999_v57  ;;  %v2003_v28 = vor.u32 %v8570_v46, %v1999_v57  ;;  %6870 = vmatprep.subr.bf16.mxu1 %v10007_v45  ;;  %v7574_v1 = vld [vmem:[%s9989_s5 + $0x48] sm:$0xff]   ;;  %v7578_v14 = vld [vmem:[%s9989_s5 + $0x40] sm:$0xff]  }
 0x2a7   :  { %6839 = vmatpush3.bf16.msra.mxu0 %v7572_v32  ;;  %v2257_v10 = vrot.slane %v8518_v47, 1  ;;  %v2529_v25 = vrot.slane %v1984_v61, 6  ;;  %v2532_v11 = vrot.slane %v8489_v22, 6  ;;  %v2680_v49 = vrot.slane %v8535_v43, 6 }
 0x2a8   :  { %v8602_v6 = vpack.c.bf16 %v1955_v20, %v1954_v27  ;;  %v2008_v42 = vsel %vm1233_vm3, %v2003_v28, %v2007_v29  ;;  %6840 = vmatprep.subr.bf16.mxu0 %v10007_v45  ;;  %v2535_v39 = vrot.slane %v8570_v46, 5  ;;  %v8615_v61 = vsel %vm2676_vm10, %v2677_v2, %v2678_v0 }
 0x2a9   :  { %6871 = vmatpush3.bf16.msra.mxu1 %v7577_v18  ;;  %v8612_v31 = vsel %vm2251_vm9, %v2255_v54, %v2257_v10  ;;  %v2530_v34 = vor.u32 %v2529_v25, %v8514_v52  ;;  %v2533_v60 = vor.u32 %v2532_v11, %v2531_v35  ;;  %v8639_v52 = vsel %vm2676_vm10, %v2678_v0, %v2680_v49 }
 0x2aa   :  { %6793 = vmatmul.mubr.msk.bf16.gmra.mxu0 %vm714_vm1, %v2000_v3  ;;  %6825 = vmatmul.mubr.msk.bf16.gmra.mxu1 %vm714_vm1, %v8535_v43  ;;  %v8624_v27 = vshll.u32 %v8602_v6, 16  ;;  %v8627_v32 = vshrl.u32 %v8602_v6, 16  ;;  %v9998_v29 = vrot.slane %v8602_v6, 5  ;;  %v9997_v2 = vrot.slane %v8602_v6, 1 }
 0x2ab   :  { %6796 = vmatprep.mubr.msk.bf16.mxu0 %vm7668_vm0, %v10007_v45  ;;  %6828 = vmatprep.mubr.msk.bf16.mxu1 %vm7668_vm0, %v10007_v45  ;;  %v8636_v35 = vsel %vm1747_vm4, %v2530_v34, %v2533_v60  ;;  %v2536_v33 = vrot.slane %v8556_v5, 6  ;;  %v2682_v54 = vrot.slane %v8518_v47, 6  ;;  %v2539_v20 = vrot.slane %v8546_v40, 5 }
 0x2ac   :  { %6841 = vmatpush3.bf16.msra.mxu0 %v7574_v1  ;;  %v2015_v51 = vrot.slane %v8624_v27, 1  ;;  %v8650_v57 = vsel %vm1569_vm2, %v2395_v17, %v9998_v29  ;;  %6920 = vmatprep.subr.bf16.mxu1 %v10007_v45  ;;  %v8656_v18 = vsel %vm2251_vm9, %v2257_v10, %v9997_v2  ;;  %v2540_v0 = vrot.slane %v8543_v7, 6 }
 0x2ad   :  { %6842 = vmatprep.subr.bf16.mxu0 %v10007_v45  ;;  %v2537_v3 = vor.u32 %v2536_v33, %v2535_v39  ;;  %v8661_v28 = vsel %vm2676_vm10, %v2680_v49, %v2682_v54  ;;  %v9999_v17 = vrot.slane %v8602_v6, 6  ;;  %v2960_v25 = vrot.slane %v8556_v5, 3 }
 0x2ae   :  { %v2016_v10 = vsel %vm1233_vm3, %v2011_v16, %v2015_v51  ;;  %v2543_v11 = vrot.slane %v8627_v32, 5  ;;  %v2544_v1 = vrot.slane %v8624_v27, 6  ;;  %v2541_v49 = vor.u32 %v2540_v0, %v2539_v20 }
 0x2af   :  { %v8672_v39 = vsel %vm1747_vm4, %v2533_v60, %v2537_v3  ;;  %v8677_v34 = vsel %vm2676_vm10, %v2682_v54, %v9999_v17  ;;  %v2957_v33 = vrot.slane %v8489_v22, 3  ;;  %v2959_v16 = vrot.slane %v8570_v46, 2 }
 0x2b0   :  { %6843 = vmatpush3.bf16.msra.mxu0 %v7578_v14  ;;  %v8680_v5 = vor.u32 %v2544_v1, %v2543_v11  ;;  %v2817_v2 = vrot.slane %v8479_v58, 2  ;;  %v2818_v29 = vrot.slane %v8535_v43, 2  ;;  %v8687_v60 = vsel %vm1747_vm4, %v2537_v3, %v2541_v49 }
 0x2b1   :  { %6892 = vmatprep.subr.bf16.mxu0 %v10007_v45  ;;  %v2958_v54 = vor.u32 %v2957_v33, %v2956_v9  ;;  %v2963_v20 = vrot.slane %v8546_v40, 2  ;;  %v2964_v22 = vrot.slane %v8543_v7, 3  ;;  %v2961_v14 = vor.u32 %v2960_v25, %v2959_v16 }
 0x2b2   :  { %6797 = vmatmul.mubr.msk.bf16.gmra.mxu0 %vm714_vm1, %v2008_v42  ;;  %6829 = vmatmul.mubr.msk.bf16.gmra.mxu1 %vm714_vm1, %v8518_v47  ;;  %v8698_v46 = vsel %vm1747_vm4, %v2541_v49, %v8680_v5  ;;  %v8701_v3 = vsel %vm2816_vm5, %v2817_v2, %v2818_v29  ;;  %v2820_v55 = vrot.slane %v8518_v47, 2  ;;  %v2967_v7 = vrot.slane %v8627_v32, 2 }
 0x2b3   :  { %6800 = vmatprep.mubr.msk.bf16.mxu0 %vm7668_vm0, %v10007_v45  ;;  %6832 = vmatprep.mubr.msk.bf16.mxu1 %vm7668_vm0, %v10007_v45  ;;  %v2965_v9 = vor.u32 %v2964_v22, %v2963_v20  ;;  %v2968_v40 = vrot.slane %v8624_v27, 3  ;;  %v2822_v42 = vrot.slane %v8602_v6, 2  ;;  %v8712_v0 = vsel %vm2955_vm7, %v2958_v54, %v2961_v14  ;;  %v7583_v27 = vld [vmem:[%s9989_s5 + $0xb0] sm:$0xff]  }
 0x2b4   :  { %v8715_v2 = vsel %vm2816_vm5, %v2818_v29, %v2820_v55  ;;  %v2972_v25 = vshrl.u32 %v8592_v62, 16  ;;  %v2975_v11 = vshll.u32 %v8592_v62, 16  ;;  %v2824_v16 = vrot.slane %v8592_v62, 2 }
 0x2b5   :  { %v8720_v1 = vsel %vm2955_vm7, %v2961_v14, %v2965_v9  ;;  %v2969_v49 = vor.u32 %v2968_v40, %v2967_v7  ;;  %v8723_v33 = vsel %vm2816_vm5, %v2820_v55, %v2822_v42  ;;  %v3110_v54 = vrot.slane %v8479_v58, 3 }
 0x2b6   :  { %v2974_v20 = vrot.slane %v2972_v25, 2  ;;  %v2977_v22 = vrot.slane %v2975_v11, 3  ;;  %v3111_v29 = vrot.slane %v8535_v43, 3  ;;  %v8734_v14 = vsel %vm2816_vm5, %v2822_v42, %v2824_v16  ;;  %v7581_v11 = vld [vmem:[%s9989_s5 + $0xb8] sm:$0xff]  }
 0x2b7   :  { %v8729_v17 = vsel %vm2955_vm7, %v2965_v9, %v2969_v49  ;;  %v3113_v7 = vrot.slane %v8518_v47, 3  ;;  %v3115_v55 = vrot.slane %v8602_v6, 3  ;;  %v3117_v58 = vrot.slane %v8592_v62, 3  ;;  %v7624_v62 = vld [vmem:[%s9987_s3 + $0xf0] sm:$0xff]  }
 0x2b8   :  { %v8738_v40 = vor.u32 %v2977_v22, %v2974_v20  ;;  %v8741_v25 = vsel %vm3109_vm11, %v3110_v54, %v3111_v29  ;;  %v7588_v20 = vld [vmem:[%s9989_s5 + $0xd0] sm:$0xff]   ;;  %v7595_v22 = vld [vmem:[%s9987_s3 + $0x78] sm:$0xff]   ;;  %v7594_v54 = vld [vmem:[%s9989_s5 + $0xc0] sm:$0xff]  }
 0x2b9   :  { %v8745_v43 = vsel %vm3109_vm11, %v3111_v29, %v3113_v7  ;;  %v8748_v9 = vsel %vm3109_vm11, %v3113_v7, %v3115_v55  ;;  %v8760_v42 = vsel %vm3109_vm11, %v3115_v55, %v3117_v58  ;;  %v7605_v29 = vld [vmem:[%s9987_s3 + $0x40] sm:$0xff]   ;;  %v7607_v7 = vld [vmem:[%s9987_s3 + $0xb8] sm:$0xff]   ;;  %v7617_v55 = vld [vmem:[%s9987_s3 + $0x88] sm:$0xff]  }
 0x2ba   :  { %6801 = vmatmul.mubr.msk.bf16.gmra.mxu0 %vm714_vm1, %v2016_v10  ;;  %6833 = vmatmul.mubr.msk.bf16.gmra.mxu1 %vm714_vm1, %v8602_v6  ;;  %v8755_v47 = vsel %vm2955_vm7, %v2969_v49, %v8738_v40  ;;  %v2019_v10 = vor.u32 %v8627_v32, %v2015_v51  ;;  %v7579_v32 = vld [vmem:[%s9989_s5 + $0x98] sm:$0xff]   ;;  %v7580_v51 = vld [vmem:[%s9989_s5 + $0x90] sm:$0xff]   ;;  %v7586_v49 = vld [vmem:[%s9989_s5 + $0x80] sm:$0xff]  }
 0x2bb   :  { %6804 = vmatprep.mubr.msk.bf16.mxu0 %vm7668_vm0, %v10007_v45  ;;  %6872 = vmatprep.mubr.msk.bf16.mxu1 %vm7668_vm0, %v10007_v45 }
 0x2c2   :  { %6805 = vmatmul.mubr.msk.bf16.gmra.mxu0 %vm714_vm1, %v2019_v10  ;;  %6873 = vmatmul.mubr.msk.bf16.vlgmr.msra.gmra.mxu1 %vm714_vm1, %v8528_v59  ;;  %v7584_v59 = vld [vmem:[%s9989_s5 + $0xa8] sm:$0xff]   ;;  %v7623_v10 = vld [vmem:[%s9987_s3 + $0xf8] sm:$0xff]  }
 0x2c3   :  { %6844 = vmatprep.mubr.msk.bf16.mxu0 %vm7668_vm0, %v10007_v45  ;;  %6876 = vmatprep.mubr.msk.bf16.mxu1 %vm7668_vm0, %v10007_v45 }
 0x2c4   :  { %6921 = vmatpush3.bf16.msra.mxu1 %v7581_v11 }
 0x2c5   :  { %6922 = vmatprep.subr.bf16.mxu1 %v10007_v45 }
 0x2c8   :  { %6923 = vmatpush3.bf16.msra.mxu1 %v7583_v27 }
 0x2c9   :  { %6924 = vmatprep.subr.bf16.mxu1 %v10007_v45 }
 0x2ca   :  { %6845 = vmatmul.mubr.msk.bf16.vlgmr.msra.gmra.mxu0 %vm714_vm1, %v8533_v15  ;;  %6877 = vmatmul.mubr.msk.bf16.gmra.mxu1 %vm714_vm1, %v8582_v13  ;;  %v7585_v15 = vld [vmem:[%s9989_s5 + $0xa0] sm:$0xff]   ;;  %v7582_v13 = vld [vmem:[%s9989_s5 + $0x88] sm:$0xff]  }
 0x2cb   :  { %6893 = vmatpush3.bf16.msra.mxu0 %v7579_v32  ;;  %6848 = vmatprep.mubr.msk.bf16.mxu0 %vm7668_vm0, %v10007_v45 }
 0x2cc   :  { %6880 = vmatprep.mubr.msk.bf16.mxu1 %vm7668_vm0, %v10007_v45  ;;  %6894 = vmatprep.subr.bf16.mxu0 %v10007_v45 }
 0x2cd   :  { %6925 = vmatpush3.bf16.msra.mxu1 %v7584_v59 }
 0x2ce   :  { %6926 = vmatprep.subr.bf16.mxu1 %v10007_v45 }
 0x2cf   :  { %6895 = vmatpush3.bf16.msra.mxu0 %v7580_v51 }
 0x2d0   :  { %6896 = vmatprep.subr.bf16.mxu0 %v10007_v45 }
 0x2d1   :  { %6927 = vmatpush3.bf16.msra.mxu1 %v7585_v15 }
 0x2d2   :  { %6849 = vmatmul.mubr.msk.bf16.gmra.mxu0 %vm714_vm1, %v8587_v36  ;;  %6881 = vmatmul.mubr.msk.bf16.gmra.mxu1 %vm714_vm1, %v8590_v41  ;;  %v10008_v36 = vrot.slane %v8602_v6, 5  ;;  %v7589_v41 = vld [vmem:[%s9989_s5 + $0xf8] sm:$0xff]  }
 0x2d3   :  { %6852 = vmatprep.mubr.msk.bf16.mxu0 %vm7668_vm0, %v10007_v45  ;;  %6884 = vmatprep.mubr.msk.bf16.mxu1 %vm7668_vm0, %v10007_v45 }
 0x2d4   :  { %6897 = vmatpush3.bf16.msra.mxu0 %v7582_v13  ;;  %6976 = vmatprep.subr.bf16.mxu1 %v10007_v45 }
 0x2d5   :  { %6898 = vmatprep.subr.bf16.mxu0 %v10007_v45 }
 0x2d8   :  { %6899 = vmatpush3.bf16.msra.mxu0 %v7586_v49 }
 0x2d9   :  { %6948 = vmatprep.subr.bf16.mxu0 %v10007_v45 }
 0x2da   :  { %6853 = vmatmul.mubr.msk.bf16.gmra.mxu0 %vm714_vm1, %v8612_v31  ;;  %6885 = vmatmul.mubr.msk.bf16.gmra.mxu1 %vm714_vm1, %v8650_v57  ;;  %v10009_v31 = vrot.slane %v8602_v6, 1  ;;  %v7591_v57 = vld [vmem:[%s9989_s5 + $0xf0] sm:$0xff]  }
 0x2db   :  { %6856 = vmatprep.mubr.msk.bf16.mxu0 %vm7668_vm0, %v10007_v45  ;;  %6888 = vmatprep.mubr.msk.bf16.mxu1 %vm7668_vm0, %v10007_v45 }
 0x2e2   :  { %6857 = vmatmul.mubr.msk.bf16.gmra.mxu0 %vm714_vm1, %v8656_v18  ;;  %6889 = vmatmul.mubr.msk.bf16.gmra.mxu1 %vm714_vm1, %v10008_v36  ;;  %v7587_v18 = vld [vmem:[%s9989_s5 + $0xd8] sm:$0xff]  }
 0x2e3   :  { %6860 = vmatprep.mubr.msk.bf16.mxu0 %vm7668_vm0, %v10007_v45  ;;  %6928 = vmatprep.mubr.msk.bf16.mxu1 %vm7668_vm0, %v10007_v45 }
 0x2ea   :  { %6861 = vmatmul.mubr.msk.bf16.gmra.mxu0 %vm714_vm1, %v10009_v31  ;;  %6929 = vmatmul.mubr.msk.bf16.vlgmr.msra.gmra.mxu1 %vm714_vm1, %v8615_v61  ;;  %v7592_v61 = vld [vmem:[%s9989_s5 + $0xe8] sm:$0xff]  }
 0x2eb   :  { %6900 = vmatprep.mubr.msk.bf16.mxu0 %vm7668_vm0, %v10007_v45  ;;  %6932 = vmatprep.mubr.msk.bf16.mxu1 %vm7668_vm0, %v10007_v45  ;;  %v7625_v31 = vld [vmem:[%s9987_s3 + $0xe8] sm:$0xff]  }
 0x2ec   :  { %6977 = vmatpush3.bf16.msra.mxu1 %v7589_v41 }
 0x2ed   :  { %6978 = vmatprep.subr.bf16.mxu1 %v10007_v45 }
 0x2f0   :  { %6979 = vmatpush3.bf16.msra.mxu1 %v7591_v57 }
 0x2f1   :  { %6980 = vmatprep.subr.bf16.mxu1 %v10007_v45 }
 0x2f2   :  { %6901 = vmatmul.mubr.msk.bf16.vlgmr.msra.gmra.mxu0 %vm714_vm1, %v8636_v35  ;;  %6933 = vmatmul.mubr.msk.bf16.gmra.mxu1 %vm714_vm1, %v8639_v52  ;;  %v7593_v35 = vld [vmem:[%s9989_s5 + $0xe0] sm:$0xff]   ;;  %v7590_v52 = vld [vmem:[%s9989_s5 + $0xc8] sm:$0xff]  }
 0x2f3   :  { %6949 = vmatpush3.bf16.msra.mxu0 %v7587_v18  ;;  %6904 = vmatprep.mubr.msk.bf16.mxu0 %vm7668_vm0, %v10007_v45 }
 0x2f4   :  { %6936 = vmatprep.mubr.msk.bf16.mxu1 %vm7668_vm0, %v10007_v45  ;;  %6950 = vmatprep.subr.bf16.mxu0 %v10007_v45 }
 0x2f5   :  { %6981 = vmatpush3.bf16.msra.mxu1 %v7592_v61 }
 0x2f6   :  { %6982 = vmatprep.subr.bf16.mxu1 %v10007_v45 }
 0x2f7   :  { %6951 = vmatpush3.bf16.msra.mxu0 %v7588_v20 }
 0x2f8   :  { %6952 = vmatprep.subr.bf16.mxu0 %v10007_v45 }
 0x2f9   :  { %6983 = vmatpush3.bf16.msra.mxu1 %v7593_v35 }
 0x2fa   :  { %6905 = vmatmul.mubr.msk.bf16.gmra.mxu0 %vm714_vm1, %v8672_v39  ;;  %6937 = vmatmul.mubr.msk.bf16.gmra.mxu1 %vm714_vm1, %v8661_v28  ;;  %v10010_v28 = vrot.slane %v8602_v6, 6  ;;  %v7597_v39 = vld [vmem:[%s9987_s3 + $0x70] sm:$0xff]   ;;  %v7598_v6 = vld [vmem:[%s9987_s3 + $0x68] sm:$0xff]  }
 0x2fb   :  { %6908 = vmatprep.mubr.msk.bf16.mxu0 %vm7668_vm0, %v10007_v45  ;;  %6940 = vmatprep.mubr.msk.bf16.mxu1 %vm7668_vm0, %v10007_v45 }
 0x2fc   :  { %6953 = vmatpush3.bf16.msra.mxu0 %v7590_v52  ;;  %7032 = vmatprep.subr.bf16.mxu1 %v7595_v22 }
 0x2fd   :  { %6954 = vmatprep.subr.bf16.mxu0 %v10007_v45 }
 0x300   :  { %6955 = vmatpush3.bf16.msra.mxu0 %v7594_v54 }
 0x301   :  { %7004 = vmatprep.subr.bf16.mxu0 %v10007_v45 }
 0x302   :  { %6909 = vmatmul.mubr.msk.bf16.gmra.mxu0 %vm714_vm1, %v8687_v60  ;;  %6941 = vmatmul.mubr.msk.bf16.gmra.mxu1 %vm714_vm1, %v8677_v34  ;;  %v7596_v34 = vld [vmem:[%s9989_s5 + $0x118] sm:$0xff]   ;;  %v7599_v60 = vld [vmem:[%s9989_s5 + $0x110] sm:$0xff]  }
 0x303   :  { %6912 = vmatprep.mubr.msk.bf16.mxu0 %vm7668_vm0, %v10007_v45  ;;  %6944 = vmatprep.mubr.msk.bf16.mxu1 %vm7668_vm0, %v10007_v45 }
 0x30a   :  { %6913 = vmatmul.mubr.msk.bf16.gmra.mxu0 %vm714_vm1, %v8698_v46  ;;  %6945 = vmatmul.mubr.msk.bf16.gmra.mxu1 %vm714_vm1, %v10010_v28  ;;  %v7601_v46 = vld [vmem:[%s9987_s3 + $0x58] sm:$0xff]  }
 0x30b   :  { %6916 = vmatprep.mubr.msk.bf16.mxu0 %vm7668_vm0, %v10007_v45  ;;  %6984 = vmatprep.mubr.msk.bf16.mxu1 %vm7668_vm0, %v10007_v45  ;;  %v7627_v28 = vld [vmem:[%s9987_s3 + $0xd8] sm:$0xff]  }
 0x312   :  { %6917 = vmatmul.mubr.msk.bf16.gmra.mxu0 %vm714_vm1, %v8680_v5  ;;  %6985 = vmatmul.mubr.msk.bf16.vlgmr.msra.gmra.mxu1 %vm714_vm1, %v8712_v0  ;;  %v7600_v5 = vld [vmem:[%s9987_s3 + $0x60] sm:$0xff]   ;;  %v7602_v0 = vld [vmem:[%s9987_s3 + $0x50] sm:$0xff]  }
 0x313   :  { %6956 = vmatprep.mubr.msk.bf16.mxu0 %vm7668_vm0, %v10007_v45  ;;  %6988 = vmatprep.mubr.msk.bf16.mxu1 %vm7668_vm0, %v10007_v45 }
 0x314   :  { %7033 = vmatpush3.bf16.msra.mxu1 %v7595_v22 }
 0x315   :  { %7034 = vmatprep.subr.bf16.mxu1 %v7597_v39 }
 0x318   :  { %7035 = vmatpush3.bf16.msra.mxu1 %v7597_v39 }
 0x319   :  { %7036 = vmatprep.subr.bf16.mxu1 %v7598_v6 }
 0x31a   :  { %6957 = vmatmul.mubr.msk.bf16.vlgmr.msra.gmra.mxu0 %vm714_vm1, %v8701_v3  ;;  %6989 = vmatmul.mubr.msk.bf16.gmra.mxu1 %vm714_vm1, %v8720_v1  ;;  %v7603_v3 = vld [vmem:[%s9989_s5 + $0x108] sm:$0xff]   ;;  %v7606_v1 = vld [vmem:[%s9989_s5 + $0x100] sm:$0xff]  }
 0x31b   :  { %7005 = vmatpush3.bf16.msra.mxu0 %v7596_v34  ;;  %6960 = vmatprep.mubr.msk.bf16.mxu0 %vm7668_vm0, %v10007_v45 }
 0x31c   :  { %6992 = vmatprep.mubr.msk.bf16.mxu1 %vm7668_vm0, %v10007_v45  ;;  %7037 = vmatpush3.bf16.msra.mxu1 %v7598_v6 }
 0x31d   :  { %7006 = vmatprep.subr.bf16.mxu0 %v10007_v45  ;;  %7038 = vmatprep.subr.bf16.mxu1 %v7600_v5 }
 0x31f   :  { %7007 = vmatpush3.bf16.msra.mxu0 %v7599_v60  ;;  %v7628_v60 = vld [vmem:[%s9987_s3 + $0xd0] sm:$0xff]  }
 0x320   :  { %7039 = vmatpush3.bf16.msra.mxu1 %v7600_v5  ;;  %7008 = vmatprep.subr.bf16.mxu0 %v10007_v45 }
 0x321   :  { %7040 = vmatprep.subr.bf16.mxu1 %v7601_v46 }
 0x322   :  { %6961 = vmatmul.mubr.msk.bf16.gmra.mxu0 %vm714_vm1, %v8715_v2  ;;  %6993 = vmatmul.mubr.msk.bf16.gmra.mxu1 %vm714_vm1, %v8729_v17  ;;  %v7604_v2 = vld [vmem:[%s9987_s3 + $0x48] sm:$0xff]   ;;  %v7609_v17 = vld [vmem:[%s9987_s3 + $0x38] sm:$0xff]  }
 0x323   :  { %6964 = vmatprep.mubr.msk.bf16.mxu0 %vm7668_vm0, %v10007_v45  ;;  %6996 = vmatprep.mubr.msk.bf16.mxu1 %vm7668_vm0, %v10007_v45 }
 0x324   :  { %7041 = vmatpush3.bf16.msra.mxu1 %v7601_v46  ;;  %7009 = vmatpush3.bf16.msra.mxu0 %v7603_v3  ;;  %v10011_v46 = vld [vmem:[#allocation5_spill] sm:$0xff] }
 0x325   :  { %7042 = vmatprep.subr.bf16.mxu1 %v7602_v0  ;;  %7010 = vmatprep.subr.bf16.mxu0 %v10007_v45  ;;  %v10012_v3 = vrot.slane %v10011_v46, 2 }
 0x328   :  { %7043 = vmatpush3.bf16.msra.mxu1 %v7602_v0  ;;  %7011 = vmatpush3.bf16.msra.mxu0 %v7606_v1 }
 0x329   :  { %7044 = vmatprep.subr.bf16.mxu1 %v7604_v2  ;;  %7060 = vmatprep.subr.bf16.mxu0 %v7609_v17 }
 0x32a   :  { %6965 = vmatmul.mubr.msk.bf16.gmra.mxu0 %vm714_vm1, %v8723_v33  ;;  %6997 = vmatmul.mubr.msk.bf16.gmra.mxu1 %vm714_vm1, %v8755_v47  ;;  %v7608_v33 = vld [vmem:[%s9987_s3 + $0xb0] sm:$0xff]  }
 0x32b   :  { %6968 = vmatprep.mubr.msk.bf16.mxu0 %vm7668_vm0, %v10007_v45  ;;  %7000 = vmatprep.mubr.msk.bf16.mxu1 %vm7668_vm0, %v10007_v45 }
 0x32c   :  { %7045 = vmatpush3.bf16.msra.mxu1 %v7604_v2  ;;  %v10013_v2 = vld [vmem:[#allocation2_spill] sm:$0xff] }
 0x32d   :  { %7046 = vmatprep.subr.bf16.mxu1 %v7605_v29 }
 0x330   :  { %7047 = vmatpush3.bf16.msra.mxu1 %v7605_v29 }
 0x331   :  { %7088 = vmatprep.subr.bf16.mxu1 %v7607_v7 }
 0x332   :  { %6969 = vmatmul.mubr.msk.bf16.gmra.mxu0 %vm714_vm1, %v8734_v14  ;;  %7001 = vmatmul.mubr.msk.bf16.gmra.mxu1 %vm714_vm1, %v8738_v40  ;;  %v7611_v14 = vld [vmem:[%s9987_s3 + $0xa0] sm:$0xff]   ;;  %v7618_v40 = vld [vmem:[%s9987_s3 + $0x18] sm:$0xff]  }
 0x333   :  { %7048 = vmatprep.mubr.bf16.mxu1 %v8302_v63  ;;  %6972 = vmatprep.mubr.msk.bf16.mxu0 %vm7668_vm0, %v10007_v45  ;;  %v7610_v63 = vld [vmem:[%s9987_s3 + $0xa8] sm:$0xff]  }
 0x33a   :  { %6973 = vmatmul.mubr.msk.bf16.gmra.mxu0 %vm714_vm1, %v2824_v16  ;;  %7049 = vmatmul.mubr.bf16.vlgmr.msra.gmra.mxu1 %v8324_v38  ;;  %v7612_v38 = vld [vmem:[%s9987_s3 + $0x30] sm:$0xff]   ;;  %v7614_v16 = vld [vmem:[%s9987_s3 + $0x28] sm:$0xff]  }
 0x33b   :  { %7089 = vmatpush3.bf16.msra.mxu1 %v7607_v7  ;;  %7052 = vmatprep.mubr.bf16.mxu1 %v8345_v21  ;;  %v7613_v21 = vld [vmem:[%s9987_s3 + $0x98] sm:$0xff]   ;;  %v7629_v7 = vld [vmem:[%s9987_s3 + $0xc8] sm:$0xff]  }
 0x33c   :  { %7090 = vmatprep.subr.bf16.mxu1 %v7608_v33  ;;  %7012 = vmatprep.mubr.msk.bf16.mxu0 %vm7668_vm0, %v10007_v45 }
 0x33f   :  { %7091 = vmatpush3.bf16.msra.mxu1 %v7608_v33 }
 0x340   :  { %7092 = vmatprep.subr.bf16.mxu1 %v7610_v63 }
 0x342   :  { %7013 = vmatmul.mubr.msk.bf16.vlgmr.msra.gmra.mxu0 %vm714_vm1, %v8741_v25  ;;  %7053 = vmatmul.mubr.bf16.gmra.mxu1 %v8368_v44  ;;  %v7615_v44 = vld [vmem:[%s9987_s3 + $0x90] sm:$0xff]   ;;  %v7621_v25 = vld [vmem:[%s9987_s3 + $0x8] sm:$0xff]  }
 0x343   :  { %7061 = vmatpush3.bf16.msra.mxu0 %v7609_v17  ;;  %7093 = vmatpush3.bf16.msra.mxu1 %v7610_v63 }
 0x344   :  { %7056 = vmatprep.mubr.bf16.mxu1 %v8403_v30  ;;  %7094 = vmatprep.subr.bf16.mxu1 %v7611_v14  ;;  %v7616_v30 = vld [vmem:[%s9987_s3 + $0x20] sm:$0xff]  }
 0x345   :  { %7062 = vmatprep.subr.bf16.mxu0 %v7612_v38  ;;  %7016 = vmatprep.mubr.msk.bf16.mxu0 %vm7668_vm0, %v10007_v45 }
 0x347   :  { %7095 = vmatpush3.bf16.msra.mxu1 %v7611_v14  ;;  %7063 = vmatpush3.bf16.msra.mxu0 %v7612_v38 }
 0x348   :  { %7096 = vmatprep.subr.bf16.mxu1 %v7613_v21  ;;  %7064 = vmatprep.subr.bf16.mxu0 %v7614_v16 }
 0x34a   :  { %7017 = vmatmul.mubr.msk.bf16.gmra.mxu0 %vm714_vm1, %v8745_v43  ;;  %7057 = vmatmul.mubr.bf16.gmra.mxu1 %v8395_v4  ;;  %v7620_v4 = vld [vmem:[%s9987_s3 + $0x10] sm:$0xff]   ;;  %v7622_v43 = vld [vmem:[%s9987_s3] sm:$0xff]  }
 0x34b   :  { %7097 = vmatpush3.bf16.msra.mxu1 %v7613_v21  ;;  %7104 = vmatprep.mubr.bf16.mxu1 %v8290_v53  ;;  %v7619_v53 = vld [vmem:[%s9987_s3 + $0x80] sm:$0xff]  }
 0x34c   :  { %7065 = vmatpush3.bf16.msra.mxu0 %v7614_v16  ;;  %7098 = vmatprep.subr.bf16.mxu1 %v7615_v44  ;;  %v7630_v16 = vld [vmem:[%s9987_s3 + $0xc0] sm:$0xff]  }
 0x34d   :  { %7020 = vmatprep.mubr.msk.bf16.mxu0 %vm7668_vm0, %v10007_v45  ;;  %7066 = vmatprep.subr.bf16.mxu0 %v7616_v30 }
 0x34f   :  { %7099 = vmatpush3.bf16.msra.mxu1 %v7615_v44 }
 0x350   :  { %7067 = vmatpush3.bf16.msra.mxu0 %v7616_v30  ;;  %7100 = vmatprep.subr.bf16.mxu1 %v7617_v55 }
 0x351   :  { %7068 = vmatprep.subr.bf16.mxu0 %v7618_v40 }
 0x352   :  { %7021 = vmatmul.mubr.msk.bf16.gmra.mxu0 %vm714_vm1, %v8748_v9 }
 0x353   :  { %7101 = vmatpush3.bf16.msra.mxu1 %v7617_v55  ;;  %7024 = vmatprep.mubr.msk.bf16.mxu0 %vm7668_vm0, %v10007_v45 }
 0x354   :  { %7102 = vmatprep.subr.bf16.mxu1 %v7619_v53  ;;  %7069 = vmatpush3.bf16.msra.mxu0 %v7618_v40 }
 0x355   :  { %7070 = vmatprep.subr.bf16.mxu0 %v7620_v4 }
 0x357   :  { %7103 = vmatpush3.bf16.msra.mxu1 %v7619_v53 }
 0x358   :  { %7071 = vmatpush3.bf16.msra.mxu0 %v7620_v4  ;;  %7144 = vmatprep.subr.bf16.mxu1 %v10007_v45 }
 0x359   :  { %7072 = vmatprep.subr.bf16.mxu0 %v7621_v25 }
 0x35a   :  { %7025 = vmatmul.mubr.msk.bf16.gmra.mxu0 %vm714_vm1, %v8760_v42  ;;  %7105 = vmatmul.mubr.bf16.vlgmr.msra.gmra.mxu1 %v8313_v19  ;;  %v2199_v9 = vpop.f32.mrf.mxu1 }
 0x35b   :  { %7108 = vmatprep.mubr.bf16.mxu1 %v8335_v50  ;;  %7028 = vmatprep.mubr.msk.bf16.mxu0 %vm7668_vm0, %v10007_v45 }
 0x35c   :  { %v6818_v47 = vpop.f32.mrf.mxu1  ;;  %7073 = vmatpush3.bf16.msra.mxu0 %v7621_v25 }
 0x35d   :  { %7074 = vmatprep.subr.bf16.mxu0 %v7622_v43  ;;  %v10014_v47 = vld [vmem:[#allocation3_spill] sm:$0xff] }
 0x35e   :  { %v2202_v11 = vpop.f32.mrf.mxu1 }
 0x360   :  { %v6819_v27 = vpop.f32.mrf.mxu1  ;;  %7075 = vmatpush3.bf16.msra.mxu0 %v7622_v43 }
 0x361   :  { %7116 = vmatprep.subr.bf16.mxu0 %v7623_v10 }
 0x362   :  { %v2093_v42 = vpop.f32.mrf.mxu0  ;;  %7029 = vmatmul.mubr.msk.bf16.gmra.mxu0 %vm714_vm1, %v3117_v58  ;;  %7109 = vmatmul.mubr.bf16.gmra.mxu1 %v8355_v26  ;;  %v2207_v19 = vpop.f32.mrf.mxu1 }
 0x363   :  { %v9077_v50 = vadd.f32 %v2199_v9, %v2093_v42  ;;  %7076 = vmatprep.mubr.bf16.mxu0 %v8293_v12  ;;  %7112 = vmatprep.mubr.bf16.mxu1 %v8382_v56  ;;  %v10015_v42 = vld [vmem:[#allocation4_spill] sm:$0xff] }
 0x364   :  { %v6790_v32 = vpop.f32.mrf.mxu0  ;;  %v6822_v59 = vpop.f32.mrf.mxu1 }
 0x366   :  { %v2096_v51 = vpop.f32.mrf.mxu0  ;;  %v2210_v15 = vpop.f32.mrf.mxu1 }
 0x367   :  { %v9081_v13 = vadd.f32 %v2202_v11, %v2096_v51 }
 0x368   :  { %v6791_v49 = vpop.f32.mrf.mxu0  ;;  %v6823_v36 = vpop.f32.mrf.mxu1 }
 0x36a   :  { %v2101_v26 = vpop.f32.mrf.mxu0  ;;  %7077 = vmatmul.mubr.bf16.vlgmr.msra.gmra.mxu0 %v8316_v8  ;;  %7113 = vmatmul.mubr.bf16.gmra.mxu1 %v8406_v24  ;;  %v2215_v12 = vpop.f32.mrf.mxu1 }
 0x36b   :  { %v9088_v58 = vadd.f32 %v2207_v19, %v2101_v26  ;;  %7117 = vmatpush3.bf16.msra.mxu0 %v7623_v10  ;;  %7080 = vmatprep.mubr.bf16.mxu0 %v8338_v37  ;;  %v7626_v37 = vld [vmem:[%s9987_s3 + $0xe0] sm:$0xff]  }
 0x36c   :  { %v6794_v56 = vpop.f32.mrf.mxu0  ;;  %v6826_v41 = vpop.f32.mrf.mxu1  ;;  %7118 = vmatprep.subr.bf16.mxu0 %v7624_v62  ;;  %7152 = vmatprep.mubr.msk.bf16.mxu1 %vm7668_vm0, %v10007_v45 }
 0x36e   :  { %v2104_v57 = vpop.f32.mrf.mxu0  ;;  %v2218_v8 = vpop.f32.mrf.mxu1 }
 0x36f   :  { %v9096_v18 = vadd.f32 %v2210_v15, %v2104_v57  ;;  %7119 = vmatpush3.bf16.msra.mxu0 %v7624_v62  ;;  %v10017_v57 = vld [vmem:[#allocation7_spill] sm:$0xff] }
 0x370   :  { %v6795_v24 = vpop.f32.mrf.mxu0  ;;  %v6827_v61 = vpop.f32.mrf.mxu1  ;;  %7120 = vmatprep.subr.bf16.mxu0 %v7625_v31 }
 0x372   :  { %v2109_v20 = vpop.f32.mrf.mxu0  ;;  %7081 = vmatmul.mubr.bf16.gmra.mxu0 %v8358_v23  ;;  %v2223_v35 = vpop.f32.mrf.mxu1 }
 0x373   :  { %v9102_v52 = vadd.f32 %v2215_v12, %v2109_v20  ;;  %7121 = vmatpush3.bf16.msra.mxu0 %v7625_v31  ;;  %7084 = vmatprep.mubr.bf16.mxu0 %v8387_v48  ;;  %v10016_v12 = vld [vmem:[#allocation6_spill] sm:$0xff] }
 0x374   :  { %v6798_v22 = vpop.f32.mrf.mxu0  ;;  %v6830_v54 = vpop.f32.mrf.mxu1  ;;  %7122 = vmatprep.subr.bf16.mxu0 %v7626_v37 }
 0x375   :  { %v10018_v54 = vld [vmem:[#allocation8_spill] sm:$0xff] }
 0x376   :  { %v2112_v39 = vpop.f32.mrf.mxu0  ;;  %v2226_v6 = vpop.f32.mrf.mxu1 }
 0x377   :  { %v9108_v34 = vadd.f32 %v2218_v8, %v2112_v39  ;;  %7123 = vmatpush3.bf16.msra.mxu0 %v7626_v37 }
 0x378   :  { %v6799_v5 = vpop.f32.mrf.mxu0  ;;  %v6831_v23 = vpop.f32.mrf.mxu1  ;;  %7124 = vmatprep.subr.bf16.mxu0 %v7627_v28 }
 0x37a   :  { %v2117_v48 = vpop.f32.mrf.mxu0  ;;  %7085 = vmatmul.mubr.bf16.gmra.mxu0 %v10012_v3  ;;  %v2231_v0 = vpop.f32.mrf.mxu1 }
 0x37b   :  { %v9115_v1 = vadd.f32 %v2223_v35, %v2117_v48  ;;  %7125 = vmatpush3.bf16.msra.mxu0 %v7627_v28  ;;  %7132 = vmatprep.mubr.bf16.mxu0 %v10013_v2 }
 0x37c   :  { %v6802_v17 = vpop.f32.mrf.mxu0  ;;  %v6834_v29 = vpop.f32.mrf.mxu1  ;;  %7126 = vmatprep.subr.bf16.mxu0 %v7628_v60 }
 0x37e   :  { %v2120_v33 = vpop.f32.mrf.mxu0  ;;  %v2234_v63 = vpop.f32.mrf.mxu1 }
 0x37f   :  { %v9121_v14 = vadd.f32 %v2226_v6, %v2120_v33  ;;  %7127 = vmatpush3.bf16.msra.mxu0 %v7628_v60 }
 0x380   :  { %v6803_v38 = vpop.f32.mrf.mxu0  ;;  %v6835_v21 = vpop.f32.mrf.mxu1  ;;  %7128 = vmatprep.subr.bf16.mxu0 %v7629_v7 }
 0x382   :  { %v2125_v44 = vpop.f32.mrf.mxu0  ;;  %v2472_v30 = vpop.f32.mrf.mxu1 }
 0x383   :  { %v9126_v55 = vadd.f32 %v2231_v0, %v2125_v44  ;;  %7129 = vmatpush3.bf16.msra.mxu0 %v7629_v7 }
 0x384   :  { %v6806_v40 = vpop.f32.mrf.mxu0  ;;  %v6874_v53 = vpop.f32.mrf.mxu1  ;;  %7130 = vmatprep.subr.bf16.mxu0 %v7630_v16 }
 0x386   :  { %v2128_v4 = vpop.f32.mrf.mxu0  ;;  %v2475_v25 = vpop.f32.mrf.mxu1 }
 0x387   :  { %7131 = vmatpush3.bf16.msra.mxu0 %v7630_v16 }
 0x388   :  { %v6807_v43 = vpop.f32.mrf.mxu0  ;;  %v6875_v9 = vpop.f32.mrf.mxu1  ;;  %7172 = vmatprep.subr.bf16.mxu0 %v10007_v45 }
 0x38a   :  { %7133 = vmatmul.mubr.bf16.vlgmr.msra.gmra.mxu0 %v10014_v47  ;;  %v2334_v10 = vpop.f32.mrf.mxu0  ;;  %v2480_v11 = vpop.f32.mrf.mxu1 }
 0x38b   :  { %v2372_v27 = vadd.f32 %v2334_v10, %v9077_v50  ;;  %7136 = vmatprep.mubr.bf16.mxu0 %v10015_v42 }
 0x38c   :  { %v6846_v19 = vpop.f32.mrf.mxu0  ;;  %v6878_v32 = vpop.f32.mrf.mxu1 }
 0x38d   :  { %v2510_v59 = vadd.f32 %v2472_v30, %v2372_v27 }
 0x38e   :  { %v2337_v51 = vpop.f32.mrf.mxu0  ;;  %v2483_v15 = vpop.f32.mrf.mxu1 }
 0x38f   :  { %v2373_v49 = vadd.f32 %v2337_v51, %v9081_v13 }
 0x390   :  { %v6847_v36 = vpop.f32.mrf.mxu0  ;;  %v6879_v62 = vpop.f32.mrf.mxu1 }
 0x391   :  { %v2511_v26 = vadd.f32 %v2475_v25, %v2373_v49 }
 0x392   :  { %7137 = vmatmul.mubr.bf16.gmra.mxu0 %v10016_v12  ;;  %v2342_v56 = vpop.f32.mrf.mxu0  ;;  %v2488_v41 = vpop.f32.mrf.mxu1 }
 0x393   :  { %v2374_v31 = vadd.f32 %v2342_v56, %v9088_v58  ;;  %7140 = vmatprep.mubr.bf16.mxu0 %v10017_v57 }
 0x394   :  { %v6850_v50 = vpop.f32.mrf.mxu0  ;;  %v6882_v8 = vpop.f32.mrf.mxu1 }
 0x395   :  { %v2512_v24 = vadd.f32 %v2480_v11, %v2374_v31 }
 0x396   :  { %v2345_v61 = vpop.f32.mrf.mxu0  ;;  %v2491_v37 = vpop.f32.mrf.mxu1 }
 0x397   :  { %v2375_v20 = vadd.f32 %v2345_v61, %v9096_v18 }
 0x398   :  { %v6851_v35 = vpop.f32.mrf.mxu0  ;;  %v6883_v13 = vpop.f32.mrf.mxu1 }
 0x399   :  { %v2513_v22 = vadd.f32 %v2483_v15, %v2375_v20 }
 0x39a   :  { %7141 = vmatmul.mubr.bf16.gmra.mxu0 %v10018_v54  ;;  %v2350_v28 = vpop.f32.mrf.mxu0  ;;  %v2496_v39 = vpop.f32.mrf.mxu1 }
 0x39b   :  { %v2376_v6 = vadd.f32 %v2350_v28, %v9102_v52  ;;  %7180 = vmatprep.mubr.msk.bf16.mxu0 %vm7668_vm0, %v10007_v45 }
 0x39c   :  { %v6854_v58 = vpop.f32.mrf.mxu0  ;;  %v6886_v5 = vpop.f32.mrf.mxu1 }
 0x39d   :  { %v2514_v23 = vadd.f32 %v2488_v41, %v2376_v6 }
 0x39e   :  { %v2353_v60 = vpop.f32.mrf.mxu0  ;;  %v2499_v48 = vpop.f32.mrf.mxu1 }
 0x39f   :  { %v2377_v46 = vadd.f32 %v2353_v60, %v9108_v34 }
 0x3a0   :  { %v6855_v18 = vpop.f32.mrf.mxu0  ;;  %v6887_v3 = vpop.f32.mrf.mxu1 }
 0x3a1   :  { %v2515_v0 = vadd.f32 %v2491_v37, %v2377_v46 }
 0x3a2   :  { %v2358_v2 = vpop.f32.mrf.mxu0  ;;  %v2504_v17 = vpop.f32.mrf.mxu1 }
 0x3a3   :  { %v2378_v29 = vadd.f32 %v2358_v2, %v9115_v1 }
 0x3a4   :  { %v6858_v7 = vpop.f32.mrf.mxu0  ;;  %v6890_v33 = vpop.f32.mrf.mxu1 }
 0x3a5   :  { %v2516_v52 = vadd.f32 %v2496_v39, %v2378_v29 }
 0x3a6   :  { %v2361_v63 = vpop.f32.mrf.mxu0  ;;  %v2507_v38 = vpop.f32.mrf.mxu1 }
 0x3a7   :  { %v2379_v21 = vadd.f32 %v2361_v63, %v9121_v14  ;;  %v7632_v38 = vld [vmem:[%s9989_s5 + $0x18] sm:$0xff]  }
 0x3a8   :  { %v6859_v16 = vpop.f32.mrf.mxu0  ;;  %v6891_v44 = vpop.f32.mrf.mxu1  ;;  %7173 = vmatpush3.bf16.msra.mxu0 %v7632_v38 }
 0x3a9   :  { %v2517_v30 = vadd.f32 %v2499_v48, %v2379_v21  ;;  %7174 = vmatprep.subr.bf16.mxu0 %v10007_v45 }
 0x3aa   :  { %v2366_v40 = vpop.f32.mrf.mxu0  ;;  %v2759_v53 = vpop.f32.mrf.mxu1 }
 0x3ab   :  { %v2380_v34 = vadd.f32 %v2366_v40, %v9126_v55 }
 0x3ac   :  { %v6862_v4 = vpop.f32.mrf.mxu0  ;;  %v6930_v25 = vpop.f32.mrf.mxu1 }
 0x3ad   :  { %v2518_v43 = vadd.f32 %v2504_v17, %v2380_v34  ;;  %v7634_v25 = vld [vmem:[%s9989_s5 + $0x30] sm:$0xff]  }
 0x3ae   :  { %v2369_v9 = vpop.f32.mrf.mxu0  ;;  %v2762_v47 = vpop.f32.mrf.mxu1 }
 0x3b0   :  { %v6863_v1 = vpop.f32.mrf.mxu0  ;;  %v6931_v10 = vpop.f32.mrf.mxu1 }
 0x3b2   :  { %v2620_v11 = vpop.f32.mrf.mxu0  ;;  %v2767_v27 = vpop.f32.mrf.mxu1 }
 0x3b3   :  { %v2658_v42 = vadd.f32 %v2620_v11, %v2510_v59  ;;  %v7636_v11 = vld [vmem:[%s9989_s5 + $0x28] sm:$0xff]  }
 0x3b4   :  { %v6902_v19 = vpop.f32.mrf.mxu0  ;;  %v6934_v32 = vpop.f32.mrf.mxu1 }
 0x3b5   :  { %v9145_v14 = vadd.f32 %v2759_v53, %v2658_v42 }
 0x3b6   :  { %v2623_v51 = vpop.f32.mrf.mxu0  ;;  %v2770_v15 = vpop.f32.mrf.mxu1 }
 0x3b7   :  { %v2659_v49 = vadd.f32 %v2623_v51, %v2511_v26  ;;  %v7631_v26 = vld [vmem:[%s9989_s5 + $0x38] sm:$0xff]   ;;  %v7637_v51 = vld [vmem:[%s9989_s5] sm:$0xff]  }
 0x3b8   :  { %v6903_v36 = vpop.f32.mrf.mxu0  ;;  %v6935_v62 = vpop.f32.mrf.mxu1  ;;  %7145 = vmatpush3.bf16.msra.mxu1 %v7631_v26 }
 0x3b9   :  { %v9147_v55 = vadd.f32 %v2762_v47, %v2659_v49  ;;  %7146 = vmatprep.subr.bf16.mxu1 %v10007_v45  ;;  %v7638_v36 = vld [vmem:[%s9989_s5 + $0x20] sm:$0xff]  }
 0x3ba   :  { %v2628_v12 = vpop.f32.mrf.mxu0  ;;  %v2775_v56 = vpop.f32.mrf.mxu1 }
 0x3bb   :  { %v2660_v41 = vadd.f32 %v2628_v12, %v2512_v24 }
 0x3bc   :  { %v6906_v31 = vpop.f32.mrf.mxu0  ;;  %v6938_v57 = vpop.f32.mrf.mxu1  ;;  %7147 = vmatpush3.bf16.msra.mxu1 %v7634_v25 }
 0x3bd   :  { %v9149_v50 = vadd.f32 %v2767_v27, %v2660_v41  ;;  %7148 = vmatprep.subr.bf16.mxu1 %v10007_v45 }
 0x3be   :  { %v2631_v8 = vpop.f32.mrf.mxu0  ;;  %v2778_v59 = vpop.f32.mrf.mxu1 }
 0x3bf   :  { %v2661_v61 = vadd.f32 %v2631_v8, %v2513_v22 }
 0x3c0   :  { %v6907_v37 = vpop.f32.mrf.mxu0  ;;  %v6939_v20 = vpop.f32.mrf.mxu1  ;;  %7149 = vmatpush3.bf16.msra.mxu1 %v7636_v11 }
 0x3c1   :  { %v9151_v35 = vadd.f32 %v2770_v15, %v2661_v61  ;;  %7150 = vmatprep.subr.bf16.mxu1 %v10007_v45 }
 0x3c2   :  { %v2636_v13 = vpop.f32.mrf.mxu0  ;;  %v2783_v54 = vpop.f32.mrf.mxu1 }
 0x3c3   :  { %v2662_v28 = vadd.f32 %v2636_v13, %v2514_v23 }
 0x3c4   :  { %v6910_v24 = vpop.f32.mrf.mxu0  ;;  %v6942_v39 = vpop.f32.mrf.mxu1  ;;  %7151 = vmatpush3.bf16.msra.mxu1 %v7638_v36 }
 0x3c5   :  { %v9157_v6 = vadd.f32 %v2775_v56, %v2662_v28  ;;  %7200 = vmatprep.subr.bf16.mxu1 %v10007_v45 }
 0x3c6   :  { %v2639_v58 = vpop.f32.mrf.mxu0  ;;  %v2786_v22 = vpop.f32.mrf.mxu1 }
 0x3c7   :  { %v2663_v5 = vadd.f32 %v2639_v58, %v2515_v0 }
 0x3c8   :  { %v6911_v60 = vpop.f32.mrf.mxu0  ;;  %v6943_v48 = vpop.f32.mrf.mxu1 }
 0x3c9   :  { %v9159_v46 = vadd.f32 %v2778_v59, %v2663_v5 }
 0x3ca   :  { %v2644_v18 = vpop.f32.mrf.mxu0  ;;  %v2791_v3 = vpop.f32.mrf.mxu1 }
 0x3cb   :  { %v2664_v2 = vadd.f32 %v2644_v18, %v2516_v52 }
 0x3cc   :  { %v6914_v17 = vpop.f32.mrf.mxu0  ;;  %v6946_v29 = vpop.f32.mrf.mxu1 }
 0x3cd   :  { %v9161_v23 = vadd.f32 %v2783_v54, %v2664_v2 }
 0x3ce   :  { %v2647_v7 = vpop.f32.mrf.mxu0  ;;  %v2794_v33 = vpop.f32.mrf.mxu1 }
 0x3cf   :  { %v2665_v63 = vadd.f32 %v2647_v7, %v2517_v30  ;;  %v7633_v30 = vld [vmem:[%s9989_s5 + $0x10] sm:$0xff]  }
 0x3d0   :  { %v6915_v21 = vpop.f32.mrf.mxu0  ;;  %v6947_v0 = vpop.f32.mrf.mxu1  ;;  %7175 = vmatpush3.bf16.msra.mxu0 %v7633_v30 }
 0x3d1   :  { %v9166_v16 = vadd.f32 %v2786_v22, %v2665_v63  ;;  %7176 = vmatprep.subr.bf16.mxu0 %v10007_v45 }
 0x3d2   :  { %v2652_v44 = vpop.f32.mrf.mxu0  ;;  %v9168_v40 = vpop.f32.mrf.mxu1 }
 0x3d3   :  { %v2666_v52 = vadd.f32 %v2652_v44, %v2518_v43  ;;  %v7635_v43 = vld [vmem:[%s9989_s5 + $0x8] sm:$0xff]  }
 0x3d4   :  { %v6918_v53 = vpop.f32.mrf.mxu0  ;;  %v6986_v34 = vpop.f32.mrf.mxu1  ;;  %7177 = vmatpush3.bf16.msra.mxu0 %v7635_v43  ;;  %v9235_v43 = vld [vmem:[%s9991_s6] ss:$0 sm:$0xff] }
 0x3d5   :  { %v9171_v4 = vadd.f32 %v2791_v3, %v2666_v52  ;;  %7178 = vmatprep.subr.bf16.mxu0 %v10007_v45 }
 0x3d6   :  { %v2655_v9 = vpop.f32.mrf.mxu0  ;;  %v9179_v47 = vpop.f32.mrf.mxu1 }
 0x3d8   :  { %v6919_v1 = vpop.f32.mrf.mxu0  ;;  %v6987_v10 = vpop.f32.mrf.mxu1  ;;  %7179 = vmatpush3.bf16.msra.mxu0 %v7637_v51 }
 0x3d9   :  { %7228 = vmatprep.subr.bf16.mxu0 %v10007_v45 }
 0x3da   :  { %v2899_v27 = vpop.f32.mrf.mxu0  ;;  %v9189_v42 = vpop.f32.mrf.mxu1 }
 0x3db   :  { %v2937_v38 = vadd.f32 %v2899_v27, %v9145_v14 }
 0x3dc   :  { %v6958_v19 = vpop.f32.mrf.mxu0  ;;  %v6990_v32 = vpop.f32.mrf.mxu1 }
 0x3dd   :  { %v3091_v34 = vadd.f32 %v9168_v40, %v2937_v38 }
 0x3de   :  { %v2902_v15 = vpop.f32.mrf.mxu0  ;;  %v9196_v49 = vpop.f32.mrf.mxu1 }
 0x3df   :  { %v2938_v53 = vadd.f32 %v2902_v15, %v9147_v55 }
 0x3e0   :  { %v6959_v62 = vpop.f32.mrf.mxu0  ;;  %v6991_v12 = vpop.f32.mrf.mxu1 }
 0x3e1   :  { %v3092_v11 = vadd.f32 %v9179_v47, %v2938_v53 }
 0x3e2   :  { %v2907_v56 = vpop.f32.mrf.mxu0  ;;  %v9202_v41 = vpop.f32.mrf.mxu1 }
 0x3e3   :  { %v2939_v10 = vadd.f32 %v2907_v56, %v9149_v50 }
 0x3e4   :  { %v6962_v31 = vpop.f32.mrf.mxu0  ;;  %v6994_v57 = vpop.f32.mrf.mxu1 }
 0x3e5   :  { %v3093_v62 = vadd.f32 %v9189_v42, %v2939_v10  ;;  %v3272_v57 = vld [vmem:[%s9992_s7] sm:$0xf] }
 0x3e6   :  { %v2910_v8 = vpop.f32.mrf.mxu0  ;;  %v9205_v59 = vpop.f32.mrf.mxu1 }
 0x3e7   :  { %v2940_v15 = vadd.f32 %v2910_v8, %v9151_v35 }
 0x3e8   :  { %v6963_v61 = vpop.f32.mrf.mxu0  ;;  %v6995_v37 = vpop.f32.mrf.mxu1 }
 0x3ea   :  { %v2915_v20 = vpop.f32.mrf.mxu0  ;;  %v9207_v26 = vpop.f32.mrf.mxu1 }
 0x3eb   :  { %v2941_v8 = vadd.f32 %v2915_v20, %v9157_v6 }
 0x3ec   :  { %v6966_v13 = vpop.f32.mrf.mxu0  ;;  %v6998_v54 = vpop.f32.mrf.mxu1 }
 0x3ed   :  { %v3094_v13 = vadd.f32 %v9196_v49, %v2940_v15 }
 0x3ee   :  { %v2918_v28 = vpop.f32.mrf.mxu0  ;;  %v9209_v24 = vpop.f32.mrf.mxu1 }
 0x3f0   :  { %v6967_v39 = vpop.f32.mrf.mxu0  ;;  %v6999_v58 = vpop.f32.mrf.mxu1 }
 0x3f2   :  { %v9211_v22 = vpop.f32.mrf.mxu0  ;;  %v9213_v5 = vpop.f32.mrf.mxu1 }
 0x3f4   :  { %v6970_v60 = vpop.f32.mrf.mxu0  ;;  %v7002_v48 = vpop.f32.mrf.mxu1 }
 0x3f6   :  { %v9215_v18 = vpop.f32.mrf.mxu0  ;;  %v3088_v3 = vpop.f32.mrf.mxu1 }
 0x3f7   :  { %v2942_v3 = vadd.f32 %v2918_v28, %v9159_v46 }
 0x3f8   :  { %v6971_v2 = vpop.f32.mrf.mxu0  ;;  %v7003_v17 = vpop.f32.mrf.mxu1 }
 0x3f9   :  { %v3095_v17 = vadd.f32 %v9202_v41, %v2941_v8  ;;  %v3096_v41 = vadd.f32 %v9205_v59, %v2942_v3 }
 0x3fa   :  { %v9217_v29 = vpop.f32.mrf.mxu0  ;;  %v9219_v7 = vpop.f32.mrf.mxu1 }
 0x3fb   :  { %v2945_v3 = vadd.f32 %v9217_v29, %v9171_v4 }
 0x3fc   :  { %v6974_v33 = vpop.f32.mrf.mxu0  ;;  %v9221_v63 = vpop.f32.mrf.mxu1 }
 0x3fe   :  { %v2934_v21 = vpop.f32.mrf.mxu0  ;;  %v9224_v0 = vpop.f32.mrf.mxu1 }
 0x3ff   :  { %v5837_v21 = vld [vmem:[%s9992_s7 + $0x4] sm:$0xf] }
 0x400   :  { %v6975_v44 = vpop.f32.mrf.mxu0  ;;  %v9226_v52 = vpop.f32.mrf.mxu1 }
 0x402   :  { %v3192_v30 = vpop.f32.mrf.mxu0  ;;  %v9230_v25 = vpop.f32.mrf.mxu1 }
 0x403   :  { %v3230_v9 = vadd.f32 %v3192_v30, %v3091_v34 }
 0x404   :  { %v7014_v14 = vpop.f32.mrf.mxu0  ;;  %v9237_v1 = vpop.f32.mrf.mxu1 }
 0x405   :  { %v3246_v40 = vadd.f32 %v9235_v43, %v3230_v9  ;;  %v2943_v9 = vadd.f32 %v9211_v22, %v9161_v23 }
 0x406   :  { %v3195_v27 = vpop.f32.mrf.mxu0  ;;  %v9241_v55 = vpop.f32.mrf.mxu1 }
 0x407   :  { %v3231_v19 = vadd.f32 %v3195_v27, %v3092_v11  ;;  %v3255_v12 = vmax.f32 %v3246_v40, 0.0 }
 0x408   :  { %v7015_v32 = vpop.f32.mrf.mxu0  ;;  %v9244_v51 = vpop.f32.mrf.mxu1 }
 0x409   :  { %v3247_v36 = vadd.f32 %v9235_v43, %v3231_v19  ;;  %v5841_v19 = vld [vmem:[%s9992_s7 + $0x8] sm:$0xf] }
 0x40a   :  { %v3200_v50 = vpop.f32.mrf.mxu0  ;;  %v9256_v61 = vpop.f32.mrf.mxu1 }
 0x40b   :  { %v3256_v47 = vmax.f32 %v3247_v36, 0.0  ;;  %v3232_v56 = vadd.f32 %v3200_v50, %v3093_v62  ;;  %v2944_v36 = vadd.f32 %v9215_v18, %v9166_v16 }
 0x40c   :  { %v7018_v35 = vpop.f32.mrf.mxu0  ;;  %v9267_v6 = vpop.f32.mrf.mxu1 }
 0x40d   :  { %v3264_v37 = vpack.c.bf16 %v3256_v47, %v3255_v12  ;;  %v3248_v42 = vadd.f32 %v9235_v43, %v3232_v56  ;;  %v6113_v58 = vpack.c.bf16 %v3256_v47, %v3256_v47 }
 0x40e   :  { %v3203_v54 = vpop.f32.mrf.mxu0  ;;  %v9279_v34 = vpop.f32.mrf.mxu1 }
 0x40f   :  { %v3273_v39 = vsel %vm9249_vm14, %v3264_v37, %v3272_v57  ;;  %v3257_v60 = vmax.f32 %v3248_v42, 0.0  ;;  %v3233_v48 = vadd.f32 %v3203_v54, %v3094_v13  ;;  %v5836_v46 = vrot.slane %v6113_v58, 9 }
 0x410   :  { %3274 = vst [vmem:[%s9992_s7] sm:$0xf] %v3273_v39  ;;  %v7019_v20 = vpop.f32.mrf.mxu0  ;;  %v9303_v62 = vpop.f32.mrf.mxu1  ;;  %v3097_v57 = vadd.f32 %v9207_v26, %v2943_v9  ;;  %v5845_v26 = vld [vmem:[%s9992_s7 + $0xc] sm:$0xf]  ;;  %v5848_v39 = vld [vmem:[%s9992_s7 + $0x10] sm:$0xf] }
 0x411   :  { %v6114_v2 = vpack.c.bf16 %v3257_v60, %v3257_v60  ;;  %v3249_v49 = vadd.f32 %v9235_v43, %v3233_v48  ;;  %v3098_v48 = vadd.f32 %v9209_v24, %v2944_v36 }
 0x412   :  { %v3208_v38 = vpop.f32.mrf.mxu0 }
 0x413   :  { %v3285_v28 = vrot.slane %v6114_v2, 5  ;;  %v3258_v44 = vmax.f32 %v3249_v49, 0.0  ;;  %v3234_v53 = vadd.f32 %v3208_v38, %v3095_v17  ;;  %v5840_v23 = vrot.slane %v6114_v2, 10 }
 0x414   :  { %v7022_v30 = vpop.f32.mrf.mxu0 }
 0x415   :  { %v3286_v14 = vsel %vm9272_vm8, %v5836_v46, %v3285_v28  ;;  %v6115_v10 = vpack.c.bf16 %v3258_v44, %v3258_v44  ;;  %v3250_v11 = vadd.f32 %v9235_v43, %v3234_v53  ;;  %v3099_v44 = vadd.f32 %v9213_v5, %v2945_v3 }
 0x416   :  { %v3290_v27 = vsel %vm9249_vm14, %v3286_v14, %v5837_v21  ;;  %v3211_v59 = vpop.f32.mrf.mxu0 }
 0x417   :  { %5838 = vst [vmem:[%s9992_s7 + $0x4] sm:$0xf] %v3290_v27  ;;  %v3298_v22 = vrot.slane %v6115_v10, 6  ;;  %v3259_v32 = vmax.f32 %v3250_v11, 0.0  ;;  %v3235_v15 = vadd.f32 %v3211_v59, %v3096_v41  ;;  %v5844_v37 = vrot.slane %v6115_v10, 11 }
 0x418   :  { %v7023_v50 = vpop.f32.mrf.mxu0 }
 0x419   :  { %v3299_v12 = vsel %vm9291_vm13, %v5840_v23, %v3298_v22  ;;  %v6116_v47 = vpack.c.bf16 %v3259_v32, %v3259_v32  ;;  %v3251_v56 = vadd.f32 %v9235_v43, %v3235_v15 }
 0x41a   :  { %v3303_v35 = vsel %vm9249_vm14, %v3299_v12, %v5841_v19  ;;  %v3216_v16 = vpop.f32.mrf.mxu0  ;;  %v9317_v18 = vpop.f32.mrf.mxu1  ;;  %v5853_v19 = vld [vmem:[%s9992_s7 + $0x14] sm:$0xf] }
 0x41b   :  { %5842 = vst [vmem:[%s9992_s7 + $0x8] sm:$0xf] %v3303_v35  ;;  %v3313_v42 = vrot.slane %v6116_v47, 7  ;;  %v3260_v13 = vmax.f32 %v3251_v56, 0.0  ;;  %v3236_v54 = vadd.f32 %v3216_v16, %v3097_v57  ;;  %v5857_v57 = vld [vmem:[%s9992_s7 + $0x18] sm:$0xf] }
 0x41c   :  { %v7026_v58 = vpop.f32.mrf.mxu0  ;;  %v9328_v60 = vpop.f32.mrf.mxu1 }
 0x41d   :  { %v3314_v20 = vsel %vm9313_vm12, %v5844_v37, %v3313_v42  ;;  %v6117_v2 = vpack.c.bf16 %v3260_v13, %v3260_v13  ;;  %v3252_v49 = vadd.f32 %v9235_v43, %v3236_v54 }
 0x41e   :  { %v3318_v17 = vsel %vm9249_vm14, %v3314_v20, %v5845_v26  ;;  %v3219_v38 = vpop.f32.mrf.mxu0  ;;  %v7107_v4 = vpop.f32.mrf.mxu1 }
 0x41f   :  { %5846 = vst [vmem:[%s9992_s7 + $0xc] sm:$0xf] %v3318_v17  ;;  %v3325_v24 = vsel %vm9249_vm14, %v6117_v2, %v5848_v39  ;;  %v3261_v46 = vmax.f32 %v3252_v49, 0.0  ;;  %v3237_v28 = vadd.f32 %v3219_v38, %v3098_v48 }
 0x420   :  { %5849 = vst [vmem:[%s9992_s7 + $0x10] sm:$0xf] %v3325_v24  ;;  %v7027_v29 = vpop.f32.mrf.mxu0  ;;  %v3840_v14 = vpop.f32.mrf.mxu1 }
 0x421   :  { %v3253_v21 = vadd.f32 %v9235_v43, %v3237_v28  ;;  %v6118_v30 = vpack.c.bf16 %v3261_v46, %v3261_v46 }
 0x422   :  { %v3224_v53 = vpop.f32.mrf.mxu0  ;;  %v7110_v15 = vpop.f32.mrf.mxu1 }
 0x423   :  { %v3262_v41 = vmax.f32 %v3253_v21, 0.0  ;;  %v3238_v9 = vadd.f32 %v3224_v53, %v3099_v44  ;;  %v5852_v23 = vrot.slane %v6118_v30, 9 }
 0x424   :  { %v7030_v10 = vpop.f32.mrf.mxu0  ;;  %v3853_v35 = vpop.f32.mrf.mxu1 }
 0x425   :  { %v6119_v11 = vpack.c.bf16 %v3262_v41, %v3262_v41  ;;  %v3254_v27 = vadd.f32 %v9235_v43, %v3238_v9 }
 0x426   :  { %v3227_v59 = vpop.f32.mrf.mxu0  ;;  %v7111_v13 = vpop.f32.mrf.mxu1 }
 0x427   :  { %v3334_v22 = vrot.slane %v6119_v11, 5  ;;  %v3263_v32 = vmax.f32 %v3254_v27, 0.0  ;;  %v5856_v43 = vrot.slane %v6119_v11, 10 }
 0x428   :  { %v7031_v36 = vpop.f32.mrf.mxu0  ;;  %v3856_v58 = vpop.f32.mrf.mxu1 }
 0x429   :  { %v3335_v5 = vsel %vm9272_vm8, %v5852_v23, %v3334_v22  ;;  %v6120_v50 = vpack.c.bf16 %v3263_v32, %v3263_v32 }
 0x42a   :  { %v3339_v12 = vsel %vm9249_vm14, %v3335_v5, %v5853_v19  ;;  %v7078_v47 = vpop.f32.mrf.mxu0  ;;  %v7114_v20 = vpop.f32.mrf.mxu1 }
 0x42b   :  { %5854 = vst [vmem:[%s9992_s7 + $0x14] sm:$0xf] %v3339_v12  ;;  %v3346_v56 = vrot.slane %v6120_v50, 6  ;;  %v3681_v53 = vadd.f32 %v7078_v47, %v9219_v7 }
 0x42c   :  { %v3672_v16 = vpop.f32.mrf.mxu0  ;;  %v3869_v38 = vpop.f32.mrf.mxu1 }
 0x42d   :  { %v3347_v37 = vsel %vm9291_vm13, %v5856_v43, %v3346_v56  ;;  %v3673_v30 = vadd.f32 %v3672_v16, %v9221_v63  ;;  %v3886_v10 = vadd.f32 %v9317_v18, %v3681_v53 }
 0x42e   :  { %v3351_v42 = vsel %vm9249_vm14, %v3347_v37, %v5857_v57  ;;  %v7079_v26 = vpop.f32.mrf.mxu0  ;;  %v7115_v21 = vpop.f32.mrf.mxu1 }
 0x42f   :  { %5858 = vst [vmem:[%s9992_s7 + $0x18] sm:$0xf] %v3351_v42  ;;  %v3684_v9 = vadd.f32 %v7079_v26, %v9224_v0  ;;  %v3884_v27 = vadd.f32 %v9328_v60, %v3673_v30 }
 0x430   :  { %v3675_v54 = vpop.f32.mrf.mxu0 }
 0x431   :  { %v3676_v11 = vadd.f32 %v3675_v54, %v9226_v52  ;;  %v3887_v22 = vadd.f32 %v7107_v4, %v3684_v9 }
 0x432   :  { %v7082_v39 = vpop.f32.mrf.mxu0 }
 0x433   :  { %v3697_v63 = vadd.f32 %v7082_v39, %v9230_v25  ;;  %v3885_v32 = vadd.f32 %v3840_v14, %v3676_v11 }
 0x434   :  { %v3688_v48 = vpop.f32.mrf.mxu0 }
 0x435   :  { %v3689_v0 = vadd.f32 %v3688_v48, %v9237_v1  ;;  %v3890_v47 = vadd.f32 %v7110_v15, %v3697_v63 }
 0x436   :  { %v7083_v3 = vpop.f32.mrf.mxu0 }
 0x437   :  { %v3700_v60 = vadd.f32 %v7083_v3, %v9241_v55  ;;  %v3888_v1 = vadd.f32 %v3853_v35, %v3689_v0 }
 0x438   :  { %v3691_v2 = vpop.f32.mrf.mxu0 }
 0x439   :  { %v3692_v4 = vadd.f32 %v3691_v2, %v9244_v51  ;;  %v3891_v55 = vadd.f32 %v7111_v13, %v3700_v60  ;;  %v7641_v51 = vld [vmem:[%s9989_s5 + $0x78] sm:$0xff]   ;;  %v7644_v60 = vld [vmem:[%s9989_s5 + $0x68] sm:$0xff]  }
 0x43a   :  { %v7086_v49 = vpop.f32.mrf.mxu0 }
 0x43b   :  { %v3713_v17 = vadd.f32 %v7086_v49, %v9256_v61  ;;  %v3889_v35 = vadd.f32 %v3856_v58, %v3692_v4  ;;  %v7643_v58 = vld [vmem:[%s9989_s5 + $0x70] sm:$0xff]  }
 0x43c   :  { %v3704_v24 = vpop.f32.mrf.mxu0 }
 0x43d   :  { %v9370_v46 = vadd.f32 %v7114_v20, %v3713_v17  ;;  %v3705_v54 = vadd.f32 %v3704_v24, %v9267_v6 }
 0x43e   :  { %v7087_v28 = vpop.f32.mrf.mxu0 }
 0x43f   :  { %v3716_v29 = vadd.f32 %v7087_v28, %v9279_v34  ;;  %v9384_v34 = vld [vmem:[%s9990_s4] ss:$0 sm:$0xff]  ;;  %v3892_v24 = vadd.f32 %v3869_v38, %v3705_v54 }
 0x440   :  { %v3707_v41 = vpop.f32.mrf.mxu0 }
 0x441   :  { %v9373_v44 = vadd.f32 %v7115_v21, %v3716_v29  ;;  %v3708_v21 = vadd.f32 %v3707_v41, %v9303_v62 }
 0x44a   :  { %v7134_v61 = vpop.f32.mrf.mxu0 }
 0x44b   :  { %v4074_v59 = vadd.f32 %v7134_v61, %v3886_v10 }
 0x44c   :  { %v4025_v23 = vpop.f32.mrf.mxu0 }
 0x44d   :  { %v4072_v7 = vadd.f32 %v4025_v23, %v3884_v27  ;;  %v4093_v52 = vadd.f32 %v9384_v34, %v4074_v59 }
 0x44e   :  { %v7135_v19 = vpop.f32.mrf.mxu0 }
 0x44f   :  { %v4075_v18 = vadd.f32 %v7135_v19, %v3887_v22  ;;  %v4091_v5 = vadd.f32 %v9384_v34, %v4072_v7  ;;  %v4105_v57 = vmax.f32 %v4093_v52, 0.0  ;;  %v3872_v22 = vpop.f32.mrf.mxu1 }
 0x450   :  { %v4028_v36 = vpop.f32.mrf.mxu0 }
 0x451   :  { %v4094_v50 = vadd.f32 %v9384_v34, %v4075_v18  ;;  %v4073_v12 = vadd.f32 %v4028_v36, %v3885_v32  ;;  %v4103_v37 = vmax.f32 %v4091_v5, 0.0  ;;  %v3893_v32 = vadd.f32 %v3872_v22, %v3708_v21 }
 0x452   :  { %v7138_v43 = vpop.f32.mrf.mxu0 }
 0x453   :  { %v4106_v25 = vmax.f32 %v4094_v50, 0.0  ;;  %v4092_v56 = vadd.f32 %v9384_v34, %v4073_v12  ;;  %v4078_v14 = vadd.f32 %v7138_v43, %v3890_v47  ;;  %v7640_v43 = vld [vmem:[%s9989_s5 + $0x50] sm:$0xff]  }
 0x454   :  { %v4041_v16 = vpop.f32.mrf.mxu0 }
 0x455   :  { %v4104_v42 = vmax.f32 %v4092_v56, 0.0  ;;  %v4076_v26 = vadd.f32 %v4041_v16, %v3888_v1  ;;  %v9395_v39 = vpack.c.bf16 %v4106_v25, %v4105_v57  ;;  %v4097_v20 = vadd.f32 %v9384_v34, %v4078_v14 }
 0x456   :  { %v7139_v48 = vpop.f32.mrf.mxu0 }
 0x457   :  { %v9400_v15 = vpack.c.bf16 %v4104_v42, %v4103_v37  ;;  %v4079_v3 = vadd.f32 %v7139_v48, %v3891_v55  ;;  %v4095_v49 = vadd.f32 %v9384_v34, %v4076_v26  ;;  %v9409_v29 = vshll.u32 %v9395_v39, 16 }
 0x458   :  { %v4044_v2 = vpop.f32.mrf.mxu0  ;;  %v4109_v9 = vmax.f32 %v4097_v20, 0.0  ;;  %v9447_v47 = vshrl.u32 %v9395_v39, 16  ;;  %v4828_v55 = vrot.slane %v9395_v39, 6 }
 0x459   :  { %v4098_v13 = vadd.f32 %v9384_v34, %v4079_v3  ;;  %v4077_v17 = vadd.f32 %v4044_v2, %v3889_v35  ;;  %7181 = vmatmul.mubr.msk.bf16.vlgmr.msra.gmra.mxu0 %vm714_vm1, %v9400_v15  ;;  %v4140_v28 = vshll.u32 %v9400_v15, 16  ;;  %v4138_v61 = vshrl.u32 %v9400_v15, 16 }
 0x45a   :  { %v7142_v6 = vpop.f32.mrf.mxu0  ;;  %7184 = vmatprep.mubr.msk.bf16.mxu0 %vm7668_vm0, %v10007_v45  ;;  %7229 = vmatpush3.bf16.msra.mxu0 %v7641_v51  ;;  %v4107_v27 = vmax.f32 %v4095_v49, 0.0  ;;  %v4147_v41 = vrot.slane %v9409_v29, 1  ;;  %v4827_v4 = vrot.slane %v9400_v15, 6  ;;  %v4683_v2 = vrot.slane %v9447_v47, 5 }
 0x45b   :  { %v4110_v53 = vmax.f32 %v4098_v13, 0.0  ;;  %v4096_v30 = vadd.f32 %v9384_v34, %v4077_v17  ;;  %v4082_v38 = vadd.f32 %v7142_v6, %v9370_v46  ;;  %7230 = vmatprep.subr.bf16.mxu0 %v10007_v45  ;;  %v4142_v11 = vrot.slane %v4140_v28, 1  ;;  %v7639_v46 = vld [vmem:[%s9989_s5 + $0x58] sm:$0xff]   ;;  %v7642_v17 = vld [vmem:[%s9989_s5 + $0x48] sm:$0xff]  }
 0x45c   :  { %v4057_v10 = vpop.f32.mrf.mxu0  ;;  %v4680_v25 = vrot.slane %v4138_v61, 5  ;;  %v4681_v56 = vrot.slane %v4140_v28, 6  ;;  %v4151_v3 = vor.u32 %v9447_v47, %v4147_v41  ;;  %v9476_v35 = vsel %vm2676_vm10, %v4827_v4, %v4828_v55 }
 0x45d   :  { %v4108_v59 = vmax.f32 %v4096_v30, 0.0  ;;  %v4101_v23 = vadd.f32 %v9384_v34, %v4082_v38  ;;  %v4080_v7 = vadd.f32 %v4057_v10, %v3892_v24  ;;  %v4143_v62 = vor.u32 %v4142_v11, %v4138_v61 }
 0x45e   :  { %v7143_v63 = vpop.f32.mrf.mxu0  ;;  %7231 = vmatpush3.bf16.msra.mxu0 %v7643_v58  ;;  %v9426_v19 = vpack.c.bf16 %v4110_v53, %v4109_v9  ;;  %v4682_v20 = vor.u32 %v4681_v56, %v4680_v25  ;;  %v4684_v6 = vrot.slane %v9409_v29, 6  ;;  %v4965_v56 = vrot.slane %v9395_v39, 2 }
 0x45f   :  { %v9428_v0 = vpack.c.bf16 %v4108_v59, %v4107_v27  ;;  %v4083_v18 = vadd.f32 %v7143_v63, %v9373_v44  ;;  %7232 = vmatprep.subr.bf16.mxu0 %v10007_v45  ;;  %v4148_v36 = vsel %vm1233_vm3, %v4143_v62, %v4147_v41  ;;  %v4099_v5 = vadd.f32 %v9384_v34, %v4080_v7  ;;  %v7646_v7 = vld [vmem:[%s9989_s5 + $0x40] sm:$0xff]  }
 0x460   :  { %v4060_v52 = vpop.f32.mrf.mxu0  ;;  %7153 = vmatmul.mubr.msk.bf16.vlgmr.msra.gmra.mxu1 %vm714_vm1, %v4148_v36  ;;  %v4113_v1 = vmax.f32 %v4101_v23, 0.0  ;;  %v9458_v16 = vshll.u32 %v9426_v19, 16  ;;  %v9465_v26 = vshrl.u32 %v9426_v19, 16  ;;  %v4832_v10 = vrot.slane %v9426_v19, 6 }
 0x461   :  { %v4102_v50 = vadd.f32 %v9384_v34, %v4083_v18  ;;  %v4081_v12 = vadd.f32 %v4060_v52, %v3893_v32  ;;  %7185 = vmatmul.mubr.msk.bf16.gmra.mxu0 %vm714_vm1, %v9395_v39  ;;  %v9442_v44 = vshll.u32 %v9428_v0, 16  ;;  %7201 = vmatpush3.bf16.msra.mxu1 %v7639_v46  ;;  %v9462_v42 = vshrl.u32 %v9428_v0, 16 }
 0x462   :  { %7156 = vmatprep.mubr.msk.bf16.mxu1 %vm7668_vm0, %v10007_v45  ;;  %7188 = vmatprep.mubr.msk.bf16.mxu0 %vm7668_vm0, %v10007_v45  ;;  %v4111_v54 = vmax.f32 %v4099_v5, 0.0  ;;  %v4163_v13 = vrot.slane %v9458_v16, 1  ;;  %v4830_v24 = vrot.slane %v9428_v0, 6  ;;  %v4691_v53 = vrot.slane %v9465_v26, 5 }
 0x463   :  { %v4114_v57 = vmax.f32 %v4102_v50, 0.0  ;;  %v4100_v14 = vadd.f32 %v9384_v34, %v4081_v12  ;;  %7202 = vmatprep.subr.bf16.mxu1 %v10007_v45  ;;  %v4155_v37 = vrot.slane %v9442_v44, 1  ;;  %7233 = vmatpush3.bf16.msra.mxu0 %v7644_v60  ;;  %v7645_v34 = vld [vmem:[%s9989_s5 + $0x60] sm:$0xff]   ;;  %v4687_v58 = vrot.slane %v9462_v42, 5 }
 0x464   :  { %7234 = vmatprep.subr.bf16.mxu0 %v10007_v45  ;;  %v4688_v21 = vrot.slane %v9442_v44, 6  ;;  %v4685_v61 = vor.u32 %v4684_v6, %v4683_v2  ;;  %v9508_v11 = vsel %vm2676_vm10, %v4828_v55, %v4830_v24  ;;  %v4692_v59 = vrot.slane %v9458_v16, 6 }
 0x465   :  { %v9471_v48 = vpack.c.bf16 %v4114_v57, %v4113_v1  ;;  %v4112_v51 = vmax.f32 %v4100_v14, 0.0  ;;  %7203 = vmatpush3.bf16.msra.mxu1 %v7640_v43  ;;  %v4156_v28 = vsel %vm1233_vm3, %v4151_v3, %v4155_v37  ;;  %v4159_v30 = vor.u32 %v9462_v42, %v4155_v37 }
 0x466   :  { %7204 = vmatprep.subr.bf16.mxu1 %v10007_v45  ;;  %v4689_v27 = vor.u32 %v4688_v21, %v4687_v58  ;;  %v4167_v23 = vor.u32 %v9465_v26, %v4163_v13  ;;  %v9517_v22 = vsel %vm2676_vm10, %v4830_v24, %v4832_v10  ;;  %v9521_v63 = vsel %vm1747_vm4, %v4682_v20, %v4685_v61 }
 0x467   :  { %v9479_v49 = vpack.c.bf16 %v4112_v51, %v4111_v54  ;;  %7235 = vmatpush3.bf16.msra.mxu0 %v7645_v34  ;;  %v4693_v41 = vor.u32 %v4692_v59, %v4691_v53  ;;  %v4164_v18 = vsel %vm1233_vm3, %v4159_v30, %v4163_v13  ;;  %v5102_v50 = vrot.slane %v9447_v47, 2 }
 0x468   :  { %7157 = vmatmul.mubr.msk.bf16.gmra.mxu1 %vm714_vm1, %v4156_v28  ;;  %7284 = vmatprep.subr.bf16.mxu0 %v10007_v45  ;;  %v9524_v62 = vsel %vm1747_vm4, %v4685_v61, %v4689_v27  ;;  %v5103_v12 = vrot.slane %v9409_v29, 3  ;;  %v5105_v4 = vrot.slane %v9462_v42, 2  ;;  %v5106_v25 = vrot.slane %v9442_v44, 3 }
 0x469   :  { %7189 = vmatmul.mubr.msk.bf16.gmra.mxu0 %vm714_vm1, %v9428_v0  ;;  %v9497_v38 = vshll.u32 %v9479_v49, 16  ;;  %v9500_v9 = vshrl.u32 %v9479_v49, 16  ;;  %7160 = vmatprep.mubr.msk.bf16.mxu1 %vm7668_vm0, %v10007_v45  ;;  %v4834_v46 = vrot.slane %v9479_v49, 6  ;;  %v9532_v60 = vsel %vm1747_vm4, %v4689_v27, %v4693_v41 }
 0x46a   :  { %7192 = vmatprep.mubr.msk.bf16.mxu0 %vm7668_vm0, %v10007_v45  ;;  %7205 = vmatpush3.bf16.msra.mxu1 %v7642_v17  ;;  %v5104_v1 = vor.u32 %v5103_v12, %v5102_v50  ;;  %v4966_v57 = vrot.slane %v9428_v0, 2  ;;  %v5109_v14 = vrot.slane %v9465_v26, 2  ;;  %v5110_v47 = vrot.slane %v9458_v16, 3 }
 0x46b   :  { %7206 = vmatprep.subr.bf16.mxu1 %v10007_v45  ;;  %v4171_v32 = vrot.slane %v9497_v38, 1  ;;  %v4695_v52 = vrot.slane %v9500_v9, 5  ;;  %v4696_v36 = vrot.slane %v9497_v38, 6  ;;  %v9537_v5 = vsel %vm2676_vm10, %v4832_v10, %v4834_v46 }
 0x46c   :  { %v5107_v44 = vor.u32 %v5106_v25, %v5105_v4  ;;  %v4968_v37 = vrot.slane %v9426_v19, 2  ;;  %v5113_v42 = vrot.slane %v9500_v9, 2  ;;  %v9564_v16 = vsel %vm2816_vm5, %v4965_v56, %v4966_v57  ;;  %v7649_v4 = vld [vmem:[%s9989_s5 + $0xb8] sm:$0xff]  }
 0x46d   :  { %v9541_v43 = vor.u32 %v4696_v36, %v4695_v52  ;;  %v5111_v26 = vor.u32 %v5110_v47, %v5109_v14  ;;  %v5114_v34 = vrot.slane %v9497_v38, 3  ;;  %v4970_v55 = vrot.slane %v9479_v49, 2 }
 0x46e   :  { %7207 = vmatpush3.bf16.msra.mxu1 %v7646_v7  ;;  %v9569_v54 = vsel %vm2955_vm7, %v5104_v1, %v5107_v44  ;;  %v9572_v51 = vsel %vm2816_vm5, %v4966_v57, %v4968_v37  ;;  %v5118_v3 = vshrl.u32 %v9471_v48, 16  ;;  %v5121_v20 = vshll.u32 %v9471_v48, 16  ;;  %v7647_v57 = vld [vmem:[%s9989_s5 + $0x98] sm:$0xff]  }
 0x46f   :  { %7256 = vmatprep.subr.bf16.mxu1 %v10007_v45  ;;  %v9555_v29 = vsel %vm1747_vm4, %v4693_v41, %v9541_v43  ;;  %v9577_v2 = vsel %vm2955_vm7, %v5107_v44, %v5111_v26  ;;  %v5115_v13 = vor.u32 %v5114_v34, %v5113_v42  ;;  %v9580_v17 = vsel %vm2816_vm5, %v4968_v37, %v4970_v55  ;;  %v7653_v37 = vld [vmem:[%s9989_s5 + $0xa0] sm:$0xff]  }
 0x470   :  { %7161 = vmatmul.mubr.msk.bf16.gmra.mxu1 %vm714_vm1, %v4164_v18  ;;  %v4972_v6 = vrot.slane %v9471_v48, 2  ;;  %v5120_v24 = vrot.slane %v5118_v3, 2  ;;  %v5123_v28 = vrot.slane %v5121_v20, 3  ;;  %v5254_v58 = vrot.slane %v9395_v39, 3 }
 0x471   :  { %7193 = vmatmul.mubr.msk.bf16.gmra.mxu0 %vm714_vm1, %v9426_v19  ;;  %7164 = vmatprep.mubr.msk.bf16.mxu1 %vm7668_vm0, %v10007_v45  ;;  %v5255_v21 = vrot.slane %v9428_v0, 3  ;;  %v9586_v53 = vsel %vm2955_vm7, %v5111_v26, %v5115_v13  ;;  %v5257_v38 = vrot.slane %v9426_v19, 3  ;;  %v5259_v10 = vrot.slane %v9479_v49, 3  ;;  %v7650_v26 = vld [vmem:[%s9989_s5 + $0x88] sm:$0xff]  }
 0x472   :  { %7196 = vmatprep.mubr.msk.bf16.mxu0 %vm7668_vm0, %v10007_v45  ;;  %v9591_v30 = vsel %vm2816_vm5, %v4970_v55, %v4972_v6  ;;  %v9595_v61 = vor.u32 %v5123_v28, %v5120_v24  ;;  %v5261_v59 = vrot.slane %v9471_v48, 3  ;;  %v4172_v7 = vsel %vm1233_vm3, %v4167_v23, %v4171_v32  ;;  %v7654_v55 = vld [vmem:[%s9989_s5 + $0x80] sm:$0xff]  }
 0x473   :  { %v9598_v27 = vsel %vm3109_vm11, %v5254_v58, %v5255_v21  ;;  %v9603_v41 = vsel %vm3109_vm11, %v5255_v21, %v5257_v38  ;;  %v9606_v18 = vsel %vm3109_vm11, %v5257_v38, %v5259_v10  ;;  %v4543_v23 = vrot.slane %v9400_v15, 5  ;;  %v7657_v58 = vld [vmem:[%s9989_s5 + $0xf8] sm:$0xff]   ;;  %v7659_v21 = vld [vmem:[%s9989_s5 + $0xf0] sm:$0xff]  }
 0x474   :  { %v9613_v52 = vsel %vm2955_vm7, %v5115_v13, %v9595_v61  ;;  %v9618_v36 = vsel %vm3109_vm11, %v5259_v10, %v5261_v59  ;;  %v4544_v50 = vrot.slane %v9395_v39, 5  ;;  %v4175_v12 = vor.u32 %v9500_v9, %v4171_v32  ;;  %v7651_v9 = vld [vmem:[%s9989_s5 + $0xb0] sm:$0xff]   ;;  %v7655_v38 = vld [vmem:[%s9989_s5 + $0xd8] sm:$0xff]  }
 0x475   :  { %v4406_v32 = vrot.slane %v9400_v15, 1  ;;  %v4546_v56 = vrot.slane %v9428_v0, 5  ;;  %v4407_v1 = vrot.slane %v9395_v39, 1  ;;  %v7652_v15 = vld [vmem:[%s9989_s5 + $0xa8] sm:$0xff]   ;;  %v7648_v39 = vld [vmem:[%s9989_s5 + $0x90] sm:$0xff]   ;;  %v4409_v44 = vrot.slane %v9428_v0, 1 }
 0x476   :  { %v4545_v25 = vsel %vm1569_vm2, %v4543_v23, %v4544_v50  ;;  %v4548_v42 = vrot.slane %v9426_v19, 5  ;;  %v4550_v3 = vrot.slane %v9479_v49, 5  ;;  %v4411_v20 = vrot.slane %v9426_v19, 1  ;;  %v7656_v10 = vld [vmem:[%s9989_s5 + $0xd0] sm:$0xff]  }
 0x477   :  { %v4408_v14 = vsel %vm2251_vm9, %v4406_v32, %v4407_v1  ;;  %v4547_v47 = vsel %vm1569_vm2, %v4544_v50, %v4546_v56  ;;  %v4410_v34 = vsel %vm2251_vm9, %v4407_v1, %v4409_v44  ;;  %v4413_v28 = vrot.slane %v9479_v49, 1 }
 0x478   :  { %7165 = vmatmul.mubr.msk.bf16.gmra.mxu1 %vm714_vm1, %v4172_v7  ;;  %v4549_v0 = vsel %vm1569_vm2, %v4546_v56, %v4548_v42  ;;  %v4412_v13 = vsel %vm2251_vm9, %v4409_v44, %v4411_v20  ;;  %v4551_v24 = vsel %vm1569_vm2, %v4548_v42, %v4550_v3  ;;  %v7662_v7 = vld [vmem:[%s9989_s5 + $0xc0] sm:$0xff]  }
 0x479   :  { %7197 = vmatmul.mubr.msk.bf16.gmra.mxu0 %vm714_vm1, %v9479_v49  ;;  %7168 = vmatprep.mubr.msk.bf16.mxu1 %vm7668_vm0, %v10007_v45  ;;  %v4414_v19 = vsel %vm2251_vm9, %v4411_v20, %v4413_v28  ;;  %v7664_v49 = vld [vmem:[%s9989_s5 + $0x110] sm:$0xff]  }
 0x47a   :  { %7236 = vmatprep.mubr.msk.bf16.mxu0 %vm7668_vm0, %v10007_v45 }
 0x480   :  { %7169 = vmatmul.mubr.msk.bf16.gmra.mxu1 %vm714_vm1, %v4175_v12 }
 0x481   :  { %7237 = vmatmul.mubr.msk.bf16.vlgmr.msra.gmra.mxu0 %vm714_vm1, %v4545_v25  ;;  %7208 = vmatprep.mubr.msk.bf16.mxu1 %vm7668_vm0, %v10007_v45 }
 0x482   :  { %7240 = vmatprep.mubr.msk.bf16.mxu0 %vm7668_vm0, %v10007_v45  ;;  %7285 = vmatpush3.bf16.msra.mxu0 %v7649_v4 }
 0x483   :  { %7286 = vmatprep.subr.bf16.mxu0 %v10007_v45 }
 0x486   :  { %7287 = vmatpush3.bf16.msra.mxu0 %v7651_v9 }
 0x487   :  { %7288 = vmatprep.subr.bf16.mxu0 %v10007_v45 }
 0x488   :  { %7209 = vmatmul.mubr.msk.bf16.vlgmr.msra.gmra.mxu1 %vm714_vm1, %v4408_v14 }
 0x489   :  { %7241 = vmatmul.mubr.msk.bf16.gmra.mxu0 %vm714_vm1, %v4547_v47  ;;  %7257 = vmatpush3.bf16.msra.mxu1 %v7647_v57 }
 0x48a   :  { %7212 = vmatprep.mubr.msk.bf16.mxu1 %vm7668_vm0, %v10007_v45  ;;  %7244 = vmatprep.mubr.msk.bf16.mxu0 %vm7668_vm0, %v10007_v45 }
 0x48b   :  { %7258 = vmatprep.subr.bf16.mxu1 %v10007_v45  ;;  %7289 = vmatpush3.bf16.msra.mxu0 %v7652_v15 }
 0x48c   :  { %7290 = vmatprep.subr.bf16.mxu0 %v10007_v45 }
 0x48d   :  { %7259 = vmatpush3.bf16.msra.mxu1 %v7648_v39 }
 0x48e   :  { %7260 = vmatprep.subr.bf16.mxu1 %v10007_v45 }
 0x48f   :  { %7291 = vmatpush3.bf16.msra.mxu0 %v7653_v37 }
 0x490   :  { %7213 = vmatmul.mubr.msk.bf16.gmra.mxu1 %vm714_vm1, %v4410_v34  ;;  %7340 = vmatprep.subr.bf16.mxu0 %v10007_v45 }
 0x491   :  { %7245 = vmatmul.mubr.msk.bf16.gmra.mxu0 %vm714_vm1, %v4549_v0  ;;  %7216 = vmatprep.mubr.msk.bf16.mxu1 %vm7668_vm0, %v10007_v45 }
 0x492   :  { %7248 = vmatprep.mubr.msk.bf16.mxu0 %vm7668_vm0, %v10007_v45  ;;  %7261 = vmatpush3.bf16.msra.mxu1 %v7650_v26 }
 0x493   :  { %7262 = vmatprep.subr.bf16.mxu1 %v10007_v45 }
 0x496   :  { %7263 = vmatpush3.bf16.msra.mxu1 %v7654_v55 }
 0x497   :  { %7312 = vmatprep.subr.bf16.mxu1 %v10007_v45 }
 0x498   :  { %7217 = vmatmul.mubr.msk.bf16.gmra.mxu1 %vm714_vm1, %v4412_v13 }
 0x499   :  { %7249 = vmatmul.mubr.msk.bf16.gmra.mxu0 %vm714_vm1, %v4551_v24  ;;  %7220 = vmatprep.mubr.msk.bf16.mxu1 %vm7668_vm0, %v10007_v45 }
 0x49a   :  { %7252 = vmatprep.mubr.msk.bf16.mxu0 %vm7668_vm0, %v10007_v45 }
 0x4a0   :  { %7221 = vmatmul.mubr.msk.bf16.gmra.mxu1 %vm714_vm1, %v4414_v19 }
 0x4a1   :  { %7253 = vmatmul.mubr.msk.bf16.gmra.mxu0 %vm714_vm1, %v4550_v3  ;;  %7224 = vmatprep.mubr.msk.bf16.mxu1 %vm7668_vm0, %v10007_v45 }
 0x4a2   :  { %7292 = vmatprep.mubr.msk.bf16.mxu0 %vm7668_vm0, %v10007_v45 }
 0x4a8   :  { %7225 = vmatmul.mubr.msk.bf16.gmra.mxu1 %vm714_vm1, %v4413_v28 }
 0x4a9   :  { %7293 = vmatmul.mubr.msk.bf16.vlgmr.msra.gmra.mxu0 %vm714_vm1, %v9476_v35  ;;  %7264 = vmatprep.mubr.msk.bf16.mxu1 %vm7668_vm0, %v10007_v45  ;;  %v7660_v35 = vld [vmem:[%s9989_s5 + $0xe8] sm:$0xff]  }
 0x4aa   :  { %7296 = vmatprep.mubr.msk.bf16.mxu0 %vm7668_vm0, %v10007_v45  ;;  %7341 = vmatpush3.bf16.msra.mxu0 %v7657_v58 }
 0x4ab   :  { %7342 = vmatprep.subr.bf16.mxu0 %v10007_v45 }
 0x4ae   :  { %7343 = vmatpush3.bf16.msra.mxu0 %v7659_v21 }
 0x4af   :  { %7344 = vmatprep.subr.bf16.mxu0 %v10007_v45 }
 0x4b0   :  { %7265 = vmatmul.mubr.msk.bf16.vlgmr.msra.gmra.mxu1 %vm714_vm1, %v9521_v63  ;;  %v7661_v63 = vld [vmem:[%s9989_s5 + $0xe0] sm:$0xff]  }
 0x4b1   :  { %7297 = vmatmul.mubr.msk.bf16.gmra.mxu0 %vm714_vm1, %v9508_v11  ;;  %7313 = vmatpush3.bf16.msra.mxu1 %v7655_v38  ;;  %v7658_v11 = vld [vmem:[%s9989_s5 + $0xc8] sm:$0xff]  }
 0x4b2   :  { %7268 = vmatprep.mubr.msk.bf16.mxu1 %vm7668_vm0, %v10007_v45  ;;  %7300 = vmatprep.mubr.msk.bf16.mxu0 %vm7668_vm0, %v10007_v45 }
 0x4b3   :  { %7314 = vmatprep.subr.bf16.mxu1 %v10007_v45  ;;  %7345 = vmatpush3.bf16.msra.mxu0 %v7660_v35 }
 0x4b4   :  { %7346 = vmatprep.subr.bf16.mxu0 %v10007_v45 }
 0x4b5   :  { %7315 = vmatpush3.bf16.msra.mxu1 %v7656_v10 }
 0x4b6   :  { %7316 = vmatprep.subr.bf16.mxu1 %v10007_v45 }
 0x4b7   :  { %7347 = vmatpush3.bf16.msra.mxu0 %v7661_v63 }
 0x4b8   :  { %7269 = vmatmul.mubr.msk.bf16.gmra.mxu1 %vm714_vm1, %v9524_v62  ;;  %7368 = vmatprep.subr.bf16.mxu0 %v10007_v45  ;;  %v7665_v62 = vld [vmem:[%s9989_s5 + $0x108] sm:$0xff]  }
 0x4b9   :  { %7301 = vmatmul.mubr.msk.bf16.gmra.mxu0 %vm714_vm1, %v9517_v22  ;;  %7272 = vmatprep.mubr.msk.bf16.mxu1 %vm7668_vm0, %v10007_v45  ;;  %v7663_v22 = vld [vmem:[%s9989_s5 + $0x118] sm:$0xff]  }
 0x4ba   :  { %7304 = vmatprep.mubr.msk.bf16.mxu0 %vm7668_vm0, %v10007_v45  ;;  %7317 = vmatpush3.bf16.msra.mxu1 %v7658_v11 }
 0x4bb   :  { %7318 = vmatprep.subr.bf16.mxu1 %v10007_v45 }
 0x4be   :  { %7319 = vmatpush3.bf16.msra.mxu1 %v7662_v7 }
 0x4bf   :  { %7396 = vmatprep.subr.bf16.mxu1 %v10007_v45 }
 0x4c0   :  { %7273 = vmatmul.mubr.msk.bf16.gmra.mxu1 %vm714_vm1, %v9532_v60 }
 0x4c1   :  { %7305 = vmatmul.mubr.msk.bf16.gmra.mxu0 %vm714_vm1, %v9537_v5  ;;  %7276 = vmatprep.mubr.msk.bf16.mxu1 %vm7668_vm0, %v10007_v45 }
 0x4c2   :  { %7308 = vmatprep.mubr.msk.bf16.mxu0 %vm7668_vm0, %v10007_v45 }
 0x4c8   :  { %7277 = vmatmul.mubr.msk.bf16.gmra.mxu1 %vm714_vm1, %v9555_v29 }
 0x4c9   :  { %7309 = vmatmul.mubr.msk.bf16.gmra.mxu0 %vm714_vm1, %v4834_v46  ;;  %7280 = vmatprep.mubr.msk.bf16.mxu1 %vm7668_vm0, %v10007_v45  ;;  %v7666_v46 = vld [vmem:[%s9989_s5 + $0x100] sm:$0xff]  }
 0x4ca   :  { %7348 = vmatprep.mubr.msk.bf16.mxu0 %vm7668_vm0, %v10007_v45 }
 0x4d0   :  { %7281 = vmatmul.mubr.msk.bf16.gmra.mxu1 %vm714_vm1, %v9541_v43 }
 0x4d1   :  { %7349 = vmatmul.mubr.msk.bf16.vlgmr.msra.gmra.mxu0 %vm714_vm1, %v9569_v54  ;;  %7320 = vmatprep.mubr.msk.bf16.mxu1 %vm7668_vm0, %v10007_v45 }
 0x4d2   :  { %7352 = vmatprep.mubr.msk.bf16.mxu0 %vm7668_vm0, %v10007_v45  ;;  %7369 = vmatpush3.bf16.msra.mxu0 %v7663_v22 }
 0x4d3   :  { %7370 = vmatprep.subr.bf16.mxu0 %v10007_v45 }
 0x4d6   :  { %7371 = vmatpush3.bf16.msra.mxu0 %v7664_v49 }
 0x4d7   :  { %7372 = vmatprep.subr.bf16.mxu0 %v10007_v45 }
 0x4d8   :  { %7321 = vmatmul.mubr.msk.bf16.vlgmr.msra.gmra.mxu1 %vm714_vm1, %v9564_v16 }
 0x4d9   :  { %7353 = vmatmul.mubr.msk.bf16.gmra.mxu0 %vm714_vm1, %v9577_v2  ;;  %7400 = vmatpush3.bf16.msra.mxu1 %v7663_v22 }
 0x4da   :  { %7324 = vmatprep.mubr.msk.bf16.mxu1 %vm7668_vm0, %v10007_v45  ;;  %7356 = vmatprep.mubr.msk.bf16.mxu0 %vm7668_vm0, %v10007_v45 }
 0x4db   :  { %7397 = vmatprep.subr.bf16.mxu1 %v10007_v45  ;;  %7373 = vmatpush3.bf16.msra.mxu0 %v7665_v62 }
 0x4dc   :  { %7374 = vmatprep.subr.bf16.mxu0 %v10007_v45 }
 0x4dd   :  { %7401 = vmatpush3.bf16.msra.mxu1 %v7664_v49 }
 0x4de   :  { %7398 = vmatprep.subr.bf16.mxu1 %v10007_v45 }
 0x4df   :  { %7375 = vmatpush3.bf16.msra.mxu0 %v7666_v46 }
 0x4e0   :  { %7325 = vmatmul.mubr.msk.bf16.gmra.mxu1 %vm714_vm1, %v9572_v51 }
 0x4e1   :  { %7357 = vmatmul.mubr.msk.bf16.gmra.mxu0 %vm714_vm1, %v9586_v53  ;;  %7328 = vmatprep.mubr.msk.bf16.mxu1 %vm7668_vm0, %v10007_v45 }
 0x4e2   :  { %7360 = vmatprep.mubr.msk.bf16.mxu0 %vm7668_vm0, %v10007_v45  ;;  %7402 = vmatpush3.bf16.msra.mxu1 %v7665_v62 }
 0x4e3   :  { %7399 = vmatprep.subr.bf16.mxu1 %v10007_v45 }
 0x4e6   :  { %7403 = vmatpush3.bf16.msra.mxu1 %v7666_v46 }
 0x4e8   :  { %7329 = vmatmul.mubr.msk.bf16.gmra.mxu1 %vm714_vm1, %v9580_v17 }
 0x4e9   :  { %7361 = vmatmul.mubr.msk.bf16.gmra.mxu0 %vm714_vm1, %v9613_v52  ;;  %7332 = vmatprep.mubr.msk.bf16.mxu1 %vm7668_vm0, %v10007_v45 }
 0x4ea   :  { %7364 = vmatprep.mubr.msk.bf16.mxu0 %vm7668_vm0, %v10007_v45 }
 0x4f0   :  { %7333 = vmatmul.mubr.msk.bf16.gmra.mxu1 %vm714_vm1, %v9591_v30 }
 0x4f1   :  { %7365 = vmatmul.mubr.msk.bf16.gmra.mxu0 %vm714_vm1, %v9595_v61  ;;  %7336 = vmatprep.mubr.msk.bf16.mxu1 %vm7668_vm0, %v10007_v45 }
 0x4f2   :  { %7376 = vmatprep.mubr.msk.bf16.mxu0 %vm7668_vm0, %v10007_v45 }
 0x4f8   :  { %7337 = vmatmul.mubr.msk.bf16.gmra.mxu1 %vm714_vm1, %v4972_v6 }
 0x4f9   :  { %7377 = vmatmul.mubr.msk.bf16.vlgmr.msra.gmra.mxu0 %vm714_vm1, %v9598_v27  ;;  %7380 = vmatprep.mubr.msk.bf16.mxu1 %vm7668_vm0, %v10007_v45 }
 0x500   :  { %7381 = vmatmul.mubr.msk.bf16.vlgmr.msra.gmra.mxu1 %vm714_vm1, %v9603_v41 }
 0x501   :  { %7384 = vmatprep.mubr.msk.bf16.mxu1 %vm7668_vm0, %v10007_v45 }
 0x508   :  { %7385 = vmatmul.mubr.msk.bf16.gmra.mxu1 %vm714_vm1, %v9606_v18 }
 0x509   :  { %7388 = vmatprep.mubr.msk.bf16.mxu1 %vm7668_vm0, %v10007_v45 }
 0x510   :  { %7389 = vmatmul.mubr.msk.bf16.gmra.mxu1 %vm714_vm1, %v9618_v36 }
 0x511   :  { %7392 = vmatprep.mubr.msk.bf16.mxu1 %vm7668_vm0, %v10007_v45 }
 0x518   :  { %7393 = vmatmul.mubr.msk.bf16.gmra.mxu1 %vm714_vm1, %v5261_v59 }
 0x519   :  { %v4355_v60 = vpop.f32.mrf.mxu0 }
 0x51b   :  { %v7182_v5 = vpop.f32.mrf.mxu0 }
 0x51d   :  { %v4358_v43 = vpop.f32.mrf.mxu0 }
 0x51f   :  { %v7183_v29 = vpop.f32.mrf.mxu0 }
 0x520   :  { %v4249_v16 = vpop.f32.mrf.mxu1 }
 0x521   :  { %v4363_v54 = vpop.f32.mrf.mxu0  ;;  %v4356_v51 = vadd.f32 %v4355_v60, %v4249_v16 }
 0x522   :  { %v7154_v2 = vpop.f32.mrf.mxu1 }
 0x523   :  { %v7186_v17 = vpop.f32.mrf.mxu0 }
 0x524   :  { %v4252_v6 = vpop.f32.mrf.mxu1 }
 0x525   :  { %v4366_v53 = vpop.f32.mrf.mxu0  ;;  %v4359_v30 = vadd.f32 %v4358_v43, %v4252_v6 }
 0x526   :  { %v7155_v61 = vpop.f32.mrf.mxu1 }
 0x527   :  { %v7187_v27 = vpop.f32.mrf.mxu0 }
 0x528   :  { %v4257_v41 = vpop.f32.mrf.mxu1 }
 0x529   :  { %v4371_v45 = vpop.f32.mrf.mxu0  ;;  %v4364_v18 = vadd.f32 %v4363_v54, %v4257_v41 }
 0x52a   :  { %v7158_v48 = vpop.f32.mrf.mxu1 }
 0x52b   :  { %v7190_v52 = vpop.f32.mrf.mxu0 }
 0x52c   :  { %v4260_v59 = vpop.f32.mrf.mxu1 }
 0x52d   :  { %v4374_v36 = vpop.f32.mrf.mxu0  ;;  %v4367_v23 = vadd.f32 %v4366_v53, %v4260_v59 }
 0x52e   :  { %v7159_v50 = vpop.f32.mrf.mxu1 }
 0x52f   :  { %v7191_v12 = vpop.f32.mrf.mxu0 }
 0x530   :  { %v4265_v4 = vpop.f32.mrf.mxu1 }
 0x531   :  { %v4379_v25 = vpop.f32.mrf.mxu0  ;;  %v4372_v9 = vadd.f32 %v4371_v45, %v4265_v4 }
 0x532   :  { %v7162_v32 = vpop.f32.mrf.mxu1 }
 0x533   :  { %v7194_v56 = vpop.f32.mrf.mxu0 }
 0x534   :  { %v4268_v1 = vpop.f32.mrf.mxu1 }
 0x535   :  { %v4382_v57 = vpop.f32.mrf.mxu0  ;;  %v4375_v14 = vadd.f32 %v4374_v36, %v4268_v1 }
 0x536   :  { %v7163_v47 = vpop.f32.mrf.mxu1 }
 0x537   :  { %v7195_v15 = vpop.f32.mrf.mxu0 }
 0x538   :  { %v4273_v39 = vpop.f32.mrf.mxu1 }
 0x539   :  { %v4387_v44 = vpop.f32.mrf.mxu0  ;;  %v4380_v37 = vadd.f32 %v4379_v25, %v4273_v39 }
 0x53a   :  { %v7166_v42 = vpop.f32.mrf.mxu1 }
 0x53b   :  { %v7198_v26 = vpop.f32.mrf.mxu0 }
 0x53c   :  { %v4276_v34 = vpop.f32.mrf.mxu1 }
 0x53d   :  { %v4390_v0 = vpop.f32.mrf.mxu0  ;;  %v4383_v55 = vadd.f32 %v4382_v57, %v4276_v34 }
 0x53e   :  { %v7167_v3 = vpop.f32.mrf.mxu1 }
 0x53f   :  { %v7199_v20 = vpop.f32.mrf.mxu0 }
 0x540   :  { %v4281_v13 = vpop.f32.mrf.mxu1 }
 0x541   :  { %v4625_v24 = vpop.f32.mrf.mxu0  ;;  %v4388_v28 = vadd.f32 %v4387_v44, %v4281_v13 }
 0x542   :  { %v7170_v19 = vpop.f32.mrf.mxu1 }
 0x543   :  { %v7238_v58 = vpop.f32.mrf.mxu0 }
 0x544   :  { %v4284_v21 = vpop.f32.mrf.mxu1 }
 0x545   :  { %v4628_v38 = vpop.f32.mrf.mxu0 }
 0x546   :  { %v7171_v35 = vpop.f32.mrf.mxu1 }
 0x547   :  { %v7239_v10 = vpop.f32.mrf.mxu0 }
 0x548   :  { %v4488_v63 = vpop.f32.mrf.mxu1 }
 0x549   :  { %v4633_v11 = vpop.f32.mrf.mxu0  ;;  %v4526_v7 = vadd.f32 %v4488_v63, %v4356_v51 }
 0x54a   :  { %v7210_v22 = vpop.f32.mrf.mxu1 }
 0x54b   :  { %v7242_v49 = vpop.f32.mrf.mxu0  ;;  %v4663_v62 = vadd.f32 %v4625_v24, %v4526_v7 }
 0x54c   :  { %v4491_v46 = vpop.f32.mrf.mxu1 }
 0x54d   :  { %v4636_v60 = vpop.f32.mrf.mxu0  ;;  %v4527_v5 = vadd.f32 %v4491_v46, %v4359_v30 }
 0x54e   :  { %v7211_v43 = vpop.f32.mrf.mxu1 }
 0x54f   :  { %v7243_v29 = vpop.f32.mrf.mxu0  ;;  %v4664_v16 = vadd.f32 %v4628_v38, %v4527_v5 }
 0x550   :  { %v4496_v54 = vpop.f32.mrf.mxu1 }
 0x551   :  { %v4641_v2 = vpop.f32.mrf.mxu0  ;;  %v4528_v17 = vadd.f32 %v4496_v54, %v4364_v18 }
 0x552   :  { %v7214_v6 = vpop.f32.mrf.mxu1 }
 0x553   :  { %v7246_v53 = vpop.f32.mrf.mxu0  ;;  %v4665_v61 = vadd.f32 %v4633_v11, %v4528_v17 }
 0x554   :  { %v4499_v27 = vpop.f32.mrf.mxu1 }
 0x555   :  { %v4644_v41 = vpop.f32.mrf.mxu0  ;;  %v4529_v45 = vadd.f32 %v4499_v27, %v4367_v23 }
 0x556   :  { %v7215_v48 = vpop.f32.mrf.mxu1 }
 0x557   :  { %v7247_v51 = vpop.f32.mrf.mxu0  ;;  %v4666_v52 = vadd.f32 %v4636_v60, %v4529_v45 }
 0x558   :  { %v4504_v59 = vpop.f32.mrf.mxu1 }
 0x559   :  { %v4649_v36 = vpop.f32.mrf.mxu0  ;;  %v4530_v50 = vadd.f32 %v4504_v59, %v4372_v9 }
 0x55a   :  { %v7218_v12 = vpop.f32.mrf.mxu1 }
 0x55b   :  { %v7250_v30 = vpop.f32.mrf.mxu0  ;;  %v4667_v4 = vadd.f32 %v4641_v2, %v4530_v50 }
 0x55c   :  { %v4507_v25 = vpop.f32.mrf.mxu1 }
 0x55d   :  { %v4652_v32 = vpop.f32.mrf.mxu0  ;;  %v4531_v56 = vadd.f32 %v4507_v25, %v4375_v14 }
 0x55e   :  { %v7219_v1 = vpop.f32.mrf.mxu1 }
 0x55f   :  { %v7251_v18 = vpop.f32.mrf.mxu0  ;;  %v4668_v57 = vadd.f32 %v4644_v41, %v4531_v56 }
 0x560   :  { %v4512_v47 = vpop.f32.mrf.mxu1 }
 0x561   :  { %v4657_v15 = vpop.f32.mrf.mxu0  ;;  %v4532_v39 = vadd.f32 %v4512_v47, %v4380_v37 }
 0x562   :  { %v7222_v44 = vpop.f32.mrf.mxu1 }
 0x563   :  { %v7254_v23 = vpop.f32.mrf.mxu0  ;;  %v4669_v42 = vadd.f32 %v4649_v36, %v4532_v39 }
 0x564   :  { %v4515_v26 = vpop.f32.mrf.mxu1 }
 0x565   :  { %v4660_v34 = vpop.f32.mrf.mxu0  ;;  %v4533_v0 = vadd.f32 %v4515_v26, %v4383_v55 }
 0x566   :  { %v7223_v3 = vpop.f32.mrf.mxu1 }
 0x567   :  { %v7255_v9 = vpop.f32.mrf.mxu0  ;;  %v4670_v20 = vadd.f32 %v4652_v32, %v4533_v0 }
 0x568   :  { %v4520_v13 = vpop.f32.mrf.mxu1 }
 0x569   :  { %v4909_v24 = vpop.f32.mrf.mxu0  ;;  %v4534_v19 = vadd.f32 %v4520_v13, %v4388_v28 }
 0x56a   :  { %v7226_v58 = vpop.f32.mrf.mxu1 }
 0x56b   :  { %v7294_v14 = vpop.f32.mrf.mxu0  ;;  %v4671_v21 = vadd.f32 %v4657_v15, %v4534_v19 }
 0x56c   :  { %v4523_v38 = vpop.f32.mrf.mxu1 }
 0x56d   :  { %v4912_v35 = vpop.f32.mrf.mxu0 }
 0x56e   :  { %v7227_v10 = vpop.f32.mrf.mxu1 }
 0x56f   :  { %v7295_v63 = vpop.f32.mrf.mxu0 }
 0x570   :  { %v4772_v37 = vpop.f32.mrf.mxu1 }
 0x571   :  { %v4917_v11 = vpop.f32.mrf.mxu0  ;;  %v4810_v7 = vadd.f32 %v4772_v37, %v4663_v62 }
 0x572   :  { %v7266_v22 = vpop.f32.mrf.mxu1 }
 0x573   :  { %v7298_v49 = vpop.f32.mrf.mxu0  ;;  %v9857_v46 = vadd.f32 %v4909_v24, %v4810_v7 }
 0x574   :  { %v4775_v55 = vpop.f32.mrf.mxu1 }
 0x575   :  { %v4920_v60 = vpop.f32.mrf.mxu0  ;;  %v4811_v5 = vadd.f32 %v4775_v55, %v4664_v16 }
 0x576   :  { %v7267_v43 = vpop.f32.mrf.mxu1 }
 0x577   :  { %v7299_v29 = vpop.f32.mrf.mxu0  ;;  %v9859_v28 = vadd.f32 %v4912_v35, %v4811_v5 }
 0x578   :  { %v4780_v54 = vpop.f32.mrf.mxu1 }
 0x579   :  { %v4925_v2 = vpop.f32.mrf.mxu0  ;;  %v4812_v17 = vadd.f32 %v4780_v54, %v4665_v61 }
 0x57a   :  { %v7270_v6 = vpop.f32.mrf.mxu1 }
 0x57b   :  { %v7302_v53 = vpop.f32.mrf.mxu0  ;;  %v9861_v27 = vadd.f32 %v4917_v11, %v4812_v17 }
 0x57c   :  { %v4783_v41 = vpop.f32.mrf.mxu1 }
 0x57d   :  { %v4928_v62 = vpop.f32.mrf.mxu0  ;;  %v4813_v45 = vadd.f32 %v4783_v41, %v4666_v52 }
 0x57e   :  { %v7271_v48 = vpop.f32.mrf.mxu1 }
 0x57f   :  { %v7303_v51 = vpop.f32.mrf.mxu0  ;;  %v9863_v59 = vadd.f32 %v4920_v60, %v4813_v45 }
 0x580   :  { %v4788_v36 = vpop.f32.mrf.mxu1 }
 0x581   :  { %v4933_v16 = vpop.f32.mrf.mxu0  ;;  %v4814_v50 = vadd.f32 %v4788_v36, %v4667_v4 }
 0x582   :  { %v7274_v12 = vpop.f32.mrf.mxu1 }
 0x583   :  { %v7306_v30 = vpop.f32.mrf.mxu0  ;;  %v9865_v25 = vadd.f32 %v4925_v2, %v4814_v50 }
 0x584   :  { %v4791_v32 = vpop.f32.mrf.mxu1 }
 0x585   :  { %v4936_v61 = vpop.f32.mrf.mxu0  ;;  %v4815_v56 = vadd.f32 %v4791_v32, %v4668_v57 }
 0x586   :  { %v7275_v1 = vpop.f32.mrf.mxu1 }
 0x587   :  { %v7307_v18 = vpop.f32.mrf.mxu0  ;;  %v9867_v47 = vadd.f32 %v4928_v62, %v4815_v56 }
 0x588   :  { %v4796_v15 = vpop.f32.mrf.mxu1 }
 0x589   :  { %v4941_v52 = vpop.f32.mrf.mxu0  ;;  %v4816_v39 = vadd.f32 %v4796_v15, %v4669_v42 }
 0x58a   :  { %v7278_v44 = vpop.f32.mrf.mxu1 }
 0x58b   :  { %v7310_v23 = vpop.f32.mrf.mxu0  ;;  %v9869_v26 = vadd.f32 %v4933_v16, %v4816_v39 }
 0x58c   :  { %v4799_v34 = vpop.f32.mrf.mxu1 }
 0x58d   :  { %v4944_v4 = vpop.f32.mrf.mxu0  ;;  %v4817_v0 = vadd.f32 %v4799_v34, %v4670_v20 }
 0x58e   :  { %v7279_v3 = vpop.f32.mrf.mxu1  ;;  %v9894_v4 = vld [vmem:[%s9991_s6] ss:$0 sm:$0xff] }
 0x58f   :  { %v7311_v9 = vpop.f32.mrf.mxu0  ;;  %v9871_v13 = vadd.f32 %v4936_v61, %v4817_v0 }
 0x590   :  { %v4804_v24 = vpop.f32.mrf.mxu1 }
 0x591   :  { %v5199_v57 = vpop.f32.mrf.mxu0  ;;  %v4818_v19 = vadd.f32 %v4804_v24, %v4671_v21 }
 0x592   :  { %v7282_v58 = vpop.f32.mrf.mxu1 }
 0x593   :  { %v7350_v14 = vpop.f32.mrf.mxu0  ;;  %v9873_v38 = vadd.f32 %v4941_v52, %v4818_v19 }
 0x594   :  { %v4807_v35 = vpop.f32.mrf.mxu1 }
 0x595   :  { %v5202_v42 = vpop.f32.mrf.mxu0 }
 0x596   :  { %v7283_v10 = vpop.f32.mrf.mxu1 }
 0x597   :  { %v7351_v63 = vpop.f32.mrf.mxu0 }
 0x598   :  { %v5047_v37 = vpop.f32.mrf.mxu1 }
 0x599   :  { %v5207_v11 = vpop.f32.mrf.mxu0  ;;  %v5085_v61 = vadd.f32 %v5047_v37, %v9857_v46 }
 0x59a   :  { %v7322_v7 = vpop.f32.mrf.mxu1 }
 0x59b   :  { %v7354_v22 = vpop.f32.mrf.mxu0  ;;  %v5237_v39 = vadd.f32 %v5199_v57, %v5085_v61 }
 0x59c   :  { %v5050_v20 = vpop.f32.mrf.mxu1 }
 0x59d   :  { %v5210_v49 = vpop.f32.mrf.mxu0  ;;  %v5086_v52 = vadd.f32 %v5050_v20, %v9859_v28 }
 0x59e   :  { %v7323_v55 = vpop.f32.mrf.mxu1 }
 0x59f   :  { %v7355_v60 = vpop.f32.mrf.mxu0  ;;  %v5238_v9 = vadd.f32 %v5202_v42, %v5086_v52 }
 0x5a0   :  { %v5055_v5 = vpop.f32.mrf.mxu1 }
 0x5a1   :  { %v9875_v43 = vpop.f32.mrf.mxu0  ;;  %v5087_v46 = vadd.f32 %v5055_v5, %v9861_v27  ;;  %v6086_v27 = vld [vmem:[%s9992_s7 + $0x1c] sm:$0xf] }
 0x5a2   :  { %v7326_v21 = vpop.f32.mrf.mxu1 }
 0x5a3   :  { %v7358_v29 = vpop.f32.mrf.mxu0  ;;  %v5239_v63 = vadd.f32 %v5207_v11, %v5087_v46 }
 0x5a4   :  { %v5058_v54 = vpop.f32.mrf.mxu1 }
 0x5a5   :  { %v9877_v2 = vpop.f32.mrf.mxu0  ;;  %v5088_v35 = vadd.f32 %v5058_v54, %v9863_v59 }
 0x5a6   :  { %v7327_v17 = vpop.f32.mrf.mxu1 }
 0x5a7   :  { %v7359_v6 = vpop.f32.mrf.mxu0  ;;  %v5240_v21 = vadd.f32 %v5210_v49, %v5088_v35 }
 0x5a8   :  { %v5063_v53 = vpop.f32.mrf.mxu1 }
 0x5a9   :  { %v9879_v41 = vpop.f32.mrf.mxu0  ;;  %v5089_v55 = vadd.f32 %v5063_v53, %v9865_v25 }
 0x5aa   :  { %v7330_v62 = vpop.f32.mrf.mxu1 }
 0x5ab   :  { %v7362_v45 = vpop.f32.mrf.mxu0  ;;  %v5241_v53 = vadd.f32 %v9875_v43, %v5089_v55 }
 0x5ac   :  { %v5066_v48 = vpop.f32.mrf.mxu1 }
 0x5ad   :  { %v9881_v51 = vpop.f32.mrf.mxu0  ;;  %v5090_v6 = vadd.f32 %v5066_v48, %v9867_v47 }
 0x5ae   :  { %v7331_v36 = vpop.f32.mrf.mxu1 }
 0x5af   :  { %v7363_v16 = vpop.f32.mrf.mxu0  ;;  %v5242_v48 = vadd.f32 %v9877_v2, %v5090_v6 }
 0x5b0   :  { %v5071_v50 = vpop.f32.mrf.mxu1 }
 0x5b1   :  { %v9883_v12 = vpop.f32.mrf.mxu0 }
 0x5b2   :  { %v7334_v30 = vpop.f32.mrf.mxu1 }
 0x5b3   :  { %v7366_v32 = vpop.f32.mrf.mxu0  ;;  %v6091_v30 = vld [vmem:[%s9992_s7 + $0x20] sm:$0xf] }
 0x5b4   :  { %v9886_v56 = vpop.f32.mrf.mxu1 }
 0x5b5   :  { %v5234_v1 = vpop.f32.mrf.mxu0 }
 0x5b6   :  { %v7335_v18 = vpop.f32.mrf.mxu1  ;;  %v5091_v1 = vadd.f32 %v5071_v50, %v9869_v26  ;;  %v6095_v26 = vld [vmem:[%s9992_s7 + $0x24] sm:$0xf] }
 0x5b7   :  { %v7367_v15 = vpop.f32.mrf.mxu0 }
 0x5b8   :  { %v9889_v44 = vpop.f32.mrf.mxu1 }
 0x5b9   :  { %v5336_v23 = vpop.f32.mrf.mxu0 }
 0x5ba   :  { %v5374_v34 = vadd.f32 %v5336_v23, %v5237_v39  ;;  %v7338_v0 = vpop.f32.mrf.mxu1 }
 0x5bb   :  { %v7378_v3 = vpop.f32.mrf.mxu0  ;;  %v5092_v0 = vadd.f32 %v9886_v56, %v9871_v13  ;;  %v6099_v13 = vld [vmem:[%s9992_s7 + $0x28] sm:$0xf] }
 0x5bc   :  { %v5082_v24 = vpop.f32.mrf.mxu1  ;;  %v5390_v58 = vadd.f32 %v9894_v4, %v5374_v34 }
 0x5bd   :  { %v5339_v19 = vpop.f32.mrf.mxu0 }
 0x5be   :  { %v5375_v28 = vadd.f32 %v5339_v19, %v5238_v9  ;;  %v7339_v57 = vpop.f32.mrf.mxu1  ;;  %v5399_v7 = vmax.f32 %v5390_v58, 0.0  ;;  %v5243_v19 = vadd.f32 %v9879_v41, %v5091_v1  ;;  %v6102_v41 = vld [vmem:[%s9992_s7 + $0x2c] sm:$0xf] }
 0x5bf   :  { %v7379_v14 = vpop.f32.mrf.mxu0 }
 0x5c0   :  { %v5391_v10 = vadd.f32 %v9894_v4, %v5375_v28  ;;  %v5344_v37 = vpop.f32.mrf.mxu1 }
 0x5c1   :  { %v5376_v20 = vadd.f32 %v5344_v37, %v5239_v63  ;;  %v5244_v63 = vadd.f32 %v9881_v51, %v5092_v0  ;;  %v5093_v37 = vadd.f32 %v9889_v44, %v9873_v38 }
 0x5c2   :  { %v5400_v22 = vmax.f32 %v5391_v10, 0.0  ;;  %v7382_v42 = vpop.f32.mrf.mxu1 }
 0x5c3   :  { %v5392_v5 = vadd.f32 %v9894_v4, %v5376_v20  ;;  %v5245_v44 = vadd.f32 %v9883_v12, %v5093_v37 }
 0x5c4   :  { %v5408_v60 = vpack.c.bf16 %v5400_v22, %v5399_v7  ;;  %v5347_v29 = vpop.f32.mrf.mxu1  ;;  %v6121_v11 = vpack.c.bf16 %v5400_v22, %v5400_v22 }
 0x5c5   :  { %v5401_v54 = vmax.f32 %v5392_v5, 0.0  ;;  %v5377_v17 = vadd.f32 %v5347_v29, %v5240_v21 }
 0x5c6   :  { %v5415_v59 = vsel %vm9249_vm14, %v5408_v60, %v6086_v27  ;;  %v7383_v62 = vpop.f32.mrf.mxu1  ;;  %v6090_v36 = vrot.slane %v6121_v11, 9 }
 0x5c7   :  { %6087 = vst [vmem:[%s9992_s7 + $0x1c] sm:$0xf] %v5415_v59  ;;  %v6122_v45 = vpack.c.bf16 %v5401_v54, %v5401_v54  ;;  %v5393_v25 = vadd.f32 %v9894_v4, %v5377_v17 }
 0x5c8   :  { %v5352_v49 = vpop.f32.mrf.mxu1 }
 0x5c9   :  { %v5425_v16 = vrot.slane %v6122_v45, 5  ;;  %v5402_v32 = vmax.f32 %v5393_v25, 0.0  ;;  %v5378_v61 = vadd.f32 %v5352_v49, %v5241_v53  ;;  %v6094_v23 = vrot.slane %v6122_v45, 10  ;;  %v6107_v25 = vld [vmem:[%s9992_s7 + $0x30] sm:$0xf] }
 0x5ca   :  { %v7386_v47 = vpop.f32.mrf.mxu1 }
 0x5cb   :  { %v5426_v18 = vsel %vm9272_vm8, %v6090_v36, %v5425_v16  ;;  %v6123_v15 = vpack.c.bf16 %v5402_v32, %v5402_v32  ;;  %v5394_v43 = vadd.f32 %v9894_v4, %v5378_v61  ;;  %v6111_v32 = vld [vmem:[%s9992_s7 + $0x34] sm:$0xf] }
 0x5cc   :  { %v5430_v52 = vsel %vm9249_vm14, %v5426_v18, %v6091_v30  ;;  %v5355_v39 = vpop.f32.mrf.mxu1 }
 0x5cd   :  { %6092 = vst [vmem:[%s9992_s7 + $0x20] sm:$0xf] %v5430_v52  ;;  %v5436_v34 = vrot.slane %v6123_v15, 6  ;;  %v5403_v2 = vmax.f32 %v5394_v43, 0.0  ;;  %v5379_v50 = vadd.f32 %v5355_v39, %v5242_v48  ;;  %v6098_v57 = vrot.slane %v6123_v15, 11 }
 0x5ce   :  { %v7387_v3 = vpop.f32.mrf.mxu1 }
 0x5cf   :  { %v5437_v46 = vsel %vm9291_vm13, %v6094_v23, %v5436_v34  ;;  %v6124_v9 = vpack.c.bf16 %v5403_v2, %v5403_v2  ;;  %v5395_v24 = vadd.f32 %v9894_v4, %v5379_v50 }
 0x5d0   :  { %v5441_v58 = vsel %vm9249_vm14, %v5437_v46, %v6095_v26  ;;  %v5360_v28 = vpop.f32.mrf.mxu1 }
 0x5d1   :  { %6096 = vst [vmem:[%s9992_s7 + $0x24] sm:$0xf] %v5441_v58  ;;  %v5448_v14 = vrot.slane %v6124_v9, 7  ;;  %v5404_v56 = vmax.f32 %v5395_v24, 0.0  ;;  %v5380_v35 = vadd.f32 %v5360_v28, %v5243_v19 }
 0x5d2   :  { %v7390_v10 = vpop.f32.mrf.mxu1 }
 0x5d3   :  { %v5449_v7 = vsel %vm9313_vm12, %v6098_v57, %v5448_v14  ;;  %v6125_v22 = vpack.c.bf16 %v5404_v56, %v5404_v56  ;;  %v5396_v20 = vadd.f32 %v9894_v4, %v5380_v35 }
 0x5d4   :  { %v5453_v27 = vsel %vm9249_vm14, %v5449_v7, %v6099_v13  ;;  %v5363_v42 = vpop.f32.mrf.mxu1 }
 0x5d5   :  { %6100 = vst [vmem:[%s9992_s7 + $0x28] sm:$0xf] %v5453_v27  ;;  %v5460_v51 = vsel %vm9249_vm14, %v6125_v22, %v6102_v41  ;;  %v5405_v55 = vmax.f32 %v5396_v20, 0.0  ;;  %v5381_v60 = vadd.f32 %v5363_v42, %v5244_v63 }
 0x5d6   :  { %6103 = vst [vmem:[%s9992_s7 + $0x2c] sm:$0xf] %v5460_v51  ;;  %v7391_v8 = vpop.f32.mrf.mxu1 }
 0x5d7   :  { %v5397_v38 = vadd.f32 %v9894_v4, %v5381_v60  ;;  %v6126_v21 = vpack.c.bf16 %v5405_v55, %v5405_v55 }
 0x5d8   :  { %v5368_v5 = vpop.f32.mrf.mxu1 }
 0x5d9   :  { %v5406_v29 = vmax.f32 %v5397_v38, 0.0  ;;  %v5382_v59 = vadd.f32 %v5368_v5, %v5245_v44  ;;  %v6106_v62 = vrot.slane %v6126_v21, 9 }
 0x5da   :  { %v7394_v11 = vpop.f32.mrf.mxu1 }
 0x5db   :  { %v6127_v54 = vpack.c.bf16 %v5406_v29, %v5406_v29  ;;  %v5398_v17 = vadd.f32 %v9894_v4, %v5382_v59 }
 0x5dc   :  { %v5371_v6 = vpop.f32.mrf.mxu1 }
 0x5dd   :  { %v5469_v45 = vrot.slane %v6127_v54, 5  ;;  %v5407_v53 = vmax.f32 %v5398_v17, 0.0  ;;  %v6110_v4 = vrot.slane %v6127_v54, 10 }
 0x5de   :  { %v7395_v49 = vpop.f32.mrf.mxu1 }
 0x5df   :  { %v5470_v12 = vsel %vm9272_vm8, %v6106_v62, %v5469_v45  ;;  %v6128_v36 = vpack.c.bf16 %v5407_v53, %v5407_v53 }
 0x5e0   :  { %v5474_v16 = vsel %vm9249_vm14, %v5470_v12, %v6107_v25 }
 0x5e1   :  { %6108 = vst [vmem:[%s9992_s7 + $0x30] sm:$0xf] %v5474_v16  ;;  %v5481_v30 = vrot.slane %v6128_v36, 6 }
 0x5e3   :  { %v5482_v61 = vsel %vm9291_vm13, %v6110_v4, %v5481_v30 }
 0x5e4   :  { %v5486_v33 = vsel %vm9249_vm14, %v5482_v61, %v6111_v32 }
 0x5e5   :  { %6112 = vst [vmem:[%s9992_s7 + $0x34] sm:$0xf] %v5486_v33 }

// kernel: dqn_forward.3
= control target key start
LH: loop header
LB: loop body
LE: loop exit
PB: predicated region body
PF: predicated region fallthrough
CT: control target
= control target key end

     0   :  { %v812_v36 = vlaneseq  ;;  %v8478_v37 = vmov 1966171168   ;;  %vm4941_vm0 = vcmask 523264   ;;  %s11222_s0 = inlined_call_operand.vmem [shape: bf16[2,3136], index: 0, kind: input, shape index: {}]   ;;  %s11223_s1 = inlined_call_operand.vmem [shape: bf16[3136,512], index: 1, kind: input, shape index: {}]   ;;  %s11224_s2 = inlined_call_operand.vmem [shape: f32[1,512], index: 2, kind: input, shape index: {}]   ;;  %s11225_s3 = inlined_call_operand.vmem [shape: bf16[512,128], index: 3, kind: input, shape index: {}]   ;;  %s11226_s4 = inlined_call_operand.vmem [shape: f32[1,128], index: 4, kind: input, shape index: {}]   ;;  %s11227_s5 = inlined_call_operand.hbm [shape: f32[2,128], index: 5, kind: output, shape index: {}]  }
   0x1   :  { %v7244_v0 = vld [vmem:[%s11223_s1 + $0xe4] ss:$16 sps:$4 sm:$0xff]   ;;  %v7248_v2 = vld [vmem:[%s11223_s1 + $0xe0] ss:$16 sps:$4 sm:$0xff]   ;;  %v838_v38 = vunpack.c.l.s4 %v8478_v37 }
   0x2   :  { %v7246_v1 = vld [vmem:[%s11223_s1 + $0x2e4] ss:$16 sps:$4 sm:$0xff]   ;;  %4945 = vmatprep.subr.bf16.mxu0 %v7244_v0  ;;  %v7249_v3 = vld [vmem:[%s11223_s1 + $0x2e0] ss:$16 sps:$4 sm:$0xff]   ;;  %v8628_v42 = vshrl.u32 %v812_v36, 7 }
   0x3   :  { %4986 = vmatprep.subr.bf16.mxu1 %v7246_v1  ;;  %v7250_v4 = vld [vmem:[%s11223_s1 + $0xc4] ss:$16 sps:$4 sm:$0xff]   ;;  %4946 = vmatpush1.bf16.msra.mxu0 %v7248_v2  ;;  %v7254_v6 = vld [vmem:[%s11223_s1 + $0xc0] ss:$16 sps:$4 sm:$0xff]   ;;  %v839_v43 = vunpack.c.0.s8 %v838_v38 }
   0x4   :  { %4987 = vmatpush1.bf16.msra.mxu1 %v7249_v3  ;;  %v7252_v5 = vld [vmem:[%s11223_s1 + $0x2c4] ss:$16 sps:$4 sm:$0xff]   ;;  %4947 = vmatprep.subr.bf16.mxu0 %v7250_v4  ;;  %v7255_v7 = vld [vmem:[%s11223_s1 + $0x2c0] ss:$16 sps:$4 sm:$0xff]  }
   0x5   :  { %4988 = vmatprep.subr.bf16.mxu1 %v7252_v5  ;;  %v7256_v8 = vld [vmem:[%s11223_s1 + $0xa4] ss:$16 sps:$4 sm:$0xff]   ;;  %v7260_v10 = vld [vmem:[%s11223_s1 + $0xa0] ss:$16 sps:$4 sm:$0xff]   ;;  %v8646_v49 = vsub.s32 %v839_v43, %v8628_v42 }
   0x6   :  { %v7258_v9 = vld [vmem:[%s11223_s1 + $0x2a4] ss:$16 sps:$4 sm:$0xff]   ;;  %v7261_v11 = vld [vmem:[%s11223_s1 + $0x2a0] ss:$16 sps:$4 sm:$0xff]  }
   0x7   :  { %4948 = vmatpush1.bf16.msra.mxu0 %v7254_v6  ;;  %v7262_v12 = vld [vmem:[%s11223_s1 + $0x84] ss:$16 sps:$4 sm:$0xff]   ;;  %v7266_v14 = vld [vmem:[%s11223_s1 + $0x80] ss:$16 sps:$4 sm:$0xff]  }
   0x8   :  { %4989 = vmatpush1.bf16.msra.mxu1 %v7255_v7  ;;  %4949 = vmatprep.subr.bf16.mxu0 %v7256_v8  ;;  %v7264_v13 = vld [vmem:[%s11223_s1 + $0x284] ss:$16 sps:$4 sm:$0xff]   ;;  %v7267_v15 = vld [vmem:[%s11223_s1 + $0x280] ss:$16 sps:$4 sm:$0xff]  }
   0x9   :  { %4990 = vmatprep.subr.bf16.mxu1 %v7258_v9  ;;  %v7268_v16 = vld [vmem:[%s11223_s1 + $0x64] ss:$16 sps:$4 sm:$0xff]   ;;  %v7272_v18 = vld [vmem:[%s11223_s1 + $0x60] ss:$16 sps:$4 sm:$0xff]  }
   0xa   :  { %v7270_v17 = vld [vmem:[%s11223_s1 + $0x264] ss:$16 sps:$4 sm:$0xff]   ;;  %v7273_v19 = vld [vmem:[%s11223_s1 + $0x260] ss:$16 sps:$4 sm:$0xff]  }
   0xb   :  { %4950 = vmatpush1.bf16.msra.mxu0 %v7260_v10  ;;  %v7274_v20 = vld [vmem:[%s11223_s1 + $0x44] ss:$16 sps:$4 sm:$0xff]   ;;  %v7278_v22 = vld [vmem:[%s11223_s1 + $0x40] ss:$16 sps:$4 sm:$0xff]  }
   0xc   :  { %4991 = vmatpush1.bf16.msra.mxu1 %v7261_v11  ;;  %4951 = vmatprep.subr.bf16.mxu0 %v7262_v12  ;;  %v7276_v21 = vld [vmem:[%s11223_s1 + $0x244] ss:$16 sps:$4 sm:$0xff]   ;;  %v7279_v23 = vld [vmem:[%s11223_s1 + $0x240] ss:$16 sps:$4 sm:$0xff]  }
   0xd   :  { %4992 = vmatprep.subr.bf16.mxu1 %v7264_v13  ;;  %v7280_v24 = vld [vmem:[%s11223_s1 + $0x24] ss:$16 sps:$4 sm:$0xff]   ;;  %v7284_v26 = vld [vmem:[%s11223_s1 + $0x20] ss:$16 sps:$4 sm:$0xff]  }
   0xe   :  { %v7282_v25 = vld [vmem:[%s11223_s1 + $0x224] ss:$16 sps:$4 sm:$0xff]   ;;  %v7285_v27 = vld [vmem:[%s11223_s1 + $0x220] ss:$16 sps:$4 sm:$0xff]  }
   0xf   :  { %4952 = vmatpush1.bf16.msra.mxu0 %v7266_v14  ;;  %v7286_v28 = vld [vmem:[%s11223_s1 + $0x4] ss:$16 sps:$4 sm:$0xff]   ;;  %v7290_v30 = vld [vmem:[%s11223_s1] ss:$16 sps:$4 sm:$0xff]  }
  0x10   :  { %4993 = vmatpush1.bf16.msra.mxu1 %v7267_v15  ;;  %4953 = vmatprep.subr.bf16.mxu0 %v7268_v16  ;;  %v7288_v29 = vld [vmem:[%s11223_s1 + $0x204] ss:$16 sps:$4 sm:$0xff]   ;;  %v7291_v31 = vld [vmem:[%s11223_s1 + $0x200] ss:$16 sps:$4 sm:$0xff]  }
  0x11   :  { %4994 = vmatprep.subr.bf16.mxu1 %v7270_v17  ;;  %v7292_v32 = vld [vmem:[%s11223_s1 + $0x1e4] ss:$16 sps:$4 sm:$0xff]   ;;  %v7296_v34 = vld [vmem:[%s11223_s1 + $0x1e0] ss:$16 sps:$4 sm:$0xff]  }
  0x12   :  { %v7294_v33 = vld [vmem:[%s11223_s1 + $0x3e4] ss:$16 sps:$4 sm:$0xff]   ;;  %v7297_v35 = vld [vmem:[%s11223_s1 + $0x3e0] ss:$16 sps:$4 sm:$0xff]  }
  0x13   :  { %4954 = vmatpush1.bf16.msra.mxu0 %v7272_v18  ;;  %v7298_v39 = vld [vmem:[%s11223_s1 + $0x1c4] ss:$16 sps:$4 sm:$0xff]   ;;  %v7302_v41 = vld [vmem:[%s11223_s1 + $0x1c0] ss:$16 sps:$4 sm:$0xff]  }
  0x14   :  { %4995 = vmatpush1.bf16.msra.mxu1 %v7273_v19  ;;  %4955 = vmatprep.subr.bf16.mxu0 %v7274_v20  ;;  %v7300_v40 = vld [vmem:[%s11223_s1 + $0x3c4] ss:$16 sps:$4 sm:$0xff]   ;;  %v7303_v44 = vld [vmem:[%s11223_s1 + $0x3c0] ss:$16 sps:$4 sm:$0xff]  }
  0x15   :  { %4996 = vmatprep.subr.bf16.mxu1 %v7276_v21  ;;  %v7304_v45 = vld [vmem:[%s11223_s1 + $0x1a4] ss:$16 sps:$4 sm:$0xff]   ;;  %v7308_v47 = vld [vmem:[%s11223_s1 + $0x1a0] ss:$16 sps:$4 sm:$0xff]  }
  0x16   :  { %v7306_v46 = vld [vmem:[%s11223_s1 + $0x3a4] ss:$16 sps:$4 sm:$0xff]   ;;  %v7309_v48 = vld [vmem:[%s11223_s1 + $0x3a0] ss:$16 sps:$4 sm:$0xff]  }
  0x17   :  { %4956 = vmatpush1.bf16.msra.mxu0 %v7278_v22  ;;  %v7310_v50 = vld [vmem:[%s11223_s1 + $0x184] ss:$16 sps:$4 sm:$0xff]   ;;  %v7314_v53 = vld [vmem:[%s11223_s1 + $0x180] ss:$16 sps:$4 sm:$0xff]  }
  0x18   :  { %4997 = vmatpush1.bf16.msra.mxu1 %v7279_v23  ;;  %4957 = vmatprep.subr.bf16.mxu0 %v7280_v24  ;;  %v7312_v51 = vld [vmem:[%s11223_s1 + $0x384] ss:$16 sps:$4 sm:$0xff]   ;;  %v7315_v55 = vld [vmem:[%s11223_s1 + $0x380] ss:$16 sps:$4 sm:$0xff]  }
  0x19   :  { %4998 = vmatprep.subr.bf16.mxu1 %v7282_v25  ;;  %v22_v52 = vld [vmem:[%s11222_s0] sm:$0xff] }
  0x1a   :  { %v843_v54 = vrot.slane %v22_v52, %v8646_v49  ;;  %v7316_v56 = vld [vmem:[%s11223_s1 + $0x164] ss:$16 sps:$4 sm:$0xff]   ;;  %v7320_v59 = vld [vmem:[%s11223_s1 + $0x160] ss:$16 sps:$4 sm:$0xff]   ;;  %v836_v1 = vcombine.high %v22_v52, %v22_v52 }
  0x1b   :  { %4958 = vmatpush1.bf16.msra.mxu0 %v7284_v26  ;;  %v7318_v57 = vld [vmem:[%s11223_s1 + $0x364] ss:$16 sps:$4 sm:$0xff]   ;;  %v7321_v61 = vld [vmem:[%s11223_s1 + $0x360] ss:$16 sps:$4 sm:$0xff]  }
  0x1c   :  { %4999 = vmatpush1.bf16.msra.mxu1 %v7285_v27  ;;  %4959 = vmatprep.subr.bf16.mxu0 %v7286_v28  ;;  %v851_v58 = vcombine.high %v843_v54, %v843_v54  ;;  %v7322_v62 = vld [vmem:[%s11223_s1 + $0x144] ss:$16 sps:$4 sm:$0xff]   ;;  %v7326_v2 = vld [vmem:[%s11223_s1 + $0x140] ss:$16 sps:$4 sm:$0xff]   ;;  %v8704_v6 = vrot.slane %v836_v1, %v8646_v49  ;;  %v8724_v13 = vrot.slane %v843_v54, %v8646_v49 }
  0x1d   :  { %5000 = vmatprep.subr.bf16.mxu1 %v7288_v29  ;;  %v7324_v63 = vld [vmem:[%s11223_s1 + $0x344] ss:$16 sps:$4 sm:$0xff]   ;;  %v7327_v3 = vld [vmem:[%s11223_s1 + $0x340] ss:$16 sps:$4 sm:$0xff]  }
  0x1e   :  { %v8674_v60 = vrot.slane %v851_v58, %v8646_v49  ;;  %v7328_v4 = vld [vmem:[%s11223_s1 + $0x124] ss:$16 sps:$4 sm:$0xff]   ;;  %v7332_v7 = vld [vmem:[%s11223_s1 + $0x120] ss:$16 sps:$4 sm:$0xff]   ;;  %v852_v11 = vcombine.high %v8704_v6, %v8704_v6  ;;  %v8740_v18 = vcombine.high %v8724_v13, %v8724_v13 }
  0x1f   :  { %4960 = vmatpush1.bf16.msra.mxu0 %v7290_v30  ;;  %v7330_v5 = vld [vmem:[%s11223_s1 + $0x324] ss:$16 sps:$4 sm:$0xff]   ;;  %v7333_v8 = vld [vmem:[%s11223_s1 + $0x320] ss:$16 sps:$4 sm:$0xff]  }
  0x20   :  { %5001 = vmatpush1.bf16.msra.mxu1 %v7291_v31  ;;  %4961 = vmatprep.subr.bf16.mxu0 %v7292_v32  ;;  %v8687_v0 = vcombine.high %v8674_v60, %v8674_v60  ;;  %v7334_v9 = vld [vmem:[%s11223_s1 + $0x104] ss:$16 sps:$4 sm:$0xff]   ;;  %v7338_v12 = vld [vmem:[%s11223_s1 + $0x100] ss:$16 sps:$4 sm:$0xff]   ;;  %v8736_v17 = vrot.slane %v852_v11, %v8646_v49 }
  0x21   :  { %5002 = vmatprep.subr.bf16.mxu1 %v7294_v33  ;;  %4977 = vmatprep.mubr.bf16.mxu0 %v8674_v60  ;;  %v7336_v10 = vld [vmem:[%s11223_s1 + $0x304] ss:$16 sps:$4 sm:$0xff]   ;;  %v7339_v14 = vld [vmem:[%s11223_s1 + $0x300] ss:$16 sps:$4 sm:$0xff]  }
  0x22   :  { %5018 = vmatprep.mubr.bf16.mxu1 %v8687_v0  ;;  %v7342_v15 = vld [vmem:[%s11223_s1 + $0x4e4] ss:$16 sps:$4 sm:$0xff]   ;;  %v7340_v19 = vld [vmem:[%s11223_s1 + $0x4e0] ss:$16 sps:$4 sm:$0xff]   ;;  %v8756_v23 = vcombine.high %v8736_v17, %v8736_v17 }
  0x23   :  { %4962 = vmatpush2.bf16.msra.mxu0 %v7296_v34  ;;  %v7345_v16 = vld [vmem:[%s11223_s1 + $0x6e4] ss:$16 sps:$4 sm:$0xff]   ;;  %v7343_v20 = vld [vmem:[%s11223_s1 + $0x6e0] ss:$16 sps:$4 sm:$0xff]  }
  0x24   :  { %5003 = vmatpush2.bf16.msra.mxu1 %v7297_v35  ;;  %4963 = vmatprep.subr.bf16.mxu0 %v7298_v39  ;;  %v7348_v21 = vld [vmem:[%s11223_s1 + $0x4c4] ss:$16 sps:$4 sm:$0xff]   ;;  %v7346_v24 = vld [vmem:[%s11223_s1 + $0x4c0] ss:$16 sps:$4 sm:$0xff]  }
  0x25   :  { %5004 = vmatprep.subr.bf16.mxu1 %v7300_v40  ;;  %v7351_v22 = vld [vmem:[%s11223_s1 + $0x6c4] ss:$16 sps:$4 sm:$0xff]   ;;  %v7349_v25 = vld [vmem:[%s11223_s1 + $0x6c0] ss:$16 sps:$4 sm:$0xff]  }
  0x26   :  { %v7354_v26 = vld [vmem:[%s11223_s1 + $0x4a4] ss:$16 sps:$4 sm:$0xff]   ;;  %v7352_v28 = vld [vmem:[%s11223_s1 + $0x4a0] ss:$16 sps:$4 sm:$0xff]  }
  0x27   :  { %4964 = vmatpush2.bf16.msra.mxu0 %v7302_v41  ;;  %v7357_v27 = vld [vmem:[%s11223_s1 + $0x6a4] ss:$16 sps:$4 sm:$0xff]   ;;  %v7355_v29 = vld [vmem:[%s11223_s1 + $0x6a0] ss:$16 sps:$4 sm:$0xff]  }
  0x28   :  { %5005 = vmatpush2.bf16.msra.mxu1 %v7303_v44  ;;  %4965 = vmatprep.subr.bf16.mxu0 %v7304_v45  ;;  %v7360_v30 = vld [vmem:[%s11223_s1 + $0x484] ss:$16 sps:$4 sm:$0xff]   ;;  %v7358_v32 = vld [vmem:[%s11223_s1 + $0x480] ss:$16 sps:$4 sm:$0xff]  }
  0x29   :  { %5006 = vmatprep.subr.bf16.mxu1 %v7306_v46  ;;  %v7363_v31 = vld [vmem:[%s11223_s1 + $0x684] ss:$16 sps:$4 sm:$0xff]   ;;  %v7361_v33 = vld [vmem:[%s11223_s1 + $0x680] ss:$16 sps:$4 sm:$0xff]  }
  0x2a   :  { %v7366_v34 = vld [vmem:[%s11223_s1 + $0x464] ss:$16 sps:$4 sm:$0xff]   ;;  %v7364_v36 = vld [vmem:[%s11223_s1 + $0x460] ss:$16 sps:$4 sm:$0xff]  }
  0x2b   :  { %4966 = vmatpush2.bf16.msra.mxu0 %v7308_v47  ;;  %v7369_v35 = vld [vmem:[%s11223_s1 + $0x664] ss:$16 sps:$4 sm:$0xff]   ;;  %v7367_v37 = vld [vmem:[%s11223_s1 + $0x660] ss:$16 sps:$4 sm:$0xff]  }
  0x2c   :  { %5007 = vmatpush2.bf16.msra.mxu1 %v7309_v48  ;;  %4967 = vmatprep.subr.bf16.mxu0 %v7310_v50  ;;  %v7372_v38 = vld [vmem:[%s11223_s1 + $0x444] ss:$16 sps:$4 sm:$0xff]   ;;  %v7370_v40 = vld [vmem:[%s11223_s1 + $0x440] ss:$16 sps:$4 sm:$0xff]  }
  0x2d   :  { %5008 = vmatprep.subr.bf16.mxu1 %v7312_v51  ;;  %v7375_v39 = vld [vmem:[%s11223_s1 + $0x644] ss:$16 sps:$4 sm:$0xff]   ;;  %v7373_v41 = vld [vmem:[%s11223_s1 + $0x640] ss:$16 sps:$4 sm:$0xff]  }
  0x2e   :  { %v7378_v43 = vld [vmem:[%s11223_s1 + $0x424] ss:$16 sps:$4 sm:$0xff]   ;;  %v7376_v45 = vld [vmem:[%s11223_s1 + $0x420] ss:$16 sps:$4 sm:$0xff]  }
  0x2f   :  { %4968 = vmatpush2.bf16.msra.mxu0 %v7314_v53  ;;  %v7381_v44 = vld [vmem:[%s11223_s1 + $0x624] ss:$16 sps:$4 sm:$0xff]   ;;  %v7379_v46 = vld [vmem:[%s11223_s1 + $0x620] ss:$16 sps:$4 sm:$0xff]  }
  0x30   :  { %5009 = vmatpush2.bf16.msra.mxu1 %v7315_v55  ;;  %4969 = vmatprep.subr.bf16.mxu0 %v7316_v56  ;;  %v7384_v47 = vld [vmem:[%s11223_s1 + $0x404] ss:$16 sps:$4 sm:$0xff]   ;;  %v7382_v50 = vld [vmem:[%s11223_s1 + $0x400] ss:$16 sps:$4 sm:$0xff]  }
  0x31   :  { %5010 = vmatprep.subr.bf16.mxu1 %v7318_v57  ;;  %v7387_v48 = vld [vmem:[%s11223_s1 + $0x604] ss:$16 sps:$4 sm:$0xff]   ;;  %v7385_v51 = vld [vmem:[%s11223_s1 + $0x600] ss:$16 sps:$4 sm:$0xff]  }
  0x32   :  { %v7390_v52 = vld [vmem:[%s11223_s1 + $0x5e4] ss:$16 sps:$4 sm:$0xff]   ;;  %v7388_v54 = vld [vmem:[%s11223_s1 + $0x5e0] ss:$16 sps:$4 sm:$0xff]  }
  0x33   :  { %4970 = vmatpush2.bf16.msra.mxu0 %v7320_v59  ;;  %v7393_v53 = vld [vmem:[%s11223_s1 + $0x7e4] ss:$16 sps:$4 sm:$0xff]   ;;  %v7391_v55 = vld [vmem:[%s11223_s1 + $0x7e0] ss:$16 sps:$4 sm:$0xff]  }
  0x34   :  { %5011 = vmatpush2.bf16.msra.mxu1 %v7321_v61  ;;  %4971 = vmatprep.subr.bf16.mxu0 %v7322_v62  ;;  %v7396_v56 = vld [vmem:[%s11223_s1 + $0x5c4] ss:$16 sps:$4 sm:$0xff]   ;;  %v7394_v58 = vld [vmem:[%s11223_s1 + $0x5c0] ss:$16 sps:$4 sm:$0xff]  }
  0x35   :  { %5012 = vmatprep.subr.bf16.mxu1 %v7324_v63  ;;  %v7399_v57 = vld [vmem:[%s11223_s1 + $0x7c4] ss:$16 sps:$4 sm:$0xff]   ;;  %v7397_v59 = vld [vmem:[%s11223_s1 + $0x7c0] ss:$16 sps:$4 sm:$0xff]  }
  0x36   :  { %v7402_v61 = vld [vmem:[%s11223_s1 + $0x5a4] ss:$16 sps:$4 sm:$0xff]   ;;  %v7400_v63 = vld [vmem:[%s11223_s1 + $0x5a0] ss:$16 sps:$4 sm:$0xff]  }
  0x37   :  { %4972 = vmatpush2.bf16.msra.mxu0 %v7326_v2  ;;  %v7405_v62 = vld [vmem:[%s11223_s1 + $0x7a4] ss:$16 sps:$4 sm:$0xff]   ;;  %v7403_v1 = vld [vmem:[%s11223_s1 + $0x7a0] ss:$16 sps:$4 sm:$0xff]  }
  0x38   :  { %5013 = vmatpush2.bf16.msra.mxu1 %v7327_v3  ;;  %4973 = vmatprep.subr.bf16.mxu0 %v7328_v4  ;;  %v7408_v2 = vld [vmem:[%s11223_s1 + $0x584] ss:$16 sps:$4 sm:$0xff]   ;;  %v7406_v4 = vld [vmem:[%s11223_s1 + $0x580] ss:$16 sps:$4 sm:$0xff]  }
  0x39   :  { %5014 = vmatprep.subr.bf16.mxu1 %v7330_v5  ;;  %v7411_v3 = vld [vmem:[%s11223_s1 + $0x784] ss:$16 sps:$4 sm:$0xff]   ;;  %v7409_v5 = vld [vmem:[%s11223_s1 + $0x780] ss:$16 sps:$4 sm:$0xff]  }
  0x3a   :  { %v7420_v11 = vld [vmem:[%s11223_s1 + $0x544] ss:$16 sps:$4 sm:$0xff]  }
  0x3b   :  { %4974 = vmatpush2.bf16.msra.mxu0 %v7332_v7  ;;  %v7414_v7 = vld [vmem:[%s11223_s1 + $0x564] ss:$16 sps:$4 sm:$0xff]  }
  0x3c   :  { %5015 = vmatpush2.bf16.msra.mxu1 %v7333_v8  ;;  %4975 = vmatprep.subr.bf16.mxu0 %v7334_v9  ;;  %v7417_v8 = vld [vmem:[%s11223_s1 + $0x764] ss:$16 sps:$4 sm:$0xff]   ;;  %v7412_v9 = vld [vmem:[%s11223_s1 + $0x560] ss:$16 sps:$4 sm:$0xff]  }
  0x3d   :  { %5016 = vmatprep.subr.bf16.mxu1 %v7336_v10  ;;  %v7415_v10 = vld [vmem:[%s11223_s1 + $0x760] ss:$16 sps:$4 sm:$0xff]  }
  0x3f   :  { %4976 = vmatpush2.bf16.msra.mxu0 %v7338_v12  ;;  %v7423_v12 = vld [vmem:[%s11223_s1 + $0x744] ss:$16 sps:$4 sm:$0xff]  }
  0x40   :  { %5017 = vmatpush2.bf16.msra.mxu1 %v7339_v14  ;;  %5027 = vmatprep.subr.bf16.mxu0 %v7342_v15  ;;  %v7418_v14 = vld [vmem:[%s11223_s1 + $0x540] ss:$16 sps:$4 sm:$0xff]  }
  0x41   :  { %5068 = vmatprep.subr.bf16.mxu1 %v7345_v16  ;;  %v7421_v15 = vld [vmem:[%s11223_s1 + $0x740] ss:$16 sps:$4 sm:$0xff]   ;;  %v7426_v16 = vld [vmem:[%s11223_s1 + $0x524] ss:$16 sps:$4 sm:$0xff]  }
  0x42   :  { %4978 = vmatmul.mubr.bf16.vlgmr.msra.gmra.mxu0 %v8724_v13 }
  0x43   :  { %5019 = vmatmul.mubr.bf16.vlgmr.msra.gmra.mxu1 %v8740_v18  ;;  %5028 = vmatpush1.bf16.msra.mxu0 %v7340_v19  ;;  %v7429_v19 = vld [vmem:[%s11223_s1 + $0x724] ss:$16 sps:$4 sm:$0xff]  }
  0x44   :  { %5069 = vmatpush1.bf16.msra.mxu1 %v7343_v20  ;;  %5029 = vmatprep.subr.bf16.mxu0 %v7348_v21  ;;  %v7424_v20 = vld [vmem:[%s11223_s1 + $0x520] ss:$16 sps:$4 sm:$0xff]  }
  0x45   :  { %5070 = vmatprep.subr.bf16.mxu1 %v7351_v22  ;;  %5059 = vmatprep.mubr.bf16.mxu0 %v8736_v17  ;;  %v7427_v21 = vld [vmem:[%s11223_s1 + $0x720] ss:$16 sps:$4 sm:$0xff]   ;;  %v7432_v22 = vld [vmem:[%s11223_s1 + $0x504] ss:$16 sps:$4 sm:$0xff]  }
  0x46   :  { %5100 = vmatprep.mubr.bf16.mxu1 %v8756_v23 }
  0x47   :  { %5030 = vmatpush1.bf16.msra.mxu0 %v7346_v24  ;;  %v7435_v24 = vld [vmem:[%s11223_s1 + $0x704] ss:$16 sps:$4 sm:$0xff]  }
  0x48   :  { %5071 = vmatpush1.bf16.msra.mxu1 %v7349_v25  ;;  %5031 = vmatprep.subr.bf16.mxu0 %v7354_v26  ;;  %v7430_v25 = vld [vmem:[%s11223_s1 + $0x500] ss:$16 sps:$4 sm:$0xff]   ;;  %v8935_v26 = vrot.slane %v8704_v6, %v8646_v49 }
  0x49   :  { %5072 = vmatprep.subr.bf16.mxu1 %v7357_v27  ;;  %v7433_v27 = vld [vmem:[%s11223_s1 + $0x700] ss:$16 sps:$4 sm:$0xff]  }
  0x4a   :  { %v8948_v6 = vcombine.high %v8935_v26, %v8935_v26 }
  0x4b   :  { %5032 = vmatpush1.bf16.msra.mxu0 %v7352_v28  ;;  %v7439_v28 = vld [vmem:[%s11223_s1 + $0x8e4] ss:$16 sps:$4 sm:$0xff]  }
  0x4c   :  { %5073 = vmatpush1.bf16.msra.mxu1 %v7355_v29  ;;  %5033 = vmatprep.subr.bf16.mxu0 %v7360_v30  ;;  %v7442_v29 = vld [vmem:[%s11223_s1 + $0xae4] ss:$16 sps:$4 sm:$0xff]   ;;  %v7437_v30 = vld [vmem:[%s11223_s1 + $0x8e0] ss:$16 sps:$4 sm:$0xff]  }
  0x4d   :  { %5074 = vmatprep.subr.bf16.mxu1 %v7363_v31  ;;  %v7440_v31 = vld [vmem:[%s11223_s1 + $0xae0] ss:$16 sps:$4 sm:$0xff]  }
  0x4f   :  { %5034 = vmatpush1.bf16.msra.mxu0 %v7358_v32  ;;  %v8959_v32 = vld [vmem:[%s11222_s0 + $0x8] sm:$0xff] }
  0x50   :  { %5075 = vmatpush1.bf16.msra.mxu1 %v7361_v33  ;;  %5035 = vmatprep.subr.bf16.mxu0 %v7366_v34  ;;  %v7445_v33 = vld [vmem:[%s11223_s1 + $0x8c4] ss:$16 sps:$4 sm:$0xff]  }
  0x51   :  { %5076 = vmatprep.subr.bf16.mxu1 %v7369_v35  ;;  %v7448_v34 = vld [vmem:[%s11223_s1 + $0xac4] ss:$16 sps:$4 sm:$0xff]   ;;  %v8969_v35 = vrot.slane %v8959_v32, %v8646_v49 }
  0x53   :  { %5036 = vmatpush1.bf16.msra.mxu0 %v7364_v36  ;;  %v900_v36 = vcombine.high %v8969_v35, %v8969_v35 }
  0x54   :  { %5077 = vmatpush1.bf16.msra.mxu1 %v7367_v37  ;;  %5037 = vmatprep.subr.bf16.mxu0 %v7372_v38  ;;  %v7443_v37 = vld [vmem:[%s11223_s1 + $0x8c0] ss:$16 sps:$4 sm:$0xff]  }
  0x55   :  { %5078 = vmatprep.subr.bf16.mxu1 %v7375_v39  ;;  %v7446_v38 = vld [vmem:[%s11223_s1 + $0xac0] ss:$16 sps:$4 sm:$0xff]   ;;  %v7451_v39 = vld [vmem:[%s11223_s1 + $0x8a4] ss:$16 sps:$4 sm:$0xff]  }
  0x57   :  { %5038 = vmatpush1.bf16.msra.mxu0 %v7370_v40  ;;  %v7454_v40 = vld [vmem:[%s11223_s1 + $0xaa4] ss:$16 sps:$4 sm:$0xff]  }
  0x58   :  { %5079 = vmatpush1.bf16.msra.mxu1 %v7373_v41  ;;  %5039 = vmatprep.subr.bf16.mxu0 %v7378_v43  ;;  %v8988_v41 = vrot.slane %v900_v36, %v8646_v49  ;;  %v7515_v36 = vld [vmem:[%s11223_s1 + $0x940] ss:$16 sps:$4 sm:$0xff]  }
  0x59   :  { %5080 = vmatprep.subr.bf16.mxu1 %v7381_v44  ;;  %v7449_v44 = vld [vmem:[%s11223_s1 + $0x8a0] ss:$16 sps:$4 sm:$0xff]  }
  0x5a   :  { %v8993_v43 = vcombine.high %v8988_v41, %v8988_v41 }
  0x5b   :  { %5040 = vmatpush1.bf16.msra.mxu0 %v7376_v45  ;;  %v7452_v45 = vld [vmem:[%s11223_s1 + $0xaa0] ss:$16 sps:$4 sm:$0xff]  }
  0x5c   :  { %5081 = vmatpush1.bf16.msra.mxu1 %v7379_v46  ;;  %5041 = vmatprep.subr.bf16.mxu0 %v7384_v47  ;;  %v7457_v46 = vld [vmem:[%s11223_s1 + $0x884] ss:$16 sps:$4 sm:$0xff]  }
  0x5d   :  { %5082 = vmatprep.subr.bf16.mxu1 %v7387_v48  ;;  %v7460_v47 = vld [vmem:[%s11223_s1 + $0xa84] ss:$16 sps:$4 sm:$0xff]   ;;  %v7455_v48 = vld [vmem:[%s11223_s1 + $0x880] ss:$16 sps:$4 sm:$0xff]  }
  0x5f   :  { %5042 = vmatpush1.bf16.msra.mxu0 %v7382_v50  ;;  %v7458_v50 = vld [vmem:[%s11223_s1 + $0xa80] ss:$16 sps:$4 sm:$0xff]  }
  0x60   :  { %5083 = vmatpush1.bf16.msra.mxu1 %v7385_v51  ;;  %5043 = vmatprep.subr.bf16.mxu0 %v7390_v52  ;;  %v7463_v51 = vld [vmem:[%s11223_s1 + $0x864] ss:$16 sps:$4 sm:$0xff]  }
  0x61   :  { %5084 = vmatprep.subr.bf16.mxu1 %v7393_v53  ;;  %v7466_v52 = vld [vmem:[%s11223_s1 + $0xa64] ss:$16 sps:$4 sm:$0xff]   ;;  %v7461_v53 = vld [vmem:[%s11223_s1 + $0x860] ss:$16 sps:$4 sm:$0xff]  }
  0x63   :  { %5044 = vmatpush2.bf16.msra.mxu0 %v7388_v54  ;;  %v7464_v54 = vld [vmem:[%s11223_s1 + $0xa60] ss:$16 sps:$4 sm:$0xff]  }
  0x64   :  { %5085 = vmatpush2.bf16.msra.mxu1 %v7391_v55  ;;  %5045 = vmatprep.subr.bf16.mxu0 %v7396_v56  ;;  %v7469_v55 = vld [vmem:[%s11223_s1 + $0x844] ss:$16 sps:$4 sm:$0xff]  }
  0x65   :  { %5086 = vmatprep.subr.bf16.mxu1 %v7399_v57  ;;  %v7472_v56 = vld [vmem:[%s11223_s1 + $0xa44] ss:$16 sps:$4 sm:$0xff]   ;;  %v7467_v57 = vld [vmem:[%s11223_s1 + $0x840] ss:$16 sps:$4 sm:$0xff]  }
  0x67   :  { %5046 = vmatpush2.bf16.msra.mxu0 %v7394_v58  ;;  %v7470_v58 = vld [vmem:[%s11223_s1 + $0xa40] ss:$16 sps:$4 sm:$0xff]  }
  0x68   :  { %5087 = vmatpush2.bf16.msra.mxu1 %v7397_v59  ;;  %5047 = vmatprep.subr.bf16.mxu0 %v7402_v61  ;;  %v7475_v59 = vld [vmem:[%s11223_s1 + $0x824] ss:$16 sps:$4 sm:$0xff]  }
  0x69   :  { %5088 = vmatprep.subr.bf16.mxu1 %v7405_v62  ;;  %v7478_v61 = vld [vmem:[%s11223_s1 + $0xa24] ss:$16 sps:$4 sm:$0xff]   ;;  %v7473_v62 = vld [vmem:[%s11223_s1 + $0x820] ss:$16 sps:$4 sm:$0xff]  }
  0x6b   :  { %5048 = vmatpush2.bf16.msra.mxu0 %v7400_v63  ;;  %v7476_v63 = vld [vmem:[%s11223_s1 + $0xa20] ss:$16 sps:$4 sm:$0xff]  }
  0x6c   :  { %5089 = vmatpush2.bf16.msra.mxu1 %v7403_v1  ;;  %5049 = vmatprep.subr.bf16.mxu0 %v7408_v2  ;;  %v7481_v1 = vld [vmem:[%s11223_s1 + $0x804] ss:$16 sps:$4 sm:$0xff]  }
  0x6d   :  { %5090 = vmatprep.subr.bf16.mxu1 %v7411_v3  ;;  %v7484_v2 = vld [vmem:[%s11223_s1 + $0xa04] ss:$16 sps:$4 sm:$0xff]   ;;  %v7479_v3 = vld [vmem:[%s11223_s1 + $0x800] ss:$16 sps:$4 sm:$0xff]  }
  0x6f   :  { %5050 = vmatpush2.bf16.msra.mxu0 %v7406_v4  ;;  %v7482_v4 = vld [vmem:[%s11223_s1 + $0xa00] ss:$16 sps:$4 sm:$0xff]  }
  0x70   :  { %5091 = vmatpush2.bf16.msra.mxu1 %v7409_v5  ;;  %5051 = vmatprep.subr.bf16.mxu0 %v7414_v7  ;;  %v7487_v5 = vld [vmem:[%s11223_s1 + $0x9e4] ss:$16 sps:$4 sm:$0xff]  }
  0x71   :  { %5092 = vmatprep.subr.bf16.mxu1 %v7417_v8  ;;  %v7490_v7 = vld [vmem:[%s11223_s1 + $0xbe4] ss:$16 sps:$4 sm:$0xff]   ;;  %v7485_v8 = vld [vmem:[%s11223_s1 + $0x9e0] ss:$16 sps:$4 sm:$0xff]  }
  0x73   :  { %5052 = vmatpush2.bf16.msra.mxu0 %v7412_v9  ;;  %v7488_v9 = vld [vmem:[%s11223_s1 + $0xbe0] ss:$16 sps:$4 sm:$0xff]  }
  0x74   :  { %5093 = vmatpush2.bf16.msra.mxu1 %v7415_v10  ;;  %5053 = vmatprep.subr.bf16.mxu0 %v7420_v11  ;;  %v7493_v10 = vld [vmem:[%s11223_s1 + $0x9c4] ss:$16 sps:$4 sm:$0xff]  }
  0x75   :  { %5094 = vmatprep.subr.bf16.mxu1 %v7423_v12  ;;  %v7496_v11 = vld [vmem:[%s11223_s1 + $0xbc4] ss:$16 sps:$4 sm:$0xff]   ;;  %v7491_v12 = vld [vmem:[%s11223_s1 + $0x9c0] ss:$16 sps:$4 sm:$0xff]  }
  0x77   :  { %5054 = vmatpush2.bf16.msra.mxu0 %v7418_v14  ;;  %v7494_v14 = vld [vmem:[%s11223_s1 + $0xbc0] ss:$16 sps:$4 sm:$0xff]  }
  0x78   :  { %5095 = vmatpush2.bf16.msra.mxu1 %v7421_v15  ;;  %5055 = vmatprep.subr.bf16.mxu0 %v7426_v16  ;;  %v7499_v15 = vld [vmem:[%s11223_s1 + $0x9a4] ss:$16 sps:$4 sm:$0xff]  }
  0x79   :  { %5096 = vmatprep.subr.bf16.mxu1 %v7429_v19  ;;  %v7502_v16 = vld [vmem:[%s11223_s1 + $0xba4] ss:$16 sps:$4 sm:$0xff]   ;;  %v7497_v19 = vld [vmem:[%s11223_s1 + $0x9a0] ss:$16 sps:$4 sm:$0xff]  }
  0x7b   :  { %5056 = vmatpush2.bf16.msra.mxu0 %v7424_v20  ;;  %v7500_v20 = vld [vmem:[%s11223_s1 + $0xba0] ss:$16 sps:$4 sm:$0xff]  }
  0x7c   :  { %5097 = vmatpush2.bf16.msra.mxu1 %v7427_v21  ;;  %5057 = vmatprep.subr.bf16.mxu0 %v7432_v22  ;;  %v7505_v21 = vld [vmem:[%s11223_s1 + $0x984] ss:$16 sps:$4 sm:$0xff]  }
  0x7d   :  { %5098 = vmatprep.subr.bf16.mxu1 %v7435_v24  ;;  %v7508_v22 = vld [vmem:[%s11223_s1 + $0xb84] ss:$16 sps:$4 sm:$0xff]   ;;  %v7503_v24 = vld [vmem:[%s11223_s1 + $0x980] ss:$16 sps:$4 sm:$0xff]  }
  0x7f   :  { %5058 = vmatpush2.bf16.msra.mxu0 %v7430_v25  ;;  %v7506_v25 = vld [vmem:[%s11223_s1 + $0xb80] ss:$16 sps:$4 sm:$0xff]  }
  0x80   :  { %5099 = vmatpush2.bf16.msra.mxu1 %v7433_v27  ;;  %5109 = vmatprep.subr.bf16.mxu0 %v7439_v28  ;;  %v7511_v27 = vld [vmem:[%s11223_s1 + $0x964] ss:$16 sps:$4 sm:$0xff]  }
  0x81   :  { %5150 = vmatprep.subr.bf16.mxu1 %v7442_v29  ;;  %v7514_v28 = vld [vmem:[%s11223_s1 + $0xb64] ss:$16 sps:$4 sm:$0xff]   ;;  %v7509_v29 = vld [vmem:[%s11223_s1 + $0x960] ss:$16 sps:$4 sm:$0xff]  }
  0x82   :  { %5060 = vmatmul.mubr.bf16.vlgmr.msra.gmra.mxu0 %v8935_v26 }
  0x83   :  { %5101 = vmatmul.mubr.bf16.vlgmr.msra.gmra.mxu1 %v8948_v6  ;;  %5110 = vmatpush1.bf16.msra.mxu0 %v7437_v30  ;;  %v7512_v30 = vld [vmem:[%s11223_s1 + $0xb60] ss:$16 sps:$4 sm:$0xff]  }
  0x84   :  { %5151 = vmatpush1.bf16.msra.mxu1 %v7440_v31  ;;  %5111 = vmatprep.subr.bf16.mxu0 %v7445_v33  ;;  %v7517_v31 = vld [vmem:[%s11223_s1 + $0x944] ss:$16 sps:$4 sm:$0xff]  }
  0x85   :  { %5152 = vmatprep.subr.bf16.mxu1 %v7448_v34  ;;  %5141 = vmatprep.mubr.bf16.mxu0 %v8988_v41  ;;  %v7520_v33 = vld [vmem:[%s11223_s1 + $0xb44] ss:$16 sps:$4 sm:$0xff]   ;;  %v885_v34 = vcombine.high %v8959_v32, %v8959_v32 }
  0x86   :  { %5182 = vmatprep.mubr.bf16.mxu1 %v8993_v43  ;;  %v7526_v32 = vld [vmem:[%s11223_s1 + $0xb24] ss:$16 sps:$4 sm:$0xff]  }
  0x87   :  { %5112 = vmatpush1.bf16.msra.mxu0 %v7443_v37  ;;  %v7518_v37 = vld [vmem:[%s11223_s1 + $0xb40] ss:$16 sps:$4 sm:$0xff]  }
  0x88   :  { %5153 = vmatpush1.bf16.msra.mxu1 %v7446_v38  ;;  %5113 = vmatprep.subr.bf16.mxu0 %v7451_v39  ;;  %v7523_v38 = vld [vmem:[%s11223_s1 + $0x924] ss:$16 sps:$4 sm:$0xff]   ;;  %v9143_v39 = vrot.slane %v885_v34, %v8646_v49  ;;  %v7584_v34 = vld [vmem:[%s11223_s1 + $0xfe0] ss:$16 sps:$4 sm:$0xff]  }
  0x89   :  { %5154 = vmatprep.subr.bf16.mxu1 %v7454_v40  ;;  %v7521_v40 = vld [vmem:[%s11223_s1 + $0x920] ss:$16 sps:$4 sm:$0xff]  }
  0x8b   :  { %5114 = vmatpush1.bf16.msra.mxu0 %v7449_v44  ;;  %v7524_v44 = vld [vmem:[%s11223_s1 + $0xb20] ss:$16 sps:$4 sm:$0xff]  }
  0x8c   :  { %5155 = vmatpush1.bf16.msra.mxu1 %v7452_v45  ;;  %5115 = vmatprep.subr.bf16.mxu0 %v7457_v46  ;;  %v7529_v45 = vld [vmem:[%s11223_s1 + $0x904] ss:$16 sps:$4 sm:$0xff]  }
  0x8d   :  { %5156 = vmatprep.subr.bf16.mxu1 %v7460_v47  ;;  %v7532_v46 = vld [vmem:[%s11223_s1 + $0xb04] ss:$16 sps:$4 sm:$0xff]   ;;  %v901_v47 = vcombine.high %v9143_v39, %v9143_v39 }
  0x8f   :  { %5116 = vmatpush1.bf16.msra.mxu0 %v7455_v48  ;;  %v7527_v48 = vld [vmem:[%s11223_s1 + $0x900] ss:$16 sps:$4 sm:$0xff]  }
  0x90   :  { %5157 = vmatpush1.bf16.msra.mxu1 %v7458_v50  ;;  %5117 = vmatprep.subr.bf16.mxu0 %v7463_v51  ;;  %v9164_v50 = vrot.slane %v8969_v35, %v8646_v49  ;;  %v7530_v51 = vld [vmem:[%s11223_s1 + $0xb00] ss:$16 sps:$4 sm:$0xff]  }
  0x91   :  { %5158 = vmatprep.subr.bf16.mxu1 %v7466_v52  ;;  %v7535_v52 = vld [vmem:[%s11223_s1 + $0xce4] ss:$16 sps:$4 sm:$0xff]  }
  0x92   :  { %v9180_v35 = vcombine.high %v9164_v50, %v9164_v50 }
  0x93   :  { %5118 = vmatpush1.bf16.msra.mxu0 %v7461_v53  ;;  %v7538_v53 = vld [vmem:[%s11223_s1 + $0xee4] ss:$16 sps:$4 sm:$0xff]  }
  0x94   :  { %5159 = vmatpush1.bf16.msra.mxu1 %v7464_v54  ;;  %5119 = vmatprep.subr.bf16.mxu0 %v7469_v55  ;;  %v9176_v54 = vrot.slane %v901_v47, %v8646_v49  ;;  %v7533_v55 = vld [vmem:[%s11223_s1 + $0xce0] ss:$16 sps:$4 sm:$0xff]   ;;  %v7601_v47 = vld [vmem:[%s11223_s1 + $0xd84] ss:$16 sps:$4 sm:$0xff]  }
  0x95   :  { %5160 = vmatprep.subr.bf16.mxu1 %v7472_v56  ;;  %v7536_v56 = vld [vmem:[%s11223_s1 + $0xee0] ss:$16 sps:$4 sm:$0xff]  }
  0x97   :  { %5120 = vmatpush1.bf16.msra.mxu0 %v7467_v57  ;;  %v7541_v57 = vld [vmem:[%s11223_s1 + $0xcc4] ss:$16 sps:$4 sm:$0xff]  }
  0x98   :  { %5161 = vmatpush1.bf16.msra.mxu1 %v7470_v58  ;;  %5121 = vmatprep.subr.bf16.mxu0 %v7475_v59  ;;  %v7544_v58 = vld [vmem:[%s11223_s1 + $0xec4] ss:$16 sps:$4 sm:$0xff]   ;;  %v9196_v59 = vcombine.high %v9176_v54, %v9176_v54 }
  0x99   :  { %5162 = vmatprep.subr.bf16.mxu1 %v7478_v61  ;;  %v7539_v61 = vld [vmem:[%s11223_s1 + $0xcc0] ss:$16 sps:$4 sm:$0xff]  }
  0x9b   :  { %5122 = vmatpush1.bf16.msra.mxu0 %v7473_v62  ;;  %v7542_v62 = vld [vmem:[%s11223_s1 + $0xec0] ss:$16 sps:$4 sm:$0xff]  }
  0x9c   :  { %5163 = vmatpush1.bf16.msra.mxu1 %v7476_v63  ;;  %5123 = vmatprep.subr.bf16.mxu0 %v7481_v1  ;;  %v7547_v63 = vld [vmem:[%s11223_s1 + $0xca4] ss:$16 sps:$4 sm:$0xff]  }
  0x9d   :  { %5164 = vmatprep.subr.bf16.mxu1 %v7484_v2  ;;  %v7550_v1 = vld [vmem:[%s11223_s1 + $0xea4] ss:$16 sps:$4 sm:$0xff]   ;;  %v7545_v2 = vld [vmem:[%s11223_s1 + $0xca0] ss:$16 sps:$4 sm:$0xff]  }
  0x9f   :  { %5124 = vmatpush1.bf16.msra.mxu0 %v7479_v3  ;;  %v7548_v3 = vld [vmem:[%s11223_s1 + $0xea0] ss:$16 sps:$4 sm:$0xff]  }
  0xa0   :  { %5165 = vmatpush1.bf16.msra.mxu1 %v7482_v4  ;;  %5125 = vmatprep.subr.bf16.mxu0 %v7487_v5  ;;  %v7553_v4 = vld [vmem:[%s11223_s1 + $0xc84] ss:$16 sps:$4 sm:$0xff]  }
  0xa1   :  { %5166 = vmatprep.subr.bf16.mxu1 %v7490_v7  ;;  %v7556_v5 = vld [vmem:[%s11223_s1 + $0xe84] ss:$16 sps:$4 sm:$0xff]   ;;  %v7551_v7 = vld [vmem:[%s11223_s1 + $0xc80] ss:$16 sps:$4 sm:$0xff]  }
  0xa3   :  { %5126 = vmatpush2.bf16.msra.mxu0 %v7485_v8  ;;  %v7554_v8 = vld [vmem:[%s11223_s1 + $0xe80] ss:$16 sps:$4 sm:$0xff]  }
  0xa4   :  { %5167 = vmatpush2.bf16.msra.mxu1 %v7488_v9  ;;  %5127 = vmatprep.subr.bf16.mxu0 %v7493_v10  ;;  %v7559_v9 = vld [vmem:[%s11223_s1 + $0xc64] ss:$16 sps:$4 sm:$0xff]  }
  0xa5   :  { %5168 = vmatprep.subr.bf16.mxu1 %v7496_v11  ;;  %v7562_v10 = vld [vmem:[%s11223_s1 + $0xe64] ss:$16 sps:$4 sm:$0xff]   ;;  %v7557_v11 = vld [vmem:[%s11223_s1 + $0xc60] ss:$16 sps:$4 sm:$0xff]  }
  0xa7   :  { %5128 = vmatpush2.bf16.msra.mxu0 %v7491_v12  ;;  %v7560_v12 = vld [vmem:[%s11223_s1 + $0xe60] ss:$16 sps:$4 sm:$0xff]  }
  0xa8   :  { %5169 = vmatpush2.bf16.msra.mxu1 %v7494_v14  ;;  %5129 = vmatprep.subr.bf16.mxu0 %v7499_v15  ;;  %v7565_v14 = vld [vmem:[%s11223_s1 + $0xc44] ss:$16 sps:$4 sm:$0xff]  }
  0xa9   :  { %5170 = vmatprep.subr.bf16.mxu1 %v7502_v16  ;;  %v7568_v15 = vld [vmem:[%s11223_s1 + $0xe44] ss:$16 sps:$4 sm:$0xff]   ;;  %v7563_v16 = vld [vmem:[%s11223_s1 + $0xc40] ss:$16 sps:$4 sm:$0xff]  }
  0xab   :  { %5130 = vmatpush2.bf16.msra.mxu0 %v7497_v19  ;;  %v7566_v19 = vld [vmem:[%s11223_s1 + $0xe40] ss:$16 sps:$4 sm:$0xff]  }
  0xac   :  { %5171 = vmatpush2.bf16.msra.mxu1 %v7500_v20  ;;  %5131 = vmatprep.subr.bf16.mxu0 %v7505_v21  ;;  %v7571_v20 = vld [vmem:[%s11223_s1 + $0xc24] ss:$16 sps:$4 sm:$0xff]  }
  0xad   :  { %5172 = vmatprep.subr.bf16.mxu1 %v7508_v22  ;;  %v7574_v21 = vld [vmem:[%s11223_s1 + $0xe24] ss:$16 sps:$4 sm:$0xff]   ;;  %v7569_v22 = vld [vmem:[%s11223_s1 + $0xc20] ss:$16 sps:$4 sm:$0xff]  }
  0xaf   :  { %5132 = vmatpush2.bf16.msra.mxu0 %v7503_v24  ;;  %v7572_v24 = vld [vmem:[%s11223_s1 + $0xe20] ss:$16 sps:$4 sm:$0xff]  }
  0xb0   :  { %5173 = vmatpush2.bf16.msra.mxu1 %v7506_v25  ;;  %5133 = vmatprep.subr.bf16.mxu0 %v7511_v27  ;;  %v7577_v25 = vld [vmem:[%s11223_s1 + $0xc04] ss:$16 sps:$4 sm:$0xff]  }
  0xb1   :  { %5174 = vmatprep.subr.bf16.mxu1 %v7514_v28  ;;  %v7580_v27 = vld [vmem:[%s11223_s1 + $0xe04] ss:$16 sps:$4 sm:$0xff]   ;;  %v7575_v28 = vld [vmem:[%s11223_s1 + $0xc00] ss:$16 sps:$4 sm:$0xff]  }
  0xb3   :  { %5134 = vmatpush2.bf16.msra.mxu0 %v7509_v29  ;;  %v7578_v29 = vld [vmem:[%s11223_s1 + $0xe00] ss:$16 sps:$4 sm:$0xff]  }
  0xb4   :  { %5175 = vmatpush2.bf16.msra.mxu1 %v7512_v30  ;;  %5135 = vmatprep.subr.bf16.mxu0 %v7517_v31  ;;  %v7583_v30 = vld [vmem:[%s11223_s1 + $0xde4] ss:$16 sps:$4 sm:$0xff]  }
  0xb5   :  { %5176 = vmatprep.subr.bf16.mxu1 %v7520_v33  ;;  %v7586_v31 = vld [vmem:[%s11223_s1 + $0xfe4] ss:$16 sps:$4 sm:$0xff]   ;;  %v7581_v33 = vld [vmem:[%s11223_s1 + $0xde0] ss:$16 sps:$4 sm:$0xff]  }
  0xb7   :  { %5136 = vmatpush2.bf16.msra.mxu0 %v7515_v36  ;;  %v7589_v36 = vld [vmem:[%s11223_s1 + $0xdc4] ss:$16 sps:$4 sm:$0xff]  }
  0xb8   :  { %5177 = vmatpush2.bf16.msra.mxu1 %v7518_v37  ;;  %5137 = vmatprep.subr.bf16.mxu0 %v7523_v38  ;;  %v7592_v37 = vld [vmem:[%s11223_s1 + $0xfc4] ss:$16 sps:$4 sm:$0xff]   ;;  %v7587_v38 = vld [vmem:[%s11223_s1 + $0xdc0] ss:$16 sps:$4 sm:$0xff]  }
  0xb9   :  { %5178 = vmatprep.subr.bf16.mxu1 %v7526_v32  ;;  %v7590_v32 = vld [vmem:[%s11223_s1 + $0xfc0] ss:$16 sps:$4 sm:$0xff]  }
  0xbb   :  { %5138 = vmatpush2.bf16.msra.mxu0 %v7521_v40  ;;  %v7595_v40 = vld [vmem:[%s11223_s1 + $0xda4] ss:$16 sps:$4 sm:$0xff]  }
  0xbc   :  { %5179 = vmatpush2.bf16.msra.mxu1 %v7524_v44  ;;  %5139 = vmatprep.subr.bf16.mxu0 %v7529_v45  ;;  %v7598_v44 = vld [vmem:[%s11223_s1 + $0xfa4] ss:$16 sps:$4 sm:$0xff]   ;;  %v7593_v45 = vld [vmem:[%s11223_s1 + $0xda0] ss:$16 sps:$4 sm:$0xff]  }
  0xbd   :  { %5180 = vmatprep.subr.bf16.mxu1 %v7532_v46  ;;  %v7596_v46 = vld [vmem:[%s11223_s1 + $0xfa0] ss:$16 sps:$4 sm:$0xff]  }
  0xbf   :  { %5140 = vmatpush2.bf16.msra.mxu0 %v7527_v48  ;;  %v7604_v48 = vld [vmem:[%s11223_s1 + $0xf84] ss:$16 sps:$4 sm:$0xff]  }
  0xc0   :  { %5181 = vmatpush2.bf16.msra.mxu1 %v7530_v51  ;;  %5191 = vmatprep.subr.bf16.mxu0 %v7535_v52  ;;  %v7599_v51 = vld [vmem:[%s11223_s1 + $0xd80] ss:$16 sps:$4 sm:$0xff]  }
  0xc1   :  { %5232 = vmatprep.subr.bf16.mxu1 %v7538_v53  ;;  %v7602_v52 = vld [vmem:[%s11223_s1 + $0xf80] ss:$16 sps:$4 sm:$0xff]   ;;  %v7607_v53 = vld [vmem:[%s11223_s1 + $0xd64] ss:$16 sps:$4 sm:$0xff]  }
  0xc2   :  { %5142 = vmatmul.mubr.bf16.vlgmr.msra.gmra.mxu0 %v9164_v50 }
  0xc3   :  { %5183 = vmatmul.mubr.bf16.vlgmr.msra.gmra.mxu1 %v9180_v35  ;;  %5192 = vmatpush1.bf16.msra.mxu0 %v7533_v55  ;;  %v7610_v55 = vld [vmem:[%s11223_s1 + $0xf64] ss:$16 sps:$4 sm:$0xff]  }
  0xc4   :  { %5233 = vmatpush1.bf16.msra.mxu1 %v7536_v56  ;;  %5193 = vmatprep.subr.bf16.mxu0 %v7541_v57  ;;  %v7605_v56 = vld [vmem:[%s11223_s1 + $0xd60] ss:$16 sps:$4 sm:$0xff]  }
  0xc5   :  { %5234 = vmatprep.subr.bf16.mxu1 %v7544_v58  ;;  %5223 = vmatprep.mubr.bf16.mxu0 %v9176_v54  ;;  %v7608_v57 = vld [vmem:[%s11223_s1 + $0xf60] ss:$16 sps:$4 sm:$0xff]   ;;  %v7613_v58 = vld [vmem:[%s11223_s1 + $0xd44] ss:$16 sps:$4 sm:$0xff]  }
  0xc6   :  { %5264 = vmatprep.mubr.bf16.mxu1 %v9196_v59 }
  0xc7   :  { %5194 = vmatpush1.bf16.msra.mxu0 %v7539_v61  ;;  %v7616_v61 = vld [vmem:[%s11223_s1 + $0xf44] ss:$16 sps:$4 sm:$0xff]  }
  0xc8   :  { %5235 = vmatpush1.bf16.msra.mxu1 %v7542_v62  ;;  %5195 = vmatprep.subr.bf16.mxu0 %v7547_v63  ;;  %v7611_v62 = vld [vmem:[%s11223_s1 + $0xd40] ss:$16 sps:$4 sm:$0xff]  }
  0xc9   :  { %5236 = vmatprep.subr.bf16.mxu1 %v7550_v1  ;;  %v7614_v63 = vld [vmem:[%s11223_s1 + $0xf40] ss:$16 sps:$4 sm:$0xff]  }
  0xca   :  { %v9355_v1 = vld [vmem:[%s11222_s0 + $0x10] sm:$0xff] }
  0xcb   :  { %5196 = vmatpush1.bf16.msra.mxu0 %v7545_v2  ;;  %v7619_v2 = vld [vmem:[%s11223_s1 + $0xd24] ss:$16 sps:$4 sm:$0xff]  }
  0xcc   :  { %5237 = vmatpush1.bf16.msra.mxu1 %v7548_v3  ;;  %5197 = vmatprep.subr.bf16.mxu0 %v7553_v4  ;;  %v7622_v3 = vld [vmem:[%s11223_s1 + $0xf24] ss:$16 sps:$4 sm:$0xff]   ;;  %v9365_v4 = vrot.slane %v9355_v1, %v8646_v49 }
  0xcd   :  { %5238 = vmatprep.subr.bf16.mxu1 %v7556_v5  ;;  %v7617_v5 = vld [vmem:[%s11223_s1 + $0xd20] ss:$16 sps:$4 sm:$0xff]  }
  0xcf   :  { %5198 = vmatpush1.bf16.msra.mxu0 %v7551_v7  ;;  %v7620_v7 = vld [vmem:[%s11223_s1 + $0xf20] ss:$16 sps:$4 sm:$0xff]  }
  0xd0   :  { %5239 = vmatpush1.bf16.msra.mxu1 %v7554_v8  ;;  %5199 = vmatprep.subr.bf16.mxu0 %v7559_v9  ;;  %v7625_v8 = vld [vmem:[%s11223_s1 + $0xd04] ss:$16 sps:$4 sm:$0xff]  }
  0xd1   :  { %5240 = vmatprep.subr.bf16.mxu1 %v7562_v10  ;;  %v7628_v9 = vld [vmem:[%s11223_s1 + $0xf04] ss:$16 sps:$4 sm:$0xff]   ;;  %v7623_v10 = vld [vmem:[%s11223_s1 + $0xd00] ss:$16 sps:$4 sm:$0xff]  }
  0xd3   :  { %5200 = vmatpush1.bf16.msra.mxu0 %v7557_v11  ;;  %v949_v11 = vcombine.high %v9365_v4, %v9365_v4 }
  0xd4   :  { %5241 = vmatpush1.bf16.msra.mxu1 %v7560_v12  ;;  %5201 = vmatprep.subr.bf16.mxu0 %v7565_v14  ;;  %v7626_v12 = vld [vmem:[%s11223_s1 + $0xf00] ss:$16 sps:$4 sm:$0xff]  }
  0xd5   :  { %5242 = vmatprep.subr.bf16.mxu1 %v7568_v15  ;;  %v810_v14 = vld [vmem:[%s11224_s2] sm:$0xf]  ;;  %v9392_v15 = vrot.slane %v9143_v39, %v8646_v49 }
  0xd7   :  { %5202 = vmatpush1.bf16.msra.mxu0 %v7563_v16  ;;  %v814_v16 = vsub.s32 0, %v8628_v42  ;;  %v9407_v39 = vcombine.high %v9392_v15, %v9392_v15 }
  0xd8   :  { %5243 = vmatpush1.bf16.msra.mxu1 %v7566_v19  ;;  %5203 = vmatprep.subr.bf16.mxu0 %v7571_v20  ;;  %v7632_v19 = vld [vmem:[%s11223_s1 + $0x10e4] ss:$16 sps:$4 sm:$0xff]  }
  0xd9   :  { %5244 = vmatprep.subr.bf16.mxu1 %v7574_v21  ;;  %v7635_v20 = vld [vmem:[%s11223_s1 + $0x12e4] ss:$16 sps:$4 sm:$0xff]   ;;  %v818_v21 = vsub.s32 1, %v8628_v42 }
  0xdb   :  { %5204 = vmatpush1.bf16.msra.mxu0 %v7569_v22  ;;  %v9403_v22 = vrot.slane %v949_v11, %v8646_v49  ;;  %v7663_v11 = vld [vmem:[%s11223_s1 + $0x1240] ss:$16 sps:$4 sm:$0xff]  }
  0xdc   :  { %5245 = vmatpush1.bf16.msra.mxu1 %v7572_v24  ;;  %5205 = vmatprep.subr.bf16.mxu0 %v7577_v25  ;;  %v7630_v24 = vld [vmem:[%s11223_s1 + $0x10e0] ss:$16 sps:$4 sm:$0xff]  }
  0xdd   :  { %5246 = vmatprep.subr.bf16.mxu1 %v7580_v27  ;;  %v7633_v25 = vld [vmem:[%s11223_s1 + $0x12e0] ss:$16 sps:$4 sm:$0xff]   ;;  %v815_v27 = vrot.slane %v810_v14, %v814_v16 }
  0xde   :  { %v7666_v16 = vld [vmem:[%s11223_s1 + $0x1020] ss:$16 sps:$4 sm:$0xff]  }
  0xdf   :  { %5206 = vmatpush1.bf16.msra.mxu0 %v7575_v28  ;;  %v7638_v28 = vld [vmem:[%s11223_s1 + $0x10c4] ss:$16 sps:$4 sm:$0xff]  }
  0xe0   :  { %5247 = vmatpush1.bf16.msra.mxu1 %v7578_v29  ;;  %5207 = vmatprep.subr.bf16.mxu0 %v7583_v30  ;;  %v7641_v29 = vld [vmem:[%s11223_s1 + $0x12c4] ss:$16 sps:$4 sm:$0xff]   ;;  %v819_v30 = vrot.slane %v810_v14, %v818_v21 }
  0xe1   :  { %5248 = vmatprep.subr.bf16.mxu1 %v7586_v31  ;;  %v9423_v31 = vcombine.high %v9403_v22, %v9403_v22  ;;  %v7671_v14 = vld [vmem:[%s11223_s1 + $0x1224] ss:$16 sps:$4 sm:$0xff]  }
  0xe2   :  { %v7677_v21 = vld [vmem:[%s11223_s1 + $0x1204] ss:$16 sps:$4 sm:$0xff]  }
  0xe3   :  { %5208 = vmatpush2.bf16.msra.mxu0 %v7581_v33 }
  0xe4   :  { %5249 = vmatpush2.bf16.msra.mxu1 %v7584_v34  ;;  %5209 = vmatprep.subr.bf16.mxu0 %v7589_v36  ;;  %v7636_v36 = vld [vmem:[%s11223_s1 + $0x10c0] ss:$16 sps:$4 sm:$0xff]  }
  0xe5   :  { %5250 = vmatprep.subr.bf16.mxu1 %v7592_v37  ;;  %v7639_v37 = vld [vmem:[%s11223_s1 + $0x12c0] ss:$16 sps:$4 sm:$0xff]  }
  0xe7   :  { %5210 = vmatpush2.bf16.msra.mxu0 %v7587_v38 }
  0xe8   :  { %5251 = vmatpush2.bf16.msra.mxu1 %v7590_v32  ;;  %5211 = vmatprep.subr.bf16.mxu0 %v7595_v40 }
  0xe9   :  { %5252 = vmatprep.subr.bf16.mxu1 %v7598_v44  ;;  %v7644_v44 = vld [vmem:[%s11223_s1 + $0x10a4] ss:$16 sps:$4 sm:$0xff]  }
  0xeb   :  { %5212 = vmatpush2.bf16.msra.mxu0 %v7593_v45  ;;  %v7647_v45 = vld [vmem:[%s11223_s1 + $0x12a4] ss:$16 sps:$4 sm:$0xff]  }
  0xec   :  { %5253 = vmatpush2.bf16.msra.mxu1 %v7596_v46  ;;  %5213 = vmatprep.subr.bf16.mxu0 %v7601_v47 }
  0xed   :  { %5254 = vmatprep.subr.bf16.mxu1 %v7604_v48  ;;  %v7642_v48 = vld [vmem:[%s11223_s1 + $0x10a0] ss:$16 sps:$4 sm:$0xff]  }
  0xef   :  { %5214 = vmatpush2.bf16.msra.mxu0 %v7599_v51  ;;  %v7645_v51 = vld [vmem:[%s11223_s1 + $0x12a0] ss:$16 sps:$4 sm:$0xff]  }
  0xf0   :  { %5255 = vmatpush2.bf16.msra.mxu1 %v7602_v52  ;;  %5215 = vmatprep.subr.bf16.mxu0 %v7607_v53 }
  0xf1   :  { %5256 = vmatprep.subr.bf16.mxu1 %v7610_v55 }
  0xf3   :  { %5216 = vmatpush2.bf16.msra.mxu0 %v7605_v56 }
  0xf4   :  { %5257 = vmatpush2.bf16.msra.mxu1 %v7608_v57  ;;  %5217 = vmatprep.subr.bf16.mxu0 %v7613_v58  ;;  %v7650_v58 = vld [vmem:[%s11223_s1 + $0x1084] ss:$16 sps:$4 sm:$0xff]  }
  0xf5   :  { %5258 = vmatprep.subr.bf16.mxu1 %v7616_v61  ;;  %v7653_v61 = vld [vmem:[%s11223_s1 + $0x1284] ss:$16 sps:$4 sm:$0xff]  }
  0xf7   :  { %5218 = vmatpush2.bf16.msra.mxu0 %v7611_v62  ;;  %v7648_v62 = vld [vmem:[%s11223_s1 + $0x1080] ss:$16 sps:$4 sm:$0xff]  }
  0xf8   :  { %5259 = vmatpush2.bf16.msra.mxu1 %v7614_v63  ;;  %5219 = vmatprep.subr.bf16.mxu0 %v7619_v2  ;;  %v7651_v63 = vld [vmem:[%s11223_s1 + $0x1280] ss:$16 sps:$4 sm:$0xff]   ;;  %v7656_v2 = vld [vmem:[%s11223_s1 + $0x1064] ss:$16 sps:$4 sm:$0xff]  }
  0xf9   :  { %5260 = vmatprep.subr.bf16.mxu1 %v7622_v3  ;;  %v7659_v3 = vld [vmem:[%s11223_s1 + $0x1264] ss:$16 sps:$4 sm:$0xff]  }
  0xfb   :  { %5220 = vmatpush2.bf16.msra.mxu0 %v7617_v5  ;;  %v7654_v5 = vld [vmem:[%s11223_s1 + $0x1060] ss:$16 sps:$4 sm:$0xff]  }
  0xfc   :  { %5261 = vmatpush2.bf16.msra.mxu1 %v7620_v7  ;;  %5221 = vmatprep.subr.bf16.mxu0 %v7625_v8  ;;  %v7657_v7 = vld [vmem:[%s11223_s1 + $0x1260] ss:$16 sps:$4 sm:$0xff]   ;;  %v7662_v8 = vld [vmem:[%s11223_s1 + $0x1044] ss:$16 sps:$4 sm:$0xff]  }
  0xfd   :  { %5262 = vmatprep.subr.bf16.mxu1 %v7628_v9  ;;  %v7665_v9 = vld [vmem:[%s11223_s1 + $0x1244] ss:$16 sps:$4 sm:$0xff]  }
  0xff   :  { %5222 = vmatpush2.bf16.msra.mxu0 %v7623_v10  ;;  %v7660_v10 = vld [vmem:[%s11223_s1 + $0x1040] ss:$16 sps:$4 sm:$0xff]  }
 0x100   :  { %5263 = vmatpush2.bf16.msra.mxu1 %v7626_v12  ;;  %5273 = vmatprep.subr.bf16.mxu0 %v7632_v19  ;;  %v7668_v12 = vld [vmem:[%s11223_s1 + $0x1024] ss:$16 sps:$4 sm:$0xff]   ;;  %v7669_v19 = vld [vmem:[%s11223_s1 + $0x1220] ss:$16 sps:$4 sm:$0xff]  }
 0x101   :  { %5314 = vmatprep.subr.bf16.mxu1 %v7635_v20  ;;  %v7674_v20 = vld [vmem:[%s11223_s1 + $0x1004] ss:$16 sps:$4 sm:$0xff]  }
 0x102   :  { %v4979_v33 = vpop.f32.mrf.mxu0  ;;  %5224 = vmatmul.mubr.bf16.vlgmr.msra.gmra.mxu0 %v9392_v15 }
 0x103   :  { %v5020_v34 = vpop.f32.mrf.mxu1  ;;  %5265 = vmatmul.mubr.bf16.vlgmr.msra.gmra.mxu1 %v9407_v39  ;;  %v4980_v38 = vadd.f32 %v4979_v33, %v815_v27  ;;  %5274 = vmatpush1.bf16.msra.mxu0 %v7630_v24  ;;  %v7672_v24 = vld [vmem:[%s11223_s1 + $0x1000] ss:$16 sps:$4 sm:$0xff]   ;;  %v7680_v27 = vld [vmem:[%s11223_s1 + $0x11e4] ss:$16 sps:$4 sm:$0xff]  }
 0x104   :  { %5315 = vmatpush1.bf16.msra.mxu1 %v7633_v25  ;;  %v4981_v32 = vpop.f32.mrf.mxu0  ;;  %5275 = vmatprep.subr.bf16.mxu0 %v7638_v28  ;;  %v7675_v25 = vld [vmem:[%s11223_s1 + $0x1200] ss:$16 sps:$4 sm:$0xff]   ;;  %v7683_v28 = vld [vmem:[%s11223_s1 + $0x13e4] ss:$16 sps:$4 sm:$0xff]  }
 0x105   :  { %v5022_v40 = vpop.f32.mrf.mxu1  ;;  %5316 = vmatprep.subr.bf16.mxu1 %v7641_v29  ;;  %v9439_v46 = vadd.f32 %v5020_v34, %v4980_v38  ;;  %v4982_v47 = vadd.f32 %v4981_v32, %v819_v30  ;;  %5305 = vmatprep.mubr.bf16.mxu0 %v9403_v22  ;;  %v7678_v29 = vld [vmem:[%s11223_s1 + $0x11e0] ss:$16 sps:$4 sm:$0xff]   ;;  %v7686_v33 = vld [vmem:[%s11223_s1 + $0x11c4] ss:$16 sps:$4 sm:$0xff]  }
 0x106   :  { %5346 = vmatprep.mubr.bf16.mxu1 %v9423_v31  ;;  %v4983_v52 = vpop.f32.mrf.mxu0  ;;  %v7681_v30 = vld [vmem:[%s11223_s1 + $0x13e0] ss:$16 sps:$4 sm:$0xff]   ;;  %v7689_v34 = vld [vmem:[%s11223_s1 + $0x13c4] ss:$16 sps:$4 sm:$0xff]  }
 0x107   :  { %v5024_v53 = vpop.f32.mrf.mxu1  ;;  %v9449_v55 = vadd.f32 %v5022_v40, %v4982_v47  ;;  %5276 = vmatpush1.bf16.msra.mxu0 %v7636_v36  ;;  %v7684_v36 = vld [vmem:[%s11223_s1 + $0x11c0] ss:$16 sps:$4 sm:$0xff]   ;;  %v7692_v38 = vld [vmem:[%s11223_s1 + $0x11a4] ss:$16 sps:$4 sm:$0xff]  }
 0x108   :  { %5317 = vmatpush1.bf16.msra.mxu1 %v7639_v37  ;;  %v4984_v56 = vpop.f32.mrf.mxu0  ;;  %5277 = vmatprep.subr.bf16.mxu0 %v7644_v44  ;;  %v7687_v37 = vld [vmem:[%s11223_s1 + $0x13c0] ss:$16 sps:$4 sm:$0xff]   ;;  %v7695_v32 = vld [vmem:[%s11223_s1 + $0x13a4] ss:$16 sps:$4 sm:$0xff]  }
 0x109   :  { %v5025_v57 = vpop.f32.mrf.mxu1  ;;  %5318 = vmatprep.subr.bf16.mxu1 %v7647_v45  ;;  %v7690_v40 = vld [vmem:[%s11223_s1 + $0x11a0] ss:$16 sps:$4 sm:$0xff]   ;;  %v7698_v45 = vld [vmem:[%s11223_s1 + $0x1184] ss:$16 sps:$4 sm:$0xff]  }
 0x10a   :  { %v7693_v44 = vld [vmem:[%s11223_s1 + $0x13a0] ss:$16 sps:$4 sm:$0xff]   ;;  %v7701_v47 = vld [vmem:[%s11223_s1 + $0x1384] ss:$16 sps:$4 sm:$0xff]  }
 0x10b   :  { %5278 = vmatpush1.bf16.msra.mxu0 %v7642_v48  ;;  %v7696_v48 = vld [vmem:[%s11223_s1 + $0x1180] ss:$16 sps:$4 sm:$0xff]   ;;  %v7704_v52 = vld [vmem:[%s11223_s1 + $0x1164] ss:$16 sps:$4 sm:$0xff]  }
 0x10c   :  { %5319 = vmatpush1.bf16.msra.mxu1 %v7645_v51  ;;  %5279 = vmatprep.subr.bf16.mxu0 %v7650_v58  ;;  %v7699_v51 = vld [vmem:[%s11223_s1 + $0x1380] ss:$16 sps:$4 sm:$0xff]   ;;  %v7707_v53 = vld [vmem:[%s11223_s1 + $0x1364] ss:$16 sps:$4 sm:$0xff]  }
 0x10d   :  { %5320 = vmatprep.subr.bf16.mxu1 %v7653_v61  ;;  %v7702_v56 = vld [vmem:[%s11223_s1 + $0x1160] ss:$16 sps:$4 sm:$0xff]   ;;  %v7710_v58 = vld [vmem:[%s11223_s1 + $0x1144] ss:$16 sps:$4 sm:$0xff]  }
 0x10e   :  { %v7705_v57 = vld [vmem:[%s11223_s1 + $0x1360] ss:$16 sps:$4 sm:$0xff]   ;;  %v7713_v61 = vld [vmem:[%s11223_s1 + $0x1344] ss:$16 sps:$4 sm:$0xff]  }
 0x10f   :  { %5280 = vmatpush1.bf16.msra.mxu0 %v7648_v62  ;;  %v934_v62 = vcombine.high %v9355_v1, %v9355_v1  ;;  %v7719_v1 = vld [vmem:[%s11223_s1 + $0x1324] ss:$16 sps:$4 sm:$0xff]  }
 0x110   :  { %5321 = vmatpush1.bf16.msra.mxu1 %v7651_v63  ;;  %5281 = vmatprep.subr.bf16.mxu0 %v7656_v2  ;;  %v7708_v63 = vld [vmem:[%s11223_s1 + $0x1140] ss:$16 sps:$4 sm:$0xff]  }
 0x111   :  { %5322 = vmatprep.subr.bf16.mxu1 %v7659_v3  ;;  %v7711_v2 = vld [vmem:[%s11223_s1 + $0x1340] ss:$16 sps:$4 sm:$0xff]   ;;  %v7716_v3 = vld [vmem:[%s11223_s1 + $0x1124] ss:$16 sps:$4 sm:$0xff]  }
 0x113   :  { %5282 = vmatpush1.bf16.msra.mxu0 %v7654_v5  ;;  %v9592_v5 = vrot.slane %v934_v62, %v8646_v49  ;;  %v7747_v62 = vld [vmem:[%s11223_s1 + $0x1680] ss:$16 sps:$4 sm:$0xff]  }
 0x114   :  { %5323 = vmatpush1.bf16.msra.mxu1 %v7657_v7  ;;  %5283 = vmatprep.subr.bf16.mxu0 %v7662_v8  ;;  %v7714_v7 = vld [vmem:[%s11223_s1 + $0x1120] ss:$16 sps:$4 sm:$0xff]  }
 0x115   :  { %5324 = vmatprep.subr.bf16.mxu1 %v7665_v9  ;;  %v7717_v8 = vld [vmem:[%s11223_s1 + $0x1320] ss:$16 sps:$4 sm:$0xff]   ;;  %v7722_v9 = vld [vmem:[%s11223_s1 + $0x1104] ss:$16 sps:$4 sm:$0xff]  }
 0x117   :  { %5284 = vmatpush1.bf16.msra.mxu0 %v7660_v10  ;;  %v7725_v10 = vld [vmem:[%s11223_s1 + $0x1304] ss:$16 sps:$4 sm:$0xff]  }
 0x118   :  { %5325 = vmatpush1.bf16.msra.mxu1 %v7663_v11  ;;  %5285 = vmatprep.subr.bf16.mxu0 %v7668_v12  ;;  %v950_v11 = vcombine.high %v9592_v5, %v9592_v5  ;;  %v9610_v12 = vrot.slane %v9365_v4, %v8646_v49  ;;  %v7731_v4 = vld [vmem:[%s11223_s1 + $0x16e4] ss:$16 sps:$4 sm:$0xff]  }
 0x119   :  { %5326 = vmatprep.subr.bf16.mxu1 %v7671_v14  ;;  %v7720_v14 = vld [vmem:[%s11223_s1 + $0x1100] ss:$16 sps:$4 sm:$0xff]  }
 0x11b   :  { %5286 = vmatpush1.bf16.msra.mxu0 %v7666_v16  ;;  %v7723_v16 = vld [vmem:[%s11223_s1 + $0x1300] ss:$16 sps:$4 sm:$0xff]  }
 0x11c   :  { %5327 = vmatpush1.bf16.msra.mxu1 %v7669_v19  ;;  %5287 = vmatprep.subr.bf16.mxu0 %v7674_v20  ;;  %v7728_v19 = vld [vmem:[%s11223_s1 + $0x14e4] ss:$16 sps:$4 sm:$0xff]   ;;  %v7726_v20 = vld [vmem:[%s11223_s1 + $0x14e0] ss:$16 sps:$4 sm:$0xff]  }
 0x11d   :  { %5328 = vmatprep.subr.bf16.mxu1 %v7677_v21  ;;  %v7729_v21 = vld [vmem:[%s11223_s1 + $0x16e0] ss:$16 sps:$4 sm:$0xff]  }
 0x11f   :  { %5288 = vmatpush1.bf16.msra.mxu0 %v7672_v24  ;;  %v9631_v24 = vrot.slane %v950_v11, %v8646_v49  ;;  %v7764_v11 = vld [vmem:[%s11223_s1 + $0x1424] ss:$16 sps:$4 sm:$0xff]  }
 0x120   :  { %5329 = vmatpush1.bf16.msra.mxu1 %v7675_v25  ;;  %5289 = vmatprep.subr.bf16.mxu0 %v7680_v27  ;;  %v9635_v25 = vcombine.high %v9610_v12, %v9610_v12  ;;  %v7734_v27 = vld [vmem:[%s11223_s1 + $0x14c4] ss:$16 sps:$4 sm:$0xff]  }
 0x121   :  { %5330 = vmatprep.subr.bf16.mxu1 %v7683_v28  ;;  %v7737_v28 = vld [vmem:[%s11223_s1 + $0x16c4] ss:$16 sps:$4 sm:$0xff]  }
 0x123   :  { %5290 = vmatpush2.bf16.msra.mxu0 %v7678_v29  ;;  %v7732_v29 = vld [vmem:[%s11223_s1 + $0x14c0] ss:$16 sps:$4 sm:$0xff]  }
 0x124   :  { %5331 = vmatpush2.bf16.msra.mxu1 %v7681_v30  ;;  %5291 = vmatprep.subr.bf16.mxu0 %v7686_v33  ;;  %v7735_v30 = vld [vmem:[%s11223_s1 + $0x16c0] ss:$16 sps:$4 sm:$0xff]   ;;  %v9651_v33 = vcombine.high %v9631_v24, %v9631_v24 }
 0x125   :  { %5332 = vmatprep.subr.bf16.mxu1 %v7689_v34 }
 0x127   :  { %5292 = vmatpush2.bf16.msra.mxu0 %v7684_v36 }
 0x128   :  { %5333 = vmatpush2.bf16.msra.mxu1 %v7687_v37  ;;  %5293 = vmatprep.subr.bf16.mxu0 %v7692_v38 }
 0x129   :  { %5334 = vmatprep.subr.bf16.mxu1 %v7695_v32 }
 0x12b   :  { %5294 = vmatpush2.bf16.msra.mxu0 %v7690_v40  ;;  %v7740_v40 = vld [vmem:[%s11223_s1 + $0x14a4] ss:$16 sps:$4 sm:$0xff]  }
 0x12c   :  { %5335 = vmatpush2.bf16.msra.mxu1 %v7693_v44  ;;  %5295 = vmatprep.subr.bf16.mxu0 %v7698_v45  ;;  %v7743_v44 = vld [vmem:[%s11223_s1 + $0x16a4] ss:$16 sps:$4 sm:$0xff]  }
 0x12d   :  { %5336 = vmatprep.subr.bf16.mxu1 %v7701_v47 }
 0x12f   :  { %5296 = vmatpush2.bf16.msra.mxu0 %v7696_v48  ;;  %v7741_v48 = vld [vmem:[%s11223_s1 + $0x16a0] ss:$16 sps:$4 sm:$0xff]  }
 0x130   :  { %5337 = vmatpush2.bf16.msra.mxu1 %v7699_v51  ;;  %5297 = vmatprep.subr.bf16.mxu0 %v7704_v52 }
 0x131   :  { %5338 = vmatprep.subr.bf16.mxu1 %v7707_v53 }
 0x133   :  { %5298 = vmatpush2.bf16.msra.mxu0 %v7702_v56 }
 0x134   :  { %5339 = vmatpush2.bf16.msra.mxu1 %v7705_v57  ;;  %5299 = vmatprep.subr.bf16.mxu0 %v7710_v58  ;;  %v7746_v57 = vld [vmem:[%s11223_s1 + $0x1484] ss:$16 sps:$4 sm:$0xff]  }
 0x135   :  { %5340 = vmatprep.subr.bf16.mxu1 %v7713_v61  ;;  %v7749_v58 = vld [vmem:[%s11223_s1 + $0x1684] ss:$16 sps:$4 sm:$0xff]   ;;  %v7744_v61 = vld [vmem:[%s11223_s1 + $0x1480] ss:$16 sps:$4 sm:$0xff]  }
 0x137   :  { %5300 = vmatpush2.bf16.msra.mxu0 %v7708_v63  ;;  %v7752_v63 = vld [vmem:[%s11223_s1 + $0x1464] ss:$16 sps:$4 sm:$0xff]  }
 0x138   :  { %5341 = vmatpush2.bf16.msra.mxu1 %v7711_v2  ;;  %5301 = vmatprep.subr.bf16.mxu0 %v7716_v3  ;;  %v7755_v2 = vld [vmem:[%s11223_s1 + $0x1664] ss:$16 sps:$4 sm:$0xff]   ;;  %v7750_v3 = vld [vmem:[%s11223_s1 + $0x1460] ss:$16 sps:$4 sm:$0xff]  }
 0x139   :  { %5342 = vmatprep.subr.bf16.mxu1 %v7719_v1  ;;  %v7753_v1 = vld [vmem:[%s11223_s1 + $0x1660] ss:$16 sps:$4 sm:$0xff]  }
 0x13b   :  { %5302 = vmatpush2.bf16.msra.mxu0 %v7714_v7  ;;  %v7758_v7 = vld [vmem:[%s11223_s1 + $0x1444] ss:$16 sps:$4 sm:$0xff]  }
 0x13c   :  { %5343 = vmatpush2.bf16.msra.mxu1 %v7717_v8  ;;  %5303 = vmatprep.subr.bf16.mxu0 %v7722_v9  ;;  %v7761_v8 = vld [vmem:[%s11223_s1 + $0x1644] ss:$16 sps:$4 sm:$0xff]   ;;  %v7756_v9 = vld [vmem:[%s11223_s1 + $0x1440] ss:$16 sps:$4 sm:$0xff]  }
 0x13d   :  { %5344 = vmatprep.subr.bf16.mxu1 %v7725_v10  ;;  %v7759_v10 = vld [vmem:[%s11223_s1 + $0x1640] ss:$16 sps:$4 sm:$0xff]  }
 0x13f   :  { %5304 = vmatpush2.bf16.msra.mxu0 %v7720_v14  ;;  %v7767_v14 = vld [vmem:[%s11223_s1 + $0x1624] ss:$16 sps:$4 sm:$0xff]  }
 0x140   :  { %5345 = vmatpush2.bf16.msra.mxu1 %v7723_v16  ;;  %5355 = vmatprep.subr.bf16.mxu0 %v7728_v19  ;;  %v7762_v16 = vld [vmem:[%s11223_s1 + $0x1420] ss:$16 sps:$4 sm:$0xff]  }
 0x141   :  { %5396 = vmatprep.subr.bf16.mxu1 %v7731_v4  ;;  %v7765_v19 = vld [vmem:[%s11223_s1 + $0x1620] ss:$16 sps:$4 sm:$0xff]   ;;  %v7770_v4 = vld [vmem:[%s11223_s1 + $0x1404] ss:$16 sps:$4 sm:$0xff]  }
 0x142   :  { %v5061_v34 = vpop.f32.mrf.mxu0  ;;  %5306 = vmatmul.mubr.bf16.vlgmr.msra.gmra.mxu0 %v9610_v12 }
 0x143   :  { %v5102_v36 = vpop.f32.mrf.mxu1  ;;  %5347 = vmatmul.mubr.bf16.vlgmr.msra.gmra.mxu1 %v9635_v25  ;;  %v5062_v37 = vadd.f32 %v5061_v34, %v9439_v46  ;;  %5356 = vmatpush1.bf16.msra.mxu0 %v7726_v20  ;;  %v7738_v46 = vld [vmem:[%s11223_s1 + $0x14a0] ss:$16 sps:$4 sm:$0xff]   ;;  %v7773_v20 = vld [vmem:[%s11223_s1 + $0x1604] ss:$16 sps:$4 sm:$0xff]  }
 0x144   :  { %5397 = vmatpush1.bf16.msra.mxu1 %v7729_v21  ;;  %v5063_v38 = vpop.f32.mrf.mxu0  ;;  %5357 = vmatprep.subr.bf16.mxu0 %v7734_v27  ;;  %v7768_v21 = vld [vmem:[%s11223_s1 + $0x1400] ss:$16 sps:$4 sm:$0xff]  }
 0x145   :  { %v5104_v32 = vpop.f32.mrf.mxu1  ;;  %5398 = vmatprep.subr.bf16.mxu1 %v7737_v28  ;;  %v9662_v45 = vadd.f32 %v5102_v36, %v5062_v37  ;;  %v5064_v47 = vadd.f32 %v5063_v38, %v9449_v55  ;;  %5387 = vmatprep.mubr.bf16.mxu0 %v9631_v24  ;;  %v7771_v27 = vld [vmem:[%s11223_s1 + $0x1600] ss:$16 sps:$4 sm:$0xff]   ;;  %v7776_v28 = vld [vmem:[%s11223_s1 + $0x15e4] ss:$16 sps:$4 sm:$0xff]  }
 0x146   :  { %5428 = vmatprep.mubr.bf16.mxu1 %v9651_v33  ;;  %v5065_v51 = vpop.f32.mrf.mxu0  ;;  %v7777_v34 = vld [vmem:[%s11223_s1 + $0x17e0] ss:$16 sps:$4 sm:$0xff]   ;;  %v7782_v36 = vld [vmem:[%s11223_s1 + $0x15c4] ss:$16 sps:$4 sm:$0xff]  }
 0x147   :  { %v5106_v52 = vpop.f32.mrf.mxu1  ;;  %v9673_v53 = vadd.f32 %v5104_v32, %v5064_v47  ;;  %5358 = vmatpush1.bf16.msra.mxu0 %v7732_v29  ;;  %v7779_v29 = vld [vmem:[%s11223_s1 + $0x17e4] ss:$16 sps:$4 sm:$0xff]   ;;  %v7780_v38 = vld [vmem:[%s11223_s1 + $0x15c0] ss:$16 sps:$4 sm:$0xff]  }
 0x148   :  { %5399 = vmatpush1.bf16.msra.mxu1 %v7735_v30  ;;  %v5066_v56 = vpop.f32.mrf.mxu0  ;;  %5359 = vmatprep.subr.bf16.mxu0 %v7740_v40  ;;  %v7774_v30 = vld [vmem:[%s11223_s1 + $0x15e0] ss:$16 sps:$4 sm:$0xff]   ;;  %v7785_v37 = vld [vmem:[%s11223_s1 + $0x17c4] ss:$16 sps:$4 sm:$0xff]  }
 0x149   :  { %v5107_v55 = vpop.f32.mrf.mxu1  ;;  %5400 = vmatprep.subr.bf16.mxu1 %v7743_v44  ;;  %v7783_v32 = vld [vmem:[%s11223_s1 + $0x17c0] ss:$16 sps:$4 sm:$0xff]   ;;  %v7788_v40 = vld [vmem:[%s11223_s1 + $0x15a4] ss:$16 sps:$4 sm:$0xff]  }
 0x14a   :  { %v7791_v44 = vld [vmem:[%s11223_s1 + $0x17a4] ss:$16 sps:$4 sm:$0xff]   ;;  %v7786_v47 = vld [vmem:[%s11223_s1 + $0x15a0] ss:$16 sps:$4 sm:$0xff]  }
 0x14b   :  { %5360 = vmatpush1.bf16.msra.mxu0 %v7738_v46  ;;  %v7789_v46 = vld [vmem:[%s11223_s1 + $0x17a0] ss:$16 sps:$4 sm:$0xff]   ;;  %v7797_v51 = vld [vmem:[%s11223_s1 + $0x1784] ss:$16 sps:$4 sm:$0xff]  }
 0x14c   :  { %5401 = vmatpush1.bf16.msra.mxu1 %v7741_v48  ;;  %5361 = vmatprep.subr.bf16.mxu0 %v7746_v57  ;;  %v7794_v48 = vld [vmem:[%s11223_s1 + $0x1584] ss:$16 sps:$4 sm:$0xff]   ;;  %v7792_v52 = vld [vmem:[%s11223_s1 + $0x1580] ss:$16 sps:$4 sm:$0xff]  }
 0x14d   :  { %5402 = vmatprep.subr.bf16.mxu1 %v7749_v58  ;;  %v7795_v56 = vld [vmem:[%s11223_s1 + $0x1780] ss:$16 sps:$4 sm:$0xff]   ;;  %v7800_v55 = vld [vmem:[%s11223_s1 + $0x1564] ss:$16 sps:$4 sm:$0xff]  }
 0x14e   :  { %v7803_v57 = vld [vmem:[%s11223_s1 + $0x1764] ss:$16 sps:$4 sm:$0xff]   ;;  %v7798_v58 = vld [vmem:[%s11223_s1 + $0x1560] ss:$16 sps:$4 sm:$0xff]  }
 0x14f   :  { %5362 = vmatpush1.bf16.msra.mxu0 %v7744_v61  ;;  %v7801_v61 = vld [vmem:[%s11223_s1 + $0x1760] ss:$16 sps:$4 sm:$0xff]  }
 0x150   :  { %5403 = vmatpush1.bf16.msra.mxu1 %v7747_v62  ;;  %5363 = vmatprep.subr.bf16.mxu0 %v7752_v63  ;;  %v7806_v62 = vld [vmem:[%s11223_s1 + $0x1544] ss:$16 sps:$4 sm:$0xff]  }
 0x151   :  { %5404 = vmatprep.subr.bf16.mxu1 %v7755_v2  ;;  %v7809_v63 = vld [vmem:[%s11223_s1 + $0x1744] ss:$16 sps:$4 sm:$0xff]   ;;  %v7804_v2 = vld [vmem:[%s11223_s1 + $0x1540] ss:$16 sps:$4 sm:$0xff]  }
 0x153   :  { %5364 = vmatpush1.bf16.msra.mxu0 %v7750_v3  ;;  %v7807_v3 = vld [vmem:[%s11223_s1 + $0x1740] ss:$16 sps:$4 sm:$0xff]  }
 0x154   :  { %5405 = vmatpush1.bf16.msra.mxu1 %v7753_v1  ;;  %5365 = vmatprep.subr.bf16.mxu0 %v7758_v7  ;;  %v7812_v1 = vld [vmem:[%s11223_s1 + $0x1524] ss:$16 sps:$4 sm:$0xff]  }
 0x155   :  { %5406 = vmatprep.subr.bf16.mxu1 %v7761_v8  ;;  %v7815_v7 = vld [vmem:[%s11223_s1 + $0x1724] ss:$16 sps:$4 sm:$0xff]   ;;  %v7810_v8 = vld [vmem:[%s11223_s1 + $0x1520] ss:$16 sps:$4 sm:$0xff]  }
 0x157   :  { %5366 = vmatpush1.bf16.msra.mxu0 %v7756_v9  ;;  %v7813_v9 = vld [vmem:[%s11223_s1 + $0x1720] ss:$16 sps:$4 sm:$0xff]  }
 0x158   :  { %5407 = vmatpush1.bf16.msra.mxu1 %v7759_v10  ;;  %5367 = vmatprep.subr.bf16.mxu0 %v7764_v11  ;;  %v7818_v10 = vld [vmem:[%s11223_s1 + $0x1504] ss:$16 sps:$4 sm:$0xff]  }
 0x159   :  { %5408 = vmatprep.subr.bf16.mxu1 %v7767_v14  ;;  %v7821_v11 = vld [vmem:[%s11223_s1 + $0x1704] ss:$16 sps:$4 sm:$0xff]   ;;  %v9827_v14 = vrot.slane %v9592_v5, %v8646_v49  ;;  %v7828_v5 = vld [vmem:[%s11223_s1 + $0xec] ss:$16 sps:$4 sm:$0xff]  }
 0x15b   :  { %5368 = vmatpush1.bf16.msra.mxu0 %v7762_v16  ;;  %v7816_v16 = vld [vmem:[%s11223_s1 + $0x1500] ss:$16 sps:$4 sm:$0xff]  }
 0x15c   :  { %5409 = vmatpush1.bf16.msra.mxu1 %v7765_v19  ;;  %5369 = vmatprep.subr.bf16.mxu0 %v7770_v4  ;;  %v7819_v19 = vld [vmem:[%s11223_s1 + $0x1700] ss:$16 sps:$4 sm:$0xff]   ;;  %v7825_v4 = vld [vmem:[%s11223_s1 + $0x1864] ss:$16 sps:$4 sm:$0xff]  }
 0x15d   :  { %5410 = vmatprep.subr.bf16.mxu1 %v7773_v20  ;;  %v7823_v20 = vld [vmem:[%s11223_s1 + $0x1860] ss:$16 sps:$4 sm:$0xff]  }
 0x15f   :  { %5370 = vmatpush1.bf16.msra.mxu0 %v7768_v21  ;;  %v7826_v21 = vld [vmem:[%s11223_s1 + $0xe8] ss:$16 sps:$4 sm:$0xff]  }
 0x160   :  { %5411 = vmatpush1.bf16.msra.mxu1 %v7771_v27  ;;  %5371 = vmatprep.subr.bf16.mxu0 %v7776_v28  ;;  %v9849_v27 = vcombine.high %v9827_v14, %v9827_v14  ;;  %v7831_v28 = vld [vmem:[%s11223_s1 + $0x1844] ss:$16 sps:$4 sm:$0xff]  }
 0x161   :  { %5412 = vmatprep.subr.bf16.mxu1 %v7779_v29  ;;  %v7834_v29 = vld [vmem:[%s11223_s1 + $0xcc] ss:$16 sps:$4 sm:$0xff]  }
 0x163   :  { %5372 = vmatpush2.bf16.msra.mxu0 %v7774_v30  ;;  %v7829_v30 = vld [vmem:[%s11223_s1 + $0x1840] ss:$16 sps:$4 sm:$0xff]  }
 0x164   :  { %5413 = vmatpush2.bf16.msra.mxu1 %v7777_v34  ;;  %5373 = vmatprep.subr.bf16.mxu0 %v7782_v36  ;;  %v7832_v34 = vld [vmem:[%s11223_s1 + $0xc8] ss:$16 sps:$4 sm:$0xff]  }
 0x165   :  { %5414 = vmatprep.subr.bf16.mxu1 %v7785_v37 }
 0x167   :  { %5374 = vmatpush2.bf16.msra.mxu0 %v7780_v38 }
 0x168   :  { %5415 = vmatpush2.bf16.msra.mxu1 %v7783_v32  ;;  %5375 = vmatprep.subr.bf16.mxu0 %v7788_v40 }
 0x169   :  { %5416 = vmatprep.subr.bf16.mxu1 %v7791_v44  ;;  %v7837_v44 = vld [vmem:[%s11223_s1 + $0x1824] ss:$16 sps:$4 sm:$0xff]  }
 0x16b   :  { %5376 = vmatpush2.bf16.msra.mxu0 %v7786_v47  ;;  %v7840_v47 = vld [vmem:[%s11223_s1 + $0xac] ss:$16 sps:$4 sm:$0xff]  }
 0x16c   :  { %5417 = vmatpush2.bf16.msra.mxu1 %v7789_v46  ;;  %5377 = vmatprep.subr.bf16.mxu0 %v7794_v48 }
 0x16d   :  { %5418 = vmatprep.subr.bf16.mxu1 %v7797_v51  ;;  %v7838_v51 = vld [vmem:[%s11223_s1 + $0xa8] ss:$16 sps:$4 sm:$0xff]  }
 0x16f   :  { %5378 = vmatpush2.bf16.msra.mxu0 %v7792_v52  ;;  %v8479_v52 = vmov 0  }
 0x170   :  { %5419 = vmatpush2.bf16.msra.mxu1 %v7795_v56  ;;  %5379 = vmatprep.subr.bf16.mxu0 %v7800_v55 }
 0x171   :  { %5420 = vmatprep.subr.bf16.mxu1 %v7803_v57 }
 0x173   :  { %5380 = vmatpush2.bf16.msra.mxu0 %v7798_v58 }
 0x174   :  { %5421 = vmatpush2.bf16.msra.mxu1 %v7801_v61  ;;  %5381 = vmatprep.subr.bf16.mxu0 %v7806_v62  ;;  %v7843_v61 = vld [vmem:[%s11223_s1 + $0x1804] ss:$16 sps:$4 sm:$0xff]   ;;  %v7846_v62 = vld [vmem:[%s11223_s1 + $0x8c] ss:$16 sps:$4 sm:$0xff]  }
 0x175   :  { %5422 = vmatprep.subr.bf16.mxu1 %v7809_v63  ;;  %v7844_v63 = vld [vmem:[%s11223_s1 + $0x88] ss:$16 sps:$4 sm:$0xff]  }
 0x177   :  { %5382 = vmatpush2.bf16.msra.mxu0 %v7804_v2  ;;  %v6377_v2 = vld.sshfl [vmem:[%s11222_s0 + $0x18] sm:$0x1 pattern:$0x75316420] }
 0x178   :  { %5423 = vmatpush2.bf16.msra.mxu1 %v7807_v3  ;;  %5383 = vmatprep.subr.bf16.mxu0 %v7812_v1  ;;  %v7849_v3 = vld [vmem:[%s11223_s1 + $0x6c] ss:$16 sps:$4 sm:$0xff]  }
 0x179   :  { %5424 = vmatprep.subr.bf16.mxu1 %v7815_v7  ;;  %v7852_v1 = vld [vmem:[%s11223_s1 + $0x2ec] ss:$16 sps:$4 sm:$0xff]   ;;  %v7847_v7 = vld [vmem:[%s11223_s1 + $0x68] ss:$16 sps:$4 sm:$0xff]  }
 0x17b   :  { %5384 = vmatpush2.bf16.msra.mxu0 %v7810_v8  ;;  %v7850_v8 = vld [vmem:[%s11223_s1 + $0x2e8] ss:$16 sps:$4 sm:$0xff]  }
 0x17c   :  { %5425 = vmatpush2.bf16.msra.mxu1 %v7813_v9  ;;  %5385 = vmatprep.subr.bf16.mxu0 %v7818_v10  ;;  %v9913_v9 = vrot.slane %v6377_v2, %v8646_v49  ;;  %v7855_v10 = vld [vmem:[%s11223_s1 + $0x4c] ss:$16 sps:$4 sm:$0xff]   ;;  %v7853_v49 = vld [vmem:[%s11223_s1 + $0x48] ss:$16 sps:$4 sm:$0xff]  }
 0x17d   :  { %5426 = vmatprep.subr.bf16.mxu1 %v7821_v11  ;;  %v7858_v11 = vld [vmem:[%s11223_s1 + $0x2cc] ss:$16 sps:$4 sm:$0xff]  }
 0x17e   :  { %v7903_v2 = vld [vmem:[%s11223_s1 + $0x14c] ss:$16 sps:$4 sm:$0xff]  }
 0x17f   :  { %5386 = vmatpush2.bf16.msra.mxu0 %v7816_v16  ;;  %v7856_v16 = vld [vmem:[%s11223_s1 + $0x2c8] ss:$16 sps:$4 sm:$0xff]  }
 0x180   :  { %5427 = vmatpush2.bf16.msra.mxu1 %v7819_v19  ;;  %5445 = vmatprep.subr.bf16.mxu0 %v7825_v4  ;;  %v7861_v19 = vld [vmem:[%s11223_s1 + $0x2c] ss:$16 sps:$4 sm:$0xff]  }
 0x181   :  { %5478 = vmatprep.subr.bf16.mxu1 %v7828_v5  ;;  %v7864_v4 = vld [vmem:[%s11223_s1 + $0x2ac] ss:$16 sps:$4 sm:$0xff]   ;;  %v7859_v5 = vld [vmem:[%s11223_s1 + $0x28] ss:$16 sps:$4 sm:$0xff]  }
 0x182   :  { %v5143_v36 = vpop.f32.mrf.mxu0  ;;  %5388 = vmatmul.mubr.bf16.vlgmr.msra.gmra.mxu0 %v9827_v14 }
 0x183   :  { %v5184_v37 = vpop.f32.mrf.mxu1  ;;  %5429 = vmatmul.mubr.bf16.vlgmr.msra.gmra.mxu1 %v9849_v27  ;;  %v5144_v38 = vadd.f32 %v5143_v36, %v9662_v45  ;;  %5446 = vmatpush1.bf16.msra.mxu0 %v7823_v20  ;;  %v7835_v45 = vld [vmem:[%s11223_s1 + $0x1820] ss:$16 sps:$4 sm:$0xff]   ;;  %v7862_v20 = vld [vmem:[%s11223_s1 + $0x2a8] ss:$16 sps:$4 sm:$0xff]  }
 0x184   :  { %5479 = vmatpush1.bf16.msra.mxu1 %v7826_v21  ;;  %v5145_v32 = vpop.f32.mrf.mxu0  ;;  %5447 = vmatprep.subr.bf16.mxu0 %v7831_v28  ;;  %v7867_v21 = vld [vmem:[%s11223_s1 + $0xc] ss:$16 sps:$4 sm:$0xff]   ;;  %v7865_v28 = vld [vmem:[%s11223_s1 + $0x8] ss:$16 sps:$4 sm:$0xff]  }
 0x185   :  { %v5186_v40 = vpop.f32.mrf.mxu1  ;;  %5480 = vmatprep.subr.bf16.mxu1 %v7834_v29  ;;  %v9872_v46 = vadd.f32 %v5184_v37, %v5144_v38  ;;  %v5146_v48 = vadd.f32 %v5145_v32, %v9673_v53  ;;  %5469 = vmatprep.mubr.bf16.mxu0 %v8479_v52  ;;  %v7868_v29 = vld [vmem:[%s11223_s1 + $0x288] ss:$16 sps:$4 sm:$0xff]   ;;  %v7879_v38 = vld [vmem:[%s11223_s1 + $0x1cc] ss:$16 sps:$4 sm:$0xff]  }
 0x186   :  { %5510 = vmatprep.mubr.bf16.mxu1 %v8674_v60  ;;  %v5147_v56 = vpop.f32.mrf.mxu0  ;;  %v7841_v60 = vld [vmem:[%s11223_s1 + $0x1800] ss:$16 sps:$4 sm:$0xff]   ;;  %v7871_v36 = vld [vmem:[%s11223_s1 + $0x1e8] ss:$16 sps:$4 sm:$0xff]   ;;  %v7882_v32 = vld [vmem:[%s11223_s1 + $0x24c] ss:$16 sps:$4 sm:$0xff]  }
 0x187   :  { %v5188_v55 = vpop.f32.mrf.mxu1  ;;  %v9883_v57 = vadd.f32 %v5186_v40, %v5146_v48  ;;  %5448 = vmatpush1.bf16.msra.mxu0 %v7829_v30  ;;  %v7873_v30 = vld [vmem:[%s11223_s1 + $0x1ec] ss:$16 sps:$4 sm:$0xff]   ;;  %v7874_v37 = vld [vmem:[%s11223_s1 + $0x268] ss:$16 sps:$4 sm:$0xff]  }
 0x188   :  { %5481 = vmatpush1.bf16.msra.mxu1 %v7832_v34  ;;  %v5148_v53 = vpop.f32.mrf.mxu0  ;;  %5449 = vmatprep.subr.bf16.mxu0 %v7837_v44  ;;  %v7876_v34 = vld [vmem:[%s11223_s1 + $0x26c] ss:$16 sps:$4 sm:$0xff]   ;;  %v7877_v40 = vld [vmem:[%s11223_s1 + $0x1c8] ss:$16 sps:$4 sm:$0xff]  }
 0x189   :  { %v5189_v58 = vpop.f32.mrf.mxu1  ;;  %5482 = vmatprep.subr.bf16.mxu1 %v7840_v47  ;;  %v7880_v44 = vld [vmem:[%s11223_s1 + $0x248] ss:$16 sps:$4 sm:$0xff]   ;;  %v7885_v47 = vld [vmem:[%s11223_s1 + $0x1ac] ss:$16 sps:$4 sm:$0xff]  }
 0x18a   :  { %v7888_v48 = vld [vmem:[%s11223_s1 + $0x22c] ss:$16 sps:$4 sm:$0xff]   ;;  %v7889_v53 = vld [vmem:[%s11223_s1 + $0x188] ss:$16 sps:$4 sm:$0xff]  }
 0x18b   :  { %5450 = vmatpush1.bf16.msra.mxu0 %v7835_v45  ;;  %v7883_v45 = vld [vmem:[%s11223_s1 + $0x1a8] ss:$16 sps:$4 sm:$0xff]   ;;  %v7891_v56 = vld [vmem:[%s11223_s1 + $0x18c] ss:$16 sps:$4 sm:$0xff]  }
 0x18c   :  { %5483 = vmatpush1.bf16.msra.mxu1 %v7838_v51  ;;  %5451 = vmatprep.subr.bf16.mxu0 %v7843_v61  ;;  %v7886_v51 = vld [vmem:[%s11223_s1 + $0x228] ss:$16 sps:$4 sm:$0xff]   ;;  %v7894_v55 = vld [vmem:[%s11223_s1 + $0x20c] ss:$16 sps:$4 sm:$0xff]  }
 0x18d   :  { %5484 = vmatprep.subr.bf16.mxu1 %v7846_v62  ;;  %v7892_v58 = vld [vmem:[%s11223_s1 + $0x208] ss:$16 sps:$4 sm:$0xff]   ;;  %v7897_v61 = vld [vmem:[%s11223_s1 + $0x16c] ss:$16 sps:$4 sm:$0xff]  }
 0x18e   :  { %v7900_v62 = vld [vmem:[%s11223_s1 + $0x3ec] ss:$16 sps:$4 sm:$0xff]  }
 0x18f   :  { %5452 = vmatpush1.bf16.msra.mxu0 %v7841_v60  ;;  %v7895_v60 = vld [vmem:[%s11223_s1 + $0x168] ss:$16 sps:$4 sm:$0xff]  }
 0x190   :  { %5485 = vmatpush1.bf16.msra.mxu1 %v7844_v63  ;;  %5519 = vmatprep.subr.bf16.mxu0 %v7852_v1  ;;  %v7898_v63 = vld [vmem:[%s11223_s1 + $0x3e8] ss:$16 sps:$4 sm:$0xff]  }
 0x191   :  { %5486 = vmatprep.subr.bf16.mxu1 %v7849_v3  ;;  %v7906_v3 = vld [vmem:[%s11223_s1 + $0x3cc] ss:$16 sps:$4 sm:$0xff]   ;;  %v7901_v1 = vld [vmem:[%s11223_s1 + $0x148] ss:$16 sps:$4 sm:$0xff]  }
 0x192   :  { %7162 = vmatmul.mubr.msk.bf16.vlgmr.msra.gmra.mxu0 %vm4941_vm0, %v9913_v9 }
 0x193   :  { %5520 = vmatpush1.bf16.msra.mxu0 %v7850_v8  ;;  %5551 = vmatprep.mubr.bf16.mxu0 %v8687_v0  ;;  %v7870_v0 = vld [vmem:[%s11223_s1 + $0x28c] ss:$16 sps:$4 sm:$0xff]  }
 0x194   :  { %5487 = vmatpush1.bf16.msra.mxu1 %v7847_v7  ;;  %5521 = vmatprep.subr.bf16.mxu0 %v7858_v11  ;;  %v7904_v7 = vld [vmem:[%s11223_s1 + $0x3c8] ss:$16 sps:$4 sm:$0xff]   ;;  %v7909_v8 = vld [vmem:[%s11223_s1 + $0x12c] ss:$16 sps:$4 sm:$0xff]  }
 0x195   :  { %5488 = vmatprep.subr.bf16.mxu1 %v7855_v10  ;;  %v7912_v10 = vld [vmem:[%s11223_s1 + $0x3ac] ss:$16 sps:$4 sm:$0xff]   ;;  %v7907_v11 = vld [vmem:[%s11223_s1 + $0x128] ss:$16 sps:$4 sm:$0xff]  }
 0x197   :  { %5522 = vmatpush1.bf16.msra.mxu0 %v7856_v16  ;;  %v7915_v16 = vld [vmem:[%s11223_s1 + $0x10c] ss:$16 sps:$4 sm:$0xff]  }
 0x198   :  { %5489 = vmatpush1.bf16.msra.mxu1 %v7853_v49  ;;  %5523 = vmatprep.subr.bf16.mxu0 %v7864_v4  ;;  %v7910_v49 = vld [vmem:[%s11223_s1 + $0x3a8] ss:$16 sps:$4 sm:$0xff]  }
 0x199   :  { %5490 = vmatprep.subr.bf16.mxu1 %v7861_v19  ;;  %v7918_v19 = vld [vmem:[%s11223_s1 + $0x38c] ss:$16 sps:$4 sm:$0xff]   ;;  %v7913_v4 = vld [vmem:[%s11223_s1 + $0x108] ss:$16 sps:$4 sm:$0xff]  }
 0x19b   :  { %5524 = vmatpush1.bf16.msra.mxu0 %v7862_v20  ;;  %v7921_v20 = vld [vmem:[%s11223_s1 + $0x36c] ss:$16 sps:$4 sm:$0xff]  }
 0x19c   :  { %5491 = vmatpush1.bf16.msra.mxu1 %v7859_v5  ;;  %5525 = vmatprep.subr.bf16.mxu0 %v7870_v0  ;;  %v7916_v5 = vld [vmem:[%s11223_s1 + $0x388] ss:$16 sps:$4 sm:$0xff]  }
 0x19d   :  { %5492 = vmatprep.subr.bf16.mxu1 %v7867_v21  ;;  %v7924_v21 = vld [vmem:[%s11223_s1 + $0x4ec] ss:$16 sps:$4 sm:$0xff]   ;;  %v7919_v0 = vld [vmem:[%s11223_s1 + $0x368] ss:$16 sps:$4 sm:$0xff]  }
 0x19f   :  { %5526 = vmatpush1.bf16.msra.mxu0 %v7868_v29  ;;  %v7927_v29 = vld [vmem:[%s11223_s1 + $0x34c] ss:$16 sps:$4 sm:$0xff]  }
 0x1a0   :  { %5493 = vmatpush1.bf16.msra.mxu1 %v7865_v28  ;;  %5527 = vmatprep.subr.bf16.mxu0 %v7876_v34  ;;  %v7922_v28 = vld [vmem:[%s11223_s1 + $0x4e8] ss:$16 sps:$4 sm:$0xff]  }
 0x1a1   :  { %5494 = vmatprep.subr.bf16.mxu1 %v7873_v30  ;;  %v7930_v30 = vld [vmem:[%s11223_s1 + $0x4cc] ss:$16 sps:$4 sm:$0xff]   ;;  %v7925_v34 = vld [vmem:[%s11223_s1 + $0x348] ss:$16 sps:$4 sm:$0xff]  }
 0x1a3   :  { %5528 = vmatpush1.bf16.msra.mxu0 %v7874_v37 }
 0x1a4   :  { %5495 = vmatpush2.bf16.msra.mxu1 %v7871_v36  ;;  %5529 = vmatprep.subr.bf16.mxu0 %v7882_v32  ;;  %v7928_v36 = vld [vmem:[%s11223_s1 + $0x4c8] ss:$16 sps:$4 sm:$0xff]  }
 0x1a5   :  { %5496 = vmatprep.subr.bf16.mxu1 %v7879_v38 }
 0x1a7   :  { %5530 = vmatpush1.bf16.msra.mxu0 %v7880_v44 }
 0x1a8   :  { %5497 = vmatpush2.bf16.msra.mxu1 %v7877_v40  ;;  %5531 = vmatprep.subr.bf16.mxu0 %v7888_v48  ;;  %v7936_v48 = vld [vmem:[%s11223_s1 + $0x4ac] ss:$16 sps:$4 sm:$0xff]  }
 0x1a9   :  { %5498 = vmatprep.subr.bf16.mxu1 %v7885_v47  ;;  %v7933_v47 = vld [vmem:[%s11223_s1 + $0x32c] ss:$16 sps:$4 sm:$0xff]  }
 0x1ab   :  { %5532 = vmatpush1.bf16.msra.mxu0 %v7886_v51  ;;  %v7934_v51 = vld [vmem:[%s11223_s1 + $0x4a8] ss:$16 sps:$4 sm:$0xff]  }
 0x1ac   :  { %5499 = vmatpush2.bf16.msra.mxu1 %v7883_v45  ;;  %5533 = vmatprep.subr.bf16.mxu0 %v7894_v55 }
 0x1ad   :  { %5500 = vmatprep.subr.bf16.mxu1 %v7891_v56 }
 0x1af   :  { %5534 = vmatpush1.bf16.msra.mxu0 %v7892_v58 }
 0x1b0   :  { %5501 = vmatpush2.bf16.msra.mxu1 %v7889_v53  ;;  %5535 = vmatprep.subr.bf16.mxu0 %v7900_v62  ;;  %v7942_v62 = vld [vmem:[%s11223_s1 + $0x48c] ss:$16 sps:$4 sm:$0xff]  }
 0x1b1   :  { %5502 = vmatprep.subr.bf16.mxu1 %v7897_v61 }
 0x1b3   :  { %5536 = vmatpush2.bf16.msra.mxu0 %v7898_v63  ;;  %v7945_v63 = vld [vmem:[%s11223_s1 + $0x46c] ss:$16 sps:$4 sm:$0xff]  }
 0x1b4   :  { %5503 = vmatpush2.bf16.msra.mxu1 %v7895_v60  ;;  %5537 = vmatprep.subr.bf16.mxu0 %v7906_v3  ;;  %v7940_v60 = vld [vmem:[%s11223_s1 + $0x488] ss:$16 sps:$4 sm:$0xff]  }
 0x1b5   :  { %5504 = vmatprep.subr.bf16.mxu1 %v7903_v2  ;;  %v7948_v2 = vld [vmem:[%s11223_s1 + $0x6ec] ss:$16 sps:$4 sm:$0xff]   ;;  %v7943_v3 = vld [vmem:[%s11223_s1 + $0x468] ss:$16 sps:$4 sm:$0xff]  }
 0x1b7   :  { %5538 = vmatpush2.bf16.msra.mxu0 %v7904_v7  ;;  %v7951_v7 = vld [vmem:[%s11223_s1 + $0x44c] ss:$16 sps:$4 sm:$0xff]  }
 0x1b8   :  { %5505 = vmatpush2.bf16.msra.mxu1 %v7901_v1  ;;  %5539 = vmatprep.subr.bf16.mxu0 %v7912_v10  ;;  %v7946_v1 = vld [vmem:[%s11223_s1 + $0x6e8] ss:$16 sps:$4 sm:$0xff]  }
 0x1b9   :  { %5506 = vmatprep.subr.bf16.mxu1 %v7909_v8  ;;  %v7954_v8 = vld [vmem:[%s11223_s1 + $0x6cc] ss:$16 sps:$4 sm:$0xff]   ;;  %v7949_v10 = vld [vmem:[%s11223_s1 + $0x448] ss:$16 sps:$4 sm:$0xff]  }
 0x1bb   :  { %5540 = vmatpush2.bf16.msra.mxu0 %v7910_v49  ;;  %v7957_v49 = vld [vmem:[%s11223_s1 + $0x42c] ss:$16 sps:$4 sm:$0xff]  }
 0x1bc   :  { %5507 = vmatpush2.bf16.msra.mxu1 %v7907_v11  ;;  %5541 = vmatprep.subr.bf16.mxu0 %v7918_v19  ;;  %v7952_v11 = vld [vmem:[%s11223_s1 + $0x6c8] ss:$16 sps:$4 sm:$0xff]  }
 0x1bd   :  { %5508 = vmatprep.subr.bf16.mxu1 %v7915_v16  ;;  %v7960_v16 = vld [vmem:[%s11223_s1 + $0x6ac] ss:$16 sps:$4 sm:$0xff]   ;;  %v7955_v19 = vld [vmem:[%s11223_s1 + $0x428] ss:$16 sps:$4 sm:$0xff]  }
 0x1bf   :  { %5542 = vmatpush2.bf16.msra.mxu0 %v7916_v5  ;;  %v7966_v5 = vld [vmem:[%s11223_s1 + $0x68c] ss:$16 sps:$4 sm:$0xff]  }
 0x1c0   :  { %5509 = vmatpush2.bf16.msra.mxu1 %v7913_v4  ;;  %5543 = vmatprep.subr.bf16.mxu0 %v7921_v20  ;;  %v7963_v4 = vld [vmem:[%s11223_s1 + $0x40c] ss:$16 sps:$4 sm:$0xff]   ;;  %v7961_v20 = vld [vmem:[%s11223_s1 + $0x408] ss:$16 sps:$4 sm:$0xff]  }
 0x1c1   :  { %5560 = vmatprep.subr.bf16.mxu1 %v7924_v21  ;;  %v7969_v21 = vld [vmem:[%s11223_s1 + $0x5ec] ss:$16 sps:$4 sm:$0xff]  }
 0x1c2   :  { %v5225_v37 = vpop.f32.mrf.mxu0 }
 0x1c3   :  { %v5266_v38 = vpop.f32.mrf.mxu1  ;;  %5511 = vmatmul.mubr.bf16.vlgmr.msra.gmra.mxu1 %v8724_v13  ;;  %v5226_v32 = vadd.f32 %v5225_v37, %v9872_v46  ;;  %5544 = vmatpush2.bf16.msra.mxu0 %v7919_v0  ;;  %v7931_v46 = vld [vmem:[%s11223_s1 + $0x328] ss:$16 sps:$4 sm:$0xff]   ;;  %v7972_v0 = vld [vmem:[%s11223_s1 + $0x66c] ss:$16 sps:$4 sm:$0xff]  }
 0x1c4   :  { %5561 = vmatpush1.bf16.msra.mxu1 %v7922_v28  ;;  %v5227_v40 = vpop.f32.mrf.mxu0  ;;  %5545 = vmatprep.subr.bf16.mxu0 %v7927_v29  ;;  %v7967_v28 = vld [vmem:[%s11223_s1 + $0x5e8] ss:$16 sps:$4 sm:$0xff]  }
 0x1c5   :  { %v5268_v44 = vpop.f32.mrf.mxu1  ;;  %5562 = vmatprep.subr.bf16.mxu1 %v7930_v30  ;;  %v10082_v45 = vadd.f32 %v5266_v38, %v5226_v32  ;;  %v5228_v13 = vadd.f32 %v5227_v40, %v9883_v57  ;;  %5592 = vmatprep.mubr.bf16.mxu1 %v8736_v17  ;;  %v7939_v57 = vld [vmem:[%s11223_s1 + $0x30c] ss:$16 sps:$4 sm:$0xff]   ;;  %v7937_v17 = vld [vmem:[%s11223_s1 + $0x308] ss:$16 sps:$4 sm:$0xff]  }
 0x1c6   :  { %v5229_v56 = vpop.f32.mrf.mxu0  ;;  %v7970_v29 = vld [vmem:[%s11223_s1 + $0x668] ss:$16 sps:$4 sm:$0xff]   ;;  %v7975_v30 = vld [vmem:[%s11223_s1 + $0x5cc] ss:$16 sps:$4 sm:$0xff]  }
 0x1c7   :  { %v5270_v55 = vpop.f32.mrf.mxu1  ;;  %v10092_v53 = vadd.f32 %v5268_v44, %v5228_v13  ;;  %5546 = vmatpush2.bf16.msra.mxu0 %v7925_v34  ;;  %v7978_v34 = vld [vmem:[%s11223_s1 + $0x64c] ss:$16 sps:$4 sm:$0xff]   ;;  %v7976_v37 = vld [vmem:[%s11223_s1 + $0x648] ss:$16 sps:$4 sm:$0xff]  }
 0x1c8   :  { %5563 = vmatpush1.bf16.msra.mxu1 %v7928_v36  ;;  %v5230_v58 = vpop.f32.mrf.mxu0  ;;  %5547 = vmatprep.subr.bf16.mxu0 %v7933_v47  ;;  %v7973_v36 = vld [vmem:[%s11223_s1 + $0x5c8] ss:$16 sps:$4 sm:$0xff]   ;;  %v7981_v38 = vld [vmem:[%s11223_s1 + $0x5ac] ss:$16 sps:$4 sm:$0xff]  }
 0x1c9   :  { %v5271_v61 = vpop.f32.mrf.mxu1  ;;  %5564 = vmatprep.subr.bf16.mxu1 %v7936_v48  ;;  %v7984_v32 = vld [vmem:[%s11223_s1 + $0x62c] ss:$16 sps:$4 sm:$0xff]   ;;  %v7979_v40 = vld [vmem:[%s11223_s1 + $0x5a8] ss:$16 sps:$4 sm:$0xff]  }
 0x1ca   :  { %v7982_v44 = vld [vmem:[%s11223_s1 + $0x628] ss:$16 sps:$4 sm:$0xff]   ;;  %v7987_v47 = vld [vmem:[%s11223_s1 + $0x58c] ss:$16 sps:$4 sm:$0xff]  }
 0x1cb   :  { %5548 = vmatpush2.bf16.msra.mxu0 %v7931_v46  ;;  %v7990_v48 = vld [vmem:[%s11223_s1 + $0x60c] ss:$16 sps:$4 sm:$0xff]  }
 0x1cc   :  { %5565 = vmatpush1.bf16.msra.mxu1 %v7934_v51  ;;  %5549 = vmatprep.subr.bf16.mxu0 %v7939_v57 }
 0x1cd   :  { %5566 = vmatprep.subr.bf16.mxu1 %v7942_v62 }
 0x1cf   :  { %5550 = vmatpush2.bf16.msra.mxu0 %v7937_v17 }
 0x1d0   :  { %5567 = vmatpush1.bf16.msra.mxu1 %v7940_v60  ;;  %5601 = vmatprep.subr.bf16.mxu0 %v7948_v2 }
 0x1d1   :  { %5568 = vmatprep.subr.bf16.mxu1 %v7945_v63 }
 0x1d2   :  { %5552 = vmatmul.mubr.bf16.vlgmr.msra.gmra.mxu0 %v8740_v18  ;;  %v7958_v18 = vld [vmem:[%s11223_s1 + $0x6a8] ss:$16 sps:$4 sm:$0xff]  }
 0x1d3   :  { %5602 = vmatpush1.bf16.msra.mxu0 %v7946_v1  ;;  %5633 = vmatprep.mubr.bf16.mxu0 %v8756_v23  ;;  %v7964_v23 = vld [vmem:[%s11223_s1 + $0x688] ss:$16 sps:$4 sm:$0xff]  }
 0x1d4   :  { %5569 = vmatpush1.bf16.msra.mxu1 %v7943_v3  ;;  %5603 = vmatprep.subr.bf16.mxu0 %v7954_v8 }
 0x1d5   :  { %5570 = vmatprep.subr.bf16.mxu1 %v7951_v7 }
 0x1d7   :  { %5604 = vmatpush1.bf16.msra.mxu0 %v7952_v11 }
 0x1d8   :  { %5571 = vmatpush1.bf16.msra.mxu1 %v7949_v10  ;;  %5605 = vmatprep.subr.bf16.mxu0 %v7960_v16 }
 0x1d9   :  { %5572 = vmatprep.subr.bf16.mxu1 %v7957_v49 }
 0x1db   :  { %5606 = vmatpush1.bf16.msra.mxu0 %v7958_v18 }
 0x1dc   :  { %5573 = vmatpush1.bf16.msra.mxu1 %v7955_v19  ;;  %5607 = vmatprep.subr.bf16.mxu0 %v7966_v5 }
 0x1dd   :  { %5574 = vmatprep.subr.bf16.mxu1 %v7963_v4 }
 0x1df   :  { %5608 = vmatpush1.bf16.msra.mxu0 %v7964_v23 }
 0x1e0   :  { %5575 = vmatpush1.bf16.msra.mxu1 %v7961_v20  ;;  %5609 = vmatprep.subr.bf16.mxu0 %v7972_v0 }
 0x1e1   :  { %5576 = vmatprep.subr.bf16.mxu1 %v7969_v21 }
 0x1e3   :  { %5610 = vmatpush1.bf16.msra.mxu0 %v7970_v29 }
 0x1e4   :  { %5577 = vmatpush2.bf16.msra.mxu1 %v7967_v28  ;;  %5611 = vmatprep.subr.bf16.mxu0 %v7978_v34 }
 0x1e5   :  { %5578 = vmatprep.subr.bf16.mxu1 %v7975_v30 }
 0x1e7   :  { %5612 = vmatpush1.bf16.msra.mxu0 %v7976_v37 }
 0x1e8   :  { %5579 = vmatpush2.bf16.msra.mxu1 %v7973_v36  ;;  %5613 = vmatprep.subr.bf16.mxu0 %v7984_v32 }
 0x1e9   :  { %5580 = vmatprep.subr.bf16.mxu1 %v7981_v38 }
 0x1ea   :  { %10 = vsyncpa [#allocation3], 0  ;;  %v7985_v13 = vld [vmem:[%s11223_s1 + $0x588] ss:$16 sps:$4 sm:$0xff]   ;;  %v7993_v51 = vld [vmem:[%s11223_s1 + $0x56c] ss:$16 sps:$4 sm:$0xff]  }
 0x1eb   :  { %5614 = vmatpush1.bf16.msra.mxu0 %v7982_v44  ;;  %v7988_v46 = vld [vmem:[%s11223_s1 + $0x608] ss:$16 sps:$4 sm:$0xff]   ;;  %v7996_v56 = vld [vmem:[%s11223_s1 + $0x7ec] ss:$16 sps:$4 sm:$0xff]   ;;  %s8480_s16 = smov [#allocation2]  }
 0x1ec   :  { %5581 = vmatpush2.bf16.msra.mxu1 %v7979_v40  ;;  %5615 = vmatprep.subr.bf16.mxu0 %v7990_v48  ;;  %v7991_v55 = vld [vmem:[%s11223_s1 + $0x568] ss:$16 sps:$4 sm:$0xff]   ;;  %v7999_v61 = vld [vmem:[%s11223_s1 + $0x54c] ss:$16 sps:$4 sm:$0xff]   ;;  %s6369_s17 = sshll.u32 %s8480_s16, 4  ;;  %s6370_s17 = int_to_ptr.vmem [resolvable:$true] %s6369_s17 }
 0x1ed   :  { %5582 = vmatprep.subr.bf16.mxu1 %v7987_v47  ;;  %v7994_v58 = vld [vmem:[%s11223_s1 + $0x7e8] ss:$16 sps:$4 sm:$0xff]   ;;  %v8002_v57 = vld [vmem:[%s11223_s1 + $0x7cc] ss:$16 sps:$4 sm:$0xff]   ;;  %s8456_s18 = scalar_lea.vmem %s6370_s17, 32  ;;  %p8461_p1 = scmp.lt.s32.totalorder %s6370_s17, %s6370_s17 }
 0x1ee   :  { %v7997_v62 = vld [vmem:[%s11223_s1 + $0x548] ss:$16 sps:$4 sm:$0xff]   ;;  %v8005_v60 = vld [vmem:[%s11223_s1 + $0x52c] ss:$16 sps:$4 sm:$0xff]   ;;  %p8457_p0 = scmp.ne.s32.totalorder %s6370_s17, %s8456_s18  ;;  %p8462_p2 = scmp.lt.s32.totalorder %s8456_s18, %s8456_s18 }
 0x1ef   :  { %5616 = vmatpush1.bf16.msra.mxu0 %v7988_v46  ;;  %v8000_v17 = vld [vmem:[%s11223_s1 + $0x7c8] ss:$16 sps:$4 sm:$0xff]   ;;  %v8008_v63 = vld [vmem:[%s11223_s1 + $0x7ac] ss:$16 sps:$4 sm:$0xff]  }
 0x1f0   :  { %5583 = vmatpush2.bf16.msra.mxu1 %v7985_v13  ;;  %5617 = vmatprep.subr.bf16.mxu0 %v7996_v56  ;;  %v8003_v2 = vld [vmem:[%s11223_s1 + $0x528] ss:$16 sps:$4 sm:$0xff]   ;;  %v8011_v1 = vld [vmem:[%s11223_s1 + $0x50c] ss:$16 sps:$4 sm:$0xff]   ;;  %p8463_p3 = por %p8462_p2, %p8461_p1 }
 0x1f1   :  { %5584 = vmatprep.subr.bf16.mxu1 %v7993_v51  ;;  %v8006_v3 = vld [vmem:[%s11223_s1 + $0x7a8] ss:$16 sps:$4 sm:$0xff]   ;;  %v8014_v7 = vld [vmem:[%s11223_s1 + $0x78c] ss:$16 sps:$4 sm:$0xff]  }
 0x1f2   :  { %v8009_v8 = vld [vmem:[%s11223_s1 + $0x508] ss:$16 sps:$4 sm:$0xff]   ;;  %v8017_v11 = vld [vmem:[%s11223_s1 + $0x76c] ss:$16 sps:$4 sm:$0xff]   ;;  %p8464_p4 = pnand %p8463_p3, %p8457_p0 }
 0x1f3   :  { %5618 = vmatpush2.bf16.msra.mxu0 %v7994_v58  ;;  %v8012_v10 = vld [vmem:[%s11223_s1 + $0x788] ss:$16 sps:$4 sm:$0xff]   ;;  %v8020_v49 = vld [vmem:[%s11223_s1 + $0x8ec] ss:$16 sps:$4 sm:$0xff]  }
 0x1f4   :  { %5585 = vmatpush2.bf16.msra.mxu1 %v7991_v55  ;;  %5619 = vmatprep.subr.bf16.mxu0 %v8002_v57  ;;  %v8015_v16 = vld [vmem:[%s11223_s1 + $0x768] ss:$16 sps:$4 sm:$0xff]   ;;  %v8023_v18 = vld [vmem:[%s11223_s1 + $0x74c] ss:$16 sps:$4 sm:$0xff]  }
 0x1f5   :  { %5586 = vmatprep.subr.bf16.mxu1 %v7999_v61  ;;  %v8018_v19 = vld [vmem:[%s11223_s1 + $0x8e8] ss:$16 sps:$4 sm:$0xff]   ;;  %v8026_v4 = vld [vmem:[%s11223_s1 + $0x8cc] ss:$16 sps:$4 sm:$0xff]  }
 0x1f6   :  { %v8021_v21 = vld [vmem:[%s11223_s1 + $0x748] ss:$16 sps:$4 sm:$0xff]   ;;  %v8041_v46 = vld [vmem:[%s11223_s1 + $0x86c] ss:$16 sps:$4 sm:$0xff]  }
 0x1f7   :  { %5620 = vmatpush2.bf16.msra.mxu0 %v8000_v17  ;;  %v8024_v0 = vld [vmem:[%s11223_s1 + $0x8c8] ss:$16 sps:$4 sm:$0xff]   ;;  %v8044_v51 = vld [vmem:[%s11223_s1 + $0xaec] ss:$16 sps:$4 sm:$0xff]  }
 0x1f8   :  { %5587 = vmatpush2.bf16.msra.mxu1 %v7997_v62  ;;  %5621 = vmatprep.subr.bf16.mxu0 %v8008_v63  ;;  %v8027_v32 = vld [vmem:[%s11223_s1 + $0x728] ss:$16 sps:$4 sm:$0xff]   ;;  %v8047_v58 = vld [vmem:[%s11223_s1 + $0x84c] ss:$16 sps:$4 sm:$0xff]  }
 0x1f9   :  { %5588 = vmatprep.subr.bf16.mxu1 %v8005_v60  ;;  %v8030_v40 = vld [vmem:[%s11223_s1 + $0x8a8] ss:$16 sps:$4 sm:$0xff]   ;;  %v8050_v61 = vld [vmem:[%s11223_s1 + $0xacc] ss:$16 sps:$4 sm:$0xff]  }
 0x1fa   :  { %v8033_v48 = vld [vmem:[%s11223_s1 + $0x708] ss:$16 sps:$4 sm:$0xff]   ;;  %v8053_v17 = vld [vmem:[%s11223_s1 + $0x82c] ss:$16 sps:$4 sm:$0xff]  }
 0x1fb   :  { %5622 = vmatpush2.bf16.msra.mxu0 %v8006_v3  ;;  %v8036_v13 = vld [vmem:[%s11223_s1 + $0x888] ss:$16 sps:$4 sm:$0xff]  }
 0x1fc   :  { %5589 = vmatpush2.bf16.msra.mxu1 %v8003_v2  ;;  %5623 = vmatprep.subr.bf16.mxu0 %v8014_v7  ;;  %v8039_v56 = vld [vmem:[%s11223_s1 + $0x868] ss:$16 sps:$4 sm:$0xff]   ;;  %v8059_v2 = vld [vmem:[%s11223_s1 + $0x80c] ss:$16 sps:$4 sm:$0xff]  }
 0x1fd   :  { %5590 = vmatprep.subr.bf16.mxu1 %v8011_v1  ;;  %v8042_v55 = vld [vmem:[%s11223_s1 + $0xae8] ss:$16 sps:$4 sm:$0xff]   ;;  %v8065_v7 = vld [vmem:[%s11223_s1 + $0x9ec] ss:$16 sps:$4 sm:$0xff]  }
 0x1fe   :  { %v8045_v57 = vld [vmem:[%s11223_s1 + $0x848] ss:$16 sps:$4 sm:$0xff]  }
 0x1ff   :  { %5624 = vmatpush2.bf16.msra.mxu0 %v8012_v10  ;;  %v8048_v62 = vld [vmem:[%s11223_s1 + $0xac8] ss:$16 sps:$4 sm:$0xff]  }
 0x200   :  { %5591 = vmatpush2.bf16.msra.mxu1 %v8009_v8  ;;  %5625 = vmatprep.subr.bf16.mxu0 %v8017_v11  ;;  %v8051_v60 = vld [vmem:[%s11223_s1 + $0x828] ss:$16 sps:$4 sm:$0xff]   ;;  %v8068_v8 = vld [vmem:[%s11223_s1 + $0xa6c] ss:$16 sps:$4 sm:$0xff]  }
 0x201   :  { %5642 = vmatprep.subr.bf16.mxu1 %v8020_v49  ;;  %v8054_v63 = vld [vmem:[%s11223_s1 + $0xaa8] ss:$16 sps:$4 sm:$0xff]   ;;  %v8071_v49 = vld [vmem:[%s11223_s1 + $0x9cc] ss:$16 sps:$4 sm:$0xff]  }
 0x202   :  { %v5307_v5 = vpop.f32.mrf.mxu0  ;;  %v8057_v3 = vld [vmem:[%s11223_s1 + $0x808] ss:$16 sps:$4 sm:$0xff]  }
 0x203   :  { %v5348_v20 = vpop.f32.mrf.mxu1  ;;  %5593 = vmatmul.mubr.bf16.vlgmr.msra.gmra.mxu1 %v8935_v26  ;;  %v5308_v23 = vadd.f32 %v5307_v5, %v10082_v45  ;;  %5626 = vmatpush2.bf16.msra.mxu0 %v8015_v16  ;;  %v8029_v26 = vld [vmem:[%s11223_s1 + $0x72c] ss:$16 sps:$4 sm:$0xff]   ;;  %v8060_v1 = vld [vmem:[%s11223_s1 + $0xa88] ss:$16 sps:$4 sm:$0xff]  }
 0x204   :  { %5643 = vmatpush1.bf16.msra.mxu1 %v8018_v19  ;;  %v5309_v28 = vpop.f32.mrf.mxu0  ;;  %5627 = vmatprep.subr.bf16.mxu0 %v8023_v18  ;;  %v8032_v45 = vld [vmem:[%s11223_s1 + $0x8ac] ss:$16 sps:$4 sm:$0xff]   ;;  %v8063_v10 = vld [vmem:[%s11223_s1 + $0x9e8] ss:$16 sps:$4 sm:$0xff]  }
 0x205   :  { %v5350_v29 = vpop.f32.mrf.mxu1  ;;  %5644 = vmatprep.subr.bf16.mxu1 %v8026_v4  ;;  %v10284_v30 = vadd.f32 %v5348_v20, %v5308_v23  ;;  %v5310_v34 = vadd.f32 %v5309_v28, %v10092_v53  ;;  %5674 = vmatprep.mubr.bf16.mxu1 %v8988_v41  ;;  %v8035_v41 = vld [vmem:[%s11223_s1 + $0x70c] ss:$16 sps:$4 sm:$0xff]   ;;  %v8066_v11 = vld [vmem:[%s11223_s1 + $0xa68] ss:$16 sps:$4 sm:$0xff]  }
 0x206   :  { %v5311_v36 = vpop.f32.mrf.mxu0  ;;  %v8038_v53 = vld [vmem:[%s11223_s1 + $0x88c] ss:$16 sps:$4 sm:$0xff]   ;;  %v8069_v19 = vld [vmem:[%s11223_s1 + $0x9c8] ss:$16 sps:$4 sm:$0xff]  }
 0x207   :  { %v5352_v37 = vpop.f32.mrf.mxu1  ;;  %v10288_v38 = vadd.f32 %v5350_v29, %v5310_v34  ;;  %5628 = vmatpush2.bf16.msra.mxu0 %v8021_v21  ;;  %v8074_v16 = vld [vmem:[%s11223_s1 + $0xa4c] ss:$16 sps:$4 sm:$0xff]   ;;  %v8072_v18 = vld [vmem:[%s11223_s1 + $0xa48] ss:$16 sps:$4 sm:$0xff]  }
 0x208   :  { %5645 = vmatpush1.bf16.msra.mxu1 %v8024_v0  ;;  %v5312_v44 = vpop.f32.mrf.mxu0  ;;  %5629 = vmatprep.subr.bf16.mxu0 %v8029_v26  ;;  %v8077_v4 = vld [vmem:[%s11223_s1 + $0x9ac] ss:$16 sps:$4 sm:$0xff]   ;;  %v8075_v20 = vld [vmem:[%s11223_s1 + $0x9a8] ss:$16 sps:$4 sm:$0xff]  }
 0x209   :  { %v5353_v47 = vpop.f32.mrf.mxu1  ;;  %5646 = vmatprep.subr.bf16.mxu1 %v8032_v45  ;;  %v8080_v5 = vld [vmem:[%s11223_s1 + $0xa2c] ss:$16 sps:$4 sm:$0xff]   ;;  %v8078_v23 = vld [vmem:[%s11223_s1 + $0xa28] ss:$16 sps:$4 sm:$0xff]  }
 0x20a   :  { %v8083_v21 = vld [vmem:[%s11223_s1 + $0x98c] ss:$16 sps:$4 sm:$0xff]   ;;  %v8081_v28 = vld [vmem:[%s11223_s1 + $0x988] ss:$16 sps:$4 sm:$0xff]  }
 0x20b   :  { %5630 = vmatpush2.bf16.msra.mxu0 %v8027_v32  ;;  %v8086_v0 = vld [vmem:[%s11223_s1 + $0xa0c] ss:$16 sps:$4 sm:$0xff]   ;;  %v8084_v29 = vld [vmem:[%s11223_s1 + $0xa08] ss:$16 sps:$4 sm:$0xff]  }
 0x20c   :  { %5647 = vmatpush1.bf16.msra.mxu1 %v8030_v40  ;;  %5631 = vmatprep.subr.bf16.mxu0 %v8035_v41  ;;  %v8089_v26 = vld [vmem:[%s11223_s1 + $0x96c] ss:$16 sps:$4 sm:$0xff]   ;;  %v8087_v34 = vld [vmem:[%s11223_s1 + $0x968] ss:$16 sps:$4 sm:$0xff]  }
 0x20d   :  { %5648 = vmatprep.subr.bf16.mxu1 %v8038_v53  ;;  %v8092_v45 = vld [vmem:[%s11223_s1 + $0xbec] ss:$16 sps:$4 sm:$0xff]   ;;  %v8090_v36 = vld [vmem:[%s11223_s1 + $0xbe8] ss:$16 sps:$4 sm:$0xff]  }
 0x20e   :  { %v8095_v37 = vld [vmem:[%s11223_s1 + $0x94c] ss:$16 sps:$4 sm:$0xff]   ;;  %v8093_v40 = vld [vmem:[%s11223_s1 + $0x948] ss:$16 sps:$4 sm:$0xff]  }
 0x20f   :  { %5632 = vmatpush2.bf16.msra.mxu0 %v8033_v48  ;;  %v8098_v32 = vld [vmem:[%s11223_s1 + $0xbcc] ss:$16 sps:$4 sm:$0xff]   ;;  %v8096_v44 = vld [vmem:[%s11223_s1 + $0xbc8] ss:$16 sps:$4 sm:$0xff]  }
 0x210   :  { %5649 = vmatpush1.bf16.msra.mxu1 %v8036_v13  ;;  %5683 = vmatprep.subr.bf16.mxu0 %v8044_v51  ;;  %v8101_v47 = vld [vmem:[%s11223_s1 + $0x92c] ss:$16 sps:$4 sm:$0xff]   ;;  %v8099_v53 = vld [vmem:[%s11223_s1 + $0x928] ss:$16 sps:$4 sm:$0xff]  }
 0x211   :  { %5650 = vmatprep.subr.bf16.mxu1 %v8041_v46  ;;  %v8104_v41 = vld [vmem:[%s11223_s1 + $0xbac] ss:$16 sps:$4 sm:$0xff]   ;;  %v8102_v48 = vld [vmem:[%s11223_s1 + $0xba8] ss:$16 sps:$4 sm:$0xff]  }
 0x212   :  { %5634 = vmatmul.mubr.bf16.vlgmr.msra.gmra.mxu0 %v8948_v6  ;;  %v8056_v6 = vld [vmem:[%s11223_s1 + $0xaac] ss:$16 sps:$4 sm:$0xff]   ;;  %v8105_v51 = vld [vmem:[%s11223_s1 + $0x908] ss:$16 sps:$4 sm:$0xff]  }
 0x213   :  { %5684 = vmatpush1.bf16.msra.mxu0 %v8042_v55  ;;  %5715 = vmatprep.mubr.bf16.mxu0 %v8993_v43  ;;  %v8062_v43 = vld [vmem:[%s11223_s1 + $0xa8c] ss:$16 sps:$4 sm:$0xff]  }
 0x214   :  { %5651 = vmatpush1.bf16.msra.mxu1 %v8039_v56  ;;  %5685 = vmatprep.subr.bf16.mxu0 %v8050_v61  ;;  %v8107_v13 = vld [vmem:[%s11223_s1 + $0x90c] ss:$16 sps:$4 sm:$0xff]   ;;  %v8108_v56 = vld [vmem:[%s11223_s1 + $0xb88] ss:$16 sps:$4 sm:$0xff]  }
 0x215   :  { %5652 = vmatprep.subr.bf16.mxu1 %v8047_v58  ;;  %v8110_v46 = vld [vmem:[%s11223_s1 + $0xb8c] ss:$16 sps:$4 sm:$0xff]   ;;  %v8111_v61 = vld [vmem:[%s11223_s1 + $0xb68] ss:$16 sps:$4 sm:$0xff]  }
 0x216   :  { %v8113_v55 = vld [vmem:[%s11223_s1 + $0xb6c] ss:$16 sps:$4 sm:$0xff]  }
 0x217   :  { %5686 = vmatpush1.bf16.msra.mxu0 %v8048_v62  ;;  %v8116_v58 = vld [vmem:[%s11223_s1 + $0xcec] ss:$16 sps:$4 sm:$0xff]  }
 0x218   :  { %5653 = vmatpush1.bf16.msra.mxu1 %v8045_v57  ;;  %5687 = vmatprep.subr.bf16.mxu0 %v8056_v6  ;;  %v8114_v57 = vld [vmem:[%s11223_s1 + $0xce8] ss:$16 sps:$4 sm:$0xff]   ;;  %v8119_v62 = vld [vmem:[%s11223_s1 + $0xb4c] ss:$16 sps:$4 sm:$0xff]  }
 0x219   :  { %5654 = vmatprep.subr.bf16.mxu1 %v8053_v17  ;;  %v8122_v17 = vld [vmem:[%s11223_s1 + $0xccc] ss:$16 sps:$4 sm:$0xff]  }
 0x21b   :  { %5688 = vmatpush1.bf16.msra.mxu0 %v8054_v63 }
 0x21c   :  { %5655 = vmatpush1.bf16.msra.mxu1 %v8051_v60  ;;  %5689 = vmatprep.subr.bf16.mxu0 %v8062_v43  ;;  %v8120_v43 = vld [vmem:[%s11223_s1 + $0xcc8] ss:$16 sps:$4 sm:$0xff]  }
 0x21d   :  { %5656 = vmatprep.subr.bf16.mxu1 %v8059_v2  ;;  %v8117_v2 = vld [vmem:[%s11223_s1 + $0xb48] ss:$16 sps:$4 sm:$0xff]  }
 0x21f   :  { %5690 = vmatpush1.bf16.msra.mxu0 %v8060_v1 }
 0x220   :  { %5657 = vmatpush1.bf16.msra.mxu1 %v8057_v3  ;;  %5691 = vmatprep.subr.bf16.mxu0 %v8068_v8 }
 0x221   :  { %5658 = vmatprep.subr.bf16.mxu1 %v8065_v7 }
 0x223   :  { %5692 = vmatpush1.bf16.msra.mxu0 %v8066_v11 }
 0x224   :  { %5659 = vmatpush2.bf16.msra.mxu1 %v8063_v10  ;;  %5693 = vmatprep.subr.bf16.mxu0 %v8074_v16  ;;  %v8123_v16 = vld [vmem:[%s11223_s1 + $0xb28] ss:$16 sps:$4 sm:$0xff]  }
 0x225   :  { %5660 = vmatprep.subr.bf16.mxu1 %v8071_v49 }
 0x227   :  { %5694 = vmatpush1.bf16.msra.mxu0 %v8072_v18 }
 0x228   :  { %5661 = vmatpush2.bf16.msra.mxu1 %v8069_v19  ;;  %5695 = vmatprep.subr.bf16.mxu0 %v8080_v5  ;;  %v8126_v19 = vld [vmem:[%s11223_s1 + $0xca8] ss:$16 sps:$4 sm:$0xff]  }
 0x229   :  { %5662 = vmatprep.subr.bf16.mxu1 %v8077_v4  ;;  %v8129_v5 = vld [vmem:[%s11223_s1 + $0xb08] ss:$16 sps:$4 sm:$0xff]  }
 0x22b   :  { %5696 = vmatpush1.bf16.msra.mxu0 %v8078_v23  ;;  %v8137_v23 = vld [vmem:[%s11223_s1 + $0xc6c] ss:$16 sps:$4 sm:$0xff]  }
 0x22c   :  { %5663 = vmatpush2.bf16.msra.mxu1 %v8075_v20  ;;  %5697 = vmatprep.subr.bf16.mxu0 %v8086_v0  ;;  %v8132_v20 = vld [vmem:[%s11223_s1 + $0xc88] ss:$16 sps:$4 sm:$0xff]  }
 0x22d   :  { %5664 = vmatprep.subr.bf16.mxu1 %v8083_v21  ;;  %v8140_v21 = vld [vmem:[%s11223_s1 + $0xeec] ss:$16 sps:$4 sm:$0xff]   ;;  %v8135_v0 = vld [vmem:[%s11223_s1 + $0xc68] ss:$16 sps:$4 sm:$0xff]  }
 0x22f   :  { %5698 = vmatpush1.bf16.msra.mxu0 %v8084_v29  ;;  %v8143_v29 = vld [vmem:[%s11223_s1 + $0xc4c] ss:$16 sps:$4 sm:$0xff]  }
 0x230   :  { %5665 = vmatpush2.bf16.msra.mxu1 %v8081_v28  ;;  %5699 = vmatprep.subr.bf16.mxu0 %v8092_v45  ;;  %v8138_v28 = vld [vmem:[%s11223_s1 + $0xee8] ss:$16 sps:$4 sm:$0xff]  }
 0x231   :  { %5666 = vmatprep.subr.bf16.mxu1 %v8089_v26  ;;  %v8146_v26 = vld [vmem:[%s11223_s1 + $0xecc] ss:$16 sps:$4 sm:$0xff]  }
 0x233   :  { %5700 = vmatpush2.bf16.msra.mxu0 %v8090_v36  ;;  %v8141_v36 = vld [vmem:[%s11223_s1 + $0xc48] ss:$16 sps:$4 sm:$0xff]  }
 0x234   :  { %5667 = vmatpush2.bf16.msra.mxu1 %v8087_v34  ;;  %5701 = vmatprep.subr.bf16.mxu0 %v8098_v32 }
 0x235   :  { %5668 = vmatprep.subr.bf16.mxu1 %v8095_v37  ;;  %v8144_v37 = vld [vmem:[%s11223_s1 + $0xec8] ss:$16 sps:$4 sm:$0xff]  }
 0x237   :  { %5702 = vmatpush2.bf16.msra.mxu0 %v8096_v44 }
 0x238   :  { %5669 = vmatpush2.bf16.msra.mxu1 %v8093_v40  ;;  %5703 = vmatprep.subr.bf16.mxu0 %v8104_v41  ;;  %v8149_v40 = vld [vmem:[%s11223_s1 + $0xc2c] ss:$16 sps:$4 sm:$0xff]   ;;  %v8147_v41 = vld [vmem:[%s11223_s1 + $0xc28] ss:$16 sps:$4 sm:$0xff]  }
 0x239   :  { %5670 = vmatprep.subr.bf16.mxu1 %v8101_v47 }
 0x23b   :  { %5704 = vmatpush2.bf16.msra.mxu0 %v8102_v48 }
 0x23c   :  { %5671 = vmatpush2.bf16.msra.mxu1 %v8099_v53  ;;  %5705 = vmatprep.subr.bf16.mxu0 %v8110_v46  ;;  %v8150_v53 = vld [vmem:[%s11223_s1 + $0xea8] ss:$16 sps:$4 sm:$0xff]  }
 0x23d   :  { %5672 = vmatprep.subr.bf16.mxu1 %v8107_v13  ;;  %v8155_v13 = vld [vmem:[%s11223_s1 + $0xc0c] ss:$16 sps:$4 sm:$0xff]   ;;  %v8153_v46 = vld [vmem:[%s11223_s1 + $0xc08] ss:$16 sps:$4 sm:$0xff]  }
 0x23f   :  { %5706 = vmatpush2.bf16.msra.mxu0 %v8108_v56  ;;  %v8161_v56 = vld [vmem:[%s11223_s1 + $0xdec] ss:$16 sps:$4 sm:$0xff]  }
 0x240   :  { %5673 = vmatpush2.bf16.msra.mxu1 %v8105_v51  ;;  %5707 = vmatprep.subr.bf16.mxu0 %v8113_v55  ;;  %v8156_v51 = vld [vmem:[%s11223_s1 + $0xe88] ss:$16 sps:$4 sm:$0xff]   ;;  %v8164_v55 = vld [vmem:[%s11223_s1 + $0xe6c] ss:$16 sps:$4 sm:$0xff]  }
 0x241   :  { %5724 = vmatprep.subr.bf16.mxu1 %v8116_v58  ;;  %v8159_v58 = vld [vmem:[%s11223_s1 + $0xde8] ss:$16 sps:$4 sm:$0xff]  }
 0x242   :  { %v5389_v6 = vpop.f32.mrf.mxu0 }
 0x243   :  { %v5430_v60 = vpop.f32.mrf.mxu1  ;;  %5675 = vmatmul.mubr.bf16.vlgmr.msra.gmra.mxu1 %v9164_v50  ;;  %v5390_v63 = vadd.f32 %v5389_v6, %v10284_v30  ;;  %5708 = vmatpush2.bf16.msra.mxu0 %v8111_v61  ;;  %v8125_v50 = vld [vmem:[%s11223_s1 + $0xb2c] ss:$16 sps:$4 sm:$0xff]   ;;  %v8162_v61 = vld [vmem:[%s11223_s1 + $0xe68] ss:$16 sps:$4 sm:$0xff]  }
 0x244   :  { %5725 = vmatpush1.bf16.msra.mxu1 %v8114_v57  ;;  %v5391_v3 = vpop.f32.mrf.mxu0  ;;  %5709 = vmatprep.subr.bf16.mxu0 %v8119_v62  ;;  %v8128_v30 = vld [vmem:[%s11223_s1 + $0xcac] ss:$16 sps:$4 sm:$0xff]   ;;  %v8168_v6 = vld [vmem:[%s11223_s1 + $0xe48] ss:$16 sps:$4 sm:$0xff]  }
 0x245   :  { %v5432_v1 = vpop.f32.mrf.mxu1  ;;  %5726 = vmatprep.subr.bf16.mxu1 %v8122_v17  ;;  %v5431_v7 = vadd.f32 %v5430_v60, %v5390_v63  ;;  %v5392_v8 = vadd.f32 %v5391_v3, %v10288_v38  ;;  %5756 = vmatprep.mubr.bf16.mxu1 %v9176_v54  ;;  %v8131_v54 = vld [vmem:[%s11223_s1 + $0xb0c] ss:$16 sps:$4 sm:$0xff]   ;;  %v8165_v17 = vld [vmem:[%s11223_s1 + $0xdc8] ss:$16 sps:$4 sm:$0xff]  }
 0x246   :  { %v5393_v10 = vpop.f32.mrf.mxu0  ;;  %v8134_v38 = vld [vmem:[%s11223_s1 + $0xc8c] ss:$16 sps:$4 sm:$0xff]  }
 0x247   :  { %v5434_v11 = vpop.f32.mrf.mxu1  ;;  %v5433_v49 = vadd.f32 %v5432_v1, %v5392_v8  ;;  %5710 = vmatpush2.bf16.msra.mxu0 %v8117_v2  ;;  %v8167_v57 = vld [vmem:[%s11223_s1 + $0xdcc] ss:$16 sps:$4 sm:$0xff]   ;;  %v8171_v2 = vld [vmem:[%s11223_s1 + $0xda8] ss:$16 sps:$4 sm:$0xff]  }
 0x248   :  { %5727 = vmatpush1.bf16.msra.mxu1 %v8120_v43  ;;  %v5394_v18 = vpop.f32.mrf.mxu0  ;;  %5711 = vmatprep.subr.bf16.mxu0 %v8125_v50  ;;  %v8170_v62 = vld [vmem:[%s11223_s1 + $0xe4c] ss:$16 sps:$4 sm:$0xff]   ;;  %v8174_v43 = vld [vmem:[%s11223_s1 + $0xe28] ss:$16 sps:$4 sm:$0xff]  }
 0x249   :  { %v5435_v4 = vpop.f32.mrf.mxu1  ;;  %5728 = vmatprep.subr.bf16.mxu1 %v8128_v30  ;;  %v8173_v60 = vld [vmem:[%s11223_s1 + $0xdac] ss:$16 sps:$4 sm:$0xff]   ;;  %v8177_v50 = vld [vmem:[%s11223_s1 + $0xd88] ss:$16 sps:$4 sm:$0xff]  }
 0x24a   :  { %v8176_v63 = vld [vmem:[%s11223_s1 + $0xe2c] ss:$16 sps:$4 sm:$0xff]   ;;  %v8180_v30 = vld [vmem:[%s11223_s1 + $0xe08] ss:$16 sps:$4 sm:$0xff]  }
 0x24b   :  { %5712 = vmatpush2.bf16.msra.mxu0 %v8123_v16  ;;  %v8179_v3 = vld [vmem:[%s11223_s1 + $0xd8c] ss:$16 sps:$4 sm:$0xff]   ;;  %v8183_v10 = vld [vmem:[%s11223_s1 + $0xd68] ss:$16 sps:$4 sm:$0xff]  }
 0x24c   :  { %5729 = vmatpush1.bf16.msra.mxu1 %v8126_v19  ;;  %5713 = vmatprep.subr.bf16.mxu0 %v8131_v54  ;;  %v8182_v1 = vld [vmem:[%s11223_s1 + $0xe0c] ss:$16 sps:$4 sm:$0xff]   ;;  %v8186_v11 = vld [vmem:[%s11223_s1 + $0xfe8] ss:$16 sps:$4 sm:$0xff]  }
 0x24d   :  { %5730 = vmatprep.subr.bf16.mxu1 %v8134_v38  ;;  %v8188_v8 = vld [vmem:[%s11223_s1 + $0xfec] ss:$16 sps:$4 sm:$0xff]   ;;  %v8189_v19 = vld [vmem:[%s11223_s1 + $0xd48] ss:$16 sps:$4 sm:$0xff]  }
 0x24e   :  { %v8194_v16 = vld [vmem:[%s11223_s1 + $0xfcc] ss:$16 sps:$4 sm:$0xff]   ;;  %v8192_v18 = vld [vmem:[%s11223_s1 + $0xfc8] ss:$16 sps:$4 sm:$0xff]  }
 0x24f   :  { %5714 = vmatpush2.bf16.msra.mxu0 %v8129_v5  ;;  %v8197_v4 = vld [vmem:[%s11223_s1 + $0xd2c] ss:$16 sps:$4 sm:$0xff]   ;;  %v8195_v38 = vld [vmem:[%s11223_s1 + $0xd28] ss:$16 sps:$4 sm:$0xff]  }
 0x250   :  { %5731 = vmatpush1.bf16.msra.mxu1 %v8132_v20  ;;  %5765 = vmatprep.subr.bf16.mxu0 %v8140_v21  ;;  %v8200_v54 = vld [vmem:[%s11223_s1 + $0xfac] ss:$16 sps:$4 sm:$0xff]   ;;  %v8198_v5 = vld [vmem:[%s11223_s1 + $0xfa8] ss:$16 sps:$4 sm:$0xff]  }
 0x251   :  { %5732 = vmatprep.subr.bf16.mxu1 %v8137_v23  ;;  %v8203_v20 = vld [vmem:[%s11223_s1 + $0xd0c] ss:$16 sps:$4 sm:$0xff]   ;;  %v8201_v21 = vld [vmem:[%s11223_s1 + $0xd08] ss:$16 sps:$4 sm:$0xff]  }
 0x252   :  { %v5471_v45 = vpop.f32.mrf.mxu0  ;;  %5716 = vmatmul.mubr.bf16.vlgmr.msra.gmra.mxu0 %v9180_v35  ;;  %v8152_v35 = vld [vmem:[%s11223_s1 + $0xeac] ss:$16 sps:$4 sm:$0xff]  }
 0x253   :  { %v10525_v34 = vadd.f32 %v5471_v45, %v5431_v7  ;;  %5766 = vmatpush1.bf16.msra.mxu0 %v8138_v28  ;;  %5797 = vmatprep.mubr.bf16.mxu0 %v9196_v59  ;;  %v8158_v59 = vld [vmem:[%s11223_s1 + $0xe8c] ss:$16 sps:$4 sm:$0xff]   ;;  %v8210_v45 = vld [vmem:[%s11223_s1 + $0x10e8] ss:$16 sps:$4 sm:$0xff]  }
 0x254   :  { %5733 = vmatpush1.bf16.msra.mxu1 %v8135_v0  ;;  %v5473_v32 = vpop.f32.mrf.mxu0  ;;  %5767 = vmatprep.subr.bf16.mxu0 %v8146_v26  ;;  %v8185_v7 = vld [vmem:[%s11223_s1 + $0xd6c] ss:$16 sps:$4 sm:$0xff]   ;;  %v8204_v0 = vld [vmem:[%s11223_s1 + $0xf88] ss:$16 sps:$4 sm:$0xff]  }
 0x255   :  { %5734 = vmatprep.subr.bf16.mxu1 %v8143_v29  ;;  %v10539_v44 = vadd.f32 %v5473_v32, %v5433_v49  ;;  %v8191_v49 = vld [vmem:[%s11223_s1 + $0xd4c] ss:$16 sps:$4 sm:$0xff]   ;;  %v8207_v26 = vld [vmem:[%s11223_s1 + $0xf68] ss:$16 sps:$4 sm:$0xff]  }
 0x256   :  { %v5475_v47 = vpop.f32.mrf.mxu0  ;;  %v8206_v23 = vld [vmem:[%s11223_s1 + $0xf8c] ss:$16 sps:$4 sm:$0xff]  }
 0x257   :  { %5768 = vmatpush1.bf16.msra.mxu0 %v8144_v37  ;;  %v8209_v28 = vld [vmem:[%s11223_s1 + $0xf6c] ss:$16 sps:$4 sm:$0xff]  }
 0x258   :  { %5735 = vmatpush1.bf16.msra.mxu1 %v8141_v36  ;;  %v5476_v48 = vpop.f32.mrf.mxu0  ;;  %5769 = vmatprep.subr.bf16.mxu0 %v8152_v35  ;;  %v8212_v29 = vld [vmem:[%s11223_s1 + $0x10ec] ss:$16 sps:$4 sm:$0xff]   ;;  %v8216_v35 = vld [vmem:[%s11223_s1 + $0x10c8] ss:$16 sps:$4 sm:$0xff]  }
 0x259   :  { %5736 = vmatprep.subr.bf16.mxu1 %v8149_v40  ;;  %v8215_v36 = vld [vmem:[%s11223_s1 + $0xf4c] ss:$16 sps:$4 sm:$0xff]   ;;  %v8213_v40 = vld [vmem:[%s11223_s1 + $0xf48] ss:$16 sps:$4 sm:$0xff]  }
 0x25a   :  { %v8218_v37 = vld [vmem:[%s11223_s1 + $0x10cc] ss:$16 sps:$4 sm:$0xff]   ;;  %v8219_v48 = vld [vmem:[%s11223_s1 + $0xf28] ss:$16 sps:$4 sm:$0xff]  }
 0x25b   :  { %5770 = vmatpush1.bf16.msra.mxu0 %v8150_v53 }
 0x25c   :  { %5737 = vmatpush1.bf16.msra.mxu1 %v8147_v41  ;;  %5771 = vmatprep.subr.bf16.mxu0 %v8158_v59  ;;  %v8221_v41 = vld [vmem:[%s11223_s1 + $0xf2c] ss:$16 sps:$4 sm:$0xff]  }
 0x25d   :  { %5738 = vmatprep.subr.bf16.mxu1 %v8155_v13  ;;  %v8222_v13 = vld [vmem:[%s11223_s1 + $0x10a8] ss:$16 sps:$4 sm:$0xff]  }
 0x25f   :  { %5772 = vmatpush1.bf16.msra.mxu0 %v8156_v51  ;;  %v822_v51 = vsub.s32 2, %v8628_v42 }
 0x260   :  { %5739 = vmatpush1.bf16.msra.mxu1 %v8153_v46  ;;  %5773 = vmatprep.subr.bf16.mxu0 %v8164_v55  ;;  %v8227_v46 = vld [vmem:[%s11223_s1 + $0xf0c] ss:$16 sps:$4 sm:$0xff]   ;;  %v8225_v55 = vld [vmem:[%s11223_s1 + $0xf08] ss:$16 sps:$4 sm:$0xff]  }
 0x261   :  { %5740 = vmatprep.subr.bf16.mxu1 %v8161_v56  ;;  %v826_v56 = vsub.s32 3, %v8628_v42  ;;  %v8236_v42 = vld [vmem:[%s11223_s1 + $0x12ec] ss:$16 sps:$4 sm:$0xff]  }
 0x263   :  { %5774 = vmatpush1.bf16.msra.mxu0 %v8162_v61  ;;  %v8233_v61 = vld [vmem:[%s11223_s1 + $0x106c] ss:$16 sps:$4 sm:$0xff]  }
 0x264   :  { %5741 = vmatpush2.bf16.msra.mxu1 %v8159_v58  ;;  %5775 = vmatprep.subr.bf16.mxu0 %v8170_v62  ;;  %v8228_v58 = vld [vmem:[%s11223_s1 + $0x1088] ss:$16 sps:$4 sm:$0xff]  }
 0x265   :  { %5742 = vmatprep.subr.bf16.mxu1 %v8167_v57  ;;  %v8455_v57 = vld [vmem:[%s11224_s2] sm:$0xf] }
 0x266   :  { %v823_v62 = vrot.slane %v8455_v57, %v822_v51  ;;  %v8288_v51 = vld [vmem:[%s11223_s1 + $0x13c8] ss:$16 sps:$4 sm:$0xff]  }
 0x267   :  { %5776 = vmatpush1.bf16.msra.mxu0 %v8168_v6  ;;  %v8231_v6 = vld [vmem:[%s11223_s1 + $0x1068] ss:$16 sps:$4 sm:$0xff]  }
 0x268   :  { %5743 = vmatpush2.bf16.msra.mxu1 %v8165_v17  ;;  %5777 = vmatprep.subr.bf16.mxu0 %v8176_v63  ;;  %v827_v17 = vrot.slane %v8455_v57, %v826_v56  ;;  %v8239_v63 = vld [vmem:[%s11223_s1 + $0x104c] ss:$16 sps:$4 sm:$0xff]  }
 0x269   :  { %5744 = vmatprep.subr.bf16.mxu1 %v8173_v60  ;;  %v8234_v60 = vld [vmem:[%s11223_s1 + $0x12e8] ss:$16 sps:$4 sm:$0xff]   ;;  %v8293_v56 = vld [vmem:[%s11223_s1 + $0x112c] ss:$16 sps:$4 sm:$0xff]  }
 0x26a   :  { %v8302_v57 = vld [vmem:[%s11223_s1 + $0x138c] ss:$16 sps:$4 sm:$0xff]  }
 0x26b   :  { %5778 = vmatpush1.bf16.msra.mxu0 %v8174_v43 }
 0x26c   :  { %5745 = vmatpush2.bf16.msra.mxu1 %v8171_v2  ;;  %5779 = vmatprep.subr.bf16.mxu0 %v8182_v1  ;;  %v8242_v2 = vld [vmem:[%s11223_s1 + $0x12cc] ss:$16 sps:$4 sm:$0xff]  }
 0x26d   :  { %5746 = vmatprep.subr.bf16.mxu1 %v8179_v3 }
 0x26f   :  { %5780 = vmatpush1.bf16.msra.mxu0 %v8180_v30  ;;  %v8237_v30 = vld [vmem:[%s11223_s1 + $0x1048] ss:$16 sps:$4 sm:$0xff]  }
 0x270   :  { %5747 = vmatpush2.bf16.msra.mxu1 %v8177_v50  ;;  %5781 = vmatprep.subr.bf16.mxu0 %v8188_v8 }
 0x271   :  { %5748 = vmatprep.subr.bf16.mxu1 %v8185_v7  ;;  %v8240_v7 = vld [vmem:[%s11223_s1 + $0x12c8] ss:$16 sps:$4 sm:$0xff]  }
 0x273   :  { %5782 = vmatpush2.bf16.msra.mxu0 %v8186_v11 }
 0x274   :  { %5749 = vmatpush2.bf16.msra.mxu1 %v8183_v10  ;;  %5783 = vmatprep.subr.bf16.mxu0 %v8194_v16  ;;  %v8248_v10 = vld [vmem:[%s11223_s1 + $0x12ac] ss:$16 sps:$4 sm:$0xff]   ;;  %v8243_v16 = vld [vmem:[%s11223_s1 + $0x1028] ss:$16 sps:$4 sm:$0xff]  }
 0x275   :  { %5750 = vmatprep.subr.bf16.mxu1 %v8191_v49 }
 0x277   :  { %5784 = vmatpush2.bf16.msra.mxu0 %v8192_v18 }
 0x278   :  { %5751 = vmatpush2.bf16.msra.mxu1 %v8189_v19  ;;  %5785 = vmatprep.subr.bf16.mxu0 %v8200_v54  ;;  %v8246_v19 = vld [vmem:[%s11223_s1 + $0x12a8] ss:$16 sps:$4 sm:$0xff]  }
 0x279   :  { %5752 = vmatprep.subr.bf16.mxu1 %v8197_v4  ;;  %v8251_v4 = vld [vmem:[%s11223_s1 + $0x100c] ss:$16 sps:$4 sm:$0xff]   ;;  %v8249_v54 = vld [vmem:[%s11223_s1 + $0x1008] ss:$16 sps:$4 sm:$0xff]  }
 0x27b   :  { %5786 = vmatpush2.bf16.msra.mxu0 %v8198_v5  ;;  %v8257_v5 = vld [vmem:[%s11223_s1 + $0x11ec] ss:$16 sps:$4 sm:$0xff]  }
 0x27c   :  { %5753 = vmatpush2.bf16.msra.mxu1 %v8195_v38  ;;  %5787 = vmatprep.subr.bf16.mxu0 %v8206_v23  ;;  %v8252_v38 = vld [vmem:[%s11223_s1 + $0x1288] ss:$16 sps:$4 sm:$0xff]  }
 0x27d   :  { %5754 = vmatprep.subr.bf16.mxu1 %v8203_v20  ;;  %v8260_v20 = vld [vmem:[%s11223_s1 + $0x126c] ss:$16 sps:$4 sm:$0xff]   ;;  %v8255_v23 = vld [vmem:[%s11223_s1 + $0x11e8] ss:$16 sps:$4 sm:$0xff]  }
 0x27f   :  { %5788 = vmatpush2.bf16.msra.mxu0 %v8204_v0  ;;  %v8263_v0 = vld [vmem:[%s11223_s1 + $0x11cc] ss:$16 sps:$4 sm:$0xff]  }
 0x280   :  { %5755 = vmatpush2.bf16.msra.mxu1 %v8201_v21  ;;  %5789 = vmatprep.subr.bf16.mxu0 %v8209_v28  ;;  %v8258_v21 = vld [vmem:[%s11223_s1 + $0x1268] ss:$16 sps:$4 sm:$0xff]   ;;  %v8266_v28 = vld [vmem:[%s11223_s1 + $0x124c] ss:$16 sps:$4 sm:$0xff]  }
 0x281   :  { %5806 = vmatprep.subr.bf16.mxu1 %v8212_v29  ;;  %v8261_v29 = vld [vmem:[%s11223_s1 + $0x11c8] ss:$16 sps:$4 sm:$0xff]  }
 0x283   :  { %v5512_v32 = vpop.f32.mrf.mxu1  ;;  %5757 = vmatmul.mubr.bf16.vlgmr.msra.gmra.mxu1 %v9392_v15  ;;  %5790 = vmatpush2.bf16.msra.mxu0 %v8207_v26  ;;  %v8224_v15 = vld [vmem:[%s11223_s1 + $0x10ac] ss:$16 sps:$4 sm:$0xff]   ;;  %v8264_v26 = vld [vmem:[%s11223_s1 + $0x1248] ss:$16 sps:$4 sm:$0xff]  }
 0x284   :  { %5807 = vmatpush1.bf16.msra.mxu1 %v8210_v45  ;;  %5791 = vmatprep.subr.bf16.mxu0 %v8215_v36  ;;  %v5513_v43 = vadd.f32 %v5512_v32, %v823_v62  ;;  %v8269_v45 = vld [vmem:[%s11223_s1 + $0x11ac] ss:$16 sps:$4 sm:$0xff]   ;;  %v8270_v32 = vld [vmem:[%s11223_s1 + $0x1228] ss:$16 sps:$4 sm:$0xff]  }
 0x285   :  { %v5514_v47 = vpop.f32.mrf.mxu1  ;;  %5808 = vmatprep.subr.bf16.mxu1 %v8218_v37  ;;  %5838 = vmatprep.mubr.bf16.mxu1 %v9403_v22  ;;  %v8230_v22 = vld [vmem:[%s11223_s1 + $0x108c] ss:$16 sps:$4 sm:$0xff]   ;;  %v8267_v37 = vld [vmem:[%s11223_s1 + $0x11a8] ss:$16 sps:$4 sm:$0xff]  }
 0x286   :  { %v5515_v1 = vadd.f32 %v5514_v47, %v827_v17  ;;  %v8272_v36 = vld [vmem:[%s11223_s1 + $0x122c] ss:$16 sps:$4 sm:$0xff]   ;;  %v8273_v47 = vld [vmem:[%s11223_s1 + $0x1188] ss:$16 sps:$4 sm:$0xff]  }
 0x287   :  { %v5516_v53 = vpop.f32.mrf.mxu1  ;;  %5792 = vmatpush2.bf16.msra.mxu0 %v8213_v40  ;;  %v8275_v40 = vld [vmem:[%s11223_s1 + $0x118c] ss:$16 sps:$4 sm:$0xff]   ;;  %v8297_v62 = vld [vmem:[%s11223_s1 + $0x1108] ss:$16 sps:$4 sm:$0xff]  }
 0x288   :  { %5809 = vmatpush1.bf16.msra.mxu1 %v8216_v35  ;;  %5793 = vmatprep.subr.bf16.mxu0 %v8221_v41  ;;  %v8278_v35 = vld [vmem:[%s11223_s1 + $0x120c] ss:$16 sps:$4 sm:$0xff]   ;;  %v8276_v41 = vld [vmem:[%s11223_s1 + $0x1208] ss:$16 sps:$4 sm:$0xff]  }
 0x289   :  { %v5517_v59 = vpop.f32.mrf.mxu1  ;;  %5810 = vmatprep.subr.bf16.mxu1 %v8224_v15  ;;  %v8281_v15 = vld [vmem:[%s11223_s1 + $0x116c] ss:$16 sps:$4 sm:$0xff]   ;;  %v8300_v17 = vld [vmem:[%s11223_s1 + $0x1388] ss:$16 sps:$4 sm:$0xff]  }
 0x28a   :  { %v8284_v53 = vld [vmem:[%s11223_s1 + $0x13ec] ss:$16 sps:$4 sm:$0xff]  }
 0x28b   :  { %5794 = vmatpush2.bf16.msra.mxu0 %v8219_v48  ;;  %v8279_v48 = vld [vmem:[%s11223_s1 + $0x1168] ss:$16 sps:$4 sm:$0xff]   ;;  %v8287_v59 = vld [vmem:[%s11223_s1 + $0x114c] ss:$16 sps:$4 sm:$0xff]  }
 0x28c   :  { %5811 = vmatpush1.bf16.msra.mxu1 %v8222_v13  ;;  %5795 = vmatprep.subr.bf16.mxu0 %v8227_v46  ;;  %v8282_v13 = vld [vmem:[%s11223_s1 + $0x13e8] ss:$16 sps:$4 sm:$0xff]   ;;  %v8290_v46 = vld [vmem:[%s11223_s1 + $0x13cc] ss:$16 sps:$4 sm:$0xff]  }
 0x28d   :  { %5812 = vmatprep.subr.bf16.mxu1 %v8230_v22  ;;  %v8285_v22 = vld [vmem:[%s11223_s1 + $0x1148] ss:$16 sps:$4 sm:$0xff]  }
 0x28f   :  { %5796 = vmatpush2.bf16.msra.mxu0 %v8225_v55  ;;  %v8296_v55 = vld [vmem:[%s11223_s1 + $0x13ac] ss:$16 sps:$4 sm:$0xff]  }
 0x290   :  { %5813 = vmatpush1.bf16.msra.mxu1 %v8228_v58  ;;  %5847 = vmatprep.subr.bf16.mxu0 %v8236_v42  ;;  %v8291_v58 = vld [vmem:[%s11223_s1 + $0x1128] ss:$16 sps:$4 sm:$0xff]   ;;  %v8299_v42 = vld [vmem:[%s11223_s1 + $0x110c] ss:$16 sps:$4 sm:$0xff]  }
 0x291   :  { %5814 = vmatprep.subr.bf16.mxu1 %v8233_v61  ;;  %v8294_v61 = vld [vmem:[%s11223_s1 + $0x13a8] ss:$16 sps:$4 sm:$0xff]  }
 0x292   :  { %v5553_v3 = vpop.f32.mrf.mxu0  ;;  %5798 = vmatmul.mubr.bf16.vlgmr.msra.gmra.mxu0 %v9407_v39  ;;  %v8245_v39 = vld [vmem:[%s11223_s1 + $0x102c] ss:$16 sps:$4 sm:$0xff]  }
 0x293   :  { %v10730_v50 = vadd.f32 %v5553_v3, %v5513_v43  ;;  %5848 = vmatpush1.bf16.msra.mxu0 %v8234_v60  ;;  %5879 = vmatprep.mubr.bf16.mxu0 %v9423_v31  ;;  %v8254_v31 = vld [vmem:[%s11223_s1 + $0x128c] ss:$16 sps:$4 sm:$0xff]  }
 0x294   :  { %5815 = vmatpush1.bf16.msra.mxu1 %v8231_v6  ;;  %v5555_v8 = vpop.f32.mrf.mxu0  ;;  %5849 = vmatprep.subr.bf16.mxu0 %v8242_v2  ;;  %v8305_v6 = vld [vmem:[%s11223_s1 + $0x136c] ss:$16 sps:$4 sm:$0xff]   ;;  %v8306_v2 = vld [vmem:[%s11223_s1 + $0x14e8] ss:$16 sps:$4 sm:$0xff]  }
 0x295   :  { %5816 = vmatprep.subr.bf16.mxu1 %v8239_v63  ;;  %v10744_v11 = vadd.f32 %v5555_v8, %v5515_v1  ;;  %v8308_v60 = vld [vmem:[%s11223_s1 + $0x14ec] ss:$16 sps:$4 sm:$0xff]   ;;  %v8303_v63 = vld [vmem:[%s11223_s1 + $0x1368] ss:$16 sps:$4 sm:$0xff]  }
 0x296   :  { %v5557_v49 = vpop.f32.mrf.mxu0  ;;  %v8311_v43 = vld [vmem:[%s11223_s1 + $0x134c] ss:$16 sps:$4 sm:$0xff]   ;;  %v8312_v8 = vld [vmem:[%s11223_s1 + $0x14c8] ss:$16 sps:$4 sm:$0xff]  }
 0x297   :  { %5850 = vmatpush1.bf16.msra.mxu0 %v8240_v7  ;;  %v8314_v3 = vld [vmem:[%s11223_s1 + $0x14cc] ss:$16 sps:$4 sm:$0xff]   ;;  %v8309_v7 = vld [vmem:[%s11223_s1 + $0x1348] ss:$16 sps:$4 sm:$0xff]  }
 0x298   :  { %5817 = vmatpush1.bf16.msra.mxu1 %v8237_v30  ;;  %v5558_v18 = vpop.f32.mrf.mxu0  ;;  %5851 = vmatprep.subr.bf16.mxu0 %v8248_v10  ;;  %v8317_v10 = vld [vmem:[%s11223_s1 + $0x132c] ss:$16 sps:$4 sm:$0xff]  }
 0x299   :  { %5818 = vmatprep.subr.bf16.mxu1 %v8245_v39 }
 0x29b   :  { %5852 = vmatpush1.bf16.msra.mxu0 %v8246_v19  ;;  %v8318_v19 = vld [vmem:[%s11223_s1 + $0x14a8] ss:$16 sps:$4 sm:$0xff]  }
 0x29c   :  { %5819 = vmatpush1.bf16.msra.mxu1 %v8243_v16  ;;  %5853 = vmatprep.subr.bf16.mxu0 %v8254_v31  ;;  %v8315_v16 = vld [vmem:[%s11223_s1 + $0x1328] ss:$16 sps:$4 sm:$0xff]  }
 0x29d   :  { %5820 = vmatprep.subr.bf16.mxu1 %v8251_v4  ;;  %v8321_v4 = vld [vmem:[%s11223_s1 + $0x1308] ss:$16 sps:$4 sm:$0xff]  }
 0x29e   :  { %v8324_v31 = vld [vmem:[%s11223_s1 + $0x1488] ss:$16 sps:$4 sm:$0xff]  }
 0x29f   :  { %5854 = vmatpush1.bf16.msra.mxu0 %v8252_v38  ;;  %v8332_v38 = vld [vmem:[%s11223_s1 + $0x16ec] ss:$16 sps:$4 sm:$0xff]  }
 0x2a0   :  { %5821 = vmatpush1.bf16.msra.mxu1 %v8249_v54  ;;  %5855 = vmatprep.subr.bf16.mxu0 %v8260_v20  ;;  %v8329_v54 = vld [vmem:[%s11223_s1 + $0x146c] ss:$16 sps:$4 sm:$0xff]   ;;  %v8330_v20 = vld [vmem:[%s11223_s1 + $0x16e8] ss:$16 sps:$4 sm:$0xff]  }
 0x2a1   :  { %5822 = vmatprep.subr.bf16.mxu1 %v8257_v5  ;;  %v8327_v5 = vld [vmem:[%s11223_s1 + $0x1468] ss:$16 sps:$4 sm:$0xff]  }
 0x2a3   :  { %5856 = vmatpush1.bf16.msra.mxu0 %v8258_v21  ;;  %v8338_v21 = vld [vmem:[%s11223_s1 + $0x16cc] ss:$16 sps:$4 sm:$0xff]  }
 0x2a4   :  { %5823 = vmatpush2.bf16.msra.mxu1 %v8255_v23  ;;  %5857 = vmatprep.subr.bf16.mxu0 %v8266_v28  ;;  %v8335_v23 = vld [vmem:[%s11223_s1 + $0x144c] ss:$16 sps:$4 sm:$0xff]  }
 0x2a5   :  { %5824 = vmatprep.subr.bf16.mxu1 %v8263_v0 }
 0x2a7   :  { %5858 = vmatpush1.bf16.msra.mxu0 %v8264_v26  ;;  %v8336_v26 = vld [vmem:[%s11223_s1 + $0x16c8] ss:$16 sps:$4 sm:$0xff]  }
 0x2a8   :  { %5825 = vmatpush2.bf16.msra.mxu1 %v8261_v29  ;;  %5859 = vmatprep.subr.bf16.mxu0 %v8272_v36  ;;  %v8333_v29 = vld [vmem:[%s11223_s1 + $0x1448] ss:$16 sps:$4 sm:$0xff]   ;;  %v8341_v36 = vld [vmem:[%s11223_s1 + $0x142c] ss:$16 sps:$4 sm:$0xff]  }
 0x2a9   :  { %5826 = vmatprep.subr.bf16.mxu1 %v8269_v45 }
 0x2ab   :  { %5860 = vmatpush1.bf16.msra.mxu0 %v8270_v32 }
 0x2ac   :  { %5827 = vmatpush2.bf16.msra.mxu1 %v8267_v37  ;;  %5861 = vmatprep.subr.bf16.mxu0 %v8278_v35  ;;  %v8342_v35 = vld [vmem:[%s11223_s1 + $0x16a8] ss:$16 sps:$4 sm:$0xff]  }
 0x2ad   :  { %5828 = vmatprep.subr.bf16.mxu1 %v8275_v40  ;;  %v8339_v40 = vld [vmem:[%s11223_s1 + $0x1428] ss:$16 sps:$4 sm:$0xff]  }
 0x2af   :  { %5862 = vmatpush1.bf16.msra.mxu0 %v8276_v41  ;;  %v8347_v41 = vld [vmem:[%s11223_s1 + $0x140c] ss:$16 sps:$4 sm:$0xff]  }
 0x2b0   :  { %5829 = vmatpush2.bf16.msra.mxu1 %v8273_v47  ;;  %5863 = vmatprep.subr.bf16.mxu0 %v8284_v53  ;;  %v8348_v53 = vld [vmem:[%s11223_s1 + $0x1688] ss:$16 sps:$4 sm:$0xff]  }
 0x2b1   :  { %5830 = vmatprep.subr.bf16.mxu1 %v8281_v15  ;;  %v8345_v15 = vld [vmem:[%s11223_s1 + $0x1408] ss:$16 sps:$4 sm:$0xff]  }
 0x2b3   :  { %5864 = vmatpush2.bf16.msra.mxu0 %v8282_v13  ;;  %v8356_v13 = vld [vmem:[%s11223_s1 + $0x166c] ss:$16 sps:$4 sm:$0xff]  }
 0x2b4   :  { %5831 = vmatpush2.bf16.msra.mxu1 %v8279_v48  ;;  %5865 = vmatprep.subr.bf16.mxu0 %v8290_v46  ;;  %v8353_v48 = vld [vmem:[%s11223_s1 + $0x15ec] ss:$16 sps:$4 sm:$0xff]   ;;  %v8354_v46 = vld [vmem:[%s11223_s1 + $0x1668] ss:$16 sps:$4 sm:$0xff]  }
 0x2b5   :  { %5832 = vmatprep.subr.bf16.mxu1 %v8287_v59  ;;  %v8351_v59 = vld [vmem:[%s11223_s1 + $0x15e8] ss:$16 sps:$4 sm:$0xff]  }
 0x2b7   :  { %5866 = vmatpush2.bf16.msra.mxu0 %v8288_v51  ;;  %v8362_v51 = vld [vmem:[%s11223_s1 + $0x164c] ss:$16 sps:$4 sm:$0xff]  }
 0x2b8   :  { %5833 = vmatpush2.bf16.msra.mxu1 %v8285_v22  ;;  %5867 = vmatprep.subr.bf16.mxu0 %v8296_v55  ;;  %v8359_v22 = vld [vmem:[%s11223_s1 + $0x15cc] ss:$16 sps:$4 sm:$0xff]   ;;  %v8360_v55 = vld [vmem:[%s11223_s1 + $0x1648] ss:$16 sps:$4 sm:$0xff]  }
 0x2b9   :  { %5834 = vmatprep.subr.bf16.mxu1 %v8293_v56  ;;  %v8357_v56 = vld [vmem:[%s11223_s1 + $0x15c8] ss:$16 sps:$4 sm:$0xff]  }
 0x2bb   :  { %5868 = vmatpush2.bf16.msra.mxu0 %v8294_v61  ;;  %v8368_v61 = vld [vmem:[%s11223_s1 + $0x162c] ss:$16 sps:$4 sm:$0xff]  }
 0x2bc   :  { %5835 = vmatpush2.bf16.msra.mxu1 %v8291_v58  ;;  %5869 = vmatprep.subr.bf16.mxu0 %v8302_v57  ;;  %v8365_v58 = vld [vmem:[%s11223_s1 + $0x15ac] ss:$16 sps:$4 sm:$0xff]   ;;  %v8366_v57 = vld [vmem:[%s11223_s1 + $0x1628] ss:$16 sps:$4 sm:$0xff]  }
 0x2bd   :  { %5836 = vmatprep.subr.bf16.mxu1 %v8299_v42  ;;  %v8363_v42 = vld [vmem:[%s11223_s1 + $0x15a8] ss:$16 sps:$4 sm:$0xff]  }
 0x2bf   :  { %5870 = vmatpush2.bf16.msra.mxu0 %v8300_v17  ;;  %v8374_v17 = vld [vmem:[%s11223_s1 + $0x160c] ss:$16 sps:$4 sm:$0xff]  }
 0x2c0   :  { %5837 = vmatpush2.bf16.msra.mxu1 %v8297_v62  ;;  %5871 = vmatprep.subr.bf16.mxu0 %v8305_v6  ;;  %v8371_v62 = vld [vmem:[%s11223_s1 + $0x158c] ss:$16 sps:$4 sm:$0xff]   ;;  %v8369_v6 = vld [vmem:[%s11223_s1 + $0x1588] ss:$16 sps:$4 sm:$0xff]  }
 0x2c1   :  { %5888 = vmatprep.subr.bf16.mxu1 %v8308_v60  ;;  %v8372_v60 = vld [vmem:[%s11223_s1 + $0x1608] ss:$16 sps:$4 sm:$0xff]  }
 0x2c3   :  { %v5594_v1 = vpop.f32.mrf.mxu1  ;;  %5839 = vmatmul.mubr.bf16.vlgmr.msra.gmra.mxu1 %v9610_v12  ;;  %5872 = vmatpush2.bf16.msra.mxu0 %v8303_v63  ;;  %v8320_v12 = vld [vmem:[%s11223_s1 + $0x14ac] ss:$16 sps:$4 sm:$0xff]  }
 0x2c4   :  { %v5595_v30 = vadd.f32 %v5594_v1, %v10730_v50  ;;  %5889 = vmatpush1.bf16.msra.mxu1 %v8306_v2  ;;  %5873 = vmatprep.subr.bf16.mxu0 %v8311_v43  ;;  %v8377_v63 = vld [vmem:[%s11223_s1 + $0x156c] ss:$16 sps:$4 sm:$0xff]   ;;  %v8375_v43 = vld [vmem:[%s11223_s1 + $0x1568] ss:$16 sps:$4 sm:$0xff]  }
 0x2c5   :  { %v5596_v39 = vpop.f32.mrf.mxu1  ;;  %5890 = vmatprep.subr.bf16.mxu1 %v8314_v3  ;;  %5920 = vmatprep.mubr.bf16.mxu1 %v9631_v24  ;;  %v8326_v24 = vld [vmem:[%s11223_s1 + $0x148c] ss:$16 sps:$4 sm:$0xff]   ;;  %v8378_v3 = vld [vmem:[%s11223_s1 + $0x17e8] ss:$16 sps:$4 sm:$0xff]  }
 0x2c6   :  { %v5597_v50 = vadd.f32 %v5596_v39, %v10744_v11  ;;  %v8323_v11 = vld [vmem:[%s11223_s1 + $0x130c] ss:$16 sps:$4 sm:$0xff]  }
 0x2c7   :  { %v5598_v49 = vpop.f32.mrf.mxu1  ;;  %5874 = vmatpush2.bf16.msra.mxu0 %v8309_v7  ;;  %v8380_v2 = vld [vmem:[%s11223_s1 + $0x17ec] ss:$16 sps:$4 sm:$0xff]   ;;  %v8381_v7 = vld [vmem:[%s11223_s1 + $0x1548] ss:$16 sps:$4 sm:$0xff]  }
 0x2c8   :  { %5891 = vmatpush1.bf16.msra.mxu1 %v8312_v8  ;;  %5875 = vmatprep.subr.bf16.mxu0 %v8317_v10  ;;  %v8383_v1 = vld [vmem:[%s11223_s1 + $0x154c] ss:$16 sps:$4 sm:$0xff]   ;;  %v8384_v8 = vld [vmem:[%s11223_s1 + $0x17c8] ss:$16 sps:$4 sm:$0xff]  }
 0x2c9   :  { %v5599_v18 = vpop.f32.mrf.mxu1  ;;  %5892 = vmatprep.subr.bf16.mxu1 %v8320_v12  ;;  %v8389_v39 = vld [vmem:[%s11223_s1 + $0x152c] ss:$16 sps:$4 sm:$0xff]   ;;  %v8387_v12 = vld [vmem:[%s11223_s1 + $0x1528] ss:$16 sps:$4 sm:$0xff]  }
 0x2ca   :  { %v8392_v10 = vld [vmem:[%s11223_s1 + $0x17ac] ss:$16 sps:$4 sm:$0xff]   ;;  %v8396_v18 = vld [vmem:[%s11223_s1 + $0x1788] ss:$16 sps:$4 sm:$0xff]  }
 0x2cb   :  { %5876 = vmatpush2.bf16.msra.mxu0 %v8315_v16  ;;  %v8395_v49 = vld [vmem:[%s11223_s1 + $0x150c] ss:$16 sps:$4 sm:$0xff]  }
 0x2cc   :  { %5893 = vmatpush1.bf16.msra.mxu1 %v8318_v19  ;;  %5877 = vmatprep.subr.bf16.mxu0 %v8323_v11  ;;  %v8398_v16 = vld [vmem:[%s11223_s1 + $0x178c] ss:$16 sps:$4 sm:$0xff]   ;;  %v8393_v19 = vld [vmem:[%s11223_s1 + $0x1508] ss:$16 sps:$4 sm:$0xff]  }
 0x2cd   :  { %5894 = vmatprep.subr.bf16.mxu1 %v8326_v24  ;;  %v8401_v11 = vld [vmem:[%s11223_s1 + $0x176c] ss:$16 sps:$4 sm:$0xff]  }
 0x2ce   :  { %v8404_v24 = vld [vmem:[%s11223_s1 + $0x186c] ss:$16 sps:$4 sm:$0xff]  }
 0x2cf   :  { %5878 = vmatpush2.bf16.msra.mxu0 %v8321_v4  ;;  %v8399_v4 = vld [vmem:[%s11223_s1 + $0x1768] ss:$16 sps:$4 sm:$0xff]  }
 0x2d0   :  { %5895 = vmatpush1.bf16.msra.mxu1 %v8324_v31  ;;  %5929 = vmatprep.subr.bf16.mxu0 %v8332_v38  ;;  %v8402_v31 = vld [vmem:[%s11223_s1 + $0x1868] ss:$16 sps:$4 sm:$0xff]   ;;  %v8410_v38 = vld [vmem:[%s11223_s1 + $0x184c] ss:$16 sps:$4 sm:$0xff]  }
 0x2d1   :  { %5896 = vmatprep.subr.bf16.mxu1 %v8329_v54  ;;  %v8407_v54 = vld [vmem:[%s11223_s1 + $0x174c] ss:$16 sps:$4 sm:$0xff]  }
 0x2d2   :  { %v5635_v0 = vpop.f32.mrf.mxu0  ;;  %5880 = vmatmul.mubr.bf16.vlgmr.msra.gmra.mxu0 %v9635_v25  ;;  %v8344_v25 = vld [vmem:[%s11223_s1 + $0x16ac] ss:$16 sps:$4 sm:$0xff]  }
 0x2d3   :  { %v10932_v28 = vadd.f32 %v5635_v0, %v5595_v30  ;;  %5930 = vmatpush1.bf16.msra.mxu0 %v8330_v20  ;;  %5961 = vmatprep.mubr.bf16.mxu0 %v9651_v33  ;;  %v8350_v33 = vld [vmem:[%s11223_s1 + $0x168c] ss:$16 sps:$4 sm:$0xff]  }
 0x2d4   :  { %5897 = vmatpush1.bf16.msra.mxu1 %v8327_v5  ;;  %v5637_v45 = vpop.f32.mrf.mxu0  ;;  %5931 = vmatprep.subr.bf16.mxu0 %v8338_v21  ;;  %v8386_v30 = vld [vmem:[%s11223_s1 + $0x17cc] ss:$16 sps:$4 sm:$0xff]   ;;  %v8408_v21 = vld [vmem:[%s11223_s1 + $0x1848] ss:$16 sps:$4 sm:$0xff]  }
 0x2d5   :  { %5898 = vmatprep.subr.bf16.mxu1 %v8335_v23  ;;  %v10946_v37 = vadd.f32 %v5637_v45, %v5597_v50  ;;  %v8390_v50 = vld [vmem:[%s11223_s1 + $0x17a8] ss:$16 sps:$4 sm:$0xff]  }
 0x2d6   :  { %v5639_v32 = vpop.f32.mrf.mxu0  ;;  %v8405_v23 = vld [vmem:[%s11223_s1 + $0x1748] ss:$16 sps:$4 sm:$0xff]  }
 0x2d7   :  { %5932 = vmatpush1.bf16.msra.mxu0 %v8336_v26  ;;  %v8411_v45 = vld [vmem:[%s11223_s1 + $0x1728] ss:$16 sps:$4 sm:$0xff]  }
 0x2d8   :  { %5899 = vmatpush1.bf16.msra.mxu1 %v8333_v29  ;;  %v5640_v47 = vpop.f32.mrf.mxu0  ;;  %5933 = vmatprep.subr.bf16.mxu0 %v8344_v25  ;;  %v8413_v29 = vld [vmem:[%s11223_s1 + $0x172c] ss:$16 sps:$4 sm:$0xff]   ;;  %v8417_v32 = vld [vmem:[%s11223_s1 + $0x1708] ss:$16 sps:$4 sm:$0xff]  }
 0x2d9   :  { %5900 = vmatprep.subr.bf16.mxu1 %v8341_v36  ;;  %v8414_v36 = vld [vmem:[%s11223_s1 + $0x1828] ss:$16 sps:$4 sm:$0xff]   ;;  %v6012_v47 = vmax.f32 %v10539_v44, 0.0  ;;  %v8426_v44 = vld [vmem:[%s11225_s3 + $0x30] sm:$0xff]  }
 0x2db   :  { %5934 = vmatpush1.bf16.msra.mxu0 %v8342_v35  ;;  %v8423_v35 = vld [vmem:[%s11225_s3 + $0x78] sm:$0xff]  }
 0x2dc   :  { %5901 = vmatpush1.bf16.msra.mxu1 %v8339_v40  ;;  %5935 = vmatprep.subr.bf16.mxu0 %v8350_v33  ;;  %v8420_v40 = vld [vmem:[%s11223_s1 + $0x1808] ss:$16 sps:$4 sm:$0xff]   ;;  %v8425_v33 = vld [vmem:[%s11225_s3 + $0x70] sm:$0xff]  }
 0x2dd   :  { %5902 = vmatprep.subr.bf16.mxu1 %v8347_v41  ;;  %v8424_v41 = vld [vmem:[%s11225_s3 + $0x38] sm:$0xff]  }
 0x2df   :  { %5936 = vmatpush1.bf16.msra.mxu0 %v8348_v53 }
 0x2e0   :  { %5903 = vmatpush1.bf16.msra.mxu1 %v8345_v15  ;;  %5937 = vmatprep.subr.bf16.mxu0 %v8356_v13  ;;  %v6016_v15 = vpack.c.bf16 %v6012_v47, %v6012_v47 }
 0x2e1   :  { %5904 = vmatprep.subr.bf16.mxu1 %v8353_v48 }
 0x2e3   :  { %5938 = vmatpush1.bf16.msra.mxu0 %v8354_v46 }
 0x2e4   :  { %5905 = vmatpush2.bf16.msra.mxu1 %v8351_v59  ;;  %5939 = vmatprep.subr.bf16.mxu0 %v8362_v51  ;;  %v8427_v59 = vld [vmem:[%s11225_s3 + $0x68] sm:$0xff]   ;;  %v8429_v51 = vld [vmem:[%s11225_s3 + $0x60] sm:$0xff]  }
 0x2e5   :  { %5906 = vmatprep.subr.bf16.mxu1 %v8359_v22 }
 0x2e7   :  { %5940 = vmatpush1.bf16.msra.mxu0 %v8360_v55  ;;  %v8440_v55 = vld [vmem:[%s11225_s3 + $0xb8] sm:$0xff]  }
 0x2e8   :  { %5907 = vmatpush2.bf16.msra.mxu1 %v8357_v56  ;;  %5941 = vmatprep.subr.bf16.mxu0 %v8368_v61  ;;  %v8439_v56 = vld [vmem:[%s11225_s3 + $0xf8] sm:$0xff]  }
 0x2e9   :  { %5908 = vmatprep.subr.bf16.mxu1 %v8365_v58  ;;  %v8430_v58 = vld [vmem:[%s11225_s3 + $0x20] sm:$0xff]   ;;  %v8431_v61 = vld [vmem:[%s11225_s3 + $0x58] sm:$0xff]  }
 0x2eb   :  { %5942 = vmatpush1.bf16.msra.mxu0 %v8366_v57  ;;  %v8433_v57 = vld [vmem:[%s11225_s3 + $0x50] sm:$0xff]  }
 0x2ec   :  { %5909 = vmatpush2.bf16.msra.mxu1 %v8363_v42  ;;  %5943 = vmatprep.subr.bf16.mxu0 %v8374_v17  ;;  %v8432_v42 = vld [vmem:[%s11225_s3 + $0x18] sm:$0xff]   ;;  %v8435_v17 = vld [vmem:[%s11225_s3 + $0x48] sm:$0xff]  }
 0x2ed   :  { %5910 = vmatprep.subr.bf16.mxu1 %v8371_v62  ;;  %v8434_v62 = vld [vmem:[%s11225_s3 + $0x10] sm:$0xff]  }
 0x2ef   :  { %5944 = vmatpush1.bf16.msra.mxu0 %v8372_v60  ;;  %v8437_v60 = vld [vmem:[%s11225_s3 + $0x40] sm:$0xff]  }
 0x2f0   :  { %5911 = vmatpush2.bf16.msra.mxu1 %v8369_v6  ;;  %5945 = vmatprep.subr.bf16.mxu0 %v8380_v2  ;;  %v8436_v6 = vld [vmem:[%s11225_s3 + $0x8] sm:$0xff]   ;;  %v6011_v2 = vmax.f32 %v10525_v34, 0.0 }
 0x2f1   :  { %5912 = vmatprep.subr.bf16.mxu1 %v8377_v63  ;;  %v8438_v63 = vld [vmem:[%s11225_s3] sm:$0xff]   ;;  %v8443_v34 = vld [vmem:[%s11225_s3 + $0xe8] sm:$0xff]  }
 0x2f3   :  { %5946 = vmatpush2.bf16.msra.mxu0 %v8378_v3  ;;  %v8441_v3 = vld [vmem:[%s11225_s3 + $0xf0] sm:$0xff]  }
 0x2f4   :  { %5913 = vmatpush2.bf16.msra.mxu1 %v8375_v43  ;;  %5947 = vmatprep.subr.bf16.mxu0 %v8386_v30  ;;  %v6015_v43 = vpack.c.bf16 %v6011_v2, %v6011_v2 }
 0x2f5   :  { %5914 = vmatprep.subr.bf16.mxu1 %v8383_v1  ;;  %v8442_v1 = vld [vmem:[%s11225_s3 + $0xb0] sm:$0xff]  }
 0x2f7   :  { %5948 = vmatpush2.bf16.msra.mxu0 %v8384_v8 }
 0x2f8   :  { %5915 = vmatpush2.bf16.msra.mxu1 %v8381_v7  ;;  %5949 = vmatprep.subr.bf16.mxu0 %v8392_v10  ;;  %v8444_v10 = vld [vmem:[%s11225_s3 + $0xa8] sm:$0xff]  }
 0x2f9   :  { %5916 = vmatprep.subr.bf16.mxu1 %v8389_v39 }
 0x2fb   :  { %5950 = vmatpush2.bf16.msra.mxu0 %v8390_v50 }
 0x2fc   :  { %5917 = vmatpush2.bf16.msra.mxu1 %v8387_v12  ;;  %5951 = vmatprep.subr.bf16.mxu0 %v8398_v16  ;;  %v8446_v16 = vld [vmem:[%s11225_s3 + $0xa0] sm:$0xff]  }
 0x2fd   :  { %5918 = vmatprep.subr.bf16.mxu1 %v8395_v49  ;;  %v8445_v49 = vld [vmem:[%s11225_s3 + $0xe0] sm:$0xff]  }
 0x2ff   :  { %5952 = vmatpush2.bf16.msra.mxu0 %v8396_v18  ;;  %v8448_v18 = vld [vmem:[%s11225_s3 + $0x98] sm:$0xff]  }
 0x300   :  { %5919 = vmatpush2.bf16.msra.mxu1 %v8393_v19  ;;  %5953 = vmatprep.subr.bf16.mxu0 %v8401_v11  ;;  %v8447_v19 = vld [vmem:[%s11225_s3 + $0xd8] sm:$0xff]   ;;  %v8449_v11 = vld [vmem:[%s11225_s3 + $0xd0] sm:$0xff]  }
 0x301   :  { %5978 = vmatprep.subr.bf16.mxu1 %v8404_v24  ;;  %v8450_v24 = vld [vmem:[%s11225_s3 + $0x90] sm:$0xff]  }
 0x303   :  { %v5676_v5 = vpop.f32.mrf.mxu1  ;;  %5921 = vmatmul.mubr.bf16.vlgmr.msra.gmra.mxu1 %v9827_v14  ;;  %5954 = vmatpush2.bf16.msra.mxu0 %v8399_v4  ;;  %v8416_v14 = vld [vmem:[%s11223_s1 + $0x182c] ss:$16 sps:$4 sm:$0xff]  }
 0x304   :  { %v5677_v20 = vadd.f32 %v5676_v5, %v10932_v28  ;;  %5979 = vmatpush1.bf16.msra.mxu1 %v8402_v31  ;;  %5955 = vmatprep.subr.bf16.mxu0 %v8407_v54 }
 0x305   :  { %v5678_v0 = vpop.f32.mrf.mxu1  ;;  %5980 = vmatprep.subr.bf16.mxu1 %v8410_v38  ;;  %6002 = vmatprep.mubr.bf16.mxu1 %v8479_v52  ;;  %v8422_v52 = vld [vmem:[%s11223_s1 + $0x180c] ss:$16 sps:$4 sm:$0xff]  }
 0x306   :  { %v5679_v28 = vadd.f32 %v5678_v0, %v10946_v37  ;;  %v8419_v37 = vld [vmem:[%s11223_s1 + $0x170c] ss:$16 sps:$4 sm:$0xff]   ;;  %v8453_v0 = vld [vmem:[%s11225_s3 + $0xc0] sm:$0xff]  }
 0x307   :  { %v5680_v26 = vpop.f32.mrf.mxu1  ;;  %5956 = vmatpush2.bf16.msra.mxu0 %v8405_v23  ;;  %v8451_v38 = vld [vmem:[%s11225_s3 + $0xc8] sm:$0xff]  }
 0x308   :  { %5981 = vmatpush1.bf16.msra.mxu1 %v8408_v21  ;;  %5957 = vmatprep.subr.bf16.mxu0 %v8413_v29  ;;  %v8454_v29 = vld [vmem:[%s11225_s3 + $0x80] sm:$0xff]  }
 0x309   :  { %v5681_v25 = vpop.f32.mrf.mxu1  ;;  %5982 = vmatprep.subr.bf16.mxu1 %v8416_v14 }
 0x30b   :  { %5958 = vmatpush2.bf16.msra.mxu0 %v8411_v45 }
 0x30c   :  { %5983 = vmatpush1.bf16.msra.mxu1 %v8414_v36  ;;  %5959 = vmatprep.subr.bf16.mxu0 %v8419_v37 }
 0x30d   :  { %5984 = vmatprep.subr.bf16.mxu1 %v8422_v52 }
 0x30f   :  { %5960 = vmatpush2.bf16.msra.mxu0 %v8417_v32 }
 0x310   :  { %5985 = vmatpush1.bf16.msra.mxu1 %v8420_v40  ;;  %7197 = vmatprep.subr.bf16.mxu0 %v8423_v35 }
 0x311   :  { %7219 = vmatprep.subr.bf16.mxu1 %v8439_v56 }
 0x312   :  { %v5717_v53 = vpop.f32.mrf.mxu0  ;;  %5962 = vmatmul.mubr.bf16.vlgmr.msra.gmra.mxu0 %v9849_v27  ;;  %v8428_v27 = vld [vmem:[%s11225_s3 + $0x28] sm:$0xff]  }
 0x313   :  { %7163 = vmatmul.mubr.msk.bf16.vlgmr.msra.gmra.mxu1 %vm4941_vm0, %v9913_v9  ;;  %v5718_v48 = vadd.f32 %v5717_v53, %v5677_v20  ;;  %7198 = vmatpush3.bf16.msra.mxu0 %v8424_v41  ;;  %v8452_v20 = vld [vmem:[%s11225_s3 + $0x88] sm:$0xff]  }
 0x314   :  { %6314 = vmatprep.mubr.bf16.mxu0 %v6016_v15  ;;  %v5719_v13 = vpop.f32.mrf.mxu0  ;;  %7199 = vmatprep.subr.bf16.mxu0 %v8425_v33 }
 0x315   :  { %v5720_v46 = vadd.f32 %v5719_v13, %v5679_v28  ;;  %7220 = vmatpush3.bf16.msra.mxu1 %v8440_v55 }
 0x316   :  { %v5721_v22 = vpop.f32.mrf.mxu0  ;;  %7221 = vmatprep.subr.bf16.mxu1 %v8441_v3 }
 0x317   :  { %7200 = vmatpush3.bf16.msra.mxu0 %v8426_v44 }
 0x318   :  { %v5722_v9 = vpop.f32.mrf.mxu0  ;;  %7201 = vmatprep.subr.bf16.mxu0 %v8427_v59 }
 0x319   :  { %7222 = vmatpush3.bf16.msra.mxu1 %v8442_v1  ;;  %v7164_v1 = vld [vmem:[%s11226_s4] ss:$0 sm:$0xff] }
 0x31a   :  { %7223 = vmatprep.subr.bf16.mxu1 %v8443_v34 }
 0x31b   :  { %7202 = vmatpush3.bf16.msra.mxu0 %v8428_v27 }
 0x31c   :  { %7203 = vmatprep.subr.bf16.mxu0 %v8429_v51 }
 0x31d   :  { %7224 = vmatpush3.bf16.msra.mxu1 %v8444_v10 }
 0x31e   :  { %7225 = vmatprep.subr.bf16.mxu1 %v8445_v49 }
 0x31f   :  { %7204 = vmatpush3.bf16.msra.mxu0 %v8430_v58 }
 0x320   :  { %7205 = vmatprep.subr.bf16.mxu0 %v8431_v61 }
 0x321   :  { %7226 = vmatpush3.bf16.msra.mxu1 %v8446_v16 }
 0x322   :  { %7227 = vmatprep.subr.bf16.mxu1 %v8447_v19 }
 0x323   :  { %7206 = vmatpush3.bf16.msra.mxu0 %v8432_v42 }
 0x324   :  { %7207 = vmatprep.subr.bf16.mxu0 %v8433_v57 }
 0x325   :  { %7228 = vmatpush3.bf16.msra.mxu1 %v8448_v18 }
 0x326   :  { %7229 = vmatprep.subr.bf16.mxu1 %v8449_v11 }
 0x327   :  { %7208 = vmatpush3.bf16.msra.mxu0 %v8434_v62 }
 0x328   :  { %7209 = vmatprep.subr.bf16.mxu0 %v8435_v17 }
 0x329   :  { %7230 = vmatpush3.bf16.msra.mxu1 %v8450_v24 }
 0x32a   :  { %7231 = vmatprep.subr.bf16.mxu1 %v8451_v38 }
 0x32b   :  { %7210 = vmatpush3.bf16.msra.mxu0 %v8436_v6 }
 0x32c   :  { %7211 = vmatprep.subr.bf16.mxu0 %v8437_v60 }
 0x32d   :  { %7232 = vmatpush3.bf16.msra.mxu1 %v8452_v20 }
 0x32e   :  { %7233 = vmatprep.subr.bf16.mxu1 %v8453_v0 }
 0x32f   :  { %7212 = vmatpush3.bf16.msra.mxu0 %v8438_v63 }
 0x331   :  { %7234 = vmatpush3.bf16.msra.mxu1 %v8454_v29 }
 0x332   :  { %6315 = vmatmul.mubr.bf16.vlgmr.msra.gmra.mxu0 %v6015_v43 }
 0x343   :  { %v5758_v30 = vpop.f32.mrf.mxu1 }
 0x344   :  { %v5759_v7 = vadd.f32 %v5758_v30, %v5718_v48 }
 0x345   :  { %v5760_v8 = vpop.f32.mrf.mxu1 }
 0x346   :  { %v5761_v39 = vadd.f32 %v5760_v8, %v5720_v46 }
 0x347   :  { %v5762_v12 = vpop.f32.mrf.mxu1 }
 0x349   :  { %v5763_v50 = vpop.f32.mrf.mxu1 }
 0x352   :  { %v5799_v4 = vpop.f32.mrf.mxu0 }
 0x353   :  { %v5800_v31 = vadd.f32 %v5799_v4, %v5759_v7 }
 0x354   :  { %v5801_v54 = vpop.f32.mrf.mxu0 }
 0x355   :  { %v5802_v5 = vadd.f32 %v5801_v54, %v5761_v39 }
 0x356   :  { %v5803_v23 = vpop.f32.mrf.mxu0 }
 0x358   :  { %v5804_v21 = vpop.f32.mrf.mxu0 }
 0x383   :  { %v5840_v14 = vpop.f32.mrf.mxu1 }
 0x384   :  { %v5841_v28 = vadd.f32 %v5840_v14, %v5800_v31 }
 0x385   :  { %v5842_v26 = vpop.f32.mrf.mxu1 }
 0x386   :  { %v5843_v45 = vadd.f32 %v5842_v26, %v5802_v5 }
 0x387   :  { %v5844_v36 = vpop.f32.mrf.mxu1 }
 0x389   :  { %v5845_v25 = vpop.f32.mrf.mxu1 }
 0x392   :  { %v5881_v37 = vpop.f32.mrf.mxu0 }
 0x393   :  { %v5882_v15 = vadd.f32 %v5881_v37, %v5841_v28 }
 0x394   :  { %v5883_v52 = vpop.f32.mrf.mxu0 }
 0x395   :  { %v5884_v53 = vadd.f32 %v5883_v52, %v5843_v45 }
 0x396   :  { %v5885_v32 = vpop.f32.mrf.mxu0 }
 0x398   :  { %v5886_v40 = vpop.f32.mrf.mxu0 }
 0x3c3   :  { %v5922_v35 = vpop.f32.mrf.mxu1 }
 0x3c4   :  { %v5923_v48 = vadd.f32 %v5922_v35, %v5882_v15 }
 0x3c5   :  { %v5924_v47 = vpop.f32.mrf.mxu1 }
 0x3c6   :  { %v5925_v59 = vadd.f32 %v5924_v47, %v5884_v53 }
 0x3c7   :  { %v5926_v41 = vpop.f32.mrf.mxu1 }
 0x3c9   :  { %v5927_v33 = vpop.f32.mrf.mxu1 }
 0x3d2   :  { %v5963_v44 = vpop.f32.mrf.mxu0 }
 0x3d3   :  { %v6004_v13 = vpop.f32.mrf.mxu1  ;;  %v5964_v46 = vadd.f32 %v5963_v44, %v5923_v48 }
 0x3d4   :  { %v5965_v22 = vpop.f32.mrf.mxu0 }
 0x3d5   :  { %v6006_v27 = vpop.f32.mrf.mxu1  ;;  %v6005_v9 = vadd.f32 %v6004_v13, %v5964_v46  ;;  %v5966_v51 = vadd.f32 %v5965_v22, %v5925_v59 }
 0x3d6   :  { %v5967_v56 = vpop.f32.mrf.mxu0 }
 0x3d7   :  { %v6008_v55 = vpop.f32.mrf.mxu1  ;;  %v6007_v58 = vadd.f32 %v6006_v27, %v5966_v51  ;;  %v6013_v61 = vmax.f32 %v6005_v9, 0.0 }
 0x3d8   :  { %v5968_v42 = vpop.f32.mrf.mxu0 }
 0x3d9   :  { %v6009_v57 = vpop.f32.mrf.mxu1  ;;  %v6014_v62 = vmax.f32 %v6007_v58, 0.0  ;;  %v6017_v6 = vpack.c.bf16 %v6013_v61, %v6013_v61 }
 0x3db   :  { %v6018_v17 = vpack.c.bf16 %v6014_v62, %v6014_v62 }
 0x3dd   :  { %6354 = vmatprep.mubr.bf16.mxu1 %v6018_v17 }
 0x3de   :  { %6355 = vmatmul.mubr.bf16.vlgmr.msra.gmra.mxu1 %v6017_v6 }
 0x3f2   :  { %v7213_v60 = vpop.f32.mrf.mxu0 }
 0x3f4   :  { %v7214_v63 = vpop.f32.mrf.mxu0 }
 0x3f5   :  { %v7215_v2 = vadd.f32 %v7214_v63, %v7213_v60 }
 0x3f6   :  { %v7216_v43 = vpop.f32.mrf.mxu0 }
 0x3f7   :  { %v6317_v8 = vadd.f32 %v7215_v2, %v7164_v1 }
 0x3f8   :  { %v7217_v3 = vpop.f32.mrf.mxu0 }
 0x49e   :  { %v7235_v30 = vpop.f32.mrf.mxu1 }
 0x4a0   :  { %v7236_v7 = vpop.f32.mrf.mxu1 }
 0x4a1   :  { %v7237_v34 = vadd.f32 %v7236_v7, %v7235_v30 }
 0x4a2   :  { %v7238_v39 = vpop.f32.mrf.mxu1 }
 0x4a3   :  { %v6357_v10 = vadd.f32 %v7237_v34, %v6317_v8 }
 0x4a4   :  { %v7239_v12 = vpop.f32.mrf.mxu1 }
 0x4a5   :  { %6362 = vst [vmem:[#allocation2] sm:$0x3] %v6357_v10 }
 0x4a6   :  { %8467 = shalt.err (!%p8464_p4)
}
 0x4a7   :  { %6372 = dma.vmem_to_hbm [thread:$0]  %s6370_s17, 32, %s11227_s5, [#allocation3]  }
 0x4a8   :  { %8476 = dma.done.wait [#allocation3], 32  }
 0x4a9   :  { %8477 = vsyncadd [#allocation3], 4294967264 }
 0x4aa   :  { %6376 = vsyncpa [#allocation3], 1 }

</bundles_post_ra>
